<compile_context>
chip_gen: v7x
topology: tpu7x:2x2x1
jax: 0.10.0
libtpu: 0.0.40
codegen_flags: <defaults>
</compile_context>

<pallas_src>
import functools
import math

import jax
import jax.numpy as jnp
from jax.experimental import pallas as pl
from jax.experimental.pallas import tpu as pltpu

LN_EPS = 1e-5


# ----------------------------------------------------------------------------
# Small helpers
# ----------------------------------------------------------------------------
def _pad_cols(a, target):
    pad = target - a.shape[-1]
    a = a.astype(jnp.float32)
    if pad <= 0:
        return a
    return jnp.pad(a, ((0, 0), (0, pad)))


def _layernorm(v, w, b):
    mu = jnp.mean(v, axis=-1, keepdims=True)
    var = jnp.mean(jnp.square(v - mu), axis=-1, keepdims=True)
    return (v - mu) * jax.lax.rsqrt(var + LN_EPS) * w + b


def _gelu(x, exact):
    if exact:
        # PyTorch nn.GELU() default: exact erf-based GELU.
        return 0.5 * x * (1.0 + jax.lax.erf(x * (1.0 / math.sqrt(2.0))))
    # tanh approximation fallback (~1e-3 deviation) if erf does not lower on this build.
    c = math.sqrt(2.0 / math.pi)
    return 0.5 * x * (1.0 + jnp.tanh(c * (x + 0.044715 * x * x * x)))


@functools.lru_cache(maxsize=1)
def _erf_supported():
    """Probe (lazily, at call time — not only under __main__) whether lax.erf lowers."""
    try:
        def k(x_ref, o_ref):
            o_ref[...] = jax.lax.erf(x_ref[...])

        r = pl.pallas_call(
            k, out_shape=jax.ShapeDtypeStruct((8, 128), jnp.float32)
        )(jnp.ones((8, 128), jnp.float32))
        jax.block_until_ready(r)
        return True
    except Exception:
        return False


# ----------------------------------------------------------------------------
# Conv path: im2col (plain-JAX glue) + Pallas matmul with fused bias + ReLU.
# Output width is zero-padded to 128 so stores are lane-dense (sliced in wrapper).
# ----------------------------------------------------------------------------
def _mm_bias_relu_kernel(x_ref, w_ref, b_ref, o_ref):
    y = jnp.dot(x_ref[...], w_ref[...], preferred_element_type=jnp.float32)
    o_ref[...] = jnp.maximum(y + b_ref[...], 0.0)


def _pick_tile_m(m, target=4096):
    """Largest divisor of m that is a multiple of 8 and <= target; prefer >=2 blocks
    so the "parallel" grid axis can use both TensorCores on v7x."""
    if m <= target:
        tm = m
    else:
        tm = m
        for cand in range(target - (target % 8), 7, -8):
            if m % cand == 0:
                tm = cand
                break
    if tm == m and m > 8 and m % 16 == 0:
        tm = m // 2
    return tm


def matmul_bias_relu(x, w_pad, b_pad):
    """x: (M, K) f32; w_pad: (K, Np) pre-transposed, lane-padded; b_pad: (1, Np)."""
    m, k = x.shape
    np_ = w_pad.shape[1]
    tm = _pick_tile_m(m)
    return pl.pallas_call(
        _mm_bias_relu_kernel,
        out_shape=jax.ShapeDtypeStruct((m, np_), jnp.float32),
        grid=(m // tm,),
        in_specs=[
            pl.BlockSpec((tm, k), lambda i: (i, 0)),
            pl.BlockSpec((k, np_), lambda i: (0, 0)),
            pl.BlockSpec((1, np_), lambda i: (0, 0)),
        ],
        out_specs=pl.BlockSpec((tm, np_), lambda i: (i, 0)),
        compiler_params=pltpu.CompilerParams(dimension_semantics=("parallel",)),
    )(x, w_pad, b_pad)


def _im2col(x, kh, kw):
    """x: (N, C, H, W) -> (N*OH*OW, C*kh*kw), columns ordered (c, kh, kw) to match
    PyTorch conv weight.reshape(Cout, Cin*KH*KW)."""
    # TODO(synk): patch extraction is plain-JAX glue; a fully in-kernel shifted-window
    # conv would avoid this patches-matrix HBM round trip.
    n, c, h, w = x.shape
    oh, ow = h - kh + 1, w - kw + 1
    patches = jnp.stack(
        [x[:, :, i:i + oh, j:j + ow] for i in range(kh) for j in range(kw)], axis=2
    )  # (N, C, kh*kw, oh, ow)
    patches = patches.reshape(n, c * kh * kw, oh, ow)
    return patches.transpose(0, 2, 3, 1).reshape(n * oh * ow, c * kh * kw)


def max_pool_2x2(x):
    # TODO(synk): F.max_pool2d(2,2) kept as a tiny plain-JAX reshape+max (not a hot path).
    n, c, h, w = x.shape
    return x.reshape(n, c, h // 2, 2, w // 2, 2).max(axis=(3, 5))


def _conv_relu_pool(x_nchw, wt_pad, b_pad, cout, kh, kw):
    n, _, h, w = x_nchw.shape
    oh, ow = h - kh + 1, w - kw + 1
    patches = _im2col(x_nchw, kh, kw)
    y = matmul_bias_relu(patches, wt_pad, b_pad)           # (N*OH*OW, 128) lane-dense
    y = y[:, :cout]                                        # drop lane padding (wrapper)
    y = y.reshape(n, oh, ow, cout).transpose(0, 3, 1, 2)   # back to NCHW
    return max_pool_2x2(y)


def conv_features(imgs, p):
    """imgs: (N, 1, 28, 28) -> (N, 4*4*50) conv features (DigitConv up to the flatten)."""
    x = _conv_relu_pool(imgs, p["conv1_wt"], p["conv1_b"], 20, 5, 5)   # (N,20,12,12)
    x = _conv_relu_pool(x, p["conv2_wt"], p["conv2_b"], 50, 5, 5)      # (N,50,4,4)
    return x.reshape(x.shape[0], -1)                                   # NCHW flatten == torch .view


# ----------------------------------------------------------------------------
# One fused kernel: fc1(ReLU) -> fc2 -> +pos_emb -> (steps x n_layer) transformer
# blocks -> final LayerNorm -> head (mapping pre-gathered, lane-padded to 128).
# ----------------------------------------------------------------------------
def _fused_kernel(feat_ref, pos_ref,
                  fc1w_ref, fc1b_ref, fc2w_ref, fc2b_ref,
                  ln1w_ref, ln1b_ref, wq_ref, bq_ref, wk_ref, bk_ref,
                  wv_ref, bv_ref, wp_ref, bpj_ref, ln2w_ref, ln2b_ref,
                  w1_ref, b1_ref, w2_ref, b2_ref,
                  lnfw_ref, lnfb_ref, headw_ref,
                  o_ref, xc_ref,
                  *, n_layer, n_head, t_seq, bb, exact_gelu):
    s = pl.program_id(1)
    nh = n_head

    @pl.when(s == 0)
    def _embed():
        # DigitConv fc1 (ReLU) + fc2, then add positional embeddings (dropout = identity).
        feats = feat_ref[...]                                           # (mb, 800)
        h = jnp.dot(feats, fc1w_ref[...], preferred_element_type=jnp.float32)
        h = jnp.maximum(h + fc1b_ref[...], 0.0)
        tok = jnp.dot(h, fc2w_ref[...], preferred_element_type=jnp.float32) + fc2b_ref[...]
        pos = pos_ref[...]                                              # (T, C)
        if bb > 1:
            pos = jnp.concatenate([pos] * bb, axis=0)
        xc_ref[...] = tok + pos

    x = xc_ref[...]                                                     # (mb, C)
    c = x.shape[1]
    hd = c // nh
    scale = 1.0 / math.sqrt(hd)

    for li in range(n_layer):                                           # statically unrolled
        lo = li * nh
        wq_l = wq_ref[pl.ds(lo, nh), :, :]                              # (nh, C, hd)
        wk_l = wk_ref[pl.ds(lo, nh), :, :]
        wv_l = wv_ref[pl.ds(lo, nh), :, :]
        wp_l = wp_ref[pl.ds(lo, nh), :, :]                              # (nh, hd, C)
        bq_l = bq_ref[pl.ds(lo, nh), :, :]                              # (nh, 1, hd)
        bk_l = bk_ref[pl.ds(lo, nh), :, :]
        bv_l = bv_ref[pl.ds(lo, nh), :, :]

        # ---- attention (all heads batched; all-ones mask buffer => non-causal) ----
        h1 = _layernorm(x, ln1w_ref[li], ln1b_ref[li])
        hb = jnp.broadcast_to(h1[None], (nh,) + h1.shape)               # (nh, mb, C)
        q = jnp.einsum('hmc,hcd->hmd', hb, wq_l,
                       preferred_element_type=jnp.float32) + bq_l
        k = jnp.einsum('hmc,hcd->hmd', hb, wk_l,
                       preferred_element_type=jnp.float32) + bk_l
        v = jnp.einsum('hmc,hcd->hmd', hb, wv_l,
                       preferred_element_type=jnp.float32) + bv_l

        parts = []
        for bi in range(bb):                                            # bb == 1 in the demo
            r0, r1 = bi * t_seq, (bi + 1) * t_seq
            qb, kb, vb = q[:, r0:r1, :], k[:, r0:r1, :], v[:, r0:r1, :]  # (nh, T, hd)
            att = jnp.einsum('htd,hsd->hts', qb, kb,
                             preferred_element_type=jnp.float32) * scale
            att = att - jnp.max(att, axis=-1, keepdims=True)
            pr = jnp.exp(att)
            pr = pr * pl.reciprocal(jnp.sum(pr, axis=-1, keepdims=True), approx=True)
            yb = jnp.einsum('hts,hsd->htd', pr, vb,
                            preferred_element_type=jnp.float32)          # (nh, T, hd)
            # head merge fused into output projection: sum_h (y_h @ Wp_h)
            ob = jnp.einsum('htd,hdc->htc', yb, wp_l,
                            preferred_element_type=jnp.float32)          # (nh, T, C)
            parts.append(jnp.sum(ob, axis=0))                            # (T, C)
        att_out = parts[0] if bb == 1 else jnp.concatenate(parts, axis=0)
        x = x + att_out + bpj_ref[li]                                    # residual (+ proj bias)

        # ---- MLP ----
        h2 = _layernorm(x, ln2w_ref[li], ln2b_ref[li])
        m = jnp.dot(h2, w1_ref[li], preferred_element_type=jnp.float32) + b1_ref[li]
        m = _gelu(m, exact_gelu)
        m = jnp.dot(m, w2_ref[li], preferred_element_type=jnp.float32) + b2_ref[li]
        x = x + m                                                        # residual

    xc_ref[...] = x

    @pl.when(s == pl.num_programs(1) - 1)
    def _head():
        xf = _layernorm(x, lnfw_ref[...], lnfb_ref[...])
        o_ref[...] = jnp.dot(xf, headw_ref[...], preferred_element_type=jnp.float32)


def fused_transformer_head(feats, pos, p, *, b, t, n_head, n_layer, steps, exact_gelu):
    m, kf = feats.shape                                    # (b*t, 800)
    c = pos.shape[1]
    out_p = p["head_wt"].shape[1]                          # 128 (lane-dense head output)
    # Split the batch across >=2 "parallel" grid blocks when possible (v7x: 2 TCs).
    b_blocks = 2 if (b >= 2 and b % 2 == 0 and ((b // 2) * t) % 8 == 0) else 1
    bb = b // b_blocks
    mb = bb * t

    def cspec(shape):
        n = len(shape)
        return pl.BlockSpec(shape, lambda i, s, _n=n: (0,) * _n)

    in_specs = [
        pl.BlockSpec((mb, kf), lambda i, s: (i, 0)),       # conv features per batch block
        cspec(pos.shape),
        cspec(p["fc1_wt"].shape), cspec(p["fc1_b"].shape),
        cspec(p["fc2_wt"].shape), cspec(p["fc2_b"].shape),
        cspec(p["ln1_w"].shape), cspec(p["ln1_b"].shape),
        cspec(p["wq"].shape), cspec(p["bq"].shape),
        cspec(p["wk"].shape), cspec(p["bk"].shape),
        cspec(p["wv"].shape), cspec(p["bv"].shape),
        cspec(p["wp"].shape), cspec(p["bp"].shape),
        cspec(p["ln2_w"].shape), cspec(p["ln2_b"].shape),
        cspec(p["w1"].shape), cspec(p["b1"].shape),
        cspec(p["w2"].shape), cspec(p["b2"].shape),
        cspec(p["lnf_w"].shape), cspec(p["lnf_b"].shape),
        cspec(p["head_wt"].shape),
    ]
    kernel = functools.partial(
        _fused_kernel, n_layer=n_layer, n_head=n_head, t_seq=t, bb=bb,
        exact_gelu=exact_gelu)
    return pl.pallas_call(
        kernel,
        out_shape=jax.ShapeDtypeStruct((m, out_p), jnp.float32),
        grid=(b_blocks, steps),
        in_specs=in_specs,
        out_specs=pl.BlockSpec((mb, out_p), lambda i, s: (i, 0)),
        scratch_shapes=[pltpu.VMEM((mb, c), jnp.float32)],
        compiler_params=pltpu.CompilerParams(
            dimension_semantics=("parallel", "arbitrary")),
    )(feats, pos,
      p["fc1_wt"], p["fc1_b"], p["fc2_wt"], p["fc2_b"],
      p["ln1_w"], p["ln1_b"], p["wq"], p["bq"], p["wk"], p["bk"],
      p["wv"], p["bv"], p["wp"], p["bp"], p["ln2_w"], p["ln2_b"],
      p["w1"], p["b1"], p["w2"], p["b2"],
      p["lnf_w"], p["lnf_b"], p["head_wt"])


# ----------------------------------------------------------------------------
# Full GPT forward
# ----------------------------------------------------------------------------
def gpt_forward(idx, packed, *, n_head, n_layer, steps, n_mapped, exact_gelu):
    """idx: (b, t, 28, 28) -> logits (b, t, n_mapped).  targets=None => loss is 0."""
    b, t = idx.shape[0], idx.shape[1]
    imgs = idx.reshape(-1, 28, 28)[:, None, :, :]          # (b*t, 1, 28, 28)
    feats = conv_features(imgs, packed)                    # (b*t, 800)
    pos = packed["pos_emb"][0, :t, :]                      # (t, C); drop() is identity (eval)
    logits = fused_transformer_head(
        feats, pos, packed, b=b, t=t, n_head=n_head, n_layer=n_layer,
        steps=steps, exact_gelu=exact_gelu)                # (b*t, 128)
    return logits[:, :n_mapped].reshape(b, t, n_mapped)


# ----------------------------------------------------------------------------
# Parameters: PyTorch layouts (Linear weight (out,in), bias (out,)), then packed
# into the kernel layouts.
# ----------------------------------------------------------------------------
def init_params(key, n_embd, n_head, n_layer, block_size):
    """Matches GPT._init_weights: Linear N(0,0.02), bias 0, LayerNorm w=1 b=0,
    pos_emb zeros (Conv2d values are arbitrary-but-deterministic here)."""
    keys = jax.random.split(key, 8 * n_layer + 16)
    ki = iter(range(len(keys)))

    def nrm(shape):
        return (0.02 * jax.random.normal(keys[next(ki)], shape)).astype(jnp.float32)

    p = {
        "pos_emb": jnp.zeros((1, block_size, n_embd), jnp.float32),
        # DigitConv
        "conv1_w": nrm((20, 1, 5, 5)), "conv1_b": jnp.zeros((20,), jnp.float32),
        "conv2_w": nrm((50, 20, 5, 5)), "conv2_b": jnp.zeros((50,), jnp.float32),
        "fc1_w": nrm((500, 4 * 4 * 50)), "fc1_b": jnp.zeros((500,), jnp.float32),
        "fc2_w": nrm((n_embd, 500)), "fc2_b": jnp.zeros((n_embd,), jnp.float32),
        # self.LE = Linear(784, 128, bias=False): created but unused in forward().
        "LE_w": nrm((128, 28 ** 2)),
        "lnf_w": jnp.ones((n_embd,), jnp.float32),
        "lnf_b": jnp.zeros((n_embd,), jnp.float32),
        "head_w": nrm((20, n_embd)),                       # Linear(n_embd, 20, bias=False)
    }
    blocks = []
    for _ in range(n_layer):
        blocks.append({
            "ln1_w": jnp.ones((n_embd,), jnp.float32),
            "ln1_b": jnp.zeros((n_embd,), jnp.float32),
            "key_w": nrm((n_embd, n_embd)), "key_b": jnp.zeros((n_embd,), jnp.float32),
            "query_w": nrm((n_embd, n_embd)), "query_b": jnp.zeros((n_embd,), jnp.float32),
            "value_w": nrm((n_embd, n_embd)), "value_b": jnp.zeros((n_embd,), jnp.float32),
            "proj_w": nrm((n_embd, n_embd)), "proj_b": jnp.zeros((n_embd,), jnp.float32),
            "ln2_w": jnp.ones((n_embd,), jnp.float32),
            "ln2_b": jnp.zeros((n_embd,), jnp.float32),
            "mlp_fc_w": nrm((4 * n_embd, n_embd)),
            "mlp_fc_b": jnp.zeros((4 * n_embd,), jnp.float32),
            "mlp_proj_w": nrm((n_embd, 4 * n_embd)),
            "mlp_proj_b": jnp.zeros((n_embd,), jnp.float32),
        })
    p["blocks"] = blocks
    return p


def pack_params(raw, n_head, mapping):
    """Pack PyTorch-layout params into kernel layouts: weights pre-transposed to
    (in, out); conv outputs lane-padded to 128; per-layer transformer weights
    stacked (over layers, and heads for Q/K/V/proj) for static slicing inside the
    fused kernel; head weight pre-gathered with `mapping` and lane-padded."""
    c = raw["lnf_w"].shape[0]
    nh = n_head
    hd = c // nh

    def qkv_w(w):      # torch (out=C, in=C) -> (nh, C, hd): per-head columns of W^T
        return jnp.transpose(w.T.reshape(c, nh, hd), (1, 0, 2))

    def qkv_b(bvec):   # (C,) -> (nh, 1, hd)
        return bvec.reshape(nh, 1, hd)

    def proj_w(w):     # torch (out=C, in=C) -> (nh, hd, C): per-head rows of W^T
        return w.T.reshape(nh, hd, c)

    def stack(fn):         # per-layer -> (L, ...)
        return jnp.stack([fn(blk) for blk in raw["blocks"]], axis=0)

    def stack_heads(fn):   # per-layer (nh, ...) -> (L*nh, ...)
        return jnp.concatenate([fn(blk) for blk in raw["blocks"]], axis=0)

    return {
        "pos_emb": raw["pos_emb"],
        "conv1_wt": _pad_cols(raw["conv1_w"].reshape(20, -1).T, 128),
        "conv1_b": _pad_cols(raw["conv1_b"].reshape(1, -1), 128),
        "conv2_wt": _pad_cols(raw["conv2_w"].reshape(50, -1).T, 128),
        "conv2_b": _pad_cols(raw["conv2_b"].reshape(1, -1), 128),
        "fc1_wt": raw["fc1_w"].T, "fc1_b": raw["fc1_b"].reshape(1, -1),
        "fc2_wt": raw["fc2_w"].T, "fc2_b": raw["fc2_b"].reshape(1, -1),
        "ln1_w": stack(lambda blk: blk["ln1_w"].reshape(1, c)),
        "ln1_b": stack(lambda blk: blk["ln1_b"].reshape(1, c)),
        "wq": stack_heads(lambda blk: qkv_w(blk["query_w"])),
        "bq": stack_heads(lambda blk: qkv_b(blk["query_b"])),
        "wk": stack_heads(lambda blk: qkv_w(blk["key_w"])),
        "bk": stack_heads(lambda blk: qkv_b(blk["key_b"])),
        "wv": stack_heads(lambda blk: qkv_w(blk["value_w"])),
        "bv": stack_heads(lambda blk: qkv_b(blk["value_b"])),
        "wp": stack_heads(lambda blk: proj_w(blk["proj_w"])),
        "bp": stack(lambda blk: blk["proj_b"].reshape(1, c)),
        "ln2_w": stack(lambda blk: blk["ln2_w"].reshape(1, c)),
        "ln2_b": stack(lambda blk: blk["ln2_b"].reshape(1, c)),
        "w1": stack(lambda blk: blk["mlp_fc_w"].T),
        "b1": stack(lambda blk: blk["mlp_fc_b"].reshape(1, -1)),
        "w2": stack(lambda blk: blk["mlp_proj_w"].T),
        "b2": stack(lambda blk: blk["mlp_proj_b"].reshape(1, c)),
        "lnf_w": raw["lnf_w"].reshape(1, c),
        "lnf_b": raw["lnf_b"].reshape(1, c),
        "head_wt": _pad_cols(raw["head_w"].T[:, mapping], 128),
    }


if __name__ == "__main__":
    # Small config consistent with the module: block_size=8, n_embd=32, n_head=4, n_layer=2.
    n_embd, n_head, n_layer, block_size = 32, 4, 2, 8
    steps = 2
    b, t = 2, 8                                   # t <= block_size

    key = jax.random.PRNGKey(0)
    pkey, xkey = jax.random.split(key)
    raw = init_params(pkey, n_embd, n_head, n_layer, block_size)
    mapping = jnp.arange(10, dtype=jnp.int32)     # config.mapping: pick 10 of 20 head outputs
    packed = pack_params(raw, n_head, mapping)

    idx = jax.random.normal(xkey, (b, t, 28, 28), dtype=jnp.float32)
    exact_gelu = _erf_supported()                 # probed at call time (cached)

    fwd = jax.jit(functools.partial(
        gpt_forward, n_head=n_head, n_layer=n_layer, steps=steps,
        n_mapped=int(mapping.shape[0]), exact_gelu=exact_gelu))
    logits = jax.block_until_ready(fwd(idx, packed))
    assert logits.shape == (b, t, int(mapping.shape[0])), logits.shape
    assert bool(jnp.all(jnp.isfinite(logits)))
    print("KERNEL_OK")
</pallas_src>

<mosaic_0001>
module attributes {stable_mosaic.version = 11 : i64} {
  func.func @k(%arg0: memref<8x128xf32, #tpu.memory_space<vmem>>, %arg1: memref<8x128xf32, #tpu.memory_space<vmem>>) attributes {dimension_semantics = [], scalar_prefetch = 0 : i64, scratch_operands = 0 : i64, tpu.core_type = #tpu.core_type<tc>} {
    %c0 = arith.constant 0 : index
    %c0_0 = arith.constant 0 : index
    %0 = vector.load %arg0[%c0, %c0_0] : memref<8x128xf32, #tpu.memory_space<vmem>>, vector<8x128xf32>
    %1 = math.erf %0 : vector<8x128xf32>
    %c0_1 = arith.constant 0 : index
    %c0_2 = arith.constant 0 : index
    %2 = vector.load %arg1[%c0_1, %c0_2] : memref<8x128xf32, #tpu.memory_space<vmem>>, vector<8x128xf32>
    tpu.vector_store %arg1[%c0_1, %c0_2], %1 {strides = array<i32>} : memref<8x128xf32, #tpu.memory_space<vmem>>, vector<8x128xf32>,
    return
  }
}

module attributes {stable_mosaic.version = 11 : i64} {
  func.func @_mm_bias_relu_kernel(%arg0: i32, %arg1: memref<3072x25xf32, #tpu.memory_space<vmem>>, %arg2: memref<25x128xf32, #tpu.memory_space<vmem>>, %arg3: memref<1x128xf32, #tpu.memory_space<vmem>>, %arg4: memref<3072x128xf32, #tpu.memory_space<vmem>>) attributes {dimension_semantics = [#tpu.dimension_semantics<parallel>], iteration_bounds = array<i64: 3>, scalar_prefetch = 0 : i64, scratch_operands = 0 : i64, tpu.core_type = #tpu.core_type<tc>, window_params = [{transform_indices = @transform_0, window_bounds = array<i64: 3072, 25>}, {pipeline_mode = #tpu.pipeline_mode<synchronous>, transform_indices = @transform_1, window_bounds = array<i64: 25, 128>}, {pipeline_mode = #tpu.pipeline_mode<synchronous>, transform_indices = @transform_2, window_bounds = array<i64: 1, 128>}, {transform_indices = @transform_3, window_bounds = array<i64: 3072, 128>}]} {
    %c0 = arith.constant 0 : index
    %c0_0 = arith.constant 0 : index
    %0 = vector.load %arg1[%c0, %c0_0] : memref<3072x25xf32, #tpu.memory_space<vmem>>, vector<3072x25xf32>
    %c0_1 = arith.constant 0 : index
    %c0_2 = arith.constant 0 : index
    %1 = vector.load %arg2[%c0_1, %c0_2] : memref<25x128xf32, #tpu.memory_space<vmem>>, vector<25x128xf32>
    %cst = arith.constant dense<0.000000e+00> : vector<3072x128xf32>
    %2 = tpu.matmul %0, %1, %cst {dimension_numbers = #tpu.dot_dimension_numbers<[1], [0], [0], [1], [0, 0, 1, 1], [], []>} : vector<3072x25xf32>, vector<25x128xf32>, vector<3072x128xf32> -> vector<3072x128xf32>
    %c0_3 = arith.constant 0 : index
    %c0_4 = arith.constant 0 : index
    %3 = vector.load %arg3[%c0_3, %c0_4] : memref<1x128xf32, #tpu.memory_space<vmem>>, vector<1x128xf32>
    %4 = vector.broadcast %3 : vector<1x128xf32> to vector<3072x128xf32>
    %5 = arith.addf %2, %4 : vector<3072x128xf32>
    %cst_5 = arith.constant 0.000000e+00 : f32
    %6 = vector.broadcast %cst_5 : f32 to vector<3072x128xf32>
    %7 = arith.maximumf %5, %6 : vector<3072x128xf32>
    %c0_6 = arith.constant 0 : index
    %c0_7 = arith.constant 0 : index
    %8 = vector.load %arg4[%c0_6, %c0_7] : memref<3072x128xf32, #tpu.memory_space<vmem>>, vector<3072x128xf32>
    tpu.vector_store %arg4[%c0_6, %c0_7], %7 {strides = array<i32>} : memref<3072x128xf32, #tpu.memory_space<vmem>>, vector<3072x128xf32>,
    return
  }
  func.func @transform_0(%arg0: i32) -> (i32, i32) {
    %c0_i32 = arith.constant 0 : i32
    %c0_i32_0 = arith.constant 0 : i32
    return %arg0, %c0_i32 : i32, i32
  }
  func.func @transform_1(%arg0: i32) -> (i32, i32) {
    %c0_i32 = arith.constant 0 : i32
    %c0_i32_0 = arith.constant 0 : i32
    %c0_i32_1 = arith.constant 0 : i32
    return %c0_i32, %c0_i32_0 : i32, i32
  }
  func.func @transform_2(%arg0: i32) -> (i32, i32) {
    %c0_i32 = arith.constant 0 : i32
    %c0_i32_0 = arith.constant 0 : i32
    %c0_i32_1 = arith.constant 0 : i32
    return %c0_i32, %c0_i32_0 : i32, i32
  }
  func.func @transform_3(%arg0: i32) -> (i32, i32) {
    %c0_i32 = arith.constant 0 : i32
    %c0_i32_0 = arith.constant 0 : i32
    return %arg0, %c0_i32 : i32, i32
  }
}

module attributes {stable_mosaic.version = 11 : i64} {
  func.func @_mm_bias_relu_kernel(%arg0: i32, %arg1: memref<512x500xf32, #tpu.memory_space<vmem>>, %arg2: memref<500x128xf32, #tpu.memory_space<vmem>>, %arg3: memref<1x128xf32, #tpu.memory_space<vmem>>, %arg4: memref<512x128xf32, #tpu.memory_space<vmem>>) attributes {dimension_semantics = [#tpu.dimension_semantics<parallel>], iteration_bounds = array<i64: 2>, scalar_prefetch = 0 : i64, scratch_operands = 0 : i64, tpu.core_type = #tpu.core_type<tc>, window_params = [{transform_indices = @transform_0, window_bounds = array<i64: 512, 500>}, {pipeline_mode = #tpu.pipeline_mode<synchronous>, transform_indices = @transform_1, window_bounds = array<i64: 500, 128>}, {pipeline_mode = #tpu.pipeline_mode<synchronous>, transform_indices = @transform_2, window_bounds = array<i64: 1, 128>}, {transform_indices = @transform_3, window_bounds = array<i64: 512, 128>}]} {
    %c0 = arith.constant 0 : index
    %c0_0 = arith.constant 0 : index
    %0 = vector.load %arg1[%c0, %c0_0] : memref<512x500xf32, #tpu.memory_space<vmem>>, vector<512x500xf32>
    %c0_1 = arith.constant 0 : index
    %c0_2 = arith.constant 0 : index
    %1 = vector.load %arg2[%c0_1, %c0_2] : memref<500x128xf32, #tpu.memory_space<vmem>>, vector<500x128xf32>
    %cst = arith.constant dense<0.000000e+00> : vector<512x128xf32>
    %2 = tpu.matmul %0, %1, %cst {dimension_numbers = #tpu.dot_dimension_numbers<[1], [0], [0], [1], [0, 0, 1, 1], [], []>} : vector<512x500xf32>, vector<500x128xf32>, vector<512x128xf32> -> vector<512x128xf32>
    %c0_3 = arith.constant 0 : index
    %c0_4 = arith.constant 0 : index
    %3 = vector.load %arg3[%c0_3, %c0_4] : memref<1x128xf32, #tpu.memory_space<vmem>>, vector<1x128xf32>
    %4 = vector.broadcast %3 : vector<1x128xf32> to vector<512x128xf32>
    %5 = arith.addf %2, %4 : vector<512x128xf32>
    %cst_5 = arith.constant 0.000000e+00 : f32
    %6 = vector.broadcast %cst_5 : f32 to vector<512x128xf32>
    %7 = arith.maximumf %5, %6 : vector<512x128xf32>
    %c0_6 = arith.constant 0 : index
    %c0_7 = arith.constant 0 : index
    %8 = vector.load %arg4[%c0_6, %c0_7] : memref<512x128xf32, #tpu.memory_space<vmem>>, vector<512x128xf32>
    tpu.vector_store %arg4[%c0_6, %c0_7], %7 {strides = array<i32>} : memref<512x128xf32, #tpu.memory_space<vmem>>, vector<512x128xf32>,
    return
  }
  func.func @transform_0(%arg0: i32) -> (i32, i32) {
    %c0_i32 = arith.constant 0 : i32
    %c0_i32_0 = arith.constant 0 : i32
    return %arg0, %c0_i32 : i32, i32
  }
  func.func @transform_1(%arg0: i32) -> (i32, i32) {
    %c0_i32 = arith.constant 0 : i32
    %c0_i32_0 = arith.constant 0 : i32
    %c0_i32_1 = arith.constant 0 : i32
    return %c0_i32, %c0_i32_0 : i32, i32
  }
  func.func @transform_2(%arg0: i32) -> (i32, i32) {
    %c0_i32 = arith.constant 0 : i32
    %c0_i32_0 = arith.constant 0 : i32
    %c0_i32_1 = arith.constant 0 : i32
    return %c0_i32, %c0_i32_0 : i32, i32
  }
  func.func @transform_3(%arg0: i32) -> (i32, i32) {
    %c0_i32 = arith.constant 0 : i32
    %c0_i32_0 = arith.constant 0 : i32
    return %arg0, %c0_i32 : i32, i32
  }
}

module attributes {stable_mosaic.version = 11 : i64} {
  func.func @_fused_kernel(%arg0: i32, %arg1: i32, %arg2: memref<8x800xf32, #tpu.memory_space<vmem>>, %arg3: memref<8x32xf32, #tpu.memory_space<vmem>>, %arg4: memref<800x500xf32, #tpu.memory_space<vmem>>, %arg5: memref<1x500xf32, #tpu.memory_space<vmem>>, %arg6: memref<500x32xf32, #tpu.memory_space<vmem>>, %arg7: memref<1x32xf32, #tpu.memory_space<vmem>>, %arg8: memref<2x1x32xf32, #tpu.memory_space<vmem>>, %arg9: memref<2x1x32xf32, #tpu.memory_space<vmem>>, %arg10: memref<8x32x8xf32, #tpu.memory_space<vmem>>, %arg11: memref<8x1x8xf32, #tpu.memory_space<vmem>>, %arg12: memref<8x32x8xf32, #tpu.memory_space<vmem>>, %arg13: memref<8x1x8xf32, #tpu.memory_space<vmem>>, %arg14: memref<8x32x8xf32, #tpu.memory_space<vmem>>, %arg15: memref<8x1x8xf32, #tpu.memory_space<vmem>>, %arg16: memref<8x8x32xf32, #tpu.memory_space<vmem>>, %arg17: memref<2x1x32xf32, #tpu.memory_space<vmem>>, %arg18: memref<2x1x32xf32, #tpu.memory_space<vmem>>, %arg19: memref<2x1x32xf32, #tpu.memory_space<vmem>>, %arg20: memref<2x32x128xf32, #tpu.memory_space<vmem>>, %arg21: memref<2x1x128xf32, #tpu.memory_space<vmem>>, %arg22: memref<2x128x32xf32, #tpu.memory_space<vmem>>, %arg23: memref<2x1x32xf32, #tpu.memory_space<vmem>>, %arg24: memref<1x32xf32, #tpu.memory_space<vmem>>, %arg25: memref<1x32xf32, #tpu.memory_space<vmem>>, %arg26: memref<32x128xf32, #tpu.memory_space<vmem>>, %arg27: memref<8x128xf32, #tpu.memory_space<vmem>>, %arg28: memref<8x32xf32, #tpu.memory_space<vmem>>) attributes {dimension_semantics = [#tpu.dimension_semantics<parallel>, #tpu.dimension_semantics<arbitrary>], iteration_bounds = array<i64: 2, 2>, scalar_prefetch = 0 : i64, scratch_operands = 1 : i64, tpu.core_type = #tpu.core_type<tc>, window_params = [{transform_indices = @transform_0, window_bounds = array<i64: 8, 800>}, {pipeline_mode = #tpu.pipeline_mode<synchronous>, transform_indices = @transform_1, window_bounds = array<i64: 8, 32>}, {pipeline_mode = #tpu.pipeline_mode<synchronous>, transform_indices = @transform_2, window_bounds = array<i64: 800, 500>}, {pipeline_mode = #tpu.pipeline_mode<synchronous>, transform_indices = @transform_3, window_bounds = array<i64: 1, 500>}, {pipeline_mode = #tpu.pipeline_mode<synchronous>, transform_indices = @transform_4, window_bounds = array<i64: 500, 32>}, {pipeline_mode = #tpu.pipeline_mode<synchronous>, transform_indices = @transform_5, window_bounds = array<i64: 1, 32>}, {pipeline_mode = #tpu.pipeline_mode<synchronous>, transform_indices = @transform_6, window_bounds = array<i64: 2, 1, 32>}, {pipeline_mode = #tpu.pipeline_mode<synchronous>, transform_indices = @transform_7, window_bounds = array<i64: 2, 1, 32>}, {pipeline_mode = #tpu.pipeline_mode<synchronous>, transform_indices = @transform_8, window_bounds = array<i64: 8, 32, 8>}, {pipeline_mode = #tpu.pipeline_mode<synchronous>, transform_indices = @transform_9, window_bounds = array<i64: 8, 1, 8>}, {pipeline_mode = #tpu.pipeline_mode<synchronous>, transform_indices = @transform_10, window_bounds = array<i64: 8, 32, 8>}, {pipeline_mode = #tpu.pipeline_mode<synchronous>, transform_indices = @transform_11, window_bounds = array<i64: 8, 1, 8>}, {pipeline_mode = #tpu.pipeline_mode<synchronous>, transform_indices = @transform_12, window_bounds = array<i64: 8, 32, 8>}, {pipeline_mode = #tpu.pipeline_mode<synchronous>, transform_indices = @transform_13, window_bounds = array<i64: 8, 1, 8>}, {pipeline_mode = #tpu.pipeline_mode<synchronous>, transform_indices = @transform_14, window_bounds = array<i64: 8, 8, 32>}, {pipeline_mode = #tpu.pipeline_mode<synchronous>, transform_indices = @transform_15, window_bounds = array<i64: 2, 1, 32>}, {pipeline_mode = #tpu.pipeline_mode<synchronous>, transform_indices = @transform_16, window_bounds = array<i64: 2, 1, 32>}, {pipeline_mode = #tpu.pipeline_mode<synchronous>, transform_indices = @transform_17, window_bounds = array<i64: 2, 1, 32>}, {pipeline_mode = #tpu.pipeline_mode<synchronous>, transform_indices = @transform_18, window_bounds = array<i64: 2, 32, 128>}, {pipeline_mode = #tpu.pipeline_mode<synchronous>, transform_indices = @transform_19, window_bounds = array<i64: 2, 1, 128>}, {pipeline_mode = #tpu.pipeline_mode<synchronous>, transform_indices = @transform_20, window_bounds = array<i64: 2, 128, 32>}, {pipeline_mode = #tpu.pipeline_mode<synchronous>, transform_indices = @transform_21, window_bounds = array<i64: 2, 1, 32>}, {pipeline_mode = #tpu.pipeline_mode<synchronous>, transform_indices = @transform_22, window_bounds = array<i64: 1, 32>}, {pipeline_mode = #tpu.pipeline_mode<synchronous>, transform_indices = @transform_23, window_bounds = array<i64: 1, 32>}, {pipeline_mode = #tpu.pipeline_mode<synchronous>, transform_indices = @transform_24, window_bounds = array<i64: 32, 128>}, {transform_indices = @transform_25, window_bounds = array<i64: 8, 128>}]} {
    %c0_i32 = arith.constant 0 : i32
    %0 = arith.cmpi eq, %arg1, %c0_i32 : i32
    %1 = arith.extui %0 : i1 to i32
    %c0_i32_0 = arith.constant 0 : i32
    %2 = arith.cmpi ne, %1, %c0_i32_0 : i32
    scf.if %2 {
      %c0_150 = arith.constant 0 : index
      %c0_151 = arith.constant 0 : index
      %248 = vector.load %arg2[%c0_150, %c0_151] : memref<8x800xf32, #tpu.memory_space<vmem>>, vector<8x800xf32>
      %c0_152 = arith.constant 0 : index
      %c0_153 = arith.constant 0 : index
      %249 = vector.load %arg4[%c0_152, %c0_153] : memref<800x500xf32, #tpu.memory_space<vmem>>, vector<800x500xf32>
      %cst_154 = arith.constant dense<0.000000e+00> : vector<8x500xf32>
      %250 = tpu.matmul %248, %249, %cst_154 {dimension_numbers = #tpu.dot_dimension_numbers<[1], [0], [0], [1], [0, 0, 1, 1], [], []>} : vector<8x800xf32>, vector<800x500xf32>, vector<8x500xf32> -> vector<8x500xf32>
      %c0_155 = arith.constant 0 : index
      %c0_156 = arith.constant 0 : index
      %251 = vector.load %arg5[%c0_155, %c0_156] : memref<1x500xf32, #tpu.memory_space<vmem>>, vector<1x500xf32>
      %252 = vector.broadcast %251 : vector<1x500xf32> to vector<8x500xf32>
      %253 = arith.addf %250, %252 : vector<8x500xf32>
      %cst_157 = arith.constant 0.000000e+00 : f32
      %254 = vector.broadcast %cst_157 : f32 to vector<8x500xf32>
      %255 = arith.maximumf %253, %254 : vector<8x500xf32>
      %c0_158 = arith.constant 0 : index
      %c0_159 = arith.constant 0 : index
      %256 = vector.load %arg6[%c0_158, %c0_159] : memref<500x32xf32, #tpu.memory_space<vmem>>, vector<500x32xf32>
      %cst_160 = arith.constant dense<0.000000e+00> : vector<8x32xf32>
      %257 = tpu.matmul %255, %256, %cst_160 {dimension_numbers = #tpu.dot_dimension_numbers<[1], [0], [0], [1], [0, 0, 1, 1], [], []>} : vector<8x500xf32>, vector<500x32xf32>, vector<8x32xf32> -> vector<8x32xf32>
      %c0_161 = arith.constant 0 : index
      %c0_162 = arith.constant 0 : index
      %258 = vector.load %arg7[%c0_161, %c0_162] : memref<1x32xf32, #tpu.memory_space<vmem>>, vector<1x32xf32>
      %259 = vector.broadcast %258 : vector<1x32xf32> to vector<8x32xf32>
      %260 = arith.addf %257, %259 : vector<8x32xf32>
      %c0_163 = arith.constant 0 : index
      %c0_164 = arith.constant 0 : index
      %261 = vector.load %arg3[%c0_163, %c0_164] : memref<8x32xf32, #tpu.memory_space<vmem>>, vector<8x32xf32>
      %262 = arith.addf %260, %261 : vector<8x32xf32>
      %c0_165 = arith.constant 0 : index
      %c0_166 = arith.constant 0 : index
      %263 = vector.load %arg28[%c0_165, %c0_166] : memref<8x32xf32, #tpu.memory_space<vmem>>, vector<8x32xf32>
      tpu.vector_store %arg28[%c0_165, %c0_166], %262 {strides = array<i32>} : memref<8x32xf32, #tpu.memory_space<vmem>>, vector<8x32xf32>,
    } else {
    }
    %c0 = arith.constant 0 : index
    %c0_1 = arith.constant 0 : index
    %3 = vector.load %arg28[%c0, %c0_1] : memref<8x32xf32, #tpu.memory_space<vmem>>, vector<8x32xf32>
    %c0_2 = arith.constant 0 : index
    %c0_3 = arith.constant 0 : index
    %c0_4 = arith.constant 0 : index
    %4 = vector.load %arg10[%c0_2, %c0_3, %c0_4] : memref<8x32x8xf32, #tpu.memory_space<vmem>>, vector<4x32x8xf32>
    %c0_5 = arith.constant 0 : index
    %c0_6 = arith.constant 0 : index
    %c0_7 = arith.constant 0 : index
    %5 = vector.load %arg12[%c0_5, %c0_6, %c0_7] : memref<8x32x8xf32, #tpu.memory_space<vmem>>, vector<4x32x8xf32>
    %c0_8 = arith.constant 0 : index
    %c0_9 = arith.constant 0 : index
    %c0_10 = arith.constant 0 : index
    %6 = vector.load %arg14[%c0_8, %c0_9, %c0_10] : memref<8x32x8xf32, #tpu.memory_space<vmem>>, vector<4x32x8xf32>
    %c0_11 = arith.constant 0 : index
    %c0_12 = arith.constant 0 : index
    %c0_13 = arith.constant 0 : index
    %7 = vector.load %arg16[%c0_11, %c0_12, %c0_13] : memref<8x8x32xf32, #tpu.memory_space<vmem>>, vector<4x8x32xf32>
    %c0_14 = arith.constant 0 : index
    %c0_15 = arith.constant 0 : index
    %c0_16 = arith.constant 0 : index
    %8 = vector.load %arg11[%c0_14, %c0_15, %c0_16] : memref<8x1x8xf32, #tpu.memory_space<vmem>>, vector<4x1x8xf32>
    %c0_17 = arith.constant 0 : index
    %c0_18 = arith.constant 0 : index
    %c0_19 = arith.constant 0 : index
    %9 = vector.load %arg13[%c0_17, %c0_18, %c0_19] : memref<8x1x8xf32, #tpu.memory_space<vmem>>, vector<4x1x8xf32>
    %c0_20 = arith.constant 0 : index
    %c0_21 = arith.constant 0 : index
    %c0_22 = arith.constant 0 : index
    %10 = vector.load %arg15[%c0_20, %c0_21, %c0_22] : memref<8x1x8xf32, #tpu.memory_space<vmem>>, vector<4x1x8xf32>
    %c0_23 = arith.constant 0 : index
    %c0_24 = arith.constant 0 : index
    %c0_25 = arith.constant 0 : index
    %11 = vector.load %arg8[%c0_23, %c0_24, %c0_25] : memref<2x1x32xf32, #tpu.memory_space<vmem>>, vector<1x1x32xf32>
    %12 = vector.shape_cast %11 : vector<1x1x32xf32> to vector<1x32xf32>
    %c0_26 = arith.constant 0 : index
    %c0_27 = arith.constant 0 : index
    %c0_28 = arith.constant 0 : index
    %13 = vector.load %arg9[%c0_26, %c0_27, %c0_28] : memref<2x1x32xf32, #tpu.memory_space<vmem>>, vector<1x1x32xf32>
    %14 = vector.shape_cast %13 : vector<1x1x32xf32> to vector<1x32xf32>
    %cst = arith.constant dense<0.000000e+00> : vector<8xf32>
    %15 = vector.multi_reduction <add>, %3, %cst [1] : vector<8x32xf32> to vector<8xf32>
    %16 = vector.shape_cast %15 : vector<8xf32> to vector<8x1xf32>
    %cst_29 = arith.constant 3.200000e+01 : f32
    %17 = vector.broadcast %cst_29 : f32 to vector<8x1xf32>
    %18 = arith.divf %16, %17 : vector<8x1xf32>
    %19 = vector.broadcast %18 : vector<8x1xf32> to vector<8x32xf32>
    %20 = arith.subf %3, %19 : vector<8x32xf32>
    %21 = arith.mulf %20, %20 : vector<8x32xf32>
    %cst_30 = arith.constant dense<0.000000e+00> : vector<8xf32>
    %22 = vector.multi_reduction <add>, %21, %cst_30 [1] : vector<8x32xf32> to vector<8xf32>
    %23 = vector.shape_cast %22 : vector<8xf32> to vector<8x1xf32>
    %cst_31 = arith.constant 3.200000e+01 : f32
    %24 = vector.broadcast %cst_31 : f32 to vector<8x1xf32>
    %25 = arith.divf %23, %24 : vector<8x1xf32>
    %26 = vector.broadcast %18 : vector<8x1xf32> to vector<8x32xf32>
    %27 = arith.subf %3, %26 : vector<8x32xf32>
    %cst_32 = arith.constant 9.99999974E-6 : f32
    %28 = vector.broadcast %cst_32 : f32 to vector<8x1xf32>
    %29 = arith.addf %25, %28 : vector<8x1xf32>
    %30 = math.rsqrt %29 : vector<8x1xf32>
    %31 = vector.broadcast %30 : vector<8x1xf32> to vector<8x32xf32>
    %32 = arith.mulf %27, %31 : vector<8x32xf32>
    %33 = vector.broadcast %12 : vector<1x32xf32> to vector<8x32xf32>
    %34 = arith.mulf %32, %33 : vector<8x32xf32>
    %35 = vector.broadcast %14 : vector<1x32xf32> to vector<8x32xf32>
    %36 = arith.addf %34, %35 : vector<8x32xf32>
    %37 = vector.shape_cast %36 : vector<8x32xf32> to vector<1x8x32xf32>
    %38 = vector.shape_cast %37 : vector<1x8x32xf32> to vector<1x8x32xf32>
    %39 = vector.broadcast %38 : vector<1x8x32xf32> to vector<4x8x32xf32>
    "tpu.trace_start"() <{level = 10 : i32, message = "hmc,hcd->hmd"}> : () -> ()
    %cst_33 = arith.constant dense<0.000000e+00> : vector<4x8x8xf32>
    %40 = tpu.matmul %39, %4, %cst_33 {dimension_numbers = #tpu.dot_dimension_numbers<[2], [1], [1], [2], [0, 0, 0, 1, 1, 2], [0], [0]>} : vector<4x8x32xf32>, vector<4x32x8xf32>, vector<4x8x8xf32> -> vector<4x8x8xf32>
    "tpu.trace_stop"() : () -> ()
    %41 = vector.broadcast %8 : vector<4x1x8xf32> to vector<4x8x8xf32>
    %42 = arith.addf %40, %41 : vector<4x8x8xf32>
    "tpu.trace_start"() <{level = 10 : i32, message = "hmc,hcd->hmd"}> : () -> ()
    %cst_34 = arith.constant dense<0.000000e+00> : vector<4x8x8xf32>
    %43 = tpu.matmul %39, %5, %cst_34 {dimension_numbers = #tpu.dot_dimension_numbers<[2], [1], [1], [2], [0, 0, 0, 1, 1, 2], [0], [0]>} : vector<4x8x32xf32>, vector<4x32x8xf32>, vector<4x8x8xf32> -> vector<4x8x8xf32>
    "tpu.trace_stop"() : () -> ()
    %44 = vector.broadcast %9 : vector<4x1x8xf32> to vector<4x8x8xf32>
    %45 = arith.addf %43, %44 : vector<4x8x8xf32>
    "tpu.trace_start"() <{level = 10 : i32, message = "hmc,hcd->hmd"}> : () -> ()
    %cst_35 = arith.constant dense<0.000000e+00> : vector<4x8x8xf32>
    %46 = tpu.matmul %39, %6, %cst_35 {dimension_numbers = #tpu.dot_dimension_numbers<[2], [1], [1], [2], [0, 0, 0, 1, 1, 2], [0], [0]>} : vector<4x8x32xf32>, vector<4x32x8xf32>, vector<4x8x8xf32> -> vector<4x8x8xf32>
    "tpu.trace_stop"() : () -> ()
    %47 = vector.broadcast %10 : vector<4x1x8xf32> to vector<4x8x8xf32>
    %48 = arith.addf %46, %47 : vector<4x8x8xf32>
    "tpu.trace_start"() <{level = 10 : i32, message = "htd,hsd->hts"}> : () -> ()
    %cst_36 = arith.constant dense<0.000000e+00> : vector<4x8x8xf32>
    %49 = tpu.matmul %42, %45, %cst_36 {dimension_numbers = #tpu.dot_dimension_numbers<[2], [2], [1], [1], [0, 0, 0, 1, 1, 1], [0], [0]>} : vector<4x8x8xf32>, vector<4x8x8xf32>, vector<4x8x8xf32> -> vector<4x8x8xf32>
    "tpu.trace_stop"() : () -> ()
    %cst_37 = arith.constant 0.353553385 : f32
    %50 = vector.broadcast %cst_37 : f32 to vector<4x8x8xf32>
    %51 = arith.mulf %49, %50 : vector<4x8x8xf32>
    %cst_38 = arith.constant dense<0xFF800000> : vector<4x8xf32>
    %52 = vector.multi_reduction <maximumf>, %51, %cst_38 [2] : vector<4x8x8xf32> to vector<4x8xf32>
    %53 = vector.shape_cast %52 : vector<4x8xf32> to vector<4x8x1xf32>
    %54 = vector.broadcast %53 : vector<4x8x1xf32> to vector<4x8x8xf32>
    %55 = arith.subf %51, %54 : vector<4x8x8xf32>
    %56 = math.exp %55 : vector<4x8x8xf32>
    %cst_39 = arith.constant dense<0.000000e+00> : vector<4x8xf32>
    %57 = vector.multi_reduction <add>, %56, %cst_39 [2] : vector<4x8x8xf32> to vector<4x8xf32>
    %58 = vector.shape_cast %57 : vector<4x8xf32> to vector<4x8x1xf32>
    %59 = tpu.reciprocal %58 {approx = true} : vector<4x8x1xf32> -> vector<4x8x1xf32>
    %60 = vector.broadcast %59 : vector<4x8x1xf32> to vector<4x8x8xf32>
    %61 = arith.mulf %56, %60 : vector<4x8x8xf32>
    "tpu.trace_start"() <{level = 10 : i32, message = "hts,hsd->htd"}> : () -> ()
    %cst_40 = arith.constant dense<0.000000e+00> : vector<4x8x8xf32>
    %62 = tpu.matmul %61, %48, %cst_40 {dimension_numbers = #tpu.dot_dimension_numbers<[2], [1], [1], [2], [0, 0, 0, 1, 1, 2], [0], [0]>} : vector<4x8x8xf32>, vector<4x8x8xf32>, vector<4x8x8xf32> -> vector<4x8x8xf32>
    "tpu.trace_stop"() : () -> ()
    "tpu.trace_start"() <{level = 10 : i32, message = "htd,hdc->htc"}> : () -> ()
    %cst_41 = arith.constant dense<0.000000e+00> : vector<4x8x32xf32>
    %63 = tpu.matmul %62, %7, %cst_41 {dimension_numbers = #tpu.dot_dimension_numbers<[2], [1], [1], [2], [0, 0, 0, 1, 1, 2], [0], [0]>} : vector<4x8x8xf32>, vector<4x8x32xf32>, vector<4x8x32xf32> -> vector<4x8x32xf32>
    "tpu.trace_stop"() : () -> ()
    %cst_42 = arith.constant dense<0.000000e+00> : vector<8x32xf32>
    %64 = vector.multi_reduction <add>, %63, %cst_42 [0] : vector<4x8x32xf32> to vector<8x32xf32>
    %65 = arith.addf %3, %64 : vector<8x32xf32>
    %c0_43 = arith.constant 0 : index
    %c0_44 = arith.constant 0 : index
    %c0_45 = arith.constant 0 : index
    %66 = vector.load %arg17[%c0_43, %c0_44, %c0_45] : memref<2x1x32xf32, #tpu.memory_space<vmem>>, vector<1x1x32xf32>
    %67 = vector.shape_cast %66 : vector<1x1x32xf32> to vector<1x32xf32>
    %68 = vector.broadcast %67 : vector<1x32xf32> to vector<8x32xf32>
    %69 = arith.addf %65, %68 : vector<8x32xf32>
    %c0_46 = arith.constant 0 : index
    %c0_47 = arith.constant 0 : index
    %c0_48 = arith.constant 0 : index
    %70 = vector.load %arg18[%c0_46, %c0_47, %c0_48] : memref<2x1x32xf32, #tpu.memory_space<vmem>>, vector<1x1x32xf32>
    %71 = vector.shape_cast %70 : vector<1x1x32xf32> to vector<1x32xf32>
    %c0_49 = arith.constant 0 : index
    %c0_50 = arith.constant 0 : index
    %c0_51 = arith.constant 0 : index
    %72 = vector.load %arg19[%c0_49, %c0_50, %c0_51] : memref<2x1x32xf32, #tpu.memory_space<vmem>>, vector<1x1x32xf32>
    %73 = vector.shape_cast %72 : vector<1x1x32xf32> to vector<1x32xf32>
    %cst_52 = arith.constant dense<0.000000e+00> : vector<8xf32>
    %74 = vector.multi_reduction <add>, %69, %cst_52 [1] : vector<8x32xf32> to vector<8xf32>
    %75 = vector.shape_cast %74 : vector<8xf32> to vector<8x1xf32>
    %cst_53 = arith.constant 3.200000e+01 : f32
    %76 = vector.broadcast %cst_53 : f32 to vector<8x1xf32>
    %77 = arith.divf %75, %76 : vector<8x1xf32>
    %78 = vector.broadcast %77 : vector<8x1xf32> to vector<8x32xf32>
    %79 = arith.subf %69, %78 : vector<8x32xf32>
    %80 = arith.mulf %79, %79 : vector<8x32xf32>
    %cst_54 = arith.constant dense<0.000000e+00> : vector<8xf32>
    %81 = vector.multi_reduction <add>, %80, %cst_54 [1] : vector<8x32xf32> to vector<8xf32>
    %82 = vector.shape_cast %81 : vector<8xf32> to vector<8x1xf32>
    %cst_55 = arith.constant 3.200000e+01 : f32
    %83 = vector.broadcast %cst_55 : f32 to vector<8x1xf32>
    %84 = arith.divf %82, %83 : vector<8x1xf32>
    %85 = vector.broadcast %77 : vector<8x1xf32> to vector<8x32xf32>
    %86 = arith.subf %69, %85 : vector<8x32xf32>
    %cst_56 = arith.constant 9.99999974E-6 : f32
    %87 = vector.broadcast %cst_56 : f32 to vector<8x1xf32>
    %88 = arith.addf %84, %87 : vector<8x1xf32>
    %89 = math.rsqrt %88 : vector<8x1xf32>
    %90 = vector.broadcast %89 : vector<8x1xf32> to vector<8x32xf32>
    %91 = arith.mulf %86, %90 : vector<8x32xf32>
    %92 = vector.broadcast %71 : vector<1x32xf32> to vector<8x32xf32>
    %93 = arith.mulf %91, %92 : vector<8x32xf32>
    %94 = vector.broadcast %73 : vector<1x32xf32> to vector<8x32xf32>
    %95 = arith.addf %93, %94 : vector<8x32xf32>
    %c0_57 = arith.constant 0 : index
    %c0_58 = arith.constant 0 : index
    %c0_59 = arith.constant 0 : index
    %96 = vector.load %arg20[%c0_57, %c0_58, %c0_59] : memref<2x32x128xf32, #tpu.memory_space<vmem>>, vector<1x32x128xf32>
    %97 = vector.shape_cast %96 : vector<1x32x128xf32> to vector<32x128xf32>
    %cst_60 = arith.constant dense<0.000000e+00> : vector<8x128xf32>
    %98 = tpu.matmul %95, %97, %cst_60 {dimension_numbers = #tpu.dot_dimension_numbers<[1], [0], [0], [1], [0, 0, 1, 1], [], []>} : vector<8x32xf32>, vector<32x128xf32>, vector<8x128xf32> -> vector<8x128xf32>
    %c0_61 = arith.constant 0 : index
    %c0_62 = arith.constant 0 : index
    %c0_63 = arith.constant 0 : index
    %99 = vector.load %arg21[%c0_61, %c0_62, %c0_63] : memref<2x1x128xf32, #tpu.memory_space<vmem>>, vector<1x1x128xf32>
    %100 = vector.shape_cast %99 : vector<1x1x128xf32> to vector<1x128xf32>
    %101 = vector.broadcast %100 : vector<1x128xf32> to vector<8x128xf32>
    %102 = arith.addf %98, %101 : vector<8x128xf32>
    %cst_64 = arith.constant 5.000000e-01 : f32
    %103 = vector.broadcast %cst_64 : f32 to vector<8x128xf32>
    %104 = arith.mulf %103, %102 : vector<8x128xf32>
    %cst_65 = arith.constant 4.471500e-02 : f32
    %105 = vector.broadcast %cst_65 : f32 to vector<8x128xf32>
    %106 = arith.mulf %105, %102 : vector<8x128xf32>
    %107 = arith.mulf %106, %102 : vector<8x128xf32>
    %108 = arith.mulf %107, %102 : vector<8x128xf32>
    %109 = arith.addf %102, %108 : vector<8x128xf32>
    %cst_66 = arith.constant 0.797884583 : f32
    %110 = vector.broadcast %cst_66 : f32 to vector<8x128xf32>
    %111 = arith.mulf %110, %109 : vector<8x128xf32>
    %112 = math.tanh %111 : vector<8x128xf32>
    %cst_67 = arith.constant 1.000000e+00 : f32
    %113 = vector.broadcast %cst_67 : f32 to vector<8x128xf32>
    %114 = arith.addf %113, %112 : vector<8x128xf32>
    %115 = arith.mulf %104, %114 : vector<8x128xf32>
    %c0_68 = arith.constant 0 : index
    %c0_69 = arith.constant 0 : index
    %c0_70 = arith.constant 0 : index
    %116 = vector.load %arg22[%c0_68, %c0_69, %c0_70] : memref<2x128x32xf32, #tpu.memory_space<vmem>>, vector<1x128x32xf32>
    %117 = vector.shape_cast %116 : vector<1x128x32xf32> to vector<128x32xf32>
    %cst_71 = arith.constant dense<0.000000e+00> : vector<8x32xf32>
    %118 = tpu.matmul %115, %117, %cst_71 {dimension_numbers = #tpu.dot_dimension_numbers<[1], [0], [0], [1], [0, 0, 1, 1], [], []>} : vector<8x128xf32>, vector<128x32xf32>, vector<8x32xf32> -> vector<8x32xf32>
    %c0_72 = arith.constant 0 : index
    %c0_73 = arith.constant 0 : index
    %c0_74 = arith.constant 0 : index
    %119 = vector.load %arg23[%c0_72, %c0_73, %c0_74] : memref<2x1x32xf32, #tpu.memory_space<vmem>>, vector<1x1x32xf32>
    %120 = vector.shape_cast %119 : vector<1x1x32xf32> to vector<1x32xf32>
    %121 = vector.broadcast %120 : vector<1x32xf32> to vector<8x32xf32>
    %122 = arith.addf %118, %121 : vector<8x32xf32>
    %123 = arith.addf %69, %122 : vector<8x32xf32>
    %c4 = arith.constant 4 : index
    %c0_75 = arith.constant 0 : index
    %c0_76 = arith.constant 0 : index
    %124 = vector.load %arg10[%c4, %c0_75, %c0_76] : memref<8x32x8xf32, #tpu.memory_space<vmem>>, vector<4x32x8xf32>
    %c4_77 = arith.constant 4 : index
    %c0_78 = arith.constant 0 : index
    %c0_79 = arith.constant 0 : index
    %125 = vector.load %arg12[%c4_77, %c0_78, %c0_79] : memref<8x32x8xf32, #tpu.memory_space<vmem>>, vector<4x32x8xf32>
    %c4_80 = arith.constant 4 : index
    %c0_81 = arith.constant 0 : index
    %c0_82 = arith.constant 0 : index
    %126 = vector.load %arg14[%c4_80, %c0_81, %c0_82] : memref<8x32x8xf32, #tpu.memory_space<vmem>>, vector<4x32x8xf32>
    %c4_83 = arith.constant 4 : index
    %c0_84 = arith.constant 0 : index
    %c0_85 = arith.constant 0 : index
    %127 = vector.load %arg16[%c4_83, %c0_84, %c0_85] : memref<8x8x32xf32, #tpu.memory_space<vmem>>, vector<4x8x32xf32>
    %c4_86 = arith.constant 4 : index
    %c0_87 = arith.constant 0 : index
    %c0_88 = arith.constant 0 : index
    %128 = vector.load %arg11[%c4_86, %c0_87, %c0_88] : memref<8x1x8xf32, #tpu.memory_space<vmem>>, vector<4x1x8xf32>
    %c4_89 = arith.constant 4 : index
    %c0_90 = arith.constant 0 : index
    %c0_91 = arith.constant 0 : index
    %129 = vector.load %arg13[%c4_89, %c0_90, %c0_91] : memref<8x1x8xf32, #tpu.memory_space<vmem>>, vector<4x1x8xf32>
    %c4_92 = arith.constant 4 : index
    %c0_93 = arith.constant 0 : index
    %c0_94 = arith.constant 0 : index
    %130 = vector.load %arg15[%c4_92, %c0_93, %c0_94] : memref<8x1x8xf32, #tpu.memory_space<vmem>>, vector<4x1x8xf32>
    %c1 = arith.constant 1 : index
    %c0_95 = arith.constant 0 : index
    %c0_96 = arith.constant 0 : index
    %131 = vector.load %arg8[%c1, %c0_95, %c0_96] : memref<2x1x32xf32, #tpu.memory_space<vmem>>, vector<1x1x32xf32>
    %132 = vector.shape_cast %131 : vector<1x1x32xf32> to vector<1x32xf32>
    %c1_97 = arith.constant 1 : index
    %c0_98 = arith.constant 0 : index
    %c0_99 = arith.constant 0 : index
    %133 = vector.load %arg9[%c1_97, %c0_98, %c0_99] : memref<2x1x32xf32, #tpu.memory_space<vmem>>, vector<1x1x32xf32>
    %134 = vector.shape_cast %133 : vector<1x1x32xf32> to vector<1x32xf32>
    %cst_100 = arith.constant dense<0.000000e+00> : vector<8xf32>
    %135 = vector.multi_reduction <add>, %123, %cst_100 [1] : vector<8x32xf32> to vector<8xf32>
    %136 = vector.shape_cast %135 : vector<8xf32> to vector<8x1xf32>
    %cst_101 = arith.constant 3.200000e+01 : f32
    %137 = vector.broadcast %cst_101 : f32 to vector<8x1xf32>
    %138 = arith.divf %136, %137 : vector<8x1xf32>
    %139 = vector.broadcast %138 : vector<8x1xf32> to vector<8x32xf32>
    %140 = arith.subf %123, %139 : vector<8x32xf32>
    %141 = arith.mulf %140, %140 : vector<8x32xf32>
    %cst_102 = arith.constant dense<0.000000e+00> : vector<8xf32>
    %142 = vector.multi_reduction <add>, %141, %cst_102 [1] : vector<8x32xf32> to vector<8xf32>
    %143 = vector.shape_cast %142 : vector<8xf32> to vector<8x1xf32>
    %cst_103 = arith.constant 3.200000e+01 : f32
    %144 = vector.broadcast %cst_103 : f32 to vector<8x1xf32>
    %145 = arith.divf %143, %144 : vector<8x1xf32>
    %146 = vector.broadcast %138 : vector<8x1xf32> to vector<8x32xf32>
    %147 = arith.subf %123, %146 : vector<8x32xf32>
    %cst_104 = arith.constant 9.99999974E-6 : f32
    %148 = vector.broadcast %cst_104 : f32 to vector<8x1xf32>
    %149 = arith.addf %145, %148 : vector<8x1xf32>
    %150 = math.rsqrt %149 : vector<8x1xf32>
    %151 = vector.broadcast %150 : vector<8x1xf32> to vector<8x32xf32>
    %152 = arith.mulf %147, %151 : vector<8x32xf32>
    %153 = vector.broadcast %132 : vector<1x32xf32> to vector<8x32xf32>
    %154 = arith.mulf %152, %153 : vector<8x32xf32>
    %155 = vector.broadcast %134 : vector<1x32xf32> to vector<8x32xf32>
    %156 = arith.addf %154, %155 : vector<8x32xf32>
    %157 = vector.shape_cast %156 : vector<8x32xf32> to vector<1x8x32xf32>
    %158 = vector.shape_cast %157 : vector<1x8x32xf32> to vector<1x8x32xf32>
    %159 = vector.broadcast %158 : vector<1x8x32xf32> to vector<4x8x32xf32>
    "tpu.trace_start"() <{level = 10 : i32, message = "hmc,hcd->hmd"}> : () -> ()
    %cst_105 = arith.constant dense<0.000000e+00> : vector<4x8x8xf32>
    %160 = tpu.matmul %159, %124, %cst_105 {dimension_numbers = #tpu.dot_dimension_numbers<[2], [1], [1], [2], [0, 0, 0, 1, 1, 2], [0], [0]>} : vector<4x8x32xf32>, vector<4x32x8xf32>, vector<4x8x8xf32> -> vector<4x8x8xf32>
    "tpu.trace_stop"() : () -> ()
    %161 = vector.broadcast %128 : vector<4x1x8xf32> to vector<4x8x8xf32>
    %162 = arith.addf %160, %161 : vector<4x8x8xf32>
    "tpu.trace_start"() <{level = 10 : i32, message = "hmc,hcd->hmd"}> : () -> ()
    %cst_106 = arith.constant dense<0.000000e+00> : vector<4x8x8xf32>
    %163 = tpu.matmul %159, %125, %cst_106 {dimension_numbers = #tpu.dot_dimension_numbers<[2], [1], [1], [2], [0, 0, 0, 1, 1, 2], [0], [0]>} : vector<4x8x32xf32>, vector<4x32x8xf32>, vector<4x8x8xf32> -> vector<4x8x8xf32>
    "tpu.trace_stop"() : () -> ()
    %164 = vector.broadcast %129 : vector<4x1x8xf32> to vector<4x8x8xf32>
    %165 = arith.addf %163, %164 : vector<4x8x8xf32>
    "tpu.trace_start"() <{level = 10 : i32, message = "hmc,hcd->hmd"}> : () -> ()
    %cst_107 = arith.constant dense<0.000000e+00> : vector<4x8x8xf32>
    %166 = tpu.matmul %159, %126, %cst_107 {dimension_numbers = #tpu.dot_dimension_numbers<[2], [1], [1], [2], [0, 0, 0, 1, 1, 2], [0], [0]>} : vector<4x8x32xf32>, vector<4x32x8xf32>, vector<4x8x8xf32> -> vector<4x8x8xf32>
    "tpu.trace_stop"() : () -> ()
    %167 = vector.broadcast %130 : vector<4x1x8xf32> to vector<4x8x8xf32>
    %168 = arith.addf %166, %167 : vector<4x8x8xf32>
    "tpu.trace_start"() <{level = 10 : i32, message = "htd,hsd->hts"}> : () -> ()
    %cst_108 = arith.constant dense<0.000000e+00> : vector<4x8x8xf32>
    %169 = tpu.matmul %162, %165, %cst_108 {dimension_numbers = #tpu.dot_dimension_numbers<[2], [2], [1], [1], [0, 0, 0, 1, 1, 1], [0], [0]>} : vector<4x8x8xf32>, vector<4x8x8xf32>, vector<4x8x8xf32> -> vector<4x8x8xf32>
    "tpu.trace_stop"() : () -> ()
    %cst_109 = arith.constant 0.353553385 : f32
    %170 = vector.broadcast %cst_109 : f32 to vector<4x8x8xf32>
    %171 = arith.mulf %169, %170 : vector<4x8x8xf32>
    %cst_110 = arith.constant dense<0xFF800000> : vector<4x8xf32>
    %172 = vector.multi_reduction <maximumf>, %171, %cst_110 [2] : vector<4x8x8xf32> to vector<4x8xf32>
    %173 = vector.shape_cast %172 : vector<4x8xf32> to vector<4x8x1xf32>
    %174 = vector.broadcast %173 : vector<4x8x1xf32> to vector<4x8x8xf32>
    %175 = arith.subf %171, %174 : vector<4x8x8xf32>
    %176 = math.exp %175 : vector<4x8x8xf32>
    %cst_111 = arith.constant dense<0.000000e+00> : vector<4x8xf32>
    %177 = vector.multi_reduction <add>, %176, %cst_111 [2] : vector<4x8x8xf32> to vector<4x8xf32>
    %178 = vector.shape_cast %177 : vector<4x8xf32> to vector<4x8x1xf32>
    %179 = tpu.reciprocal %178 {approx = true} : vector<4x8x1xf32> -> vector<4x8x1xf32>
    %180 = vector.broadcast %179 : vector<4x8x1xf32> to vector<4x8x8xf32>
    %181 = arith.mulf %176, %180 : vector<4x8x8xf32>
    "tpu.trace_start"() <{level = 10 : i32, message = "hts,hsd->htd"}> : () -> ()
    %cst_112 = arith.constant dense<0.000000e+00> : vector<4x8x8xf32>
    %182 = tpu.matmul %181, %168, %cst_112 {dimension_numbers = #tpu.dot_dimension_numbers<[2], [1], [1], [2], [0, 0, 0, 1, 1, 2], [0], [0]>} : vector<4x8x8xf32>, vector<4x8x8xf32>, vector<4x8x8xf32> -> vector<4x8x8xf32>
    "tpu.trace_stop"() : () -> ()
    "tpu.trace_start"() <{level = 10 : i32, message = "htd,hdc->htc"}> : () -> ()
    %cst_113 = arith.constant dense<0.000000e+00> : vector<4x8x32xf32>
    %183 = tpu.matmul %182, %127, %cst_113 {dimension_numbers = #tpu.dot_dimension_numbers<[2], [1], [1], [2], [0, 0, 0, 1, 1, 2], [0], [0]>} : vector<4x8x8xf32>, vector<4x8x32xf32>, vector<4x8x32xf32> -> vector<4x8x32xf32>
    "tpu.trace_stop"() : () -> ()
    %cst_114 = arith.constant dense<0.000000e+00> : vector<8x32xf32>
    %184 = vector.multi_reduction <add>, %183, %cst_114 [0] : vector<4x8x32xf32> to vector<8x32xf32>
    %185 = arith.addf %123, %184 : vector<8x32xf32>
    %c1_115 = arith.constant 1 : index
    %c0_116 = arith.constant 0 : index
    %c0_117 = arith.constant 0 : index
    %186 = vector.load %arg17[%c1_115, %c0_116, %c0_117] : memref<2x1x32xf32, #tpu.memory_space<vmem>>, vector<1x1x32xf32>
    %187 = vector.shape_cast %186 : vector<1x1x32xf32> to vector<1x32xf32>
    %188 = vector.broadcast %187 : vector<1x32xf32> to vector<8x32xf32>
    %189 = arith.addf %185, %188 : vector<8x32xf32>
    %c1_118 = arith.constant 1 : index
    %c0_119 = arith.constant 0 : index
    %c0_120 = arith.constant 0 : index
    %190 = vector.load %arg18[%c1_118, %c0_119, %c0_120] : memref<2x1x32xf32, #tpu.memory_space<vmem>>, vector<1x1x32xf32>
    %191 = vector.shape_cast %190 : vector<1x1x32xf32> to vector<1x32xf32>
    %c1_121 = arith.constant 1 : index
    %c0_122 = arith.constant 0 : index
    %c0_123 = arith.constant 0 : index
    %192 = vector.load %arg19[%c1_121, %c0_122, %c0_123] : memref<2x1x32xf32, #tpu.memory_space<vmem>>, vector<1x1x32xf32>
    %193 = vector.shape_cast %192 : vector<1x1x32xf32> to vector<1x32xf32>
    %cst_124 = arith.constant dense<0.000000e+00> : vector<8xf32>
    %194 = vector.multi_reduction <add>, %189, %cst_124 [1] : vector<8x32xf32> to vector<8xf32>
    %195 = vector.shape_cast %194 : vector<8xf32> to vector<8x1xf32>
    %cst_125 = arith.constant 3.200000e+01 : f32
    %196 = vector.broadcast %cst_125 : f32 to vector<8x1xf32>
    %197 = arith.divf %195, %196 : vector<8x1xf32>
    %198 = vector.broadcast %197 : vector<8x1xf32> to vector<8x32xf32>
    %199 = arith.subf %189, %198 : vector<8x32xf32>
    %200 = arith.mulf %199, %199 : vector<8x32xf32>
    %cst_126 = arith.constant dense<0.000000e+00> : vector<8xf32>
    %201 = vector.multi_reduction <add>, %200, %cst_126 [1] : vector<8x32xf32> to vector<8xf32>
    %202 = vector.shape_cast %201 : vector<8xf32> to vector<8x1xf32>
    %cst_127 = arith.constant 3.200000e+01 : f32
    %203 = vector.broadcast %cst_127 : f32 to vector<8x1xf32>
    %204 = arith.divf %202, %203 : vector<8x1xf32>
    %205 = vector.broadcast %197 : vector<8x1xf32> to vector<8x32xf32>
    %206 = arith.subf %189, %205 : vector<8x32xf32>
    %cst_128 = arith.constant 9.99999974E-6 : f32
    %207 = vector.broadcast %cst_128 : f32 to vector<8x1xf32>
    %208 = arith.addf %204, %207 : vector<8x1xf32>
    %209 = math.rsqrt %208 : vector<8x1xf32>
    %210 = vector.broadcast %209 : vector<8x1xf32> to vector<8x32xf32>
    %211 = arith.mulf %206, %210 : vector<8x32xf32>
    %212 = vector.broadcast %191 : vector<1x32xf32> to vector<8x32xf32>
    %213 = arith.mulf %211, %212 : vector<8x32xf32>
    %214 = vector.broadcast %193 : vector<1x32xf32> to vector<8x32xf32>
    %215 = arith.addf %213, %214 : vector<8x32xf32>
    %c1_129 = arith.constant 1 : index
    %c0_130 = arith.constant 0 : index
    %c0_131 = arith.constant 0 : index
    %216 = vector.load %arg20[%c1_129, %c0_130, %c0_131] : memref<2x32x128xf32, #tpu.memory_space<vmem>>, vector<1x32x128xf32>
    %217 = vector.shape_cast %216 : vector<1x32x128xf32> to vector<32x128xf32>
    %cst_132 = arith.constant dense<0.000000e+00> : vector<8x128xf32>
    %218 = tpu.matmul %215, %217, %cst_132 {dimension_numbers = #tpu.dot_dimension_numbers<[1], [0], [0], [1], [0, 0, 1, 1], [], []>} : vector<8x32xf32>, vector<32x128xf32>, vector<8x128xf32> -> vector<8x128xf32>
    %c1_133 = arith.constant 1 : index
    %c0_134 = arith.constant 0 : index
    %c0_135 = arith.constant 0 : index
    %219 = vector.load %arg21[%c1_133, %c0_134, %c0_135] : memref<2x1x128xf32, #tpu.memory_space<vmem>>, vector<1x1x128xf32>
    %220 = vector.shape_cast %219 : vector<1x1x128xf32> to vector<1x128xf32>
    %221 = vector.broadcast %220 : vector<1x128xf32> to vector<8x128xf32>
    %222 = arith.addf %218, %221 : vector<8x128xf32>
    %cst_136 = arith.constant 5.000000e-01 : f32
    %223 = vector.broadcast %cst_136 : f32 to vector<8x128xf32>
    %224 = arith.mulf %223, %222 : vector<8x128xf32>
    %cst_137 = arith.constant 4.471500e-02 : f32
    %225 = vector.broadcast %cst_137 : f32 to vector<8x128xf32>
    %226 = arith.mulf %225, %222 : vector<8x128xf32>
    %227 = arith.mulf %226, %222 : vector<8x128xf32>
    %228 = arith.mulf %227, %222 : vector<8x128xf32>
    %229 = arith.addf %222, %228 : vector<8x128xf32>
    %cst_138 = arith.constant 0.797884583 : f32
    %230 = vector.broadcast %cst_138 : f32 to vector<8x128xf32>
    %231 = arith.mulf %230, %229 : vector<8x128xf32>
    %232 = math.tanh %231 : vector<8x128xf32>
    %cst_139 = arith.constant 1.000000e+00 : f32
    %233 = vector.broadcast %cst_139 : f32 to vector<8x128xf32>
    %234 = arith.addf %233, %232 : vector<8x128xf32>
    %235 = arith.mulf %224, %234 : vector<8x128xf32>
    %c1_140 = arith.constant 1 : index
    %c0_141 = arith.constant 0 : index
    %c0_142 = arith.constant 0 : index
    %236 = vector.load %arg22[%c1_140, %c0_141, %c0_142] : memref<2x128x32xf32, #tpu.memory_space<vmem>>, vector<1x128x32xf32>
    %237 = vector.shape_cast %236 : vector<1x128x32xf32> to vector<128x32xf32>
    %cst_143 = arith.constant dense<0.000000e+00> : vector<8x32xf32>
    %238 = tpu.matmul %235, %237, %cst_143 {dimension_numbers = #tpu.dot_dimension_numbers<[1], [0], [0], [1], [0, 0, 1, 1], [], []>} : vector<8x128xf32>, vector<128x32xf32>, vector<8x32xf32> -> vector<8x32xf32>
    %c1_144 = arith.constant 1 : index
    %c0_145 = arith.constant 0 : index
    %c0_146 = arith.constant 0 : index
    %239 = vector.load %arg23[%c1_144, %c0_145, %c0_146] : memref<2x1x32xf32, #tpu.memory_space<vmem>>, vector<1x1x32xf32>
    %240 = vector.shape_cast %239 : vector<1x1x32xf32> to vector<1x32xf32>
    %241 = vector.broadcast %240 : vector<1x32xf32> to vector<8x32xf32>
    %242 = arith.addf %238, %241 : vector<8x32xf32>
    %243 = arith.addf %189, %242 : vector<8x32xf32>
    %c0_147 = arith.constant 0 : index
    %c0_148 = arith.constant 0 : index
    %244 = vector.load %arg28[%c0_147, %c0_148] : memref<8x32xf32, #tpu.memory_space<vmem>>, vector<8x32xf32>
    tpu.vector_store %arg28[%c0_147, %c0_148], %243 {strides = array<i32>} : memref<8x32xf32, #tpu.memory_space<vmem>>, vector<8x32xf32>,
    %c1_i32 = arith.constant 1 : i32
    %245 = arith.cmpi eq, %arg1, %c1_i32 : i32
    %246 = arith.extui %245 : i1 to i32
    %c0_i32_149 = arith.constant 0 : i32
    %247 = arith.cmpi ne, %246, %c0_i32_149 : i32
    scf.if %247 {
      %c0_150 = arith.constant 0 : index
      %c0_151 = arith.constant 0 : index
      %248 = vector.load %arg24[%c0_150, %c0_151] : memref<1x32xf32, #tpu.memory_space<vmem>>, vector<1x32xf32>
      %c0_152 = arith.constant 0 : index
      %c0_153 = arith.constant 0 : index
      %249 = vector.load %arg25[%c0_152, %c0_153] : memref<1x32xf32, #tpu.memory_space<vmem>>, vector<1x32xf32>
      %cst_154 = arith.constant dense<0.000000e+00> : vector<8xf32>
      %250 = vector.multi_reduction <add>, %243, %cst_154 [1] : vector<8x32xf32> to vector<8xf32>
      %251 = vector.shape_cast %250 : vector<8xf32> to vector<8x1xf32>
      %cst_155 = arith.constant 3.200000e+01 : f32
      %252 = vector.broadcast %cst_155 : f32 to vector<8x1xf32>
      %253 = arith.divf %251, %252 : vector<8x1xf32>
      %254 = vector.broadcast %253 : vector<8x1xf32> to vector<8x32xf32>
      %255 = arith.subf %243, %254 : vector<8x32xf32>
      %256 = arith.mulf %255, %255 : vector<8x32xf32>
      %cst_156 = arith.constant dense<0.000000e+00> : vector<8xf32>
      %257 = vector.multi_reduction <add>, %256, %cst_156 [1] : vector<8x32xf32> to vector<8xf32>
      %258 = vector.shape_cast %257 : vector<8xf32> to vector<8x1xf32>
      %cst_157 = arith.constant 3.200000e+01 : f32
      %259 = vector.broadcast %cst_157 : f32 to vector<8x1xf32>
      %260 = arith.divf %258, %259 : vector<8x1xf32>
      %261 = vector.broadcast %253 : vector<8x1xf32> to vector<8x32xf32>
      %262 = arith.subf %243, %261 : vector<8x32xf32>
      %cst_158 = arith.constant 9.99999974E-6 : f32
      %263 = vector.broadcast %cst_158 : f32 to vector<8x1xf32>
      %264 = arith.addf %260, %263 : vector<8x1xf32>
      %265 = math.rsqrt %264 : vector<8x1xf32>
      %266 = vector.broadcast %265 : vector<8x1xf32> to vector<8x32xf32>
      %267 = arith.mulf %262, %266 : vector<8x32xf32>
      %268 = vector.broadcast %248 : vector<1x32xf32> to vector<8x32xf32>
      %269 = arith.mulf %267, %268 : vector<8x32xf32>
      %270 = vector.broadcast %249 : vector<1x32xf32> to vector<8x32xf32>
      %271 = arith.addf %269, %270 : vector<8x32xf32>
      %c0_159 = arith.constant 0 : index
      %c0_160 = arith.constant 0 : index
      %272 = vector.load %arg26[%c0_159, %c0_160] : memref<32x128xf32, #tpu.memory_space<vmem>>, vector<32x128xf32>
      %cst_161 = arith.constant dense<0.000000e+00> : vector<8x128xf32>
      %273 = tpu.matmul %271, %272, %cst_161 {dimension_numbers = #tpu.dot_dimension_numbers<[1], [0], [0], [1], [0, 0, 1, 1], [], []>} : vector<8x32xf32>, vector<32x128xf32>, vector<8x128xf32> -> vector<8x128xf32>
      %c0_162 = arith.constant 0 : index
      %c0_163 = arith.constant 0 : index
      %274 = vector.load %arg27[%c0_162, %c0_163] : memref<8x128xf32, #tpu.memory_space<vmem>>, vector<8x128xf32>
      tpu.vector_store %arg27[%c0_162, %c0_163], %273 {strides = array<i32>} : memref<8x128xf32, #tpu.memory_space<vmem>>, vector<8x128xf32>,
    } else {
    }
    return
  }
  func.func @transform_0(%arg0: i32, %arg1: i32) -> (i32, i32) {
    %c0_i32 = arith.constant 0 : i32
    %c0_i32_0 = arith.constant 0 : i32
    return %arg0, %c0_i32 : i32, i32
  }
  func.func @transform_1(%arg0: i32, %arg1: i32) -> (i32, i32) {
    %c0_i32 = arith.constant 0 : i32
    %c0_i32_0 = arith.constant 0 : i32
    %c0_i32_1 = arith.constant 0 : i32
    return %c0_i32, %c0_i32_0 : i32, i32
  }
  func.func @transform_2(%arg0: i32, %arg1: i32) -> (i32, i32) {
    %c0_i32 = arith.constant 0 : i32
    %c0_i32_0 = arith.constant 0 : i32
    %c0_i32_1 = arith.constant 0 : i32
    return %c0_i32, %c0_i32_0 : i32, i32
  }
  func.func @transform_3(%arg0: i32, %arg1: i32) -> (i32, i32) {
    %c0_i32 = arith.constant 0 : i32
    %c0_i32_0 = arith.constant 0 : i32
    %c0_i32_1 = arith.constant 0 : i32
    return %c0_i32, %c0_i32_0 : i32, i32
  }
  func.func @transform_4(%arg0: i32, %arg1: i32) -> (i32, i32) {
    %c0_i32 = arith.constant 0 : i32
    %c0_i32_0 = arith.constant 0 : i32
    %c0_i32_1 = arith.constant 0 : i32
    return %c0_i32, %c0_i32_0 : i32, i32
  }
  func.func @transform_5(%arg0: i32, %arg1: i32) -> (i32, i32) {
    %c0_i32 = arith.constant 0 : i32
    %c0_i32_0 = arith.constant 0 : i32
    %c0_i32_1 = arith.constant 0 : i32
    return %c0_i32, %c0_i32_0 : i32, i32
  }
  func.func @transform_6(%arg0: i32, %arg1: i32) -> (i32, i32, i32) {
    %c0_i32 = arith.constant 0 : i32
    %c0_i32_0 = arith.constant 0 : i32
    %c0_i32_1 = arith.constant 0 : i32
    %c0_i32_2 = arith.constant 0 : i32
    return %c0_i32, %c0_i32_0, %c0_i32_1 : i32, i32, i32
  }
  func.func @transform_7(%arg0: i32, %arg1: i32) -> (i32, i32, i32) {
    %c0_i32 = arith.constant 0 : i32
    %c0_i32_0 = arith.constant 0 : i32
    %c0_i32_1 = arith.constant 0 : i32
    %c0_i32_2 = arith.constant 0 : i32
    return %c0_i32, %c0_i32_0, %c0_i32_1 : i32, i32, i32
  }
  func.func @transform_8(%arg0: i32, %arg1: i32) -> (i32, i32, i32) {
    %c0_i32 = arith.constant 0 : i32
    %c0_i32_0 = arith.constant 0 : i32
    %c0_i32_1 = arith.constant 0 : i32
    %c0_i32_2 = arith.constant 0 : i32
    return %c0_i32, %c0_i32_0, %c0_i32_1 : i32, i32, i32
  }
  func.func @transform_9(%arg0: i32, %arg1: i32) -> (i32, i32, i32) {
    %c0_i32 = arith.constant 0 : i32
    %c0_i32_0 = arith.constant 0 : i32
    %c0_i32_1 = arith.constant 0 : i32
    %c0_i32_2 = arith.constant 0 : i32
    return %c0_i32, %c0_i32_0, %c0_i32_1 : i32, i32, i32
  }
  func.func @transform_10(%arg0: i32, %arg1: i32) -> (i32, i32, i32) {
    %c0_i32 = arith.constant 0 : i32
    %c0_i32_0 = arith.constant 0 : i32
    %c0_i32_1 = arith.constant 0 : i32
    %c0_i32_2 = arith.constant 0 : i32
    return %c0_i32, %c0_i32_0, %c0_i32_1 : i32, i32, i32
  }
  func.func @transform_11(%arg0: i32, %arg1: i32) -> (i32, i32, i32) {
    %c0_i32 = arith.constant 0 : i32
    %c0_i32_0 = arith.constant 0 : i32
    %c0_i32_1 = arith.constant 0 : i32
    %c0_i32_2 = arith.constant 0 : i32
    return %c0_i32, %c0_i32_0, %c0_i32_1 : i32, i32, i32
  }
  func.func @transform_12(%arg0: i32, %arg1: i32) -> (i32, i32, i32) {
    %c0_i32 = arith.constant 0 : i32
    %c0_i32_0 = arith.constant 0 : i32
    %c0_i32_1 = arith.constant 0 : i32
    %c0_i32_2 = arith.constant 0 : i32
    return %c0_i32, %c0_i32_0, %c0_i32_1 : i32, i32, i32
  }
  func.func @transform_13(%arg0: i32, %arg1: i32) -> (i32, i32, i32) {
    %c0_i32 = arith.constant 0 : i32
    %c0_i32_0 = arith.constant 0 : i32
    %c0_i32_1 = arith.constant 0 : i32
    %c0_i32_2 = arith.constant 0 : i32
    return %c0_i32, %c0_i32_0, %c0_i32_1 : i32, i32, i32
  }
  func.func @transform_14(%arg0: i32, %arg1: i32) -> (i32, i32, i32) {
    %c0_i32 = arith.constant 0 : i32
    %c0_i32_0 = arith.constant 0 : i32
    %c0_i32_1 = arith.constant 0 : i32
    %c0_i32_2 = arith.constant 0 : i32
    return %c0_i32, %c0_i32_0, %c0_i32_1 : i32, i32, i32
  }
  func.func @transform_15(%arg0: i32, %arg1: i32) -> (i32, i32, i32) {
    %c0_i32 = arith.constant 0 : i32
    %c0_i32_0 = arith.constant 0 : i32
    %c0_i32_1 = arith.constant 0 : i32
    %c0_i32_2 = arith.constant 0 : i32
    return %c0_i32, %c0_i32_0, %c0_i32_1 : i32, i32, i32
  }
  func.func @transform_16(%arg0: i32, %arg1: i32) -> (i32, i32, i32) {
    %c0_i32 = arith.constant 0 : i32
    %c0_i32_0 = arith.constant 0 : i32
    %c0_i32_1 = arith.constant 0 : i32
    %c0_i32_2 = arith.constant 0 : i32
    return %c0_i32, %c0_i32_0, %c0_i32_1 : i32, i32, i32
  }
  func.func @transform_17(%arg0: i32, %arg1: i32) -> (i32, i32, i32) {
    %c0_i32 = arith.constant 0 : i32
    %c0_i32_0 = arith.constant 0 : i32
    %c0_i32_1 = arith.constant 0 : i32
    %c0_i32_2 = arith.constant 0 : i32
    return %c0_i32, %c0_i32_0, %c0_i32_1 : i32, i32, i32
  }
  func.func @transform_18(%arg0: i32, %arg1: i32) -> (i32, i32, i32) {
    %c0_i32 = arith.constant 0 : i32
    %c0_i32_0 = arith.constant 0 : i32
    %c0_i32_1 = arith.constant 0 : i32
    %c0_i32_2 = arith.constant 0 : i32
    return %c0_i32, %c0_i32_0, %c0_i32_1 : i32, i32, i32
  }
  func.func @transform_19(%arg0: i32, %arg1: i32) -> (i32, i32, i32) {
    %c0_i32 = arith.constant 0 : i32
    %c0_i32_0 = arith.constant 0 : i32
    %c0_i32_1 = arith.constant 0 : i32
    %c0_i32_2 = arith.constant 0 : i32
    return %c0_i32, %c0_i32_0, %c0_i32_1 : i32, i32, i32
  }
  func.func @transform_20(%arg0: i32, %arg1: i32) -> (i32, i32, i32) {
    %c0_i32 = arith.constant 0 : i32
    %c0_i32_0 = arith.constant 0 : i32
    %c0_i32_1 = arith.constant 0 : i32
    %c0_i32_2 = arith.constant 0 : i32
    return %c0_i32, %c0_i32_0, %c0_i32_1 : i32, i32, i32
  }
  func.func @transform_21(%arg0: i32, %arg1: i32) -> (i32, i32, i32) {
    %c0_i32 = arith.constant 0 : i32
    %c0_i32_0 = arith.constant 0 : i32
    %c0_i32_1 = arith.constant 0 : i32
    %c0_i32_2 = arith.constant 0 : i32
    return %c0_i32, %c0_i32_0, %c0_i32_1 : i32, i32, i32
  }
  func.func @transform_22(%arg0: i32, %arg1: i32) -> (i32, i32) {
    %c0_i32 = arith.constant 0 : i32
    %c0_i32_0 = arith.constant 0 : i32
    %c0_i32_1 = arith.constant 0 : i32
    return %c0_i32, %c0_i32_0 : i32, i32
  }
  func.func @transform_23(%arg0: i32, %arg1: i32) -> (i32, i32) {
    %c0_i32 = arith.constant 0 : i32
    %c0_i32_0 = arith.constant 0 : i32
    %c0_i32_1 = arith.constant 0 : i32
    return %c0_i32, %c0_i32_0 : i32, i32
  }
  func.func @transform_24(%arg0: i32, %arg1: i32) -> (i32, i32) {
    %c0_i32 = arith.constant 0 : i32
    %c0_i32_0 = arith.constant 0 : i32
    %c0_i32_1 = arith.constant 0 : i32
    return %c0_i32, %c0_i32_0 : i32, i32
  }
  func.func @transform_25(%arg0: i32, %arg1: i32) -> (i32, i32) {
    %c0_i32 = arith.constant 0 : i32
    %c0_i32_0 = arith.constant 0 : i32
    return %arg0, %c0_i32 : i32, i32
  }
}

</mosaic_0001>

<bundles_post_ra>
// kernel: tpu_custom_call.1
= control target key start
LH: loop header
LB: loop body
LE: loop exit
PB: predicated region body
PF: predicated region fallthrough
CT: control target
= control target key end

     0   :  { %6 = vsyncpa [#allocation3], 0  ;;  %s127_s0 = inlined_call_operand.hbm [shape: f32[8,128], index: 0, kind: input, shape index: {}]   ;;  %s128_s1 = inlined_call_operand.hbm [shape: f32[8,128], index: 1, kind: output, shape index: {}]  }
   0x1   :  { %7 = vsyncpa [#allocation4], 0  ;;  %s91_s6 = smov [#allocation2]   ;;  %s43_s10 = scalar_lea.hbm %s127_s0, 128 }
   0x2   :  { %s14_s7 = sshll.u32 %s91_s6, 4  ;;  %p44_p0 = scmp.ne.s32.totalorder %s127_s0, %s43_s10  ;;  %s15_s7 = int_to_ptr.vmem [resolvable:$true] %s14_s7 }
   0x3   :  { %p47_p1 = scmp.lt.u32.totalorder %s43_s10, %s127_s0 }
   0x5   :  { %p49_p2 = pnand %p47_p1, %p44_p0 }
   0x7   :  { %52 = shalt.err (!%p49_p2)
}
   0x8   :  { %s53_s15 = scalar_lea.vmem %s15_s7, 128  ;;  %p58_p4 = scmp.lt.s32.totalorder %s15_s7, %s15_s7 }
   0x9   :  { %p54_p3 = scmp.ne.s32.totalorder %s15_s7, %s53_s15  ;;  %p59_p5 = scmp.lt.s32.totalorder %s53_s15, %s53_s15 }
   0xb   :  { %p60_p6 = por %p59_p5, %p58_p4 }
   0xd   :  { %p61_p7 = pnand %p60_p6, %p54_p3 }
   0xf   :  { %64 = shalt.err (!%p61_p7)
}
  0x10   :  { %17 = dma.hbm_to_vmem [thread:$0]  %s127_s0, 128, %s15_s7, [#allocation3]  }
  0x11   :  { %87 = dma.done.wait [#allocation3], 128  }
  0x12   :  { %88 = vsyncadd [#allocation3], 4294967168  ;;  %v21_v0 = vld [vmem:[#allocation2] sm:$0xff]  ;;  %s92_s18 = smov [#allocation5]  }
  0x13   :  { %41 = verf.f32 %v21_v0  ;;  %s30_s19 = sshll.u32 %s92_s18, 4  ;;  %s31_s19 = int_to_ptr.vmem [resolvable:$true] %s30_s19 }
  0x14   :  { %s65_s20 = scalar_lea.vmem %s31_s19, 128  ;;  %p70_p9 = scmp.lt.s32.totalorder %s31_s19, %s31_s19 }
  0x15   :  { %p66_p8 = scmp.ne.s32.totalorder %s31_s19, %s65_s20  ;;  %p71_p10 = scmp.lt.s32.totalorder %s65_s20, %s65_s20 }
  0x17   :  { %p72_p11 = por %p71_p10, %p70_p9 }
  0x19   :  { %p73_p12 = pnand %p72_p11, %p66_p8 }
  0x1d   :  { %v42_v1 = vpop.eup %41 }
  0x1e   :  { %23 = vst [vmem:[#allocation5] sm:$0xff] %v42_v1 }
  0x1f   :  { %76 = shalt.err (!%p73_p12)
}
  0x20   :  { %s77_s0 = scalar_lea.hbm %s128_s1, 128 }
  0x21   :  { %p78_p13 = scmp.ne.s32.totalorder %s128_s1, %s77_s0  ;;  %p81_p0 = scmp.lt.u32.totalorder %s77_s0, %s128_s1 }
  0x23   :  { %p83_p1 = pnand %p81_p0, %p78_p13 }
  0x25   :  { %86 = shalt.err (!%p83_p1)
}
  0x26   :  { %33 = dma.vmem_to_hbm [thread:$0]  %s31_s19, 128, %s128_s1, [#allocation4]  }
  0x27   :  { %89 = dma.done.wait [#allocation4], 128  }
  0x28   :  { %90 = vsyncadd [#allocation4], 4294967168 }
  0x29   :  { %37 = vsyncpa [#allocation3], 1 }
  0x2a   :  { %38 = vsyncpa [#allocation4], 1 }

// kernel: gpt_forward.3
= control target key start
LH: loop header
LB: loop body
LE: loop exit
PB: predicated region body
PF: predicated region fallthrough
CT: control target
= control target key end

     0   :  { %s5957_s12 = smov 0   ;;  %s7553_s0 = inlined_call_operand.vmem [shape: f32[9216,25], index: 0, kind: input, shape index: {}]   ;;  %s7554_s1 = inlined_call_operand.vmem [shape: f32[25,128], index: 1, kind: input, shape index: {}]   ;;  %s7555_s2 = inlined_call_operand.vmem [shape: f32[1,128], index: 2, kind: input, shape index: {}]   ;;  %s7556_s3 = inlined_call_operand.vmem [shape: f32[9216,128], index: 3, kind: output, shape index: {}]  }
   0x1 LB: > { %s4535_s13 = sadd.s32 4294967295, %s5934_s12   ;;  %p4539_p0 = scmp.ge.s32.totalorder %s5934_s12, 1  ;;  %s5934_s12 = sphi %s5957_s12, %s13_s12  }
   0x2   : > { %p138_p1 = scmp.lt.s32.totalorder %s5934_s12, 4 }
   0x4   : > { %p139_p2 = pnand %p4539_p0, %p138_p1 }
   0x5   : > { %v558_v0 = vld [vmem:[%s7554_s1] sm:$0xff] (!%p139_p2)  ;;  %v559_v1 = vld [vmem:[%s7554_s1 + $0x8] sm:$0xff] (!%p139_p2)  ;;  %v560_v2 = vld [vmem:[%s7554_s1 + $0x10] sm:$0xff] (!%p139_p2)  ;;  %vm1722_vm0 = vcmask (!%p139_p2), 1040384   ;;  %s162_s20 = smul.u32 (!%p139_p2), 384, %s4535_s13  ;;  %vm5936_vm1 = vmmov (!%p139_p2), 1  }
   0x6   : > { %142 = sbr.rel (%p139_p2) target bundleno = 617 (0x269), region = 32  ;;  %v5902_v3 = vpack.c.bf16 (!%p139_p2), %v559_v1, %v558_v0  ;;  %v561_v4 = vld [vmem:[%s7554_s1 + $0x18] sm:$0x1] (!%p139_p2)  ;;  %vm5907_vm2 = vmpackc.low (!%p139_p2), %vm1722_vm0, %vm5936_vm1  ;;  %vm569_vm3 = vcmask (!%p139_p2), 203776  }
   0x7   : > { %v5906_v5 = vpack.c.bf16 (!%p139_p2), %v561_v4, %v560_v2  ;;  %p163_p3 = scmp.lt.s32.totalorder (!%p139_p2), %s162_s20, 1151 }
   0x8   : > { %5903 = vmatprep.subr.bf16.mxu0 (!%p139_p2), %v5902_v3  ;;  %5912 = vmatprep.subr.bf16.mxu1 (!%p139_p2), %v5902_v3 }
   0x9   : > { %5905 = vmatpush3.bf16.msra.mxu0 (!%p139_p2), %v5902_v3  ;;  %5914 = vmatpush3.bf16.msra.mxu1 (!%p139_p2), %v5902_v3 }
   0xa   : > { %5908 = vmatprep.subr.msk.bf16.mxu0 (!%p139_p2), %vm5907_vm2, %v5906_v5  ;;  %5913 = vmatprep.subr.msk.bf16.mxu1 (!%p139_p2), %vm5907_vm2, %v5906_v5 }
   0xd   : > { %s7558_s20 = smov (!%p163_p3, %s162_s20), 1151  ;;  %5911 = vmatpush3.bf16.msk.msra.mxu0 %vm5907_vm2, %v5906_v5  ;;  %5915 = vmatpush3.bf16.msk.msra.mxu1 %vm5907_vm2, %v5906_v5 }
   0xe   : > { %s4540_s23 = sshll.u32 %s7558_s20, 3 }
   0xf   : > { %s5985_s26 = scalar_lea.vmem %s7553_s0, %s4540_s23  ;;  %s6433_s4 = scalar_lea.vmem %s7556_s3, %s4540_s23 }
  0x10   : > { %v174_v6 = vld [vmem:[%s5985_s26] sm:$0xff]  ;;  %v175_v8 = vld [vmem:[%s5985_s26 + $0x8] sm:$0xff]  ;;  %v176_v10 = vld [vmem:[%s5985_s26 + $0x10] sm:$0xff] }
  0x11   : > { %v366_v7 = vld [vmem:[%s5985_s26 + $0x600] sm:$0xff]  ;;  %5326 = vmatprep.mubr.msk.f32.mxu0 %vm569_vm3, %v174_v6  ;;  %v367_v9 = vld [vmem:[%s5985_s26 + $0x608] sm:$0xff]  ;;  %v368_v11 = vld [vmem:[%s5985_s26 + $0x610] sm:$0xff] }
  0x12   : > { %5614 = vmatprep.mubr.msk.f32.mxu1 %vm569_vm3, %v366_v7  ;;  %5327 = vmatmul.mubr.msk.f32.vlgmr.msra.gmra.mrb[0].mxu0 %vm569_vm3, %v175_v8  ;;  %v177_v12 = vld [vmem:[%s5985_s26 + $0x18] sm:$0xff]  ;;  %v178_v14 = vld [vmem:[%s5985_s26 + $0x20] sm:$0xff]  ;;  %v179_v16 = vld [vmem:[%s5985_s26 + $0x28] sm:$0xff] }
  0x13   : > { %5615 = vmatmul.mubr.msk.f32.vlgmr.msra.gmra.mrb[0].mxu1 %vm569_vm3, %v367_v9  ;;  %5329 = vmatprep.mubr.msk.f32.mxu0 %vm569_vm3, %v176_v10  ;;  %v369_v13 = vld [vmem:[%s5985_s26 + $0x618] sm:$0xff]  ;;  %v370_v15 = vld [vmem:[%s5985_s26 + $0x620] sm:$0xff]  ;;  %v371_v17 = vld [vmem:[%s5985_s26 + $0x628] sm:$0xff] }
  0x14   : > { %5617 = vmatprep.mubr.msk.f32.mxu1 %vm569_vm3, %v368_v11  ;;  %v180_v18 = vld [vmem:[%s5985_s26 + $0x30] sm:$0xff]  ;;  %v181_v20 = vld [vmem:[%s5985_s26 + $0x38] sm:$0xff]  ;;  %v182_v22 = vld [vmem:[%s5985_s26 + $0x40] sm:$0xff] }
  0x15   : > { %v372_v19 = vld [vmem:[%s5985_s26 + $0x630] sm:$0xff]  ;;  %v373_v21 = vld [vmem:[%s5985_s26 + $0x638] sm:$0xff]  ;;  %v374_v23 = vld [vmem:[%s5985_s26 + $0x640] sm:$0xff] }
  0x16   : > { %5330 = vmatmul.mubr.msk.f32.gmra.mrb[2].mxu0 %vm569_vm3, %v177_v12  ;;  %v183_v24 = vld [vmem:[%s5985_s26 + $0x48] sm:$0xff]  ;;  %v184_v26 = vld [vmem:[%s5985_s26 + $0x50] sm:$0xff]  ;;  %v185_v28 = vld [vmem:[%s5985_s26 + $0x58] sm:$0xff] }
  0x17   : > { %5618 = vmatmul.mubr.msk.f32.gmra.mrb[2].mxu1 %vm569_vm3, %v369_v13  ;;  %5332 = vmatprep.mubr.msk.f32.mxu0 %vm569_vm3, %v178_v14  ;;  %v375_v25 = vld [vmem:[%s5985_s26 + $0x648] sm:$0xff]  ;;  %v376_v27 = vld [vmem:[%s5985_s26 + $0x650] sm:$0xff]  ;;  %v377_v29 = vld [vmem:[%s5985_s26 + $0x658] sm:$0xff] }
  0x18   : > { %5620 = vmatprep.mubr.msk.f32.mxu1 %vm569_vm3, %v370_v15  ;;  %v186_v30 = vld [vmem:[%s5985_s26 + $0x60] sm:$0xff]  ;;  %v187_v32 = vld [vmem:[%s5985_s26 + $0x68] sm:$0xff]  ;;  %v188_v34 = vld [vmem:[%s5985_s26 + $0x70] sm:$0xff] }
  0x19   : > { %v378_v31 = vld [vmem:[%s5985_s26 + $0x660] sm:$0xff]  ;;  %v379_v33 = vld [vmem:[%s5985_s26 + $0x668] sm:$0xff]  ;;  %v380_v35 = vld [vmem:[%s5985_s26 + $0x670] sm:$0xff] }
  0x1a   : > { %5333 = vmatmul.mubr.msk.f32.gmra.mrb[4].mxu0 %vm569_vm3, %v179_v16  ;;  %v189_v36 = vld [vmem:[%s5985_s26 + $0x78] sm:$0xff]  ;;  %v190_v38 = vld [vmem:[%s5985_s26 + $0x80] sm:$0xff]  ;;  %v191_v40 = vld [vmem:[%s5985_s26 + $0x88] sm:$0xff] }
  0x1b   : > { %5621 = vmatmul.mubr.msk.f32.gmra.mrb[4].mxu1 %vm569_vm3, %v371_v17  ;;  %5335 = vmatprep.mubr.msk.f32.mxu0 %vm569_vm3, %v180_v18  ;;  %v381_v37 = vld [vmem:[%s5985_s26 + $0x678] sm:$0xff]  ;;  %v382_v39 = vld [vmem:[%s5985_s26 + $0x680] sm:$0xff]  ;;  %v383_v41 = vld [vmem:[%s5985_s26 + $0x688] sm:$0xff] }
  0x1c   : > { %5623 = vmatprep.mubr.msk.f32.mxu1 %vm569_vm3, %v372_v19  ;;  %v192_v42 = vld [vmem:[%s5985_s26 + $0x90] sm:$0xff]  ;;  %v193_v44 = vld [vmem:[%s5985_s26 + $0x98] sm:$0xff]  ;;  %v194_v46 = vld [vmem:[%s5985_s26 + $0xa0] sm:$0xff] }
  0x1d   : > { %v384_v43 = vld [vmem:[%s5985_s26 + $0x690] sm:$0xff]  ;;  %v385_v45 = vld [vmem:[%s5985_s26 + $0x698] sm:$0xff]  ;;  %v386_v47 = vld [vmem:[%s5985_s26 + $0x6a0] sm:$0xff] }
  0x1e   : > { %5336 = vmatmul.mubr.msk.f32.gmra.mrb[6].mxu0 %vm569_vm3, %v181_v20  ;;  %v195_v48 = vld [vmem:[%s5985_s26 + $0xa8] sm:$0xff]  ;;  %v196_v50 = vld [vmem:[%s5985_s26 + $0xb0] sm:$0xff]  ;;  %v197_v52 = vld [vmem:[%s5985_s26 + $0xb8] sm:$0xff] }
  0x1f   : > { %5624 = vmatmul.mubr.msk.f32.gmra.mrb[6].mxu1 %vm569_vm3, %v373_v21  ;;  %5338 = vmatprep.mubr.msk.f32.mxu0 %vm569_vm3, %v182_v22  ;;  %v387_v49 = vld [vmem:[%s5985_s26 + $0x6a8] sm:$0xff]  ;;  %v388_v51 = vld [vmem:[%s5985_s26 + $0x6b0] sm:$0xff]  ;;  %v389_v53 = vld [vmem:[%s5985_s26 + $0x6b8] sm:$0xff] }
  0x20   : > { %5626 = vmatprep.mubr.msk.f32.mxu1 %vm569_vm3, %v374_v23  ;;  %v198_v54 = vld [vmem:[%s5985_s26 + $0xc0] sm:$0xff]  ;;  %v199_v56 = vld [vmem:[%s5985_s26 + $0xc8] sm:$0xff]  ;;  %v200_v58 = vld [vmem:[%s5985_s26 + $0xd0] sm:$0xff] }
  0x21   : > { %v390_v55 = vld [vmem:[%s5985_s26 + $0x6c0] sm:$0xff]  ;;  %v391_v57 = vld [vmem:[%s5985_s26 + $0x6c8] sm:$0xff]  ;;  %v392_v59 = vld [vmem:[%s5985_s26 + $0x6d0] sm:$0xff] }
  0x22   : > { %5339 = vmatmul.mubr.msk.f32.gmra.mrb[8].mxu0 %vm569_vm3, %v183_v24  ;;  %v201_v60 = vld [vmem:[%s5985_s26 + $0xd8] sm:$0xff]  ;;  %v202_v62 = vld [vmem:[%s5985_s26 + $0xe0] sm:$0xff]  ;;  %v203_v0 = vld [vmem:[%s5985_s26 + $0xe8] sm:$0xff] }
  0x23   : > { %5627 = vmatmul.mubr.msk.f32.gmra.mrb[8].mxu1 %vm569_vm3, %v375_v25  ;;  %5341 = vmatprep.mubr.msk.f32.mxu0 %vm569_vm3, %v184_v26  ;;  %v393_v61 = vld [vmem:[%s5985_s26 + $0x6d8] sm:$0xff]  ;;  %v394_v63 = vld [vmem:[%s5985_s26 + $0x6e0] sm:$0xff]  ;;  %v395_v1 = vld [vmem:[%s5985_s26 + $0x6e8] sm:$0xff] }
  0x24   : > { %5629 = vmatprep.mubr.msk.f32.mxu1 %vm569_vm3, %v376_v27  ;;  %v204_v2 = vld [vmem:[%s5985_s26 + $0xf0] sm:$0xff]  ;;  %v205_v4 = vld [vmem:[%s5985_s26 + $0xf8] sm:$0xff]  ;;  %v206_v6 = vld [vmem:[%s5985_s26 + $0x100] sm:$0xff] }
  0x25   : > { %v396_v3 = vld [vmem:[%s5985_s26 + $0x6f0] sm:$0xff]  ;;  %v397_v5 = vld [vmem:[%s5985_s26 + $0x6f8] sm:$0xff]  ;;  %v398_v7 = vld [vmem:[%s5985_s26 + $0x700] sm:$0xff] }
  0x26   : > { %5342 = vmatmul.mubr.msk.f32.gmra.mrb[10].mxu0 %vm569_vm3, %v185_v28  ;;  %v207_v8 = vld [vmem:[%s5985_s26 + $0x108] sm:$0xff]  ;;  %v208_v10 = vld [vmem:[%s5985_s26 + $0x110] sm:$0xff]  ;;  %v209_v12 = vld [vmem:[%s5985_s26 + $0x118] sm:$0xff] }
  0x27   : > { %5630 = vmatmul.mubr.msk.f32.gmra.mrb[10].mxu1 %vm569_vm3, %v377_v29  ;;  %5344 = vmatprep.mubr.msk.f32.mxu0 %vm569_vm3, %v186_v30  ;;  %v399_v9 = vld [vmem:[%s5985_s26 + $0x708] sm:$0xff]  ;;  %v400_v11 = vld [vmem:[%s5985_s26 + $0x710] sm:$0xff]  ;;  %v401_v13 = vld [vmem:[%s5985_s26 + $0x718] sm:$0xff] }
  0x28   : > { %5632 = vmatprep.mubr.msk.f32.mxu1 %vm569_vm3, %v378_v31  ;;  %v210_v14 = vld [vmem:[%s5985_s26 + $0x120] sm:$0xff]  ;;  %v211_v16 = vld [vmem:[%s5985_s26 + $0x128] sm:$0xff]  ;;  %v212_v18 = vld [vmem:[%s5985_s26 + $0x130] sm:$0xff] }
  0x29   : > { %v402_v15 = vld [vmem:[%s5985_s26 + $0x720] sm:$0xff]  ;;  %v403_v17 = vld [vmem:[%s5985_s26 + $0x728] sm:$0xff]  ;;  %v404_v19 = vld [vmem:[%s5985_s26 + $0x730] sm:$0xff] }
  0x2a   : > { %5345 = vmatmul.mubr.msk.f32.gmra.mrb[12].mxu0 %vm569_vm3, %v187_v32  ;;  %v213_v20 = vld [vmem:[%s5985_s26 + $0x138] sm:$0xff]  ;;  %v214_v22 = vld [vmem:[%s5985_s26 + $0x140] sm:$0xff]  ;;  %v215_v24 = vld [vmem:[%s5985_s26 + $0x148] sm:$0xff] }
  0x2b   : > { %5633 = vmatmul.mubr.msk.f32.gmra.mrb[12].mxu1 %vm569_vm3, %v379_v33  ;;  %5347 = vmatprep.mubr.msk.f32.mxu0 %vm569_vm3, %v188_v34  ;;  %v405_v21 = vld [vmem:[%s5985_s26 + $0x738] sm:$0xff]  ;;  %v406_v23 = vld [vmem:[%s5985_s26 + $0x740] sm:$0xff]  ;;  %v407_v25 = vld [vmem:[%s5985_s26 + $0x748] sm:$0xff] }
  0x2c   : > { %5635 = vmatprep.mubr.msk.f32.mxu1 %vm569_vm3, %v380_v35  ;;  %v216_v26 = vld [vmem:[%s5985_s26 + $0x150] sm:$0xff]  ;;  %v217_v28 = vld [vmem:[%s5985_s26 + $0x158] sm:$0xff]  ;;  %v218_v30 = vld [vmem:[%s5985_s26 + $0x160] sm:$0xff] }
  0x2d   : > { %v408_v27 = vld [vmem:[%s5985_s26 + $0x750] sm:$0xff]  ;;  %v409_v29 = vld [vmem:[%s5985_s26 + $0x758] sm:$0xff]  ;;  %v410_v31 = vld [vmem:[%s5985_s26 + $0x760] sm:$0xff] }
  0x2e   : > { %5348 = vmatmul.mubr.msk.f32.gmra.mrb[14].mxu0 %vm569_vm3, %v189_v36  ;;  %v219_v32 = vld [vmem:[%s5985_s26 + $0x168] sm:$0xff]  ;;  %v220_v34 = vld [vmem:[%s5985_s26 + $0x170] sm:$0xff]  ;;  %v221_v36 = vld [vmem:[%s5985_s26 + $0x178] sm:$0xff] }
  0x2f   : > { %5636 = vmatmul.mubr.msk.f32.gmra.mrb[14].mxu1 %vm569_vm3, %v381_v37  ;;  %5350 = vmatprep.mubr.msk.f32.mxu0 %vm569_vm3, %v190_v38  ;;  %v411_v33 = vld [vmem:[%s5985_s26 + $0x768] sm:$0xff]  ;;  %v412_v35 = vld [vmem:[%s5985_s26 + $0x770] sm:$0xff]  ;;  %v413_v37 = vld [vmem:[%s5985_s26 + $0x778] sm:$0xff] }
  0x30   : > { %5638 = vmatprep.mubr.msk.f32.mxu1 %vm569_vm3, %v382_v39  ;;  %v222_v38 = vld [vmem:[%s5985_s26 + $0x180] sm:$0xff] }
  0x31   : > { %v414_v39 = vld [vmem:[%s5985_s26 + $0x780] sm:$0xff] }
  0x32   : > { %5351 = vmatmul.mubr.msk.f32.gmra.mrb[16].mxu0 %vm569_vm3, %v191_v40  ;;  %v223_v40 = vld [vmem:[%s5985_s26 + $0x188] sm:$0xff] }
  0x33   : > { %5639 = vmatmul.mubr.msk.f32.gmra.mrb[16].mxu1 %vm569_vm3, %v383_v41  ;;  %5353 = vmatprep.mubr.msk.f32.mxu0 %vm569_vm3, %v192_v42  ;;  %v415_v41 = vld [vmem:[%s5985_s26 + $0x788] sm:$0xff]  ;;  %v224_v42 = vld [vmem:[%s5985_s26 + $0x190] sm:$0xff] }
  0x34   : > { %5641 = vmatprep.mubr.msk.f32.mxu1 %vm569_vm3, %v384_v43  ;;  %v416_v43 = vld [vmem:[%s5985_s26 + $0x790] sm:$0xff] }
  0x36   : > { %5354 = vmatmul.mubr.msk.f32.gmra.mrb[18].mxu0 %vm569_vm3, %v193_v44  ;;  %v225_v44 = vld [vmem:[%s5985_s26 + $0x198] sm:$0xff] }
  0x37   : > { %5642 = vmatmul.mubr.msk.f32.gmra.mrb[18].mxu1 %vm569_vm3, %v385_v45  ;;  %5356 = vmatprep.mubr.msk.f32.mxu0 %vm569_vm3, %v194_v46  ;;  %v417_v45 = vld [vmem:[%s5985_s26 + $0x798] sm:$0xff]  ;;  %v226_v46 = vld [vmem:[%s5985_s26 + $0x1a0] sm:$0xff] }
  0x38   : > { %5644 = vmatprep.mubr.msk.f32.mxu1 %vm569_vm3, %v386_v47  ;;  %v418_v47 = vld [vmem:[%s5985_s26 + $0x7a0] sm:$0xff] }
  0x3a   : > { %5357 = vmatmul.mubr.msk.f32.gmra.mrb[20].mxu0 %vm569_vm3, %v195_v48  ;;  %v227_v48 = vld [vmem:[%s5985_s26 + $0x1a8] sm:$0xff] }
  0x3b   : > { %5645 = vmatmul.mubr.msk.f32.gmra.mrb[20].mxu1 %vm569_vm3, %v387_v49  ;;  %5359 = vmatprep.mubr.msk.f32.mxu0 %vm569_vm3, %v196_v50  ;;  %v419_v49 = vld [vmem:[%s5985_s26 + $0x7a8] sm:$0xff]  ;;  %v228_v50 = vld [vmem:[%s5985_s26 + $0x1b0] sm:$0xff] }
  0x3c   : > { %5647 = vmatprep.mubr.msk.f32.mxu1 %vm569_vm3, %v388_v51  ;;  %v420_v51 = vld [vmem:[%s5985_s26 + $0x7b0] sm:$0xff] }
  0x3e   : > { %5360 = vmatmul.mubr.msk.f32.gmra.mrb[22].mxu0 %vm569_vm3, %v197_v52  ;;  %v229_v52 = vld [vmem:[%s5985_s26 + $0x1b8] sm:$0xff] }
  0x3f   : > { %5648 = vmatmul.mubr.msk.f32.gmra.mrb[22].mxu1 %vm569_vm3, %v389_v53  ;;  %5362 = vmatprep.mubr.msk.f32.mxu0 %vm569_vm3, %v198_v54  ;;  %v421_v53 = vld [vmem:[%s5985_s26 + $0x7b8] sm:$0xff]  ;;  %v230_v54 = vld [vmem:[%s5985_s26 + $0x1c0] sm:$0xff] }
  0x40   : > { %5650 = vmatprep.mubr.msk.f32.mxu1 %vm569_vm3, %v390_v55  ;;  %v422_v55 = vld [vmem:[%s5985_s26 + $0x7c0] sm:$0xff] }
  0x42   : > { %5363 = vmatmul.mubr.msk.f32.gmra.mrb[24].mxu0 %vm569_vm3, %v199_v56  ;;  %v231_v56 = vld [vmem:[%s5985_s26 + $0x1c8] sm:$0xff] }
  0x43   : > { %5651 = vmatmul.mubr.msk.f32.gmra.mrb[24].mxu1 %vm569_vm3, %v391_v57  ;;  %5365 = vmatprep.mubr.msk.f32.mxu0 %vm569_vm3, %v200_v58  ;;  %v423_v57 = vld [vmem:[%s5985_s26 + $0x7c8] sm:$0xff]  ;;  %v232_v58 = vld [vmem:[%s5985_s26 + $0x1d0] sm:$0xff] }
  0x44   : > { %5653 = vmatprep.mubr.msk.f32.mxu1 %vm569_vm3, %v392_v59  ;;  %v424_v59 = vld [vmem:[%s5985_s26 + $0x7d0] sm:$0xff] }
  0x46   : > { %5366 = vmatmul.mubr.msk.f32.gmra.mrb[26].mxu0 %vm569_vm3, %v201_v60  ;;  %v233_v60 = vld [vmem:[%s5985_s26 + $0x1d8] sm:$0xff] }
  0x47   : > { %5654 = vmatmul.mubr.msk.f32.gmra.mrb[26].mxu1 %vm569_vm3, %v393_v61  ;;  %5368 = vmatprep.mubr.msk.f32.mxu0 %vm569_vm3, %v202_v62  ;;  %v425_v61 = vld [vmem:[%s5985_s26 + $0x7d8] sm:$0xff]  ;;  %v234_v62 = vld [vmem:[%s5985_s26 + $0x1e0] sm:$0xff] }
  0x48   : > { %5656 = vmatprep.mubr.msk.f32.mxu1 %vm569_vm3, %v394_v63  ;;  %v426_v63 = vld [vmem:[%s5985_s26 + $0x7e0] sm:$0xff] }
  0x4a   : > { %5369 = vmatmul.mubr.msk.f32.gmra.mrb[28].mxu0 %vm569_vm3, %v203_v0  ;;  %v235_v0 = vld [vmem:[%s5985_s26 + $0x1e8] sm:$0xff] }
  0x4b   : > { %5657 = vmatmul.mubr.msk.f32.gmra.mrb[28].mxu1 %vm569_vm3, %v395_v1  ;;  %5371 = vmatprep.mubr.msk.f32.mxu0 %vm569_vm3, %v204_v2  ;;  %v427_v1 = vld [vmem:[%s5985_s26 + $0x7e8] sm:$0xff]  ;;  %v236_v2 = vld [vmem:[%s5985_s26 + $0x1f0] sm:$0xff] }
  0x4c   : > { %5659 = vmatprep.mubr.msk.f32.mxu1 %vm569_vm3, %v396_v3  ;;  %v428_v3 = vld [vmem:[%s5985_s26 + $0x7f0] sm:$0xff] }
  0x4e   : > { %5372 = vmatmul.mubr.msk.f32.gmra.mrb[30].mxu0 %vm569_vm3, %v205_v4  ;;  %v237_v4 = vld [vmem:[%s5985_s26 + $0x1f8] sm:$0xff] }
  0x4f   : > { %5660 = vmatmul.mubr.msk.f32.gmra.mrb[30].mxu1 %vm569_vm3, %v397_v5  ;;  %5374 = vmatprep.mubr.msk.f32.mxu0 %vm569_vm3, %v206_v6  ;;  %v429_v5 = vld [vmem:[%s5985_s26 + $0x7f8] sm:$0xff]  ;;  %v238_v6 = vld [vmem:[%s5985_s26 + $0x200] sm:$0xff] }
  0x50   : > { %5662 = vmatprep.mubr.msk.f32.mxu1 %vm569_vm3, %v398_v7  ;;  %v430_v7 = vld [vmem:[%s5985_s26 + $0x800] sm:$0xff] }
  0x52   : > { %5375 = vmatmul.mubr.msk.f32.gmra.mrb[32].mxu0 %vm569_vm3, %v207_v8  ;;  %v239_v8 = vld [vmem:[%s5985_s26 + $0x208] sm:$0xff] }
  0x53   : > { %5663 = vmatmul.mubr.msk.f32.gmra.mrb[32].mxu1 %vm569_vm3, %v399_v9  ;;  %5377 = vmatprep.mubr.msk.f32.mxu0 %vm569_vm3, %v208_v10  ;;  %v431_v9 = vld [vmem:[%s5985_s26 + $0x808] sm:$0xff]  ;;  %v240_v10 = vld [vmem:[%s5985_s26 + $0x210] sm:$0xff] }
  0x54   : > { %5665 = vmatprep.mubr.msk.f32.mxu1 %vm569_vm3, %v400_v11  ;;  %v432_v11 = vld [vmem:[%s5985_s26 + $0x810] sm:$0xff] }
  0x56   : > { %5378 = vmatmul.mubr.msk.f32.gmra.mrb[34].mxu0 %vm569_vm3, %v209_v12  ;;  %v241_v12 = vld [vmem:[%s5985_s26 + $0x218] sm:$0xff] }
  0x57   : > { %5666 = vmatmul.mubr.msk.f32.gmra.mrb[34].mxu1 %vm569_vm3, %v401_v13  ;;  %5380 = vmatprep.mubr.msk.f32.mxu0 %vm569_vm3, %v210_v14  ;;  %v433_v13 = vld [vmem:[%s5985_s26 + $0x818] sm:$0xff]  ;;  %v242_v14 = vld [vmem:[%s5985_s26 + $0x220] sm:$0xff] }
  0x58   : > { %5668 = vmatprep.mubr.msk.f32.mxu1 %vm569_vm3, %v402_v15  ;;  %v434_v15 = vld [vmem:[%s5985_s26 + $0x820] sm:$0xff] }
  0x5a   : > { %5381 = vmatmul.mubr.msk.f32.gmra.mrb[36].mxu0 %vm569_vm3, %v211_v16  ;;  %v243_v16 = vld [vmem:[%s5985_s26 + $0x228] sm:$0xff] }
  0x5b   : > { %5669 = vmatmul.mubr.msk.f32.gmra.mrb[36].mxu1 %vm569_vm3, %v403_v17  ;;  %5383 = vmatprep.mubr.msk.f32.mxu0 %vm569_vm3, %v212_v18  ;;  %v435_v17 = vld [vmem:[%s5985_s26 + $0x828] sm:$0xff]  ;;  %v244_v18 = vld [vmem:[%s5985_s26 + $0x230] sm:$0xff] }
  0x5c   : > { %5671 = vmatprep.mubr.msk.f32.mxu1 %vm569_vm3, %v404_v19  ;;  %v436_v19 = vld [vmem:[%s5985_s26 + $0x830] sm:$0xff] }
  0x5e   : > { %5384 = vmatmul.mubr.msk.f32.gmra.mrb[38].mxu0 %vm569_vm3, %v213_v20  ;;  %v245_v20 = vld [vmem:[%s5985_s26 + $0x238] sm:$0xff] }
  0x5f   : > { %5672 = vmatmul.mubr.msk.f32.gmra.mrb[38].mxu1 %vm569_vm3, %v405_v21  ;;  %5386 = vmatprep.mubr.msk.f32.mxu0 %vm569_vm3, %v214_v22  ;;  %v437_v21 = vld [vmem:[%s5985_s26 + $0x838] sm:$0xff]  ;;  %v246_v22 = vld [vmem:[%s5985_s26 + $0x240] sm:$0xff] }
  0x60   : > { %5674 = vmatprep.mubr.msk.f32.mxu1 %vm569_vm3, %v406_v23  ;;  %v438_v23 = vld [vmem:[%s5985_s26 + $0x840] sm:$0xff] }
  0x62   : > { %5387 = vmatmul.mubr.msk.f32.gmra.mrb[40].mxu0 %vm569_vm3, %v215_v24  ;;  %v247_v24 = vld [vmem:[%s5985_s26 + $0x248] sm:$0xff] }
  0x63   : > { %5675 = vmatmul.mubr.msk.f32.gmra.mrb[40].mxu1 %vm569_vm3, %v407_v25  ;;  %5389 = vmatprep.mubr.msk.f32.mxu0 %vm569_vm3, %v216_v26  ;;  %v439_v25 = vld [vmem:[%s5985_s26 + $0x848] sm:$0xff]  ;;  %v248_v26 = vld [vmem:[%s5985_s26 + $0x250] sm:$0xff] }
  0x64   : > { %5677 = vmatprep.mubr.msk.f32.mxu1 %vm569_vm3, %v408_v27  ;;  %v440_v27 = vld [vmem:[%s5985_s26 + $0x850] sm:$0xff] }
  0x66   : > { %5390 = vmatmul.mubr.msk.f32.gmra.mrb[42].mxu0 %vm569_vm3, %v217_v28  ;;  %v249_v28 = vld [vmem:[%s5985_s26 + $0x258] sm:$0xff] }
  0x67   : > { %5678 = vmatmul.mubr.msk.f32.gmra.mrb[42].mxu1 %vm569_vm3, %v409_v29  ;;  %5392 = vmatprep.mubr.msk.f32.mxu0 %vm569_vm3, %v218_v30  ;;  %v441_v29 = vld [vmem:[%s5985_s26 + $0x858] sm:$0xff]  ;;  %v250_v30 = vld [vmem:[%s5985_s26 + $0x260] sm:$0xff] }
  0x68   : > { %5680 = vmatprep.mubr.msk.f32.mxu1 %vm569_vm3, %v410_v31  ;;  %v442_v31 = vld [vmem:[%s5985_s26 + $0x860] sm:$0xff] }
  0x6a   : > { %5393 = vmatmul.mubr.msk.f32.gmra.mrb[44].mxu0 %vm569_vm3, %v219_v32  ;;  %v251_v32 = vld [vmem:[%s5985_s26 + $0x268] sm:$0xff] }
  0x6b   : > { %5681 = vmatmul.mubr.msk.f32.gmra.mrb[44].mxu1 %vm569_vm3, %v411_v33  ;;  %5395 = vmatprep.mubr.msk.f32.mxu0 %vm569_vm3, %v220_v34  ;;  %v443_v33 = vld [vmem:[%s5985_s26 + $0x868] sm:$0xff]  ;;  %v252_v34 = vld [vmem:[%s5985_s26 + $0x270] sm:$0xff] }
  0x6c   : > { %5683 = vmatprep.mubr.msk.f32.mxu1 %vm569_vm3, %v412_v35  ;;  %v444_v35 = vld [vmem:[%s5985_s26 + $0x870] sm:$0xff] }
  0x6e   : > { %5396 = vmatmul.mubr.msk.f32.gmra.mrb[46].mxu0 %vm569_vm3, %v221_v36  ;;  %v253_v36 = vld [vmem:[%s5985_s26 + $0x278] sm:$0xff] }
  0x6f   : > { %5684 = vmatmul.mubr.msk.f32.gmra.mrb[46].mxu1 %vm569_vm3, %v413_v37  ;;  %5398 = vmatprep.mubr.msk.f32.mxu0 %vm569_vm3, %v222_v38  ;;  %v445_v37 = vld [vmem:[%s5985_s26 + $0x878] sm:$0xff]  ;;  %v254_v38 = vld [vmem:[%s5985_s26 + $0x280] sm:$0xff] }
  0x70   : > { %5686 = vmatprep.mubr.msk.f32.mxu1 %vm569_vm3, %v414_v39  ;;  %v446_v39 = vld [vmem:[%s5985_s26 + $0x880] sm:$0xff] }
  0x72   : > { %5399 = vmatmul.mubr.msk.f32.gmra.mrb[48].mxu0 %vm569_vm3, %v223_v40  ;;  %v255_v40 = vld [vmem:[%s5985_s26 + $0x288] sm:$0xff] }
  0x73   : > { %5687 = vmatmul.mubr.msk.f32.gmra.mrb[48].mxu1 %vm569_vm3, %v415_v41  ;;  %5401 = vmatprep.mubr.msk.f32.mxu0 %vm569_vm3, %v224_v42  ;;  %v447_v41 = vld [vmem:[%s5985_s26 + $0x888] sm:$0xff]  ;;  %v256_v42 = vld [vmem:[%s5985_s26 + $0x290] sm:$0xff] }
  0x74   : > { %5689 = vmatprep.mubr.msk.f32.mxu1 %vm569_vm3, %v416_v43  ;;  %v448_v43 = vld [vmem:[%s5985_s26 + $0x890] sm:$0xff] }
  0x76   : > { %5402 = vmatmul.mubr.msk.f32.gmra.mrb[50].mxu0 %vm569_vm3, %v225_v44  ;;  %v257_v44 = vld [vmem:[%s5985_s26 + $0x298] sm:$0xff] }
  0x77   : > { %5690 = vmatmul.mubr.msk.f32.gmra.mrb[50].mxu1 %vm569_vm3, %v417_v45  ;;  %5404 = vmatprep.mubr.msk.f32.mxu0 %vm569_vm3, %v226_v46  ;;  %v449_v45 = vld [vmem:[%s5985_s26 + $0x898] sm:$0xff]  ;;  %v258_v46 = vld [vmem:[%s5985_s26 + $0x2a0] sm:$0xff] }
  0x78   : > { %5692 = vmatprep.mubr.msk.f32.mxu1 %vm569_vm3, %v418_v47  ;;  %v450_v47 = vld [vmem:[%s5985_s26 + $0x8a0] sm:$0xff] }
  0x7a   : > { %5405 = vmatmul.mubr.msk.f32.gmra.mrb[52].mxu0 %vm569_vm3, %v227_v48  ;;  %v259_v48 = vld [vmem:[%s5985_s26 + $0x2a8] sm:$0xff] }
  0x7b   : > { %5693 = vmatmul.mubr.msk.f32.gmra.mrb[52].mxu1 %vm569_vm3, %v419_v49  ;;  %5407 = vmatprep.mubr.msk.f32.mxu0 %vm569_vm3, %v228_v50  ;;  %v451_v49 = vld [vmem:[%s5985_s26 + $0x8a8] sm:$0xff]  ;;  %v260_v50 = vld [vmem:[%s5985_s26 + $0x2b0] sm:$0xff] }
  0x7c   : > { %5695 = vmatprep.mubr.msk.f32.mxu1 %vm569_vm3, %v420_v51  ;;  %v452_v51 = vld [vmem:[%s5985_s26 + $0x8b0] sm:$0xff] }
  0x7e   : > { %5408 = vmatmul.mubr.msk.f32.gmra.mrb[54].mxu0 %vm569_vm3, %v229_v52  ;;  %v261_v52 = vld [vmem:[%s5985_s26 + $0x2b8] sm:$0xff] }
  0x7f   : > { %5696 = vmatmul.mubr.msk.f32.gmra.mrb[54].mxu1 %vm569_vm3, %v421_v53  ;;  %5410 = vmatprep.mubr.msk.f32.mxu0 %vm569_vm3, %v230_v54  ;;  %v453_v53 = vld [vmem:[%s5985_s26 + $0x8b8] sm:$0xff]  ;;  %v262_v54 = vld [vmem:[%s5985_s26 + $0x2c0] sm:$0xff] }
  0x80   : > { %5698 = vmatprep.mubr.msk.f32.mxu1 %vm569_vm3, %v422_v55  ;;  %v454_v55 = vld [vmem:[%s5985_s26 + $0x8c0] sm:$0xff] }
  0x82   : > { %5411 = vmatmul.mubr.msk.f32.gmra.mrb[56].mxu0 %vm569_vm3, %v231_v56  ;;  %v263_v56 = vld [vmem:[%s5985_s26 + $0x2c8] sm:$0xff] }
  0x83   : > { %5699 = vmatmul.mubr.msk.f32.gmra.mrb[56].mxu1 %vm569_vm3, %v423_v57  ;;  %5413 = vmatprep.mubr.msk.f32.mxu0 %vm569_vm3, %v232_v58  ;;  %v455_v57 = vld [vmem:[%s5985_s26 + $0x8c8] sm:$0xff]  ;;  %v264_v58 = vld [vmem:[%s5985_s26 + $0x2d0] sm:$0xff] }
  0x84   : > { %5701 = vmatprep.mubr.msk.f32.mxu1 %vm569_vm3, %v424_v59  ;;  %v456_v59 = vld [vmem:[%s5985_s26 + $0x8d0] sm:$0xff] }
  0x86   : > { %5414 = vmatmul.mubr.msk.f32.gmra.mrb[58].mxu0 %vm569_vm3, %v233_v60  ;;  %v265_v60 = vld [vmem:[%s5985_s26 + $0x2d8] sm:$0xff] }
  0x87   : > { %5702 = vmatmul.mubr.msk.f32.gmra.mrb[58].mxu1 %vm569_vm3, %v425_v61  ;;  %5416 = vmatprep.mubr.msk.f32.mxu0 %vm569_vm3, %v234_v62  ;;  %v457_v61 = vld [vmem:[%s5985_s26 + $0x8d8] sm:$0xff]  ;;  %v266_v62 = vld [vmem:[%s5985_s26 + $0x2e0] sm:$0xff] }
  0x88   : > { %5704 = vmatprep.mubr.msk.f32.mxu1 %vm569_vm3, %v426_v63  ;;  %v458_v63 = vld [vmem:[%s5985_s26 + $0x8e0] sm:$0xff] }
  0x8a   : > { %5417 = vmatmul.mubr.msk.f32.gmra.mrb[60].mxu0 %vm569_vm3, %v235_v0  ;;  %v267_v0 = vld [vmem:[%s5985_s26 + $0x2e8] sm:$0xff] }
  0x8b   : > { %5705 = vmatmul.mubr.msk.f32.gmra.mrb[60].mxu1 %vm569_vm3, %v427_v1  ;;  %5419 = vmatprep.mubr.msk.f32.mxu0 %vm569_vm3, %v236_v2  ;;  %v459_v1 = vld [vmem:[%s5985_s26 + $0x8e8] sm:$0xff]  ;;  %v268_v2 = vld [vmem:[%s5985_s26 + $0x2f0] sm:$0xff] }
  0x8c   : > { %5707 = vmatprep.mubr.msk.f32.mxu1 %vm569_vm3, %v428_v3  ;;  %v460_v3 = vld [vmem:[%s5985_s26 + $0x8f0] sm:$0xff] }
  0x8e   : > { %5420 = vmatmul.mubr.msk.f32.gmra.mrb[62].mxu0 %vm569_vm3, %v237_v4  ;;  %v269_v4 = vld [vmem:[%s5985_s26 + $0x2f8] sm:$0xff] }
  0x8f   : > { %5708 = vmatmul.mubr.msk.f32.gmra.mrb[62].mxu1 %vm569_vm3, %v429_v5  ;;  %5422 = vmatprep.mubr.msk.f32.mxu0 %vm569_vm3, %v238_v6  ;;  %v461_v5 = vld [vmem:[%s5985_s26 + $0x8f8] sm:$0xff]  ;;  %v270_v6 = vld [vmem:[%s5985_s26 + $0x300] sm:$0xff] }
  0x90   : > { %5710 = vmatprep.mubr.msk.f32.mxu1 %vm569_vm3, %v430_v7  ;;  %v462_v7 = vld [vmem:[%s5985_s26 + $0x900] sm:$0xff] }
  0x92   : > { %5423 = vmatmul.mubr.msk.f32.gmra.mrb[64].mxu0 %vm569_vm3, %v239_v8  ;;  %v271_v8 = vld [vmem:[%s5985_s26 + $0x308] sm:$0xff] }
  0x93   : > { %5711 = vmatmul.mubr.msk.f32.gmra.mrb[64].mxu1 %vm569_vm3, %v431_v9  ;;  %5425 = vmatprep.mubr.msk.f32.mxu0 %vm569_vm3, %v240_v10  ;;  %v463_v9 = vld [vmem:[%s5985_s26 + $0x908] sm:$0xff]  ;;  %v272_v10 = vld [vmem:[%s5985_s26 + $0x310] sm:$0xff] }
  0x94   : > { %5713 = vmatprep.mubr.msk.f32.mxu1 %vm569_vm3, %v432_v11  ;;  %v464_v11 = vld [vmem:[%s5985_s26 + $0x910] sm:$0xff] }
  0x96   : > { %5426 = vmatmul.mubr.msk.f32.gmra.mrb[66].mxu0 %vm569_vm3, %v241_v12  ;;  %v273_v12 = vld [vmem:[%s5985_s26 + $0x318] sm:$0xff] }
  0x97   : > { %5714 = vmatmul.mubr.msk.f32.gmra.mrb[66].mxu1 %vm569_vm3, %v433_v13  ;;  %5428 = vmatprep.mubr.msk.f32.mxu0 %vm569_vm3, %v242_v14  ;;  %v465_v13 = vld [vmem:[%s5985_s26 + $0x918] sm:$0xff]  ;;  %v274_v14 = vld [vmem:[%s5985_s26 + $0x320] sm:$0xff] }
  0x98   : > { %5716 = vmatprep.mubr.msk.f32.mxu1 %vm569_vm3, %v434_v15  ;;  %v466_v15 = vld [vmem:[%s5985_s26 + $0x920] sm:$0xff] }
  0x9a   : > { %5429 = vmatmul.mubr.msk.f32.gmra.mrb[68].mxu0 %vm569_vm3, %v243_v16  ;;  %v275_v16 = vld [vmem:[%s5985_s26 + $0x328] sm:$0xff] }
  0x9b   : > { %5717 = vmatmul.mubr.msk.f32.gmra.mrb[68].mxu1 %vm569_vm3, %v435_v17  ;;  %5431 = vmatprep.mubr.msk.f32.mxu0 %vm569_vm3, %v244_v18  ;;  %v467_v17 = vld [vmem:[%s5985_s26 + $0x928] sm:$0xff]  ;;  %v276_v18 = vld [vmem:[%s5985_s26 + $0x330] sm:$0xff] }
  0x9c   : > { %5719 = vmatprep.mubr.msk.f32.mxu1 %vm569_vm3, %v436_v19  ;;  %v468_v19 = vld [vmem:[%s5985_s26 + $0x930] sm:$0xff] }
  0x9e   : > { %5432 = vmatmul.mubr.msk.f32.gmra.mrb[70].mxu0 %vm569_vm3, %v245_v20  ;;  %v277_v20 = vld [vmem:[%s5985_s26 + $0x338] sm:$0xff] }
  0x9f   : > { %5720 = vmatmul.mubr.msk.f32.gmra.mrb[70].mxu1 %vm569_vm3, %v437_v21  ;;  %5434 = vmatprep.mubr.msk.f32.mxu0 %vm569_vm3, %v246_v22  ;;  %v469_v21 = vld [vmem:[%s5985_s26 + $0x938] sm:$0xff]  ;;  %v278_v22 = vld [vmem:[%s5985_s26 + $0x340] sm:$0xff] }
  0xa0   : > { %5722 = vmatprep.mubr.msk.f32.mxu1 %vm569_vm3, %v438_v23  ;;  %v470_v23 = vld [vmem:[%s5985_s26 + $0x940] sm:$0xff] }
  0xa2   : > { %5435 = vmatmul.mubr.msk.f32.gmra.mrb[72].mxu0 %vm569_vm3, %v247_v24  ;;  %v279_v24 = vld [vmem:[%s5985_s26 + $0x348] sm:$0xff] }
  0xa3   : > { %5723 = vmatmul.mubr.msk.f32.gmra.mrb[72].mxu1 %vm569_vm3, %v439_v25  ;;  %5437 = vmatprep.mubr.msk.f32.mxu0 %vm569_vm3, %v248_v26  ;;  %v471_v25 = vld [vmem:[%s5985_s26 + $0x948] sm:$0xff]  ;;  %v280_v26 = vld [vmem:[%s5985_s26 + $0x350] sm:$0xff] }
  0xa4   : > { %5725 = vmatprep.mubr.msk.f32.mxu1 %vm569_vm3, %v440_v27  ;;  %v472_v27 = vld [vmem:[%s5985_s26 + $0x950] sm:$0xff] }
  0xa6   : > { %5438 = vmatmul.mubr.msk.f32.gmra.mrb[74].mxu0 %vm569_vm3, %v249_v28  ;;  %v6416_v28 = vld [vmem:[%s7555_s2] ss:$0 sm:$0xff] }
  0xa7   : > { %5726 = vmatmul.mubr.msk.f32.gmra.mrb[74].mxu1 %vm569_vm3, %v441_v29  ;;  %5440 = vmatprep.mubr.msk.f32.mxu0 %vm569_vm3, %v250_v30  ;;  %v281_v29 = vld [vmem:[%s5985_s26 + $0x358] sm:$0xff] }
  0xa8   : > { %5728 = vmatprep.mubr.msk.f32.mxu1 %vm569_vm3, %v442_v31  ;;  %v473_v30 = vld [vmem:[%s5985_s26 + $0x958] sm:$0xff]  ;;  %v282_v31 = vld [vmem:[%s5985_s26 + $0x360] sm:$0xff] }
  0xaa   : > { %5441 = vmatmul.mubr.msk.f32.gmra.mrb[76].mxu0 %vm569_vm3, %v251_v32  ;;  %v474_v32 = vld [vmem:[%s5985_s26 + $0x960] sm:$0xff] }
  0xab   : > { %5729 = vmatmul.mubr.msk.f32.gmra.mrb[76].mxu1 %vm569_vm3, %v443_v33  ;;  %5443 = vmatprep.mubr.msk.f32.mxu0 %vm569_vm3, %v252_v34 }
  0xac   : > { %5731 = vmatprep.mubr.msk.f32.mxu1 %vm569_vm3, %v444_v35 }
  0xae   : > { %5444 = vmatmul.mubr.msk.f32.gmra.mrb[78].mxu0 %vm569_vm3, %v253_v36 }
  0xaf   : > { %5732 = vmatmul.mubr.msk.f32.gmra.mrb[78].mxu1 %vm569_vm3, %v445_v37  ;;  %5446 = vmatprep.mubr.msk.f32.mxu0 %vm569_vm3, %v254_v38 }
  0xb0   : > { %5734 = vmatprep.mubr.msk.f32.mxu1 %vm569_vm3, %v446_v39 }
  0xb2   : > { %5447 = vmatmul.mubr.msk.f32.gmra.mrb[80].mxu0 %vm569_vm3, %v255_v40 }
  0xb3   : > { %5735 = vmatmul.mubr.msk.f32.gmra.mrb[80].mxu1 %vm569_vm3, %v447_v41  ;;  %5449 = vmatprep.mubr.msk.f32.mxu0 %vm569_vm3, %v256_v42  ;;  %v283_v41 = vld [vmem:[%s5985_s26 + $0x368] sm:$0xff] }
  0xb4   : > { %5737 = vmatprep.mubr.msk.f32.mxu1 %vm569_vm3, %v448_v43  ;;  %v475_v42 = vld [vmem:[%s5985_s26 + $0x968] sm:$0xff] }
  0xb6   : > { %5450 = vmatmul.mubr.msk.f32.gmra.mrb[82].mxu0 %vm569_vm3, %v257_v44 }
  0xb7   : > { %5738 = vmatmul.mubr.msk.f32.gmra.mrb[82].mxu1 %vm569_vm3, %v449_v45  ;;  %5452 = vmatprep.mubr.msk.f32.mxu0 %vm569_vm3, %v258_v46  ;;  %v284_v45 = vld [vmem:[%s5985_s26 + $0x370] sm:$0xff] }
  0xb8   : > { %5740 = vmatprep.mubr.msk.f32.mxu1 %vm569_vm3, %v450_v47  ;;  %v476_v46 = vld [vmem:[%s5985_s26 + $0x970] sm:$0xff] }
  0xba   : > { %5453 = vmatmul.mubr.msk.f32.gmra.mrb[84].mxu0 %vm569_vm3, %v259_v48 }
  0xbb   : > { %5741 = vmatmul.mubr.msk.f32.gmra.mrb[84].mxu1 %vm569_vm3, %v451_v49  ;;  %5455 = vmatprep.mubr.msk.f32.mxu0 %vm569_vm3, %v260_v50 }
  0xbc   : > { %5743 = vmatprep.mubr.msk.f32.mxu1 %vm569_vm3, %v452_v51 }
  0xbe   : > { %5456 = vmatmul.mubr.msk.f32.gmra.mrb[86].mxu0 %vm569_vm3, %v261_v52 }
  0xbf   : > { %5744 = vmatmul.mubr.msk.f32.gmra.mrb[86].mxu1 %vm569_vm3, %v453_v53  ;;  %5458 = vmatprep.mubr.msk.f32.mxu0 %vm569_vm3, %v262_v54 }
  0xc0   : > { %5746 = vmatprep.mubr.msk.f32.mxu1 %vm569_vm3, %v454_v55 }
  0xc2   : > { %5459 = vmatmul.mubr.msk.f32.gmra.mrb[88].mxu0 %vm569_vm3, %v263_v56 }
  0xc3   : > { %5747 = vmatmul.mubr.msk.f32.gmra.mrb[88].mxu1 %vm569_vm3, %v455_v57  ;;  %5461 = vmatprep.mubr.msk.f32.mxu0 %vm569_vm3, %v264_v58  ;;  %v285_v57 = vld [vmem:[%s5985_s26 + $0x378] sm:$0xff] }
  0xc4   : > { %5749 = vmatprep.mubr.msk.f32.mxu1 %vm569_vm3, %v456_v59  ;;  %v477_v58 = vld [vmem:[%s5985_s26 + $0x978] sm:$0xff] }
  0xc6   : > { %5462 = vmatmul.mubr.msk.f32.gmra.mrb[90].mxu0 %vm569_vm3, %v265_v60 }
  0xc7   : > { %5750 = vmatmul.mubr.msk.f32.gmra.mrb[90].mxu1 %vm569_vm3, %v457_v61  ;;  %5464 = vmatprep.mubr.msk.f32.mxu0 %vm569_vm3, %v266_v62  ;;  %v286_v61 = vld [vmem:[%s5985_s26 + $0x380] sm:$0xff] }
  0xc8   : > { %5752 = vmatprep.mubr.msk.f32.mxu1 %vm569_vm3, %v458_v63  ;;  %v478_v62 = vld [vmem:[%s5985_s26 + $0x980] sm:$0xff] }
  0xca   : > { %5465 = vmatmul.mubr.msk.f32.gmra.mrb[92].mxu0 %vm569_vm3, %v267_v0 }
  0xcb   : > { %5753 = vmatmul.mubr.msk.f32.gmra.mrb[92].mxu1 %vm569_vm3, %v459_v1  ;;  %5467 = vmatprep.mubr.msk.f32.mxu0 %vm569_vm3, %v268_v2 }
  0xcc   : > { %5755 = vmatprep.mubr.msk.f32.mxu1 %vm569_vm3, %v460_v3 }
  0xce   : > { %5468 = vmatmul.mubr.msk.f32.gmra.mrb[94].mxu0 %vm569_vm3, %v269_v4 }
  0xcf   : > { %5756 = vmatmul.mubr.msk.f32.gmra.mrb[94].mxu1 %vm569_vm3, %v461_v5  ;;  %5470 = vmatprep.mubr.msk.f32.mxu0 %vm569_vm3, %v270_v6 }
  0xd0   : > { %5758 = vmatprep.mubr.msk.f32.mxu1 %vm569_vm3, %v462_v7 }
  0xd2   : > { %5471 = vmatmul.mubr.msk.f32.gmra.mrb[96].mxu0 %vm569_vm3, %v271_v8 }
  0xd3   : > { %5759 = vmatmul.mubr.msk.f32.gmra.mrb[96].mxu1 %vm569_vm3, %v463_v9  ;;  %5473 = vmatprep.mubr.msk.f32.mxu0 %vm569_vm3, %v272_v10  ;;  %v287_v9 = vld [vmem:[%s5985_s26 + $0x388] sm:$0xff] }
  0xd4   : > { %5761 = vmatprep.mubr.msk.f32.mxu1 %vm569_vm3, %v464_v11  ;;  %v479_v10 = vld [vmem:[%s5985_s26 + $0x988] sm:$0xff] }
  0xd6   : > { %5474 = vmatmul.mubr.msk.f32.gmra.mrb[98].mxu0 %vm569_vm3, %v273_v12 }
  0xd7   : > { %5762 = vmatmul.mubr.msk.f32.gmra.mrb[98].mxu1 %vm569_vm3, %v465_v13  ;;  %5476 = vmatprep.mubr.msk.f32.mxu0 %vm569_vm3, %v274_v14  ;;  %v288_v13 = vld [vmem:[%s5985_s26 + $0x390] sm:$0xff] }
  0xd8   : > { %5764 = vmatprep.mubr.msk.f32.mxu1 %vm569_vm3, %v466_v15  ;;  %v480_v14 = vld [vmem:[%s5985_s26 + $0x990] sm:$0xff] }
  0xda   : > { %5477 = vmatmul.mubr.msk.f32.gmra.mrb[100].mxu0 %vm569_vm3, %v275_v16 }
  0xdb   : > { %5765 = vmatmul.mubr.msk.f32.gmra.mrb[100].mxu1 %vm569_vm3, %v467_v17  ;;  %5479 = vmatprep.mubr.msk.f32.mxu0 %vm569_vm3, %v276_v18 }
  0xdc   : > { %5767 = vmatprep.mubr.msk.f32.mxu1 %vm569_vm3, %v468_v19 }
  0xde   : > { %5480 = vmatmul.mubr.msk.f32.gmra.mrb[102].mxu0 %vm569_vm3, %v277_v20 }
  0xdf   : > { %5768 = vmatmul.mubr.msk.f32.gmra.mrb[102].mxu1 %vm569_vm3, %v469_v21  ;;  %5482 = vmatprep.mubr.msk.f32.mxu0 %vm569_vm3, %v278_v22 }
  0xe0   : > { %5770 = vmatprep.mubr.msk.f32.mxu1 %vm569_vm3, %v470_v23 }
  0xe2   : > { %5483 = vmatmul.mubr.msk.f32.gmra.mrb[104].mxu0 %vm569_vm3, %v279_v24 }
  0xe3   : > { %5771 = vmatmul.mubr.msk.f32.gmra.mrb[104].mxu1 %vm569_vm3, %v471_v25  ;;  %5485 = vmatprep.mubr.msk.f32.mxu0 %vm569_vm3, %v280_v26  ;;  %v289_v25 = vld [vmem:[%s5985_s26 + $0x398] sm:$0xff] }
  0xe4   : > { %5773 = vmatprep.mubr.msk.f32.mxu1 %vm569_vm3, %v472_v27  ;;  %v481_v26 = vld [vmem:[%s5985_s26 + $0x998] sm:$0xff] }
  0xe5   : > { %v5328_v33 = vpop.f32.mrb[0].mxu0 }
  0xe6   : > { %v5616_v34 = vpop.f32.mrb[0].mxu1  ;;  %v1798_v35 = vadd.f32 %v5328_v33, %v6416_v28  ;;  %v1792_v37 = vpop.f32.mrb[1].mxu0  ;;  %5486 = vmatmul.mubr.msk.f32.gmra.mrb[106].mxu0 %vm569_vm3, %v281_v29 }
  0xe7   : > { %v2758_v36 = vadd.f32 %v5616_v34, %v6416_v28  ;;  %v2752_v38 = vpop.f32.mrb[1].mxu1  ;;  %5774 = vmatmul.mubr.msk.f32.gmra.mrb[106].mxu1 %vm569_vm3, %v473_v30  ;;  %v1793_v39 = vadd.f32 %v6416_v28, %v1792_v37  ;;  %5488 = vmatprep.mubr.msk.f32.mxu0 %vm569_vm3, %v282_v31  ;;  %v290_v30 = vld [vmem:[%s5985_s26 + $0x3a0] sm:$0xff] }
  0xe8   : > { %v2753_v40 = vadd.f32 %v6416_v28, %v2752_v38  ;;  %5776 = vmatprep.mubr.msk.f32.mxu1 %vm569_vm3, %v474_v32  ;;  %v3712_v43 = vmax.f32 %v1798_v35, 0.0  ;;  %v482_v31 = vld [vmem:[%s5985_s26 + $0x9a0] sm:$0xff] }
  0xe9   : > { %v3904_v44 = vmax.f32 %v2758_v36, 0.0  ;;  %v3711_v47 = vmax.f32 %v1793_v39, 0.0  ;;  %v5331_v49 = vpop.f32.mrb[2].mxu0 }
  0xea   : > { %v3903_v48 = vmax.f32 %v2753_v40, 0.0  ;;  %v5619_v50 = vpop.f32.mrb[2].mxu1  ;;  %4096 = vst [vmem:[%s6433_s4 + $0x8] sm:$0xff] %v3712_v43  ;;  %v1808_v51 = vadd.f32 %v5331_v49, %v6416_v28  ;;  %v1802_v53 = vpop.f32.mrb[3].mxu0  ;;  %5489 = vmatmul.mubr.msk.f32.gmra.mrb[108].mxu0 %vm569_vm3, %v283_v41  ;;  %v483_v43 = vld [vmem:[%s5985_s26 + $0x9a8] sm:$0xff] }
  0xeb   : > { %4288 = vst [vmem:[%s6433_s4 + $0x608] sm:$0xff] %v3904_v44  ;;  %v2768_v52 = vadd.f32 %v5619_v50, %v6416_v28  ;;  %v2762_v54 = vpop.f32.mrb[3].mxu1  ;;  %5777 = vmatmul.mubr.msk.f32.gmra.mrb[108].mxu1 %vm569_vm3, %v475_v42  ;;  %4095 = vst [vmem:[%s6433_s4] sm:$0xff] %v3711_v47  ;;  %v1803_v55 = vadd.f32 %v6416_v28, %v1802_v53  ;;  %5491 = vmatprep.mubr.msk.f32.mxu0 %vm569_vm3, %v284_v45  ;;  %v291_v42 = vld [vmem:[%s5985_s26 + $0x3a8] sm:$0xff]  ;;  %v484_v47 = vld [vmem:[%s5985_s26 + $0x9b0] sm:$0xff] }
  0xec   : > { %4287 = vst [vmem:[%s6433_s4 + $0x600] sm:$0xff] %v3903_v48  ;;  %v2763_v56 = vadd.f32 %v6416_v28, %v2762_v54  ;;  %5779 = vmatprep.mubr.msk.f32.mxu1 %vm569_vm3, %v476_v46  ;;  %v3714_v59 = vmax.f32 %v1808_v51, 0.0  ;;  %v292_v46 = vld [vmem:[%s5985_s26 + $0x3b0] sm:$0xff] }
  0xed   : > { %v3906_v60 = vmax.f32 %v2768_v52, 0.0  ;;  %v3713_v63 = vmax.f32 %v1803_v55, 0.0  ;;  %v5334_v1 = vpop.f32.mrb[4].mxu0 }
  0xee   : > { %v3905_v0 = vmax.f32 %v2763_v56, 0.0  ;;  %v5622_v2 = vpop.f32.mrb[4].mxu1  ;;  %4098 = vst [vmem:[%s6433_s4 + $0x18] sm:$0xff] %v3714_v59  ;;  %v1818_v3 = vadd.f32 %v5334_v1, %v6416_v28  ;;  %v1812_v5 = vpop.f32.mrb[5].mxu0  ;;  %5492 = vmatmul.mubr.msk.f32.gmra.mrb[110].mxu0 %vm569_vm3, %v285_v57  ;;  %v485_v59 = vld [vmem:[%s5985_s26 + $0x9b8] sm:$0xff] }
  0xef   : > { %4290 = vst [vmem:[%s6433_s4 + $0x618] sm:$0xff] %v3906_v60  ;;  %v2778_v4 = vadd.f32 %v5622_v2, %v6416_v28  ;;  %v2772_v6 = vpop.f32.mrb[5].mxu1  ;;  %5780 = vmatmul.mubr.msk.f32.gmra.mrb[110].mxu1 %vm569_vm3, %v477_v58  ;;  %4097 = vst [vmem:[%s6433_s4 + $0x10] sm:$0xff] %v3713_v63  ;;  %v1813_v7 = vadd.f32 %v6416_v28, %v1812_v5  ;;  %5494 = vmatprep.mubr.msk.f32.mxu0 %vm569_vm3, %v286_v61  ;;  %v293_v58 = vld [vmem:[%s5985_s26 + $0x3b8] sm:$0xff]  ;;  %v486_v63 = vld [vmem:[%s5985_s26 + $0x9c0] sm:$0xff] }
  0xf0   : > { %4289 = vst [vmem:[%s6433_s4 + $0x610] sm:$0xff] %v3905_v0  ;;  %v2773_v8 = vadd.f32 %v6416_v28, %v2772_v6  ;;  %5782 = vmatprep.mubr.msk.f32.mxu1 %vm569_vm3, %v478_v62  ;;  %v3716_v11 = vmax.f32 %v1818_v3, 0.0  ;;  %v294_v62 = vld [vmem:[%s5985_s26 + $0x3c0] sm:$0xff] }
  0xf1   : > { %v3908_v12 = vmax.f32 %v2778_v4, 0.0  ;;  %v3715_v15 = vmax.f32 %v1813_v7, 0.0  ;;  %v5337_v17 = vpop.f32.mrb[6].mxu0 }
  0xf2   : > { %v3907_v16 = vmax.f32 %v2773_v8, 0.0  ;;  %v5625_v18 = vpop.f32.mrb[6].mxu1  ;;  %4100 = vst [vmem:[%s6433_s4 + $0x28] sm:$0xff] %v3716_v11  ;;  %v1828_v19 = vadd.f32 %v5337_v17, %v6416_v28  ;;  %v1822_v21 = vpop.f32.mrb[7].mxu0  ;;  %5495 = vmatmul.mubr.msk.f32.gmra.mrb[112].mxu0 %vm569_vm3, %v287_v9  ;;  %v487_v11 = vld [vmem:[%s5985_s26 + $0x9c8] sm:$0xff] }
  0xf3   : > { %4292 = vst [vmem:[%s6433_s4 + $0x628] sm:$0xff] %v3908_v12  ;;  %v2788_v20 = vadd.f32 %v5625_v18, %v6416_v28  ;;  %v2782_v22 = vpop.f32.mrb[7].mxu1  ;;  %5783 = vmatmul.mubr.msk.f32.gmra.mrb[112].mxu1 %vm569_vm3, %v479_v10  ;;  %4099 = vst [vmem:[%s6433_s4 + $0x20] sm:$0xff] %v3715_v15  ;;  %v1823_v23 = vadd.f32 %v6416_v28, %v1822_v21  ;;  %5497 = vmatprep.mubr.msk.f32.mxu0 %vm569_vm3, %v288_v13  ;;  %v295_v10 = vld [vmem:[%s5985_s26 + $0x3c8] sm:$0xff]  ;;  %v488_v15 = vld [vmem:[%s5985_s26 + $0x9d0] sm:$0xff] }
  0xf4   : > { %4291 = vst [vmem:[%s6433_s4 + $0x620] sm:$0xff] %v3907_v16  ;;  %v2783_v24 = vadd.f32 %v6416_v28, %v2782_v22  ;;  %5785 = vmatprep.mubr.msk.f32.mxu1 %vm569_vm3, %v480_v14  ;;  %v3718_v27 = vmax.f32 %v1828_v19, 0.0  ;;  %v296_v14 = vld [vmem:[%s5985_s26 + $0x3d0] sm:$0xff] }
  0xf5   : > { %v3910_v29 = vmax.f32 %v2788_v20, 0.0  ;;  %v3717_v32 = vmax.f32 %v1823_v23, 0.0  ;;  %v5340_v34 = vpop.f32.mrb[8].mxu0 }
  0xf6   : > { %v3909_v33 = vmax.f32 %v2783_v24, 0.0  ;;  %v5628_v35 = vpop.f32.mrb[8].mxu1  ;;  %4102 = vst [vmem:[%s6433_s4 + $0x38] sm:$0xff] %v3718_v27  ;;  %v1838_v36 = vadd.f32 %v5340_v34, %v6416_v28  ;;  %v1832_v38 = vpop.f32.mrb[9].mxu0  ;;  %5498 = vmatmul.mubr.msk.f32.gmra.mrb[114].mxu0 %vm569_vm3, %v289_v25  ;;  %v489_v27 = vld [vmem:[%s5985_s26 + $0x9d8] sm:$0xff] }
  0xf7   : > { %4294 = vst [vmem:[%s6433_s4 + $0x638] sm:$0xff] %v3910_v29  ;;  %v2798_v37 = vadd.f32 %v5628_v35, %v6416_v28  ;;  %v2792_v39 = vpop.f32.mrb[9].mxu1  ;;  %5786 = vmatmul.mubr.msk.f32.gmra.mrb[114].mxu1 %vm569_vm3, %v481_v26  ;;  %4101 = vst [vmem:[%s6433_s4 + $0x30] sm:$0xff] %v3717_v32  ;;  %v1833_v40 = vadd.f32 %v6416_v28, %v1832_v38  ;;  %5500 = vmatprep.mubr.msk.f32.mxu0 %vm569_vm3, %v290_v30  ;;  %v297_v26 = vld [vmem:[%s5985_s26 + $0x3d8] sm:$0xff]  ;;  %v490_v32 = vld [vmem:[%s5985_s26 + $0x9e0] sm:$0xff] }
  0xf8   : > { %4293 = vst [vmem:[%s6433_s4 + $0x630] sm:$0xff] %v3909_v33  ;;  %v2793_v41 = vadd.f32 %v6416_v28, %v2792_v39  ;;  %5788 = vmatprep.mubr.msk.f32.mxu1 %vm569_vm3, %v482_v31  ;;  %v3720_v44 = vmax.f32 %v1838_v36, 0.0  ;;  %v298_v31 = vld [vmem:[%s5985_s26 + $0x3e0] sm:$0xff] }
  0xf9   : > { %v3912_v45 = vmax.f32 %v2798_v37, 0.0  ;;  %v3719_v48 = vmax.f32 %v1833_v40, 0.0  ;;  %v5343_v50 = vpop.f32.mrb[10].mxu0 }
  0xfa   : > { %v3911_v49 = vmax.f32 %v2793_v41, 0.0  ;;  %v5631_v51 = vpop.f32.mrb[10].mxu1  ;;  %4104 = vst [vmem:[%s6433_s4 + $0x48] sm:$0xff] %v3720_v44  ;;  %v1848_v52 = vadd.f32 %v5343_v50, %v6416_v28  ;;  %v1842_v54 = vpop.f32.mrb[11].mxu0  ;;  %5501 = vmatmul.mubr.msk.f32.gmra.mrb[116].mxu0 %vm569_vm3, %v291_v42  ;;  %v491_v44 = vld [vmem:[%s5985_s26 + $0x9e8] sm:$0xff] }
  0xfb   : > { %4296 = vst [vmem:[%s6433_s4 + $0x648] sm:$0xff] %v3912_v45  ;;  %v2808_v53 = vadd.f32 %v5631_v51, %v6416_v28  ;;  %v2802_v55 = vpop.f32.mrb[11].mxu1  ;;  %5789 = vmatmul.mubr.msk.f32.gmra.mrb[116].mxu1 %vm569_vm3, %v483_v43  ;;  %4103 = vst [vmem:[%s6433_s4 + $0x40] sm:$0xff] %v3719_v48  ;;  %v1843_v56 = vadd.f32 %v6416_v28, %v1842_v54  ;;  %5503 = vmatprep.mubr.msk.f32.mxu0 %vm569_vm3, %v292_v46  ;;  %v299_v43 = vld [vmem:[%s5985_s26 + $0x3e8] sm:$0xff]  ;;  %v492_v48 = vld [vmem:[%s5985_s26 + $0x9f0] sm:$0xff] }
  0xfc   : > { %4295 = vst [vmem:[%s6433_s4 + $0x640] sm:$0xff] %v3911_v49  ;;  %v2803_v57 = vadd.f32 %v6416_v28, %v2802_v55  ;;  %5791 = vmatprep.mubr.msk.f32.mxu1 %vm569_vm3, %v484_v47  ;;  %v3722_v60 = vmax.f32 %v1848_v52, 0.0  ;;  %v300_v47 = vld [vmem:[%s5985_s26 + $0x3f0] sm:$0xff] }
  0xfd   : > { %v3914_v61 = vmax.f32 %v2808_v53, 0.0  ;;  %v3721_v0 = vmax.f32 %v1843_v56, 0.0  ;;  %v5346_v2 = vpop.f32.mrb[12].mxu0 }
  0xfe   : > { %v3913_v1 = vmax.f32 %v2803_v57, 0.0  ;;  %v5634_v3 = vpop.f32.mrb[12].mxu1  ;;  %4106 = vst [vmem:[%s6433_s4 + $0x58] sm:$0xff] %v3722_v60  ;;  %v1858_v4 = vadd.f32 %v5346_v2, %v6416_v28  ;;  %v1852_v6 = vpop.f32.mrb[13].mxu0  ;;  %5504 = vmatmul.mubr.msk.f32.gmra.mrb[118].mxu0 %vm569_vm3, %v293_v58  ;;  %v493_v60 = vld [vmem:[%s5985_s26 + $0x9f8] sm:$0xff] }
  0xff   : > { %4298 = vst [vmem:[%s6433_s4 + $0x658] sm:$0xff] %v3914_v61  ;;  %v2818_v5 = vadd.f32 %v5634_v3, %v6416_v28  ;;  %v2812_v7 = vpop.f32.mrb[13].mxu1  ;;  %5792 = vmatmul.mubr.msk.f32.gmra.mrb[118].mxu1 %vm569_vm3, %v485_v59  ;;  %4105 = vst [vmem:[%s6433_s4 + $0x50] sm:$0xff] %v3721_v0  ;;  %v1853_v8 = vadd.f32 %v6416_v28, %v1852_v6  ;;  %5506 = vmatprep.mubr.msk.f32.mxu0 %vm569_vm3, %v294_v62  ;;  %v301_v59 = vld [vmem:[%s5985_s26 + $0x3f8] sm:$0xff]  ;;  %v494_v0 = vld [vmem:[%s5985_s26 + $0xa00] sm:$0xff] }
 0x100   : > { %4297 = vst [vmem:[%s6433_s4 + $0x650] sm:$0xff] %v3913_v1  ;;  %v2813_v9 = vadd.f32 %v6416_v28, %v2812_v7  ;;  %5794 = vmatprep.mubr.msk.f32.mxu1 %vm569_vm3, %v486_v63  ;;  %v3724_v12 = vmax.f32 %v1858_v4, 0.0  ;;  %v302_v63 = vld [vmem:[%s5985_s26 + $0x400] sm:$0xff] }
 0x101   : > { %v3916_v13 = vmax.f32 %v2818_v5, 0.0  ;;  %v3723_v16 = vmax.f32 %v1853_v8, 0.0  ;;  %v5349_v18 = vpop.f32.mrb[14].mxu0 }
 0x102   : > { %v3915_v17 = vmax.f32 %v2813_v9, 0.0  ;;  %v5637_v19 = vpop.f32.mrb[14].mxu1  ;;  %4108 = vst [vmem:[%s6433_s4 + $0x68] sm:$0xff] %v3724_v12  ;;  %v1868_v20 = vadd.f32 %v5349_v18, %v6416_v28  ;;  %v1862_v22 = vpop.f32.mrb[15].mxu0  ;;  %5507 = vmatmul.mubr.msk.f32.gmra.mrb[120].mxu0 %vm569_vm3, %v295_v10  ;;  %v495_v12 = vld [vmem:[%s5985_s26 + $0xa08] sm:$0xff] }
 0x103   : > { %4300 = vst [vmem:[%s6433_s4 + $0x668] sm:$0xff] %v3916_v13  ;;  %v2828_v21 = vadd.f32 %v5637_v19, %v6416_v28  ;;  %v2822_v23 = vpop.f32.mrb[15].mxu1  ;;  %5795 = vmatmul.mubr.msk.f32.gmra.mrb[120].mxu1 %vm569_vm3, %v487_v11  ;;  %4107 = vst [vmem:[%s6433_s4 + $0x60] sm:$0xff] %v3723_v16  ;;  %v1863_v24 = vadd.f32 %v6416_v28, %v1862_v22  ;;  %5509 = vmatprep.mubr.msk.f32.mxu0 %vm569_vm3, %v296_v14  ;;  %v303_v11 = vld [vmem:[%s5985_s26 + $0x408] sm:$0xff]  ;;  %v496_v16 = vld [vmem:[%s5985_s26 + $0xa10] sm:$0xff] }
 0x104   : > { %4299 = vst [vmem:[%s6433_s4 + $0x660] sm:$0xff] %v3915_v17  ;;  %v2823_v25 = vadd.f32 %v6416_v28, %v2822_v23  ;;  %5797 = vmatprep.mubr.msk.f32.mxu1 %vm569_vm3, %v488_v15  ;;  %v3726_v29 = vmax.f32 %v1868_v20, 0.0  ;;  %v304_v15 = vld [vmem:[%s5985_s26 + $0x410] sm:$0xff] }
 0x105   : > { %v3918_v30 = vmax.f32 %v2828_v21, 0.0  ;;  %v3725_v33 = vmax.f32 %v1863_v24, 0.0  ;;  %v5352_v35 = vpop.f32.mrb[16].mxu0 }
 0x106   : > { %v3917_v34 = vmax.f32 %v2823_v25, 0.0  ;;  %v5640_v36 = vpop.f32.mrb[16].mxu1  ;;  %4110 = vst [vmem:[%s6433_s4 + $0x78] sm:$0xff] %v3726_v29  ;;  %v1878_v37 = vadd.f32 %v5352_v35, %v6416_v28  ;;  %v1872_v39 = vpop.f32.mrb[17].mxu0  ;;  %5510 = vmatmul.mubr.msk.f32.gmra.mrb[122].mxu0 %vm569_vm3, %v297_v26  ;;  %v497_v29 = vld [vmem:[%s5985_s26 + $0xa18] sm:$0xff] }
 0x107   : > { %4302 = vst [vmem:[%s6433_s4 + $0x678] sm:$0xff] %v3918_v30  ;;  %v2838_v38 = vadd.f32 %v5640_v36, %v6416_v28  ;;  %v2832_v40 = vpop.f32.mrb[17].mxu1  ;;  %5798 = vmatmul.mubr.msk.f32.gmra.mrb[122].mxu1 %vm569_vm3, %v489_v27  ;;  %4109 = vst [vmem:[%s6433_s4 + $0x70] sm:$0xff] %v3725_v33  ;;  %v1873_v41 = vadd.f32 %v6416_v28, %v1872_v39  ;;  %5512 = vmatprep.mubr.msk.f32.mxu0 %vm569_vm3, %v298_v31  ;;  %v305_v27 = vld [vmem:[%s5985_s26 + $0x418] sm:$0xff]  ;;  %v498_v33 = vld [vmem:[%s5985_s26 + $0xa20] sm:$0xff] }
 0x108   : > { %4301 = vst [vmem:[%s6433_s4 + $0x670] sm:$0xff] %v3917_v34  ;;  %v2833_v42 = vadd.f32 %v6416_v28, %v2832_v40  ;;  %5800 = vmatprep.mubr.msk.f32.mxu1 %vm569_vm3, %v490_v32  ;;  %v3728_v45 = vmax.f32 %v1878_v37, 0.0  ;;  %v306_v32 = vld [vmem:[%s5985_s26 + $0x420] sm:$0xff] }
 0x109   : > { %v3920_v46 = vmax.f32 %v2838_v38, 0.0  ;;  %v3727_v49 = vmax.f32 %v1873_v41, 0.0  ;;  %v5355_v51 = vpop.f32.mrb[18].mxu0 }
 0x10a   : > { %v3919_v50 = vmax.f32 %v2833_v42, 0.0  ;;  %v5643_v52 = vpop.f32.mrb[18].mxu1  ;;  %4112 = vst [vmem:[%s6433_s4 + $0x88] sm:$0xff] %v3728_v45  ;;  %v1888_v53 = vadd.f32 %v5355_v51, %v6416_v28  ;;  %v1882_v55 = vpop.f32.mrb[19].mxu0  ;;  %5513 = vmatmul.mubr.msk.f32.gmra.mrb[124].mxu0 %vm569_vm3, %v299_v43  ;;  %v499_v45 = vld [vmem:[%s5985_s26 + $0xa28] sm:$0xff] }
 0x10b   : > { %4304 = vst [vmem:[%s6433_s4 + $0x688] sm:$0xff] %v3920_v46  ;;  %v2848_v54 = vadd.f32 %v5643_v52, %v6416_v28  ;;  %v2842_v56 = vpop.f32.mrb[19].mxu1  ;;  %5801 = vmatmul.mubr.msk.f32.gmra.mrb[124].mxu1 %vm569_vm3, %v491_v44  ;;  %4111 = vst [vmem:[%s6433_s4 + $0x80] sm:$0xff] %v3727_v49  ;;  %v1883_v57 = vadd.f32 %v6416_v28, %v1882_v55  ;;  %5515 = vmatprep.mubr.msk.f32.mxu0 %vm569_vm3, %v300_v47  ;;  %v307_v44 = vld [vmem:[%s5985_s26 + $0x428] sm:$0xff]  ;;  %v500_v49 = vld [vmem:[%s5985_s26 + $0xa30] sm:$0xff] }
 0x10c   : > { %4303 = vst [vmem:[%s6433_s4 + $0x680] sm:$0xff] %v3919_v50  ;;  %v2843_v58 = vadd.f32 %v6416_v28, %v2842_v56  ;;  %5803 = vmatprep.mubr.msk.f32.mxu1 %vm569_vm3, %v492_v48  ;;  %v3730_v61 = vmax.f32 %v1888_v53, 0.0  ;;  %v308_v48 = vld [vmem:[%s5985_s26 + $0x430] sm:$0xff] }
 0x10d   : > { %v3922_v62 = vmax.f32 %v2848_v54, 0.0  ;;  %v3729_v1 = vmax.f32 %v1883_v57, 0.0  ;;  %v5358_v3 = vpop.f32.mrb[20].mxu0 }
 0x10e   : > { %v3921_v2 = vmax.f32 %v2843_v58, 0.0  ;;  %v5646_v4 = vpop.f32.mrb[20].mxu1  ;;  %4114 = vst [vmem:[%s6433_s4 + $0x98] sm:$0xff] %v3730_v61  ;;  %v1898_v5 = vadd.f32 %v5358_v3, %v6416_v28  ;;  %v1892_v7 = vpop.f32.mrb[21].mxu0  ;;  %5516 = vmatmul.mubr.msk.f32.gmra.mrb[126].mxu0 %vm569_vm3, %v301_v59  ;;  %v501_v61 = vld [vmem:[%s5985_s26 + $0xa38] sm:$0xff] }
 0x10f   : > { %4306 = vst [vmem:[%s6433_s4 + $0x698] sm:$0xff] %v3922_v62  ;;  %v2858_v6 = vadd.f32 %v5646_v4, %v6416_v28  ;;  %v2852_v8 = vpop.f32.mrb[21].mxu1  ;;  %5804 = vmatmul.mubr.msk.f32.gmra.mrb[126].mxu1 %vm569_vm3, %v493_v60  ;;  %4113 = vst [vmem:[%s6433_s4 + $0x90] sm:$0xff] %v3729_v1  ;;  %v1893_v9 = vadd.f32 %v6416_v28, %v1892_v7  ;;  %5518 = vmatprep.mubr.msk.f32.mxu0 %vm569_vm3, %v302_v63  ;;  %v309_v60 = vld [vmem:[%s5985_s26 + $0x438] sm:$0xff]  ;;  %v502_v1 = vld [vmem:[%s5985_s26 + $0xa40] sm:$0xff] }
 0x110   : > { %4305 = vst [vmem:[%s6433_s4 + $0x690] sm:$0xff] %v3921_v2  ;;  %v2853_v10 = vadd.f32 %v6416_v28, %v2852_v8  ;;  %5806 = vmatprep.mubr.msk.f32.mxu1 %vm569_vm3, %v494_v0  ;;  %v3732_v13 = vmax.f32 %v1898_v5, 0.0  ;;  %v310_v0 = vld [vmem:[%s5985_s26 + $0x440] sm:$0xff] }
 0x111   : > { %v3924_v14 = vmax.f32 %v2858_v6, 0.0  ;;  %v3731_v17 = vmax.f32 %v1893_v9, 0.0  ;;  %v5361_v19 = vpop.f32.mrb[22].mxu0 }
 0x112   : > { %v3923_v18 = vmax.f32 %v2853_v10, 0.0  ;;  %v5649_v20 = vpop.f32.mrb[22].mxu1  ;;  %4116 = vst [vmem:[%s6433_s4 + $0xa8] sm:$0xff] %v3732_v13  ;;  %v1908_v21 = vadd.f32 %v5361_v19, %v6416_v28  ;;  %v1902_v23 = vpop.f32.mrb[23].mxu0  ;;  %5519 = vmatmul.mubr.msk.f32.gmra.mrb[128].mxu0 %vm569_vm3, %v303_v11  ;;  %v503_v13 = vld [vmem:[%s5985_s26 + $0xa48] sm:$0xff] }
 0x113   : > { %4308 = vst [vmem:[%s6433_s4 + $0x6a8] sm:$0xff] %v3924_v14  ;;  %v2868_v22 = vadd.f32 %v5649_v20, %v6416_v28  ;;  %v2862_v24 = vpop.f32.mrb[23].mxu1  ;;  %5807 = vmatmul.mubr.msk.f32.gmra.mrb[128].mxu1 %vm569_vm3, %v495_v12  ;;  %4115 = vst [vmem:[%s6433_s4 + $0xa0] sm:$0xff] %v3731_v17  ;;  %v1903_v25 = vadd.f32 %v6416_v28, %v1902_v23  ;;  %5521 = vmatprep.mubr.msk.f32.mxu0 %vm569_vm3, %v304_v15  ;;  %v311_v12 = vld [vmem:[%s5985_s26 + $0x448] sm:$0xff]  ;;  %v504_v17 = vld [vmem:[%s5985_s26 + $0xa50] sm:$0xff] }
 0x114   : > { %4307 = vst [vmem:[%s6433_s4 + $0x6a0] sm:$0xff] %v3923_v18  ;;  %v2863_v26 = vadd.f32 %v6416_v28, %v2862_v24  ;;  %5809 = vmatprep.mubr.msk.f32.mxu1 %vm569_vm3, %v496_v16  ;;  %v3734_v30 = vmax.f32 %v1908_v21, 0.0  ;;  %v312_v16 = vld [vmem:[%s5985_s26 + $0x450] sm:$0xff] }
 0x115   : > { %v3926_v31 = vmax.f32 %v2868_v22, 0.0  ;;  %v3733_v34 = vmax.f32 %v1903_v25, 0.0  ;;  %v5364_v36 = vpop.f32.mrb[24].mxu0 }
 0x116   : > { %v3925_v35 = vmax.f32 %v2863_v26, 0.0  ;;  %v5652_v37 = vpop.f32.mrb[24].mxu1  ;;  %4118 = vst [vmem:[%s6433_s4 + $0xb8] sm:$0xff] %v3734_v30  ;;  %v1918_v38 = vadd.f32 %v5364_v36, %v6416_v28  ;;  %v1912_v40 = vpop.f32.mrb[25].mxu0  ;;  %5522 = vmatmul.mubr.msk.f32.gmra.mrb[130].mxu0 %vm569_vm3, %v305_v27  ;;  %v505_v30 = vld [vmem:[%s5985_s26 + $0xa58] sm:$0xff] }
 0x117   : > { %4310 = vst [vmem:[%s6433_s4 + $0x6b8] sm:$0xff] %v3926_v31  ;;  %v2878_v39 = vadd.f32 %v5652_v37, %v6416_v28  ;;  %v2872_v41 = vpop.f32.mrb[25].mxu1  ;;  %5810 = vmatmul.mubr.msk.f32.gmra.mrb[130].mxu1 %vm569_vm3, %v497_v29  ;;  %4117 = vst [vmem:[%s6433_s4 + $0xb0] sm:$0xff] %v3733_v34  ;;  %v1913_v42 = vadd.f32 %v6416_v28, %v1912_v40  ;;  %5524 = vmatprep.mubr.msk.f32.mxu0 %vm569_vm3, %v306_v32  ;;  %v313_v29 = vld [vmem:[%s5985_s26 + $0x458] sm:$0xff]  ;;  %v506_v34 = vld [vmem:[%s5985_s26 + $0xa60] sm:$0xff] }
 0x118   : > { %4309 = vst [vmem:[%s6433_s4 + $0x6b0] sm:$0xff] %v3925_v35  ;;  %v2873_v43 = vadd.f32 %v6416_v28, %v2872_v41  ;;  %5812 = vmatprep.mubr.msk.f32.mxu1 %vm569_vm3, %v498_v33  ;;  %v3736_v46 = vmax.f32 %v1918_v38, 0.0  ;;  %v314_v33 = vld [vmem:[%s5985_s26 + $0x460] sm:$0xff] }
 0x119   : > { %v3928_v47 = vmax.f32 %v2878_v39, 0.0  ;;  %v3735_v50 = vmax.f32 %v1913_v42, 0.0  ;;  %v5367_v52 = vpop.f32.mrb[26].mxu0 }
 0x11a   : > { %v3927_v51 = vmax.f32 %v2873_v43, 0.0  ;;  %v5655_v53 = vpop.f32.mrb[26].mxu1  ;;  %4120 = vst [vmem:[%s6433_s4 + $0xc8] sm:$0xff] %v3736_v46  ;;  %v1928_v54 = vadd.f32 %v5367_v52, %v6416_v28  ;;  %v1922_v56 = vpop.f32.mrb[27].mxu0  ;;  %5525 = vmatmul.mubr.msk.f32.gmra.mrb[132].mxu0 %vm569_vm3, %v307_v44  ;;  %v507_v46 = vld [vmem:[%s5985_s26 + $0xa68] sm:$0xff] }
 0x11b   : > { %4312 = vst [vmem:[%s6433_s4 + $0x6c8] sm:$0xff] %v3928_v47  ;;  %v2888_v55 = vadd.f32 %v5655_v53, %v6416_v28  ;;  %v2882_v57 = vpop.f32.mrb[27].mxu1  ;;  %5813 = vmatmul.mubr.msk.f32.gmra.mrb[132].mxu1 %vm569_vm3, %v499_v45  ;;  %4119 = vst [vmem:[%s6433_s4 + $0xc0] sm:$0xff] %v3735_v50  ;;  %v1923_v58 = vadd.f32 %v6416_v28, %v1922_v56  ;;  %5527 = vmatprep.mubr.msk.f32.mxu0 %vm569_vm3, %v308_v48  ;;  %v315_v45 = vld [vmem:[%s5985_s26 + $0x468] sm:$0xff]  ;;  %v508_v50 = vld [vmem:[%s5985_s26 + $0xa70] sm:$0xff] }
 0x11c   : > { %4311 = vst [vmem:[%s6433_s4 + $0x6c0] sm:$0xff] %v3927_v51  ;;  %v2883_v59 = vadd.f32 %v6416_v28, %v2882_v57  ;;  %5815 = vmatprep.mubr.msk.f32.mxu1 %vm569_vm3, %v500_v49  ;;  %v3738_v62 = vmax.f32 %v1928_v54, 0.0  ;;  %v316_v49 = vld [vmem:[%s5985_s26 + $0x470] sm:$0xff] }
 0x11d   : > { %v3930_v63 = vmax.f32 %v2888_v55, 0.0  ;;  %v3737_v2 = vmax.f32 %v1923_v58, 0.0  ;;  %v5370_v4 = vpop.f32.mrb[28].mxu0 }
 0x11e   : > { %v3929_v3 = vmax.f32 %v2883_v59, 0.0  ;;  %v5658_v5 = vpop.f32.mrb[28].mxu1  ;;  %4122 = vst [vmem:[%s6433_s4 + $0xd8] sm:$0xff] %v3738_v62  ;;  %v1938_v6 = vadd.f32 %v5370_v4, %v6416_v28  ;;  %v1932_v8 = vpop.f32.mrb[29].mxu0  ;;  %5528 = vmatmul.mubr.msk.f32.gmra.mrb[134].mxu0 %vm569_vm3, %v309_v60  ;;  %v509_v62 = vld [vmem:[%s5985_s26 + $0xa78] sm:$0xff] }
 0x11f   : > { %4314 = vst [vmem:[%s6433_s4 + $0x6d8] sm:$0xff] %v3930_v63  ;;  %v2898_v7 = vadd.f32 %v5658_v5, %v6416_v28  ;;  %v2892_v9 = vpop.f32.mrb[29].mxu1  ;;  %5816 = vmatmul.mubr.msk.f32.gmra.mrb[134].mxu1 %vm569_vm3, %v501_v61  ;;  %4121 = vst [vmem:[%s6433_s4 + $0xd0] sm:$0xff] %v3737_v2  ;;  %v1933_v10 = vadd.f32 %v6416_v28, %v1932_v8  ;;  %5530 = vmatprep.mubr.msk.f32.mxu0 %vm569_vm3, %v310_v0  ;;  %v317_v61 = vld [vmem:[%s5985_s26 + $0x478] sm:$0xff]  ;;  %v510_v2 = vld [vmem:[%s5985_s26 + $0xa80] sm:$0xff] }
 0x120   : > { %4313 = vst [vmem:[%s6433_s4 + $0x6d0] sm:$0xff] %v3929_v3  ;;  %v2893_v11 = vadd.f32 %v6416_v28, %v2892_v9  ;;  %5818 = vmatprep.mubr.msk.f32.mxu1 %vm569_vm3, %v502_v1  ;;  %v3740_v14 = vmax.f32 %v1938_v6, 0.0  ;;  %v318_v1 = vld [vmem:[%s5985_s26 + $0x480] sm:$0xff] }
 0x121   : > { %v3932_v15 = vmax.f32 %v2898_v7, 0.0  ;;  %v3739_v18 = vmax.f32 %v1933_v10, 0.0  ;;  %v5373_v20 = vpop.f32.mrb[30].mxu0 }
 0x122   : > { %v3931_v19 = vmax.f32 %v2893_v11, 0.0  ;;  %v5661_v21 = vpop.f32.mrb[30].mxu1  ;;  %4124 = vst [vmem:[%s6433_s4 + $0xe8] sm:$0xff] %v3740_v14  ;;  %v1948_v22 = vadd.f32 %v5373_v20, %v6416_v28  ;;  %v1942_v24 = vpop.f32.mrb[31].mxu0  ;;  %5531 = vmatmul.mubr.msk.f32.gmra.mrb[136].mxu0 %vm569_vm3, %v311_v12  ;;  %v511_v14 = vld [vmem:[%s5985_s26 + $0xa88] sm:$0xff] }
 0x123   : > { %4316 = vst [vmem:[%s6433_s4 + $0x6e8] sm:$0xff] %v3932_v15  ;;  %v2908_v23 = vadd.f32 %v5661_v21, %v6416_v28  ;;  %v2902_v25 = vpop.f32.mrb[31].mxu1  ;;  %5819 = vmatmul.mubr.msk.f32.gmra.mrb[136].mxu1 %vm569_vm3, %v503_v13  ;;  %4123 = vst [vmem:[%s6433_s4 + $0xe0] sm:$0xff] %v3739_v18  ;;  %v1943_v26 = vadd.f32 %v6416_v28, %v1942_v24  ;;  %5533 = vmatprep.mubr.msk.f32.mxu0 %vm569_vm3, %v312_v16  ;;  %v319_v13 = vld [vmem:[%s5985_s26 + $0x488] sm:$0xff]  ;;  %v512_v18 = vld [vmem:[%s5985_s26 + $0xa90] sm:$0xff] }
 0x124   : > { %4315 = vst [vmem:[%s6433_s4 + $0x6e0] sm:$0xff] %v3931_v19  ;;  %v2903_v27 = vadd.f32 %v6416_v28, %v2902_v25  ;;  %5821 = vmatprep.mubr.msk.f32.mxu1 %vm569_vm3, %v504_v17  ;;  %v3742_v31 = vmax.f32 %v1948_v22, 0.0  ;;  %v320_v17 = vld [vmem:[%s5985_s26 + $0x490] sm:$0xff] }
 0x125   : > { %v3934_v32 = vmax.f32 %v2908_v23, 0.0  ;;  %v3741_v35 = vmax.f32 %v1943_v26, 0.0  ;;  %v5376_v37 = vpop.f32.mrb[32].mxu0 }
 0x126   : > { %v3933_v36 = vmax.f32 %v2903_v27, 0.0  ;;  %v5664_v38 = vpop.f32.mrb[32].mxu1  ;;  %4126 = vst [vmem:[%s6433_s4 + $0xf8] sm:$0xff] %v3742_v31  ;;  %v1958_v39 = vadd.f32 %v5376_v37, %v6416_v28  ;;  %v1952_v41 = vpop.f32.mrb[33].mxu0  ;;  %5534 = vmatmul.mubr.msk.f32.gmra.mrb[138].mxu0 %vm569_vm3, %v313_v29  ;;  %v513_v31 = vld [vmem:[%s5985_s26 + $0xa98] sm:$0xff] }
 0x127   : > { %4318 = vst [vmem:[%s6433_s4 + $0x6f8] sm:$0xff] %v3934_v32  ;;  %v2918_v40 = vadd.f32 %v5664_v38, %v6416_v28  ;;  %v2912_v42 = vpop.f32.mrb[33].mxu1  ;;  %5822 = vmatmul.mubr.msk.f32.gmra.mrb[138].mxu1 %vm569_vm3, %v505_v30  ;;  %4125 = vst [vmem:[%s6433_s4 + $0xf0] sm:$0xff] %v3741_v35  ;;  %v1953_v43 = vadd.f32 %v6416_v28, %v1952_v41  ;;  %5536 = vmatprep.mubr.msk.f32.mxu0 %vm569_vm3, %v314_v33  ;;  %v321_v30 = vld [vmem:[%s5985_s26 + $0x498] sm:$0xff]  ;;  %v514_v35 = vld [vmem:[%s5985_s26 + $0xaa0] sm:$0xff] }
 0x128   : > { %4317 = vst [vmem:[%s6433_s4 + $0x6f0] sm:$0xff] %v3933_v36  ;;  %v2913_v44 = vadd.f32 %v6416_v28, %v2912_v42  ;;  %5824 = vmatprep.mubr.msk.f32.mxu1 %vm569_vm3, %v506_v34  ;;  %v3744_v47 = vmax.f32 %v1958_v39, 0.0  ;;  %v322_v34 = vld [vmem:[%s5985_s26 + $0x4a0] sm:$0xff] }
 0x129   : > { %v3936_v48 = vmax.f32 %v2918_v40, 0.0  ;;  %v3743_v51 = vmax.f32 %v1953_v43, 0.0  ;;  %v5379_v53 = vpop.f32.mrb[34].mxu0 }
 0x12a   : > { %v3935_v52 = vmax.f32 %v2913_v44, 0.0  ;;  %v5667_v54 = vpop.f32.mrb[34].mxu1  ;;  %4128 = vst [vmem:[%s6433_s4 + $0x108] sm:$0xff] %v3744_v47  ;;  %v1968_v55 = vadd.f32 %v5379_v53, %v6416_v28  ;;  %v1962_v57 = vpop.f32.mrb[35].mxu0  ;;  %5537 = vmatmul.mubr.msk.f32.gmra.mrb[140].mxu0 %vm569_vm3, %v315_v45  ;;  %v515_v47 = vld [vmem:[%s5985_s26 + $0xaa8] sm:$0xff] }
 0x12b   : > { %4320 = vst [vmem:[%s6433_s4 + $0x708] sm:$0xff] %v3936_v48  ;;  %v2928_v56 = vadd.f32 %v5667_v54, %v6416_v28  ;;  %v2922_v58 = vpop.f32.mrb[35].mxu1  ;;  %5825 = vmatmul.mubr.msk.f32.gmra.mrb[140].mxu1 %vm569_vm3, %v507_v46  ;;  %4127 = vst [vmem:[%s6433_s4 + $0x100] sm:$0xff] %v3743_v51  ;;  %v1963_v59 = vadd.f32 %v6416_v28, %v1962_v57  ;;  %5539 = vmatprep.mubr.msk.f32.mxu0 %vm569_vm3, %v316_v49  ;;  %v323_v46 = vld [vmem:[%s5985_s26 + $0x4a8] sm:$0xff]  ;;  %v516_v51 = vld [vmem:[%s5985_s26 + $0xab0] sm:$0xff] }
 0x12c   : > { %4319 = vst [vmem:[%s6433_s4 + $0x700] sm:$0xff] %v3935_v52  ;;  %v2923_v60 = vadd.f32 %v6416_v28, %v2922_v58  ;;  %5827 = vmatprep.mubr.msk.f32.mxu1 %vm569_vm3, %v508_v50  ;;  %v3746_v63 = vmax.f32 %v1968_v55, 0.0  ;;  %v324_v50 = vld [vmem:[%s5985_s26 + $0x4b0] sm:$0xff] }
 0x12d   : > { %v3938_v0 = vmax.f32 %v2928_v56, 0.0  ;;  %v3745_v3 = vmax.f32 %v1963_v59, 0.0  ;;  %v5382_v5 = vpop.f32.mrb[36].mxu0 }
 0x12e   : > { %v3937_v4 = vmax.f32 %v2923_v60, 0.0  ;;  %v5670_v6 = vpop.f32.mrb[36].mxu1  ;;  %4130 = vst [vmem:[%s6433_s4 + $0x118] sm:$0xff] %v3746_v63  ;;  %v1978_v7 = vadd.f32 %v5382_v5, %v6416_v28  ;;  %v1972_v9 = vpop.f32.mrb[37].mxu0  ;;  %5540 = vmatmul.mubr.msk.f32.gmra.mrb[142].mxu0 %vm569_vm3, %v317_v61  ;;  %v517_v63 = vld [vmem:[%s5985_s26 + $0xab8] sm:$0xff] }
 0x12f   : > { %4322 = vst [vmem:[%s6433_s4 + $0x718] sm:$0xff] %v3938_v0  ;;  %v2938_v8 = vadd.f32 %v5670_v6, %v6416_v28  ;;  %v2932_v10 = vpop.f32.mrb[37].mxu1  ;;  %5828 = vmatmul.mubr.msk.f32.gmra.mrb[142].mxu1 %vm569_vm3, %v509_v62  ;;  %4129 = vst [vmem:[%s6433_s4 + $0x110] sm:$0xff] %v3745_v3  ;;  %v1973_v11 = vadd.f32 %v6416_v28, %v1972_v9  ;;  %5542 = vmatprep.mubr.msk.f32.mxu0 %vm569_vm3, %v318_v1  ;;  %v325_v62 = vld [vmem:[%s5985_s26 + $0x4b8] sm:$0xff]  ;;  %v518_v3 = vld [vmem:[%s5985_s26 + $0xac0] sm:$0xff] }
 0x130   : > { %4321 = vst [vmem:[%s6433_s4 + $0x710] sm:$0xff] %v3937_v4  ;;  %v2933_v12 = vadd.f32 %v6416_v28, %v2932_v10  ;;  %5830 = vmatprep.mubr.msk.f32.mxu1 %vm569_vm3, %v510_v2  ;;  %v3748_v15 = vmax.f32 %v1978_v7, 0.0  ;;  %v326_v2 = vld [vmem:[%s5985_s26 + $0x4c0] sm:$0xff] }
 0x131   : > { %v3940_v16 = vmax.f32 %v2938_v8, 0.0  ;;  %v3747_v19 = vmax.f32 %v1973_v11, 0.0  ;;  %v5385_v21 = vpop.f32.mrb[38].mxu0 }
 0x132   : > { %v3939_v20 = vmax.f32 %v2933_v12, 0.0  ;;  %v5673_v22 = vpop.f32.mrb[38].mxu1  ;;  %4132 = vst [vmem:[%s6433_s4 + $0x128] sm:$0xff] %v3748_v15  ;;  %v1988_v23 = vadd.f32 %v5385_v21, %v6416_v28  ;;  %v1982_v25 = vpop.f32.mrb[39].mxu0  ;;  %5543 = vmatmul.mubr.msk.f32.gmra.mrb[144].mxu0 %vm569_vm3, %v319_v13  ;;  %v519_v15 = vld [vmem:[%s5985_s26 + $0xac8] sm:$0xff] }
 0x133   : > { %4324 = vst [vmem:[%s6433_s4 + $0x728] sm:$0xff] %v3940_v16  ;;  %v2948_v24 = vadd.f32 %v5673_v22, %v6416_v28  ;;  %v2942_v26 = vpop.f32.mrb[39].mxu1  ;;  %5831 = vmatmul.mubr.msk.f32.gmra.mrb[144].mxu1 %vm569_vm3, %v511_v14  ;;  %4131 = vst [vmem:[%s6433_s4 + $0x120] sm:$0xff] %v3747_v19  ;;  %v1983_v27 = vadd.f32 %v6416_v28, %v1982_v25  ;;  %5545 = vmatprep.mubr.msk.f32.mxu0 %vm569_vm3, %v320_v17  ;;  %v327_v14 = vld [vmem:[%s5985_s26 + $0x4c8] sm:$0xff]  ;;  %v520_v19 = vld [vmem:[%s5985_s26 + $0xad0] sm:$0xff] }
 0x134   : > { %4323 = vst [vmem:[%s6433_s4 + $0x720] sm:$0xff] %v3939_v20  ;;  %v2943_v29 = vadd.f32 %v6416_v28, %v2942_v26  ;;  %5833 = vmatprep.mubr.msk.f32.mxu1 %vm569_vm3, %v512_v18  ;;  %v3750_v32 = vmax.f32 %v1988_v23, 0.0  ;;  %v328_v18 = vld [vmem:[%s5985_s26 + $0x4d0] sm:$0xff] }
 0x135   : > { %v3942_v33 = vmax.f32 %v2948_v24, 0.0  ;;  %v3749_v36 = vmax.f32 %v1983_v27, 0.0  ;;  %v5388_v38 = vpop.f32.mrb[40].mxu0 }
 0x136   : > { %v3941_v37 = vmax.f32 %v2943_v29, 0.0  ;;  %v5676_v39 = vpop.f32.mrb[40].mxu1  ;;  %4134 = vst [vmem:[%s6433_s4 + $0x138] sm:$0xff] %v3750_v32  ;;  %v1998_v40 = vadd.f32 %v5388_v38, %v6416_v28  ;;  %v1992_v42 = vpop.f32.mrb[41].mxu0  ;;  %5546 = vmatmul.mubr.msk.f32.gmra.mrb[146].mxu0 %vm569_vm3, %v321_v30  ;;  %v521_v32 = vld [vmem:[%s5985_s26 + $0xad8] sm:$0xff] }
 0x137   : > { %4326 = vst [vmem:[%s6433_s4 + $0x738] sm:$0xff] %v3942_v33  ;;  %v2958_v41 = vadd.f32 %v5676_v39, %v6416_v28  ;;  %v2952_v43 = vpop.f32.mrb[41].mxu1  ;;  %5834 = vmatmul.mubr.msk.f32.gmra.mrb[146].mxu1 %vm569_vm3, %v513_v31  ;;  %4133 = vst [vmem:[%s6433_s4 + $0x130] sm:$0xff] %v3749_v36  ;;  %v1993_v44 = vadd.f32 %v6416_v28, %v1992_v42  ;;  %5548 = vmatprep.mubr.msk.f32.mxu0 %vm569_vm3, %v322_v34  ;;  %v329_v31 = vld [vmem:[%s5985_s26 + $0x4d8] sm:$0xff]  ;;  %v522_v36 = vld [vmem:[%s5985_s26 + $0xae0] sm:$0xff] }
 0x138   : > { %4325 = vst [vmem:[%s6433_s4 + $0x730] sm:$0xff] %v3941_v37  ;;  %v2953_v45 = vadd.f32 %v6416_v28, %v2952_v43  ;;  %5836 = vmatprep.mubr.msk.f32.mxu1 %vm569_vm3, %v514_v35  ;;  %v3752_v48 = vmax.f32 %v1998_v40, 0.0  ;;  %v6768_v28 = vld [vmem:[%s7555_s2] ss:$0 sm:$0xff] }
 0x139   : > { %v3944_v49 = vmax.f32 %v2958_v41, 0.0  ;;  %v3751_v52 = vmax.f32 %v1993_v44, 0.0  ;;  %v5391_v54 = vpop.f32.mrb[42].mxu0  ;;  %v330_v35 = vld [vmem:[%s5985_s26 + $0x4e0] sm:$0xff] }
 0x13a   : > { %v3943_v53 = vmax.f32 %v2953_v45, 0.0  ;;  %v5679_v55 = vpop.f32.mrb[42].mxu1  ;;  %4136 = vst [vmem:[%s6433_s4 + $0x148] sm:$0xff] %v3752_v48  ;;  %v2008_v56 = vadd.f32 %v6768_v28, %v5391_v54  ;;  %v2002_v58 = vpop.f32.mrb[43].mxu0  ;;  %5549 = vmatmul.mubr.msk.f32.gmra.mrb[148].mxu0 %vm569_vm3, %v323_v46  ;;  %v523_v48 = vld [vmem:[%s5985_s26 + $0xae8] sm:$0xff] }
 0x13b   : > { %4328 = vst [vmem:[%s6433_s4 + $0x748] sm:$0xff] %v3944_v49  ;;  %v2968_v57 = vadd.f32 %v6768_v28, %v5679_v55  ;;  %v2962_v59 = vpop.f32.mrb[43].mxu1  ;;  %5837 = vmatmul.mubr.msk.f32.gmra.mrb[148].mxu1 %vm569_vm3, %v515_v47  ;;  %4135 = vst [vmem:[%s6433_s4 + $0x140] sm:$0xff] %v3751_v52  ;;  %v2003_v60 = vadd.f32 %v6768_v28, %v2002_v58  ;;  %5551 = vmatprep.mubr.msk.f32.mxu0 %vm569_vm3, %v324_v50  ;;  %v331_v47 = vld [vmem:[%s5985_s26 + $0x4e8] sm:$0xff]  ;;  %v524_v52 = vld [vmem:[%s5985_s26 + $0xaf0] sm:$0xff] }
 0x13c   : > { %4327 = vst [vmem:[%s6433_s4 + $0x740] sm:$0xff] %v3943_v53  ;;  %v2963_v61 = vadd.f32 %v6768_v28, %v2962_v59  ;;  %5839 = vmatprep.mubr.msk.f32.mxu1 %vm569_vm3, %v516_v51  ;;  %v3754_v0 = vmax.f32 %v2008_v56, 0.0  ;;  %v332_v51 = vld [vmem:[%s5985_s26 + $0x4f0] sm:$0xff] }
 0x13d   : > { %v3946_v1 = vmax.f32 %v2968_v57, 0.0  ;;  %v3753_v4 = vmax.f32 %v2003_v60, 0.0  ;;  %v5394_v6 = vpop.f32.mrb[44].mxu0 }
 0x13e   : > { %v3945_v5 = vmax.f32 %v2963_v61, 0.0  ;;  %v5682_v7 = vpop.f32.mrb[44].mxu1  ;;  %4138 = vst [vmem:[%s6433_s4 + $0x158] sm:$0xff] %v3754_v0  ;;  %v2018_v8 = vadd.f32 %v6768_v28, %v5394_v6  ;;  %v2012_v10 = vpop.f32.mrb[45].mxu0  ;;  %5552 = vmatmul.mubr.msk.f32.gmra.mrb[150].mxu0 %vm569_vm3, %v325_v62  ;;  %v525_v0 = vld [vmem:[%s5985_s26 + $0xaf8] sm:$0xff] }
 0x13f   : > { %4330 = vst [vmem:[%s6433_s4 + $0x758] sm:$0xff] %v3946_v1  ;;  %v2978_v9 = vadd.f32 %v6768_v28, %v5682_v7  ;;  %v2972_v11 = vpop.f32.mrb[45].mxu1  ;;  %5840 = vmatmul.mubr.msk.f32.gmra.mrb[150].mxu1 %vm569_vm3, %v517_v63  ;;  %4137 = vst [vmem:[%s6433_s4 + $0x150] sm:$0xff] %v3753_v4  ;;  %v2013_v12 = vadd.f32 %v6768_v28, %v2012_v10  ;;  %5554 = vmatprep.mubr.msk.f32.mxu0 %vm569_vm3, %v326_v2  ;;  %v333_v63 = vld [vmem:[%s5985_s26 + $0x4f8] sm:$0xff]  ;;  %v526_v4 = vld [vmem:[%s5985_s26 + $0xb00] sm:$0xff] }
 0x140   : > { %4329 = vst [vmem:[%s6433_s4 + $0x750] sm:$0xff] %v3945_v5  ;;  %v2973_v13 = vadd.f32 %v6768_v28, %v2972_v11  ;;  %5842 = vmatprep.mubr.msk.f32.mxu1 %vm569_vm3, %v518_v3  ;;  %v3756_v16 = vmax.f32 %v2018_v8, 0.0  ;;  %v334_v3 = vld [vmem:[%s5985_s26 + $0x500] sm:$0xff] }
 0x141   : > { %v3948_v17 = vmax.f32 %v2978_v9, 0.0  ;;  %v3755_v20 = vmax.f32 %v2013_v12, 0.0  ;;  %v5397_v22 = vpop.f32.mrb[46].mxu0 }
 0x142   : > { %v3947_v21 = vmax.f32 %v2973_v13, 0.0  ;;  %v5685_v23 = vpop.f32.mrb[46].mxu1  ;;  %4140 = vst [vmem:[%s6433_s4 + $0x168] sm:$0xff] %v3756_v16  ;;  %v2028_v24 = vadd.f32 %v6768_v28, %v5397_v22  ;;  %v2022_v26 = vpop.f32.mrb[47].mxu0  ;;  %5555 = vmatmul.mubr.msk.f32.gmra.mrb[152].mxu0 %vm569_vm3, %v327_v14  ;;  %v527_v16 = vld [vmem:[%s5985_s26 + $0xb08] sm:$0xff] }
 0x143   : > { %4332 = vst [vmem:[%s6433_s4 + $0x768] sm:$0xff] %v3948_v17  ;;  %v2988_v25 = vadd.f32 %v6768_v28, %v5685_v23  ;;  %v2982_v27 = vpop.f32.mrb[47].mxu1  ;;  %5843 = vmatmul.mubr.msk.f32.gmra.mrb[152].mxu1 %vm569_vm3, %v519_v15  ;;  %4139 = vst [vmem:[%s6433_s4 + $0x160] sm:$0xff] %v3755_v20  ;;  %v2023_v29 = vadd.f32 %v6768_v28, %v2022_v26  ;;  %5557 = vmatprep.mubr.msk.f32.mxu0 %vm569_vm3, %v328_v18  ;;  %v335_v15 = vld [vmem:[%s5985_s26 + $0x508] sm:$0xff]  ;;  %v528_v20 = vld [vmem:[%s5985_s26 + $0xb10] sm:$0xff] }
 0x144   : > { %4331 = vst [vmem:[%s6433_s4 + $0x760] sm:$0xff] %v3947_v21  ;;  %v2983_v30 = vadd.f32 %v6768_v28, %v2982_v27  ;;  %5845 = vmatprep.mubr.msk.f32.mxu1 %vm569_vm3, %v520_v19  ;;  %v3758_v33 = vmax.f32 %v2028_v24, 0.0  ;;  %v336_v19 = vld [vmem:[%s5985_s26 + $0x510] sm:$0xff] }
 0x145   : > { %v3950_v34 = vmax.f32 %v2988_v25, 0.0  ;;  %v3757_v37 = vmax.f32 %v2023_v29, 0.0  ;;  %v5400_v39 = vpop.f32.mrb[48].mxu0 }
 0x146   : > { %v3949_v38 = vmax.f32 %v2983_v30, 0.0  ;;  %v5688_v40 = vpop.f32.mrb[48].mxu1  ;;  %4142 = vst [vmem:[%s6433_s4 + $0x178] sm:$0xff] %v3758_v33  ;;  %v2038_v41 = vadd.f32 %v6768_v28, %v5400_v39  ;;  %v2032_v43 = vpop.f32.mrb[49].mxu0  ;;  %5558 = vmatmul.mubr.msk.f32.gmra.mrb[154].mxu0 %vm569_vm3, %v329_v31  ;;  %v529_v33 = vld [vmem:[%s5985_s26 + $0xb18] sm:$0xff] }
 0x147   : > { %4334 = vst [vmem:[%s6433_s4 + $0x778] sm:$0xff] %v3950_v34  ;;  %v2998_v42 = vadd.f32 %v6768_v28, %v5688_v40  ;;  %v2992_v44 = vpop.f32.mrb[49].mxu1  ;;  %5846 = vmatmul.mubr.msk.f32.gmra.mrb[154].mxu1 %vm569_vm3, %v521_v32  ;;  %4141 = vst [vmem:[%s6433_s4 + $0x170] sm:$0xff] %v3757_v37  ;;  %v2033_v45 = vadd.f32 %v6768_v28, %v2032_v43  ;;  %5560 = vmatprep.mubr.msk.f32.mxu0 %vm569_vm3, %v330_v35  ;;  %v337_v32 = vld [vmem:[%s5985_s26 + $0x518] sm:$0xff]  ;;  %v530_v37 = vld [vmem:[%s5985_s26 + $0xb20] sm:$0xff] }
 0x148   : > { %4333 = vst [vmem:[%s6433_s4 + $0x770] sm:$0xff] %v3949_v38  ;;  %v2993_v46 = vadd.f32 %v6768_v28, %v2992_v44  ;;  %5848 = vmatprep.mubr.msk.f32.mxu1 %vm569_vm3, %v522_v36  ;;  %v3760_v49 = vmax.f32 %v2038_v41, 0.0  ;;  %v338_v36 = vld [vmem:[%s5985_s26 + $0x520] sm:$0xff] }
 0x149   : > { %v3952_v50 = vmax.f32 %v2998_v42, 0.0  ;;  %v3759_v53 = vmax.f32 %v2033_v45, 0.0  ;;  %v5403_v55 = vpop.f32.mrb[50].mxu0 }
 0x14a   : > { %v3951_v54 = vmax.f32 %v2993_v46, 0.0  ;;  %v5691_v56 = vpop.f32.mrb[50].mxu1  ;;  %4144 = vst [vmem:[%s6433_s4 + $0x188] sm:$0xff] %v3760_v49  ;;  %v2048_v57 = vadd.f32 %v6768_v28, %v5403_v55  ;;  %v2042_v59 = vpop.f32.mrb[51].mxu0  ;;  %5561 = vmatmul.mubr.msk.f32.gmra.mrb[156].mxu0 %vm569_vm3, %v331_v47  ;;  %v531_v49 = vld [vmem:[%s5985_s26 + $0xb28] sm:$0xff] }
 0x14b   : > { %4336 = vst [vmem:[%s6433_s4 + $0x788] sm:$0xff] %v3952_v50  ;;  %v3008_v58 = vadd.f32 %v6768_v28, %v5691_v56  ;;  %v3002_v60 = vpop.f32.mrb[51].mxu1  ;;  %5849 = vmatmul.mubr.msk.f32.gmra.mrb[156].mxu1 %vm569_vm3, %v523_v48  ;;  %4143 = vst [vmem:[%s6433_s4 + $0x180] sm:$0xff] %v3759_v53  ;;  %v2043_v61 = vadd.f32 %v6768_v28, %v2042_v59  ;;  %5563 = vmatprep.mubr.msk.f32.mxu0 %vm569_vm3, %v332_v51  ;;  %v339_v48 = vld [vmem:[%s5985_s26 + $0x528] sm:$0xff]  ;;  %v532_v53 = vld [vmem:[%s5985_s26 + $0xb30] sm:$0xff] }
 0x14c   : > { %4335 = vst [vmem:[%s6433_s4 + $0x780] sm:$0xff] %v3951_v54  ;;  %v3003_v62 = vadd.f32 %v6768_v28, %v3002_v60  ;;  %5851 = vmatprep.mubr.msk.f32.mxu1 %vm569_vm3, %v524_v52  ;;  %v3762_v1 = vmax.f32 %v2048_v57, 0.0  ;;  %v340_v52 = vld [vmem:[%s5985_s26 + $0x530] sm:$0xff] }
 0x14d   : > { %v3954_v2 = vmax.f32 %v3008_v58, 0.0  ;;  %v3761_v5 = vmax.f32 %v2043_v61, 0.0  ;;  %v5406_v7 = vpop.f32.mrb[52].mxu0 }
 0x14e   : > { %v3953_v6 = vmax.f32 %v3003_v62, 0.0  ;;  %v5694_v8 = vpop.f32.mrb[52].mxu1  ;;  %4146 = vst [vmem:[%s6433_s4 + $0x198] sm:$0xff] %v3762_v1  ;;  %v2058_v9 = vadd.f32 %v6768_v28, %v5406_v7  ;;  %v2052_v11 = vpop.f32.mrb[53].mxu0  ;;  %5564 = vmatmul.mubr.msk.f32.gmra.mrb[158].mxu0 %vm569_vm3, %v333_v63  ;;  %v533_v1 = vld [vmem:[%s5985_s26 + $0xb38] sm:$0xff] }
 0x14f   : > { %4338 = vst [vmem:[%s6433_s4 + $0x798] sm:$0xff] %v3954_v2  ;;  %v3018_v10 = vadd.f32 %v6768_v28, %v5694_v8  ;;  %v3012_v12 = vpop.f32.mrb[53].mxu1  ;;  %5852 = vmatmul.mubr.msk.f32.gmra.mrb[158].mxu1 %vm569_vm3, %v525_v0  ;;  %4145 = vst [vmem:[%s6433_s4 + $0x190] sm:$0xff] %v3761_v5  ;;  %v2053_v13 = vadd.f32 %v6768_v28, %v2052_v11  ;;  %5566 = vmatprep.mubr.msk.f32.mxu0 %vm569_vm3, %v334_v3  ;;  %v341_v0 = vld [vmem:[%s5985_s26 + $0x538] sm:$0xff]  ;;  %v534_v5 = vld [vmem:[%s5985_s26 + $0xb40] sm:$0xff] }
 0x150   : > { %4337 = vst [vmem:[%s6433_s4 + $0x790] sm:$0xff] %v3953_v6  ;;  %v3013_v14 = vadd.f32 %v6768_v28, %v3012_v12  ;;  %5854 = vmatprep.mubr.msk.f32.mxu1 %vm569_vm3, %v526_v4  ;;  %v3764_v17 = vmax.f32 %v2058_v9, 0.0  ;;  %v342_v4 = vld [vmem:[%s5985_s26 + $0x540] sm:$0xff] }
 0x151   : > { %v3956_v18 = vmax.f32 %v3018_v10, 0.0  ;;  %v3763_v21 = vmax.f32 %v2053_v13, 0.0  ;;  %v5409_v23 = vpop.f32.mrb[54].mxu0 }
 0x152   : > { %v3955_v22 = vmax.f32 %v3013_v14, 0.0  ;;  %v5697_v24 = vpop.f32.mrb[54].mxu1  ;;  %4148 = vst [vmem:[%s6433_s4 + $0x1a8] sm:$0xff] %v3764_v17  ;;  %v2068_v25 = vadd.f32 %v6768_v28, %v5409_v23  ;;  %v2062_v27 = vpop.f32.mrb[55].mxu0  ;;  %5567 = vmatmul.mubr.msk.f32.gmra.mrb[160].mxu0 %vm569_vm3, %v335_v15  ;;  %v535_v17 = vld [vmem:[%s5985_s26 + $0xb48] sm:$0xff] }
 0x153   : > { %4340 = vst [vmem:[%s6433_s4 + $0x7a8] sm:$0xff] %v3956_v18  ;;  %v3028_v26 = vadd.f32 %v6768_v28, %v5697_v24  ;;  %v3022_v29 = vpop.f32.mrb[55].mxu1  ;;  %5855 = vmatmul.mubr.msk.f32.gmra.mrb[160].mxu1 %vm569_vm3, %v527_v16  ;;  %4147 = vst [vmem:[%s6433_s4 + $0x1a0] sm:$0xff] %v3763_v21  ;;  %v2063_v30 = vadd.f32 %v6768_v28, %v2062_v27  ;;  %5569 = vmatprep.mubr.msk.f32.mxu0 %vm569_vm3, %v336_v19  ;;  %v343_v16 = vld [vmem:[%s5985_s26 + $0x548] sm:$0xff]  ;;  %v536_v21 = vld [vmem:[%s5985_s26 + $0xb50] sm:$0xff] }
 0x154   : > { %4339 = vst [vmem:[%s6433_s4 + $0x7a0] sm:$0xff] %v3955_v22  ;;  %v3023_v31 = vadd.f32 %v6768_v28, %v3022_v29  ;;  %5857 = vmatprep.mubr.msk.f32.mxu1 %vm569_vm3, %v528_v20  ;;  %v3766_v34 = vmax.f32 %v2068_v25, 0.0  ;;  %v344_v20 = vld [vmem:[%s5985_s26 + $0x550] sm:$0xff] }
 0x155   : > { %v3958_v35 = vmax.f32 %v3028_v26, 0.0  ;;  %v3765_v38 = vmax.f32 %v2063_v30, 0.0  ;;  %v5412_v40 = vpop.f32.mrb[56].mxu0 }
 0x156   : > { %v3957_v39 = vmax.f32 %v3023_v31, 0.0  ;;  %v5700_v41 = vpop.f32.mrb[56].mxu1  ;;  %4150 = vst [vmem:[%s6433_s4 + $0x1b8] sm:$0xff] %v3766_v34  ;;  %v2078_v42 = vadd.f32 %v6768_v28, %v5412_v40  ;;  %v2072_v44 = vpop.f32.mrb[57].mxu0  ;;  %5570 = vmatmul.mubr.msk.f32.gmra.mrb[162].mxu0 %vm569_vm3, %v337_v32  ;;  %v537_v34 = vld [vmem:[%s5985_s26 + $0xb58] sm:$0xff] }
 0x157   : > { %4342 = vst [vmem:[%s6433_s4 + $0x7b8] sm:$0xff] %v3958_v35  ;;  %v3038_v43 = vadd.f32 %v6768_v28, %v5700_v41  ;;  %v3032_v45 = vpop.f32.mrb[57].mxu1  ;;  %5858 = vmatmul.mubr.msk.f32.gmra.mrb[162].mxu1 %vm569_vm3, %v529_v33  ;;  %4149 = vst [vmem:[%s6433_s4 + $0x1b0] sm:$0xff] %v3765_v38  ;;  %v2073_v46 = vadd.f32 %v6768_v28, %v2072_v44  ;;  %5572 = vmatprep.mubr.msk.f32.mxu0 %vm569_vm3, %v338_v36  ;;  %v345_v33 = vld [vmem:[%s5985_s26 + $0x558] sm:$0xff]  ;;  %v538_v38 = vld [vmem:[%s5985_s26 + $0xb60] sm:$0xff] }
 0x158   : > { %4341 = vst [vmem:[%s6433_s4 + $0x7b0] sm:$0xff] %v3957_v39  ;;  %v3033_v47 = vadd.f32 %v6768_v28, %v3032_v45  ;;  %5860 = vmatprep.mubr.msk.f32.mxu1 %vm569_vm3, %v530_v37  ;;  %v3768_v50 = vmax.f32 %v2078_v42, 0.0  ;;  %v346_v37 = vld [vmem:[%s5985_s26 + $0x560] sm:$0xff] }
 0x159   : > { %v3960_v51 = vmax.f32 %v3038_v43, 0.0  ;;  %v3767_v54 = vmax.f32 %v2073_v46, 0.0  ;;  %v5415_v56 = vpop.f32.mrb[58].mxu0 }
 0x15a   : > { %v3959_v55 = vmax.f32 %v3033_v47, 0.0  ;;  %v5703_v57 = vpop.f32.mrb[58].mxu1  ;;  %4152 = vst [vmem:[%s6433_s4 + $0x1c8] sm:$0xff] %v3768_v50  ;;  %v2088_v58 = vadd.f32 %v6768_v28, %v5415_v56  ;;  %v2082_v60 = vpop.f32.mrb[59].mxu0  ;;  %5573 = vmatmul.mubr.msk.f32.gmra.mrb[164].mxu0 %vm569_vm3, %v339_v48  ;;  %v539_v50 = vld [vmem:[%s5985_s26 + $0xb68] sm:$0xff] }
 0x15b   : > { %4344 = vst [vmem:[%s6433_s4 + $0x7c8] sm:$0xff] %v3960_v51  ;;  %v3048_v59 = vadd.f32 %v6768_v28, %v5703_v57  ;;  %v3042_v61 = vpop.f32.mrb[59].mxu1  ;;  %5861 = vmatmul.mubr.msk.f32.gmra.mrb[164].mxu1 %vm569_vm3, %v531_v49  ;;  %4151 = vst [vmem:[%s6433_s4 + $0x1c0] sm:$0xff] %v3767_v54  ;;  %v2083_v62 = vadd.f32 %v6768_v28, %v2082_v60  ;;  %5575 = vmatprep.mubr.msk.f32.mxu0 %vm569_vm3, %v340_v52  ;;  %v347_v49 = vld [vmem:[%s5985_s26 + $0x568] sm:$0xff]  ;;  %v540_v54 = vld [vmem:[%s5985_s26 + $0xb70] sm:$0xff] }
 0x15c   : > { %4343 = vst [vmem:[%s6433_s4 + $0x7c0] sm:$0xff] %v3959_v55  ;;  %v3043_v63 = vadd.f32 %v6768_v28, %v3042_v61  ;;  %5863 = vmatprep.mubr.msk.f32.mxu1 %vm569_vm3, %v532_v53  ;;  %v3770_v2 = vmax.f32 %v2088_v58, 0.0  ;;  %v348_v53 = vld [vmem:[%s5985_s26 + $0x570] sm:$0xff] }
 0x15d   : > { %v3962_v3 = vmax.f32 %v3048_v59, 0.0  ;;  %v3769_v6 = vmax.f32 %v2083_v62, 0.0  ;;  %v5418_v8 = vpop.f32.mrb[60].mxu0 }
 0x15e   : > { %v3961_v7 = vmax.f32 %v3043_v63, 0.0  ;;  %v5706_v9 = vpop.f32.mrb[60].mxu1  ;;  %4154 = vst [vmem:[%s6433_s4 + $0x1d8] sm:$0xff] %v3770_v2  ;;  %v2098_v10 = vadd.f32 %v6768_v28, %v5418_v8  ;;  %v2092_v12 = vpop.f32.mrb[61].mxu0  ;;  %5576 = vmatmul.mubr.msk.f32.gmra.mrb[166].mxu0 %vm569_vm3, %v341_v0  ;;  %v541_v2 = vld [vmem:[%s5985_s26 + $0xb78] sm:$0xff] }
 0x15f   : > { %4346 = vst [vmem:[%s6433_s4 + $0x7d8] sm:$0xff] %v3962_v3  ;;  %v3058_v11 = vadd.f32 %v6768_v28, %v5706_v9  ;;  %v3052_v13 = vpop.f32.mrb[61].mxu1  ;;  %5864 = vmatmul.mubr.msk.f32.gmra.mrb[166].mxu1 %vm569_vm3, %v533_v1  ;;  %4153 = vst [vmem:[%s6433_s4 + $0x1d0] sm:$0xff] %v3769_v6  ;;  %v2093_v14 = vadd.f32 %v6768_v28, %v2092_v12  ;;  %5578 = vmatprep.mubr.msk.f32.mxu0 %vm569_vm3, %v342_v4  ;;  %v349_v1 = vld [vmem:[%s5985_s26 + $0x578] sm:$0xff]  ;;  %v542_v6 = vld [vmem:[%s5985_s26 + $0xb80] sm:$0xff] }
 0x160   : > { %4345 = vst [vmem:[%s6433_s4 + $0x7d0] sm:$0xff] %v3961_v7  ;;  %v3053_v15 = vadd.f32 %v6768_v28, %v3052_v13  ;;  %5866 = vmatprep.mubr.msk.f32.mxu1 %vm569_vm3, %v534_v5  ;;  %v3772_v18 = vmax.f32 %v2098_v10, 0.0  ;;  %v350_v5 = vld [vmem:[%s5985_s26 + $0x580] sm:$0xff] }
 0x161   : > { %v3964_v19 = vmax.f32 %v3058_v11, 0.0  ;;  %v3771_v22 = vmax.f32 %v2093_v14, 0.0  ;;  %v5421_v24 = vpop.f32.mrb[62].mxu0 }
 0x162   : > { %v3963_v23 = vmax.f32 %v3053_v15, 0.0  ;;  %v5709_v25 = vpop.f32.mrb[62].mxu1  ;;  %4156 = vst [vmem:[%s6433_s4 + $0x1e8] sm:$0xff] %v3772_v18  ;;  %v2108_v26 = vadd.f32 %v6768_v28, %v5421_v24  ;;  %v2102_v29 = vpop.f32.mrb[63].mxu0  ;;  %5579 = vmatmul.mubr.msk.f32.gmra.mrb[168].mxu0 %vm569_vm3, %v343_v16  ;;  %v543_v18 = vld [vmem:[%s5985_s26 + $0xb88] sm:$0xff] }
 0x163   : > { %4348 = vst [vmem:[%s6433_s4 + $0x7e8] sm:$0xff] %v3964_v19  ;;  %v3068_v27 = vadd.f32 %v6768_v28, %v5709_v25  ;;  %v3062_v30 = vpop.f32.mrb[63].mxu1  ;;  %5867 = vmatmul.mubr.msk.f32.gmra.mrb[168].mxu1 %vm569_vm3, %v535_v17  ;;  %4155 = vst [vmem:[%s6433_s4 + $0x1e0] sm:$0xff] %v3771_v22  ;;  %v2103_v31 = vadd.f32 %v6768_v28, %v2102_v29  ;;  %5581 = vmatprep.mubr.msk.f32.mxu0 %vm569_vm3, %v344_v20  ;;  %v351_v17 = vld [vmem:[%s5985_s26 + $0x588] sm:$0xff]  ;;  %v544_v22 = vld [vmem:[%s5985_s26 + $0xb90] sm:$0xff] }
 0x164   : > { %4347 = vst [vmem:[%s6433_s4 + $0x7e0] sm:$0xff] %v3963_v23  ;;  %v3063_v32 = vadd.f32 %v6768_v28, %v3062_v30  ;;  %5869 = vmatprep.mubr.msk.f32.mxu1 %vm569_vm3, %v536_v21  ;;  %v3774_v35 = vmax.f32 %v2108_v26, 0.0  ;;  %v352_v21 = vld [vmem:[%s5985_s26 + $0x590] sm:$0xff] }
 0x165   : > { %v3966_v36 = vmax.f32 %v3068_v27, 0.0  ;;  %v3773_v39 = vmax.f32 %v2103_v31, 0.0  ;;  %v5424_v41 = vpop.f32.mrb[64].mxu0 }
 0x166   : > { %v3965_v40 = vmax.f32 %v3063_v32, 0.0  ;;  %v5712_v42 = vpop.f32.mrb[64].mxu1  ;;  %4158 = vst [vmem:[%s6433_s4 + $0x1f8] sm:$0xff] %v3774_v35  ;;  %v2118_v43 = vadd.f32 %v6768_v28, %v5424_v41  ;;  %v2112_v45 = vpop.f32.mrb[65].mxu0  ;;  %5582 = vmatmul.mubr.msk.f32.gmra.mrb[170].mxu0 %vm569_vm3, %v345_v33  ;;  %v545_v35 = vld [vmem:[%s5985_s26 + $0xb98] sm:$0xff] }
 0x167   : > { %4350 = vst [vmem:[%s6433_s4 + $0x7f8] sm:$0xff] %v3966_v36  ;;  %v3078_v44 = vadd.f32 %v6768_v28, %v5712_v42  ;;  %v3072_v46 = vpop.f32.mrb[65].mxu1  ;;  %5870 = vmatmul.mubr.msk.f32.gmra.mrb[170].mxu1 %vm569_vm3, %v537_v34  ;;  %4157 = vst [vmem:[%s6433_s4 + $0x1f0] sm:$0xff] %v3773_v39  ;;  %v2113_v47 = vadd.f32 %v6768_v28, %v2112_v45  ;;  %5584 = vmatprep.mubr.msk.f32.mxu0 %vm569_vm3, %v346_v37  ;;  %v353_v34 = vld [vmem:[%s5985_s26 + $0x598] sm:$0xff]  ;;  %v546_v39 = vld [vmem:[%s5985_s26 + $0xba0] sm:$0xff] }
 0x168   : > { %4349 = vst [vmem:[%s6433_s4 + $0x7f0] sm:$0xff] %v3965_v40  ;;  %v3073_v48 = vadd.f32 %v6768_v28, %v3072_v46  ;;  %5872 = vmatprep.mubr.msk.f32.mxu1 %vm569_vm3, %v538_v38  ;;  %v3776_v51 = vmax.f32 %v2118_v43, 0.0  ;;  %v354_v38 = vld [vmem:[%s5985_s26 + $0x5a0] sm:$0xff] }
 0x169   : > { %v3968_v52 = vmax.f32 %v3078_v44, 0.0  ;;  %v3775_v55 = vmax.f32 %v2113_v47, 0.0  ;;  %v5427_v57 = vpop.f32.mrb[66].mxu0 }
 0x16a   : > { %v3967_v56 = vmax.f32 %v3073_v48, 0.0  ;;  %v5715_v58 = vpop.f32.mrb[66].mxu1  ;;  %4160 = vst [vmem:[%s6433_s4 + $0x208] sm:$0xff] %v3776_v51  ;;  %v2128_v59 = vadd.f32 %v6768_v28, %v5427_v57  ;;  %v2122_v61 = vpop.f32.mrb[67].mxu0  ;;  %5585 = vmatmul.mubr.msk.f32.gmra.mrb[172].mxu0 %vm569_vm3, %v347_v49  ;;  %v547_v51 = vld [vmem:[%s5985_s26 + $0xba8] sm:$0xff] }
 0x16b   : > { %4352 = vst [vmem:[%s6433_s4 + $0x808] sm:$0xff] %v3968_v52  ;;  %v3088_v60 = vadd.f32 %v6768_v28, %v5715_v58  ;;  %v3082_v62 = vpop.f32.mrb[67].mxu1  ;;  %5873 = vmatmul.mubr.msk.f32.gmra.mrb[172].mxu1 %vm569_vm3, %v539_v50  ;;  %4159 = vst [vmem:[%s6433_s4 + $0x200] sm:$0xff] %v3775_v55  ;;  %v2123_v63 = vadd.f32 %v6768_v28, %v2122_v61  ;;  %5587 = vmatprep.mubr.msk.f32.mxu0 %vm569_vm3, %v348_v53  ;;  %v355_v50 = vld [vmem:[%s5985_s26 + $0x5a8] sm:$0xff]  ;;  %v548_v55 = vld [vmem:[%s5985_s26 + $0xbb0] sm:$0xff] }
 0x16c   : > { %4351 = vst [vmem:[%s6433_s4 + $0x800] sm:$0xff] %v3967_v56  ;;  %v3083_v0 = vadd.f32 %v6768_v28, %v3082_v62  ;;  %5875 = vmatprep.mubr.msk.f32.mxu1 %vm569_vm3, %v540_v54  ;;  %v3778_v3 = vmax.f32 %v2128_v59, 0.0  ;;  %v356_v54 = vld [vmem:[%s5985_s26 + $0x5b0] sm:$0xff] }
 0x16d   : > { %v3970_v4 = vmax.f32 %v3088_v60, 0.0  ;;  %v3777_v7 = vmax.f32 %v2123_v63, 0.0  ;;  %v5430_v9 = vpop.f32.mrb[68].mxu0 }
 0x16e   : > { %v3969_v8 = vmax.f32 %v3083_v0, 0.0  ;;  %v5718_v10 = vpop.f32.mrb[68].mxu1  ;;  %4162 = vst [vmem:[%s6433_s4 + $0x218] sm:$0xff] %v3778_v3  ;;  %v2138_v11 = vadd.f32 %v6768_v28, %v5430_v9  ;;  %v2132_v13 = vpop.f32.mrb[69].mxu0  ;;  %5588 = vmatmul.mubr.msk.f32.gmra.mrb[174].mxu0 %vm569_vm3, %v349_v1  ;;  %v549_v3 = vld [vmem:[%s5985_s26 + $0xbb8] sm:$0xff] }
 0x16f   : > { %4354 = vst [vmem:[%s6433_s4 + $0x818] sm:$0xff] %v3970_v4  ;;  %v3098_v12 = vadd.f32 %v6768_v28, %v5718_v10  ;;  %v3092_v14 = vpop.f32.mrb[69].mxu1  ;;  %5876 = vmatmul.mubr.msk.f32.gmra.mrb[174].mxu1 %vm569_vm3, %v541_v2  ;;  %4161 = vst [vmem:[%s6433_s4 + $0x210] sm:$0xff] %v3777_v7  ;;  %v2133_v15 = vadd.f32 %v6768_v28, %v2132_v13  ;;  %5590 = vmatprep.mubr.msk.f32.mxu0 %vm569_vm3, %v350_v5  ;;  %v357_v2 = vld [vmem:[%s5985_s26 + $0x5b8] sm:$0xff]  ;;  %v550_v7 = vld [vmem:[%s5985_s26 + $0xbc0] sm:$0xff] }
 0x170   : > { %4353 = vst [vmem:[%s6433_s4 + $0x810] sm:$0xff] %v3969_v8  ;;  %v3093_v16 = vadd.f32 %v6768_v28, %v3092_v14  ;;  %5878 = vmatprep.mubr.msk.f32.mxu1 %vm569_vm3, %v542_v6  ;;  %v3780_v19 = vmax.f32 %v2138_v11, 0.0  ;;  %v358_v6 = vld [vmem:[%s5985_s26 + $0x5c0] sm:$0xff] }
 0x171   : > { %v3972_v20 = vmax.f32 %v3098_v12, 0.0  ;;  %v3779_v23 = vmax.f32 %v2133_v15, 0.0  ;;  %v5433_v25 = vpop.f32.mrb[70].mxu0 }
 0x172   : > { %v3971_v24 = vmax.f32 %v3093_v16, 0.0  ;;  %v5721_v26 = vpop.f32.mrb[70].mxu1  ;;  %4164 = vst [vmem:[%s6433_s4 + $0x228] sm:$0xff] %v3780_v19  ;;  %v2148_v27 = vadd.f32 %v6768_v28, %v5433_v25  ;;  %v2142_v30 = vpop.f32.mrb[71].mxu0  ;;  %5591 = vmatmul.mubr.msk.f32.gmra.mrb[176].mxu0 %vm569_vm3, %v351_v17  ;;  %v551_v19 = vld [vmem:[%s5985_s26 + $0xbc8] sm:$0xff] }
 0x173   : > { %4356 = vst [vmem:[%s6433_s4 + $0x828] sm:$0xff] %v3972_v20  ;;  %v3108_v29 = vadd.f32 %v6768_v28, %v5721_v26  ;;  %v3102_v31 = vpop.f32.mrb[71].mxu1  ;;  %5879 = vmatmul.mubr.msk.f32.gmra.mrb[176].mxu1 %vm569_vm3, %v543_v18  ;;  %4163 = vst [vmem:[%s6433_s4 + $0x220] sm:$0xff] %v3779_v23  ;;  %v2143_v32 = vadd.f32 %v6768_v28, %v2142_v30  ;;  %5593 = vmatprep.mubr.msk.f32.mxu0 %vm569_vm3, %v352_v21  ;;  %v359_v18 = vld [vmem:[%s5985_s26 + $0x5c8] sm:$0xff]  ;;  %v552_v23 = vld [vmem:[%s5985_s26 + $0xbd0] sm:$0xff] }
 0x174   : > { %4355 = vst [vmem:[%s6433_s4 + $0x820] sm:$0xff] %v3971_v24  ;;  %v3103_v33 = vadd.f32 %v6768_v28, %v3102_v31  ;;  %5881 = vmatprep.mubr.msk.f32.mxu1 %vm569_vm3, %v544_v22  ;;  %v3782_v36 = vmax.f32 %v2148_v27, 0.0  ;;  %v360_v22 = vld [vmem:[%s5985_s26 + $0x5d0] sm:$0xff] }
 0x175   : > { %v3974_v37 = vmax.f32 %v3108_v29, 0.0  ;;  %v3781_v40 = vmax.f32 %v2143_v32, 0.0  ;;  %v5436_v42 = vpop.f32.mrb[72].mxu0 }
 0x176   : > { %v3973_v41 = vmax.f32 %v3103_v33, 0.0  ;;  %v5724_v43 = vpop.f32.mrb[72].mxu1  ;;  %4166 = vst [vmem:[%s6433_s4 + $0x238] sm:$0xff] %v3782_v36  ;;  %v2158_v44 = vadd.f32 %v6768_v28, %v5436_v42  ;;  %v2152_v46 = vpop.f32.mrb[73].mxu0  ;;  %5594 = vmatmul.mubr.msk.f32.gmra.mrb[178].mxu0 %vm569_vm3, %v353_v34  ;;  %v553_v36 = vld [vmem:[%s5985_s26 + $0xbd8] sm:$0xff] }
 0x177   : > { %4358 = vst [vmem:[%s6433_s4 + $0x838] sm:$0xff] %v3974_v37  ;;  %v3118_v45 = vadd.f32 %v6768_v28, %v5724_v43  ;;  %v3112_v47 = vpop.f32.mrb[73].mxu1  ;;  %5882 = vmatmul.mubr.msk.f32.gmra.mrb[178].mxu1 %vm569_vm3, %v545_v35  ;;  %4165 = vst [vmem:[%s6433_s4 + $0x230] sm:$0xff] %v3781_v40  ;;  %v2153_v48 = vadd.f32 %v6768_v28, %v2152_v46  ;;  %5596 = vmatprep.mubr.msk.f32.mxu0 %vm569_vm3, %v354_v38  ;;  %v361_v35 = vld [vmem:[%s5985_s26 + $0x5d8] sm:$0xff]  ;;  %v554_v40 = vld [vmem:[%s5985_s26 + $0xbe0] sm:$0xff] }
 0x178   : > { %4357 = vst [vmem:[%s6433_s4 + $0x830] sm:$0xff] %v3973_v41  ;;  %v3113_v49 = vadd.f32 %v6768_v28, %v3112_v47  ;;  %5884 = vmatprep.mubr.msk.f32.mxu1 %vm569_vm3, %v546_v39  ;;  %v3784_v52 = vmax.f32 %v2158_v44, 0.0  ;;  %v362_v39 = vld [vmem:[%s5985_s26 + $0x5e0] sm:$0xff] }
 0x179   : > { %v3976_v53 = vmax.f32 %v3118_v45, 0.0  ;;  %v3783_v56 = vmax.f32 %v2153_v48, 0.0  ;;  %v5439_v58 = vpop.f32.mrb[74].mxu0 }
 0x17a   : > { %v3975_v57 = vmax.f32 %v3113_v49, 0.0  ;;  %v5727_v59 = vpop.f32.mrb[74].mxu1  ;;  %4168 = vst [vmem:[%s6433_s4 + $0x248] sm:$0xff] %v3784_v52  ;;  %v2168_v60 = vadd.f32 %v6768_v28, %v5439_v58  ;;  %v2162_v62 = vpop.f32.mrb[75].mxu0  ;;  %5597 = vmatmul.mubr.msk.f32.gmra.mrb[180].mxu0 %vm569_vm3, %v355_v50  ;;  %v555_v52 = vld [vmem:[%s5985_s26 + $0xbe8] sm:$0xff] }
 0x17b   : > { %4360 = vst [vmem:[%s6433_s4 + $0x848] sm:$0xff] %v3976_v53  ;;  %v3128_v61 = vadd.f32 %v6768_v28, %v5727_v59  ;;  %v3122_v63 = vpop.f32.mrb[75].mxu1  ;;  %5885 = vmatmul.mubr.msk.f32.gmra.mrb[180].mxu1 %vm569_vm3, %v547_v51  ;;  %4167 = vst [vmem:[%s6433_s4 + $0x240] sm:$0xff] %v3783_v56  ;;  %v2163_v0 = vadd.f32 %v6768_v28, %v2162_v62  ;;  %5599 = vmatprep.mubr.msk.f32.mxu0 %vm569_vm3, %v356_v54  ;;  %v363_v51 = vld [vmem:[%s5985_s26 + $0x5e8] sm:$0xff]  ;;  %v556_v56 = vld [vmem:[%s5985_s26 + $0xbf0] sm:$0xff] }
 0x17c   : > { %4359 = vst [vmem:[%s6433_s4 + $0x840] sm:$0xff] %v3975_v57  ;;  %v3123_v1 = vadd.f32 %v6768_v28, %v3122_v63  ;;  %5887 = vmatprep.mubr.msk.f32.mxu1 %vm569_vm3, %v548_v55  ;;  %v3786_v4 = vmax.f32 %v2168_v60, 0.0  ;;  %v364_v55 = vld [vmem:[%s5985_s26 + $0x5f0] sm:$0xff] }
 0x17d   : > { %v3978_v5 = vmax.f32 %v3128_v61, 0.0  ;;  %v3785_v8 = vmax.f32 %v2163_v0, 0.0  ;;  %v5442_v10 = vpop.f32.mrb[76].mxu0 }
 0x17e   : > { %v3977_v9 = vmax.f32 %v3123_v1, 0.0  ;;  %v5730_v11 = vpop.f32.mrb[76].mxu1  ;;  %4170 = vst [vmem:[%s6433_s4 + $0x258] sm:$0xff] %v3786_v4  ;;  %v2178_v12 = vadd.f32 %v6768_v28, %v5442_v10  ;;  %v2172_v14 = vpop.f32.mrb[77].mxu0  ;;  %5600 = vmatmul.mubr.msk.f32.gmra.mrb[182].mxu0 %vm569_vm3, %v357_v2  ;;  %v557_v4 = vld [vmem:[%s5985_s26 + $0xbf8] sm:$0xff] }
 0x17f   : > { %4362 = vst [vmem:[%s6433_s4 + $0x858] sm:$0xff] %v3978_v5  ;;  %v3138_v13 = vadd.f32 %v6768_v28, %v5730_v11  ;;  %v3132_v15 = vpop.f32.mrb[77].mxu1  ;;  %5888 = vmatmul.mubr.msk.f32.gmra.mrb[182].mxu1 %vm569_vm3, %v549_v3  ;;  %4169 = vst [vmem:[%s6433_s4 + $0x250] sm:$0xff] %v3785_v8  ;;  %v2173_v16 = vadd.f32 %v6768_v28, %v2172_v14  ;;  %5602 = vmatprep.mubr.msk.f32.mxu0 %vm569_vm3, %v358_v6  ;;  %v365_v3 = vld [vmem:[%s5985_s26 + $0x5f8] sm:$0xff] }
 0x180   : > { %4361 = vst [vmem:[%s6433_s4 + $0x850] sm:$0xff] %v3977_v9  ;;  %v3133_v17 = vadd.f32 %v6768_v28, %v3132_v15  ;;  %5890 = vmatprep.mubr.msk.f32.mxu1 %vm569_vm3, %v550_v7  ;;  %v3788_v20 = vmax.f32 %v2178_v12, 0.0 }
 0x181   : > { %v3980_v21 = vmax.f32 %v3138_v13, 0.0  ;;  %v3787_v24 = vmax.f32 %v2173_v16, 0.0  ;;  %v5445_v26 = vpop.f32.mrb[78].mxu0 }
 0x182   : > { %v3979_v25 = vmax.f32 %v3133_v17, 0.0  ;;  %v5733_v27 = vpop.f32.mrb[78].mxu1  ;;  %4172 = vst [vmem:[%s6433_s4 + $0x268] sm:$0xff] %v3788_v20  ;;  %v2188_v29 = vadd.f32 %v6768_v28, %v5445_v26  ;;  %v2182_v31 = vpop.f32.mrb[79].mxu0  ;;  %5603 = vmatmul.mubr.msk.f32.gmra.mrb[184].mxu0 %vm569_vm3, %v359_v18 }
 0x183   : > { %4364 = vst [vmem:[%s6433_s4 + $0x868] sm:$0xff] %v3980_v21  ;;  %v3148_v30 = vadd.f32 %v6768_v28, %v5733_v27  ;;  %v3142_v32 = vpop.f32.mrb[79].mxu1  ;;  %5891 = vmatmul.mubr.msk.f32.gmra.mrb[184].mxu1 %vm569_vm3, %v551_v19  ;;  %4171 = vst [vmem:[%s6433_s4 + $0x260] sm:$0xff] %v3787_v24  ;;  %v2183_v33 = vadd.f32 %v6768_v28, %v2182_v31  ;;  %5605 = vmatprep.mubr.msk.f32.mxu0 %vm569_vm3, %v360_v22 }
 0x184   : > { %4363 = vst [vmem:[%s6433_s4 + $0x860] sm:$0xff] %v3979_v25  ;;  %v3143_v34 = vadd.f32 %v6768_v28, %v3142_v32  ;;  %5893 = vmatprep.mubr.msk.f32.mxu1 %vm569_vm3, %v552_v23  ;;  %v3790_v37 = vmax.f32 %v2188_v29, 0.0  ;;  %v7117_v23 = vld [vmem:[%s7555_s2] ss:$0 sm:$0xff] }
 0x185   : > { %v3982_v38 = vmax.f32 %v3148_v30, 0.0  ;;  %v3789_v41 = vmax.f32 %v2183_v33, 0.0  ;;  %v5448_v43 = vpop.f32.mrb[80].mxu0 }
 0x186   : > { %v3981_v42 = vmax.f32 %v3143_v34, 0.0  ;;  %v5736_v44 = vpop.f32.mrb[80].mxu1  ;;  %4174 = vst [vmem:[%s6433_s4 + $0x278] sm:$0xff] %v3790_v37  ;;  %v2198_v45 = vadd.f32 %v6768_v28, %v5448_v43  ;;  %v2192_v47 = vpop.f32.mrb[81].mxu0  ;;  %5606 = vmatmul.mubr.msk.f32.gmra.mrb[186].mxu0 %vm569_vm3, %v361_v35 }
 0x187   : > { %4366 = vst [vmem:[%s6433_s4 + $0x878] sm:$0xff] %v3982_v38  ;;  %v3158_v46 = vadd.f32 %v6768_v28, %v5736_v44  ;;  %v3152_v48 = vpop.f32.mrb[81].mxu1  ;;  %5894 = vmatmul.mubr.msk.f32.gmra.mrb[186].mxu1 %vm569_vm3, %v553_v36  ;;  %4173 = vst [vmem:[%s6433_s4 + $0x270] sm:$0xff] %v3789_v41  ;;  %v2193_v49 = vadd.f32 %v6768_v28, %v2192_v47  ;;  %5608 = vmatprep.mubr.msk.f32.mxu0 %vm569_vm3, %v362_v39 }
 0x188   : > { %4365 = vst [vmem:[%s6433_s4 + $0x870] sm:$0xff] %v3981_v42  ;;  %v3153_v50 = vadd.f32 %v6768_v28, %v3152_v48  ;;  %5896 = vmatprep.mubr.msk.f32.mxu1 %vm569_vm3, %v554_v40  ;;  %v3792_v53 = vmax.f32 %v2198_v45, 0.0 }
 0x189   : > { %v3984_v54 = vmax.f32 %v3158_v46, 0.0  ;;  %v3791_v57 = vmax.f32 %v2193_v49, 0.0  ;;  %v5451_v59 = vpop.f32.mrb[82].mxu0 }
 0x18a   : > { %v3983_v58 = vmax.f32 %v3153_v50, 0.0  ;;  %v5739_v60 = vpop.f32.mrb[82].mxu1  ;;  %4176 = vst [vmem:[%s6433_s4 + $0x288] sm:$0xff] %v3792_v53  ;;  %v2208_v61 = vadd.f32 %v6768_v28, %v5451_v59  ;;  %v2202_v63 = vpop.f32.mrb[83].mxu0  ;;  %5609 = vmatmul.mubr.msk.f32.gmra.mrb[188].mxu0 %vm569_vm3, %v363_v51 }
 0x18b   : > { %4368 = vst [vmem:[%s6433_s4 + $0x888] sm:$0xff] %v3984_v54  ;;  %v3168_v62 = vadd.f32 %v6768_v28, %v5739_v60  ;;  %v3162_v0 = vpop.f32.mrb[83].mxu1  ;;  %5897 = vmatmul.mubr.msk.f32.gmra.mrb[188].mxu1 %vm569_vm3, %v555_v52  ;;  %4175 = vst [vmem:[%s6433_s4 + $0x280] sm:$0xff] %v3791_v57  ;;  %v2203_v1 = vadd.f32 %v6768_v28, %v2202_v63  ;;  %5611 = vmatprep.mubr.msk.f32.mxu0 %vm569_vm3, %v364_v55 }
 0x18c   : > { %4367 = vst [vmem:[%s6433_s4 + $0x880] sm:$0xff] %v3983_v58  ;;  %v3163_v2 = vadd.f32 %v6768_v28, %v3162_v0  ;;  %5899 = vmatprep.mubr.msk.f32.mxu1 %vm569_vm3, %v556_v56  ;;  %v3794_v5 = vmax.f32 %v2208_v61, 0.0 }
 0x18d   : > { %v3986_v6 = vmax.f32 %v3168_v62, 0.0  ;;  %v3793_v7 = vmax.f32 %v2203_v1, 0.0  ;;  %v5454_v9 = vpop.f32.mrb[84].mxu0 }
 0x18e   : > { %v3985_v8 = vmax.f32 %v3163_v2, 0.0  ;;  %v5742_v10 = vpop.f32.mrb[84].mxu1  ;;  %4178 = vst [vmem:[%s6433_s4 + $0x298] sm:$0xff] %v3794_v5  ;;  %v2218_v11 = vadd.f32 %v6768_v28, %v5454_v9  ;;  %v2212_v13 = vpop.f32.mrb[85].mxu0  ;;  %5612 = vmatmul.mubr.msk.f32.gmra.mrb[190].mxu0 %vm569_vm3, %v365_v3 }
 0x18f   : > { %4370 = vst [vmem:[%s6433_s4 + $0x898] sm:$0xff] %v3986_v6  ;;  %v3178_v12 = vadd.f32 %v6768_v28, %v5742_v10  ;;  %v3172_v14 = vpop.f32.mrb[85].mxu1  ;;  %5900 = vmatmul.mubr.msk.f32.gmra.mrb[190].mxu1 %vm569_vm3, %v557_v4  ;;  %4177 = vst [vmem:[%s6433_s4 + $0x290] sm:$0xff] %v3793_v7  ;;  %v2213_v15 = vadd.f32 %v6768_v28, %v2212_v13 }
 0x190   : > { %4369 = vst [vmem:[%s6433_s4 + $0x890] sm:$0xff] %v3985_v8  ;;  %v3173_v16 = vadd.f32 %v6768_v28, %v3172_v14  ;;  %v3796_v17 = vmax.f32 %v2218_v11, 0.0 }
 0x191   : > { %v3988_v18 = vmax.f32 %v3178_v12, 0.0  ;;  %v3795_v19 = vmax.f32 %v2213_v15, 0.0  ;;  %v5457_v21 = vpop.f32.mrb[86].mxu0 }
 0x192   : > { %v3987_v20 = vmax.f32 %v3173_v16, 0.0  ;;  %v5745_v22 = vpop.f32.mrb[86].mxu1  ;;  %4180 = vst [vmem:[%s6433_s4 + $0x2a8] sm:$0xff] %v3796_v17  ;;  %v2228_v24 = vadd.f32 %v7117_v23, %v5457_v21  ;;  %v2222_v28 = vpop.f32.mrb[87].mxu0 }
 0x193   : > { %4372 = vst [vmem:[%s6433_s4 + $0x8a8] sm:$0xff] %v3988_v18  ;;  %v3188_v25 = vadd.f32 %v7117_v23, %v5745_v22  ;;  %v3182_v26 = vpop.f32.mrb[87].mxu1  ;;  %4179 = vst [vmem:[%s6433_s4 + $0x2a0] sm:$0xff] %v3795_v19  ;;  %v2223_v27 = vadd.f32 %v7117_v23, %v2222_v28 }
 0x194   : > { %4371 = vst [vmem:[%s6433_s4 + $0x8a0] sm:$0xff] %v3987_v20  ;;  %v3183_v29 = vadd.f32 %v7117_v23, %v3182_v26  ;;  %v3798_v30 = vmax.f32 %v2228_v24, 0.0 }
 0x195   : > { %v3990_v31 = vmax.f32 %v3188_v25, 0.0  ;;  %v3797_v32 = vmax.f32 %v2223_v27, 0.0  ;;  %v5460_v34 = vpop.f32.mrb[88].mxu0 }
 0x196   : > { %v3989_v33 = vmax.f32 %v3183_v29, 0.0  ;;  %v5748_v35 = vpop.f32.mrb[88].mxu1  ;;  %4182 = vst [vmem:[%s6433_s4 + $0x2b8] sm:$0xff] %v3798_v30  ;;  %v2238_v36 = vadd.f32 %v7117_v23, %v5460_v34  ;;  %v2232_v38 = vpop.f32.mrb[89].mxu0 }
 0x197   : > { %4374 = vst [vmem:[%s6433_s4 + $0x8b8] sm:$0xff] %v3990_v31  ;;  %v3198_v37 = vadd.f32 %v7117_v23, %v5748_v35  ;;  %v3192_v39 = vpop.f32.mrb[89].mxu1  ;;  %4181 = vst [vmem:[%s6433_s4 + $0x2b0] sm:$0xff] %v3797_v32  ;;  %v2233_v40 = vadd.f32 %v7117_v23, %v2232_v38 }
 0x198   : > { %4373 = vst [vmem:[%s6433_s4 + $0x8b0] sm:$0xff] %v3989_v33  ;;  %v3193_v41 = vadd.f32 %v7117_v23, %v3192_v39  ;;  %v3800_v42 = vmax.f32 %v2238_v36, 0.0 }
 0x199   : > { %v3992_v43 = vmax.f32 %v3198_v37, 0.0  ;;  %v3799_v44 = vmax.f32 %v2233_v40, 0.0  ;;  %v5463_v46 = vpop.f32.mrb[90].mxu0 }
 0x19a   : > { %v3991_v45 = vmax.f32 %v3193_v41, 0.0  ;;  %v5751_v47 = vpop.f32.mrb[90].mxu1  ;;  %4184 = vst [vmem:[%s6433_s4 + $0x2c8] sm:$0xff] %v3800_v42  ;;  %v2248_v48 = vadd.f32 %v7117_v23, %v5463_v46  ;;  %v2242_v50 = vpop.f32.mrb[91].mxu0 }
 0x19b   : > { %4376 = vst [vmem:[%s6433_s4 + $0x8c8] sm:$0xff] %v3992_v43  ;;  %v3208_v49 = vadd.f32 %v7117_v23, %v5751_v47  ;;  %v3202_v51 = vpop.f32.mrb[91].mxu1  ;;  %4183 = vst [vmem:[%s6433_s4 + $0x2c0] sm:$0xff] %v3799_v44  ;;  %v2243_v52 = vadd.f32 %v7117_v23, %v2242_v50 }
 0x19c   : > { %4375 = vst [vmem:[%s6433_s4 + $0x8c0] sm:$0xff] %v3991_v45  ;;  %v3203_v53 = vadd.f32 %v7117_v23, %v3202_v51  ;;  %v3802_v54 = vmax.f32 %v2248_v48, 0.0 }
 0x19d   : > { %v3994_v55 = vmax.f32 %v3208_v49, 0.0  ;;  %v3801_v56 = vmax.f32 %v2243_v52, 0.0  ;;  %v5466_v58 = vpop.f32.mrb[92].mxu0 }
 0x19e   : > { %v3993_v57 = vmax.f32 %v3203_v53, 0.0  ;;  %v5754_v59 = vpop.f32.mrb[92].mxu1  ;;  %4186 = vst [vmem:[%s6433_s4 + $0x2d8] sm:$0xff] %v3802_v54  ;;  %v2258_v60 = vadd.f32 %v7117_v23, %v5466_v58  ;;  %v2252_v62 = vpop.f32.mrb[93].mxu0 }
 0x19f   : > { %4378 = vst [vmem:[%s6433_s4 + $0x8d8] sm:$0xff] %v3994_v55  ;;  %v3218_v61 = vadd.f32 %v7117_v23, %v5754_v59  ;;  %v3212_v63 = vpop.f32.mrb[93].mxu1  ;;  %4185 = vst [vmem:[%s6433_s4 + $0x2d0] sm:$0xff] %v3801_v56  ;;  %v2253_v0 = vadd.f32 %v7117_v23, %v2252_v62 }
 0x1a0   : > { %4377 = vst [vmem:[%s6433_s4 + $0x8d0] sm:$0xff] %v3993_v57  ;;  %v3213_v1 = vadd.f32 %v7117_v23, %v3212_v63  ;;  %v3804_v2 = vmax.f32 %v2258_v60, 0.0 }
 0x1a1   : > { %v3996_v3 = vmax.f32 %v3218_v61, 0.0  ;;  %v3803_v4 = vmax.f32 %v2253_v0, 0.0  ;;  %v5469_v6 = vpop.f32.mrb[94].mxu0 }
 0x1a2   : > { %v3995_v5 = vmax.f32 %v3213_v1, 0.0  ;;  %v5757_v7 = vpop.f32.mrb[94].mxu1  ;;  %4188 = vst [vmem:[%s6433_s4 + $0x2e8] sm:$0xff] %v3804_v2  ;;  %v2268_v8 = vadd.f32 %v7117_v23, %v5469_v6  ;;  %v2262_v10 = vpop.f32.mrb[95].mxu0 }
 0x1a3   : > { %4380 = vst [vmem:[%s6433_s4 + $0x8e8] sm:$0xff] %v3996_v3  ;;  %v3228_v9 = vadd.f32 %v7117_v23, %v5757_v7  ;;  %v3222_v11 = vpop.f32.mrb[95].mxu1  ;;  %4187 = vst [vmem:[%s6433_s4 + $0x2e0] sm:$0xff] %v3803_v4  ;;  %v2263_v12 = vadd.f32 %v7117_v23, %v2262_v10 }
 0x1a4   : > { %4379 = vst [vmem:[%s6433_s4 + $0x8e0] sm:$0xff] %v3995_v5  ;;  %v3223_v13 = vadd.f32 %v7117_v23, %v3222_v11  ;;  %v3806_v14 = vmax.f32 %v2268_v8, 0.0 }
 0x1a5   : > { %v3998_v15 = vmax.f32 %v3228_v9, 0.0  ;;  %v3805_v16 = vmax.f32 %v2263_v12, 0.0  ;;  %v5472_v18 = vpop.f32.mrb[96].mxu0 }
 0x1a6   : > { %v3997_v17 = vmax.f32 %v3223_v13, 0.0  ;;  %v5760_v19 = vpop.f32.mrb[96].mxu1  ;;  %4190 = vst [vmem:[%s6433_s4 + $0x2f8] sm:$0xff] %v3806_v14  ;;  %v2278_v20 = vadd.f32 %v7117_v23, %v5472_v18  ;;  %v2272_v22 = vpop.f32.mrb[97].mxu0 }
 0x1a7   : > { %4382 = vst [vmem:[%s6433_s4 + $0x8f8] sm:$0xff] %v3998_v15  ;;  %v3238_v21 = vadd.f32 %v7117_v23, %v5760_v19  ;;  %v3232_v24 = vpop.f32.mrb[97].mxu1  ;;  %4189 = vst [vmem:[%s6433_s4 + $0x2f0] sm:$0xff] %v3805_v16  ;;  %v2273_v25 = vadd.f32 %v7117_v23, %v2272_v22 }
 0x1a8   : > { %4381 = vst [vmem:[%s6433_s4 + $0x8f0] sm:$0xff] %v3997_v17  ;;  %v3233_v28 = vadd.f32 %v7117_v23, %v3232_v24  ;;  %v3808_v26 = vmax.f32 %v2278_v20, 0.0 }
 0x1a9   : > { %v4000_v27 = vmax.f32 %v3238_v21, 0.0  ;;  %v3807_v29 = vmax.f32 %v2273_v25, 0.0  ;;  %v5475_v31 = vpop.f32.mrb[98].mxu0 }
 0x1aa   : > { %v3999_v30 = vmax.f32 %v3233_v28, 0.0  ;;  %v5763_v32 = vpop.f32.mrb[98].mxu1  ;;  %4192 = vst [vmem:[%s6433_s4 + $0x308] sm:$0xff] %v3808_v26  ;;  %v2288_v33 = vadd.f32 %v7117_v23, %v5475_v31  ;;  %v2282_v35 = vpop.f32.mrb[99].mxu0 }
 0x1ab   : > { %4384 = vst [vmem:[%s6433_s4 + $0x908] sm:$0xff] %v4000_v27  ;;  %v3248_v34 = vadd.f32 %v7117_v23, %v5763_v32  ;;  %v3242_v36 = vpop.f32.mrb[99].mxu1  ;;  %4191 = vst [vmem:[%s6433_s4 + $0x300] sm:$0xff] %v3807_v29  ;;  %v2283_v37 = vadd.f32 %v7117_v23, %v2282_v35 }
 0x1ac   : > { %4383 = vst [vmem:[%s6433_s4 + $0x900] sm:$0xff] %v3999_v30  ;;  %v3243_v38 = vadd.f32 %v7117_v23, %v3242_v36  ;;  %v3810_v39 = vmax.f32 %v2288_v33, 0.0 }
 0x1ad   : > { %v4002_v40 = vmax.f32 %v3248_v34, 0.0  ;;  %v3809_v41 = vmax.f32 %v2283_v37, 0.0  ;;  %v5478_v43 = vpop.f32.mrb[100].mxu0 }
 0x1ae   : > { %v4001_v42 = vmax.f32 %v3243_v38, 0.0  ;;  %v5766_v44 = vpop.f32.mrb[100].mxu1  ;;  %4194 = vst [vmem:[%s6433_s4 + $0x318] sm:$0xff] %v3810_v39  ;;  %v2298_v45 = vadd.f32 %v7117_v23, %v5478_v43  ;;  %v2292_v47 = vpop.f32.mrb[101].mxu0 }
 0x1af   : > { %4386 = vst [vmem:[%s6433_s4 + $0x918] sm:$0xff] %v4002_v40  ;;  %v3258_v46 = vadd.f32 %v7117_v23, %v5766_v44  ;;  %v3252_v48 = vpop.f32.mrb[101].mxu1  ;;  %4193 = vst [vmem:[%s6433_s4 + $0x310] sm:$0xff] %v3809_v41  ;;  %v2293_v49 = vadd.f32 %v7117_v23, %v2292_v47 }
 0x1b0   : > { %4385 = vst [vmem:[%s6433_s4 + $0x910] sm:$0xff] %v4001_v42  ;;  %v3253_v50 = vadd.f32 %v7117_v23, %v3252_v48  ;;  %v3812_v51 = vmax.f32 %v2298_v45, 0.0 }
 0x1b1   : > { %v4004_v52 = vmax.f32 %v3258_v46, 0.0  ;;  %v3811_v53 = vmax.f32 %v2293_v49, 0.0  ;;  %v5481_v55 = vpop.f32.mrb[102].mxu0 }
 0x1b2   : > { %v4003_v54 = vmax.f32 %v3253_v50, 0.0  ;;  %v5769_v56 = vpop.f32.mrb[102].mxu1  ;;  %4196 = vst [vmem:[%s6433_s4 + $0x328] sm:$0xff] %v3812_v51  ;;  %v2308_v57 = vadd.f32 %v7117_v23, %v5481_v55  ;;  %v2302_v59 = vpop.f32.mrb[103].mxu0 }
 0x1b3   : > { %4388 = vst [vmem:[%s6433_s4 + $0x928] sm:$0xff] %v4004_v52  ;;  %v3268_v58 = vadd.f32 %v7117_v23, %v5769_v56  ;;  %v3262_v60 = vpop.f32.mrb[103].mxu1  ;;  %4195 = vst [vmem:[%s6433_s4 + $0x320] sm:$0xff] %v3811_v53  ;;  %v2303_v61 = vadd.f32 %v7117_v23, %v2302_v59 }
 0x1b4   : > { %4387 = vst [vmem:[%s6433_s4 + $0x920] sm:$0xff] %v4003_v54  ;;  %v3263_v62 = vadd.f32 %v7117_v23, %v3262_v60  ;;  %v3814_v63 = vmax.f32 %v2308_v57, 0.0 }
 0x1b5   : > { %v4006_v0 = vmax.f32 %v3268_v58, 0.0  ;;  %v3813_v1 = vmax.f32 %v2303_v61, 0.0  ;;  %v5484_v3 = vpop.f32.mrb[104].mxu0 }
 0x1b6   : > { %v4005_v2 = vmax.f32 %v3263_v62, 0.0  ;;  %v5772_v4 = vpop.f32.mrb[104].mxu1  ;;  %4198 = vst [vmem:[%s6433_s4 + $0x338] sm:$0xff] %v3814_v63  ;;  %v2318_v5 = vadd.f32 %v7117_v23, %v5484_v3  ;;  %v2312_v7 = vpop.f32.mrb[105].mxu0 }
 0x1b7   : > { %4390 = vst [vmem:[%s6433_s4 + $0x938] sm:$0xff] %v4006_v0  ;;  %v3278_v6 = vadd.f32 %v7117_v23, %v5772_v4  ;;  %v3272_v8 = vpop.f32.mrb[105].mxu1  ;;  %4197 = vst [vmem:[%s6433_s4 + $0x330] sm:$0xff] %v3813_v1  ;;  %v2313_v9 = vadd.f32 %v7117_v23, %v2312_v7 }
 0x1b8   : > { %4389 = vst [vmem:[%s6433_s4 + $0x930] sm:$0xff] %v4005_v2  ;;  %v3273_v10 = vadd.f32 %v7117_v23, %v3272_v8  ;;  %v3816_v11 = vmax.f32 %v2318_v5, 0.0 }
 0x1b9   : > { %v4008_v12 = vmax.f32 %v3278_v6, 0.0  ;;  %v3815_v13 = vmax.f32 %v2313_v9, 0.0  ;;  %v5487_v15 = vpop.f32.mrb[106].mxu0 }
 0x1ba   : > { %v4007_v14 = vmax.f32 %v3273_v10, 0.0  ;;  %v5775_v16 = vpop.f32.mrb[106].mxu1  ;;  %4200 = vst [vmem:[%s6433_s4 + $0x348] sm:$0xff] %v3816_v11  ;;  %v2328_v17 = vadd.f32 %v7117_v23, %v5487_v15  ;;  %v2322_v19 = vpop.f32.mrb[107].mxu0 }
 0x1bb   : > { %4392 = vst [vmem:[%s6433_s4 + $0x948] sm:$0xff] %v4008_v12  ;;  %v3288_v18 = vadd.f32 %v7117_v23, %v5775_v16  ;;  %v3282_v20 = vpop.f32.mrb[107].mxu1  ;;  %4199 = vst [vmem:[%s6433_s4 + $0x340] sm:$0xff] %v3815_v13  ;;  %v2323_v21 = vadd.f32 %v7117_v23, %v2322_v19 }
 0x1bc   : > { %4391 = vst [vmem:[%s6433_s4 + $0x940] sm:$0xff] %v4007_v14  ;;  %v3283_v22 = vadd.f32 %v7117_v23, %v3282_v20  ;;  %v3818_v24 = vmax.f32 %v2328_v17, 0.0 }
 0x1bd   : > { %v4010_v25 = vmax.f32 %v3288_v18, 0.0  ;;  %v3817_v28 = vmax.f32 %v2323_v21, 0.0  ;;  %v5490_v27 = vpop.f32.mrb[108].mxu0 }
 0x1be   : > { %v4009_v26 = vmax.f32 %v3283_v22, 0.0  ;;  %v5778_v29 = vpop.f32.mrb[108].mxu1  ;;  %4202 = vst [vmem:[%s6433_s4 + $0x358] sm:$0xff] %v3818_v24  ;;  %v2338_v30 = vadd.f32 %v7117_v23, %v5490_v27  ;;  %v2332_v32 = vpop.f32.mrb[109].mxu0 }
 0x1bf   : > { %4394 = vst [vmem:[%s6433_s4 + $0x958] sm:$0xff] %v4010_v25  ;;  %v3298_v31 = vadd.f32 %v7117_v23, %v5778_v29  ;;  %v3292_v33 = vpop.f32.mrb[109].mxu1  ;;  %4201 = vst [vmem:[%s6433_s4 + $0x350] sm:$0xff] %v3817_v28  ;;  %v2333_v34 = vadd.f32 %v7117_v23, %v2332_v32 }
 0x1c0   : > { %4393 = vst [vmem:[%s6433_s4 + $0x950] sm:$0xff] %v4009_v26  ;;  %v3293_v35 = vadd.f32 %v7117_v23, %v3292_v33  ;;  %v3820_v36 = vmax.f32 %v2338_v30, 0.0 }
 0x1c1   : > { %v4012_v37 = vmax.f32 %v3298_v31, 0.0  ;;  %v3819_v38 = vmax.f32 %v2333_v34, 0.0  ;;  %v5493_v40 = vpop.f32.mrb[110].mxu0 }
 0x1c2   : > { %v4011_v39 = vmax.f32 %v3293_v35, 0.0  ;;  %v5781_v41 = vpop.f32.mrb[110].mxu1  ;;  %4204 = vst [vmem:[%s6433_s4 + $0x368] sm:$0xff] %v3820_v36  ;;  %v2348_v42 = vadd.f32 %v7117_v23, %v5493_v40  ;;  %v2342_v44 = vpop.f32.mrb[111].mxu0 }
 0x1c3   : > { %4396 = vst [vmem:[%s6433_s4 + $0x968] sm:$0xff] %v4012_v37  ;;  %v3308_v43 = vadd.f32 %v7117_v23, %v5781_v41  ;;  %v3302_v45 = vpop.f32.mrb[111].mxu1  ;;  %4203 = vst [vmem:[%s6433_s4 + $0x360] sm:$0xff] %v3819_v38  ;;  %v2343_v46 = vadd.f32 %v7117_v23, %v2342_v44 }
 0x1c4   : > { %4395 = vst [vmem:[%s6433_s4 + $0x960] sm:$0xff] %v4011_v39  ;;  %v3303_v47 = vadd.f32 %v7117_v23, %v3302_v45  ;;  %v3822_v48 = vmax.f32 %v2348_v42, 0.0 }
 0x1c5   : > { %v4014_v49 = vmax.f32 %v3308_v43, 0.0  ;;  %v3821_v50 = vmax.f32 %v2343_v46, 0.0  ;;  %v5496_v52 = vpop.f32.mrb[112].mxu0 }
 0x1c6   : > { %v4013_v51 = vmax.f32 %v3303_v47, 0.0  ;;  %v5784_v53 = vpop.f32.mrb[112].mxu1  ;;  %4206 = vst [vmem:[%s6433_s4 + $0x378] sm:$0xff] %v3822_v48  ;;  %v2358_v54 = vadd.f32 %v7117_v23, %v5496_v52  ;;  %v2352_v56 = vpop.f32.mrb[113].mxu0 }
 0x1c7   : > { %4398 = vst [vmem:[%s6433_s4 + $0x978] sm:$0xff] %v4014_v49  ;;  %v3318_v55 = vadd.f32 %v7117_v23, %v5784_v53  ;;  %v3312_v57 = vpop.f32.mrb[113].mxu1  ;;  %4205 = vst [vmem:[%s6433_s4 + $0x370] sm:$0xff] %v3821_v50  ;;  %v2353_v58 = vadd.f32 %v7117_v23, %v2352_v56 }
 0x1c8   : > { %4397 = vst [vmem:[%s6433_s4 + $0x970] sm:$0xff] %v4013_v51  ;;  %v3313_v59 = vadd.f32 %v7117_v23, %v3312_v57  ;;  %v3824_v60 = vmax.f32 %v2358_v54, 0.0 }
 0x1c9   : > { %v4016_v61 = vmax.f32 %v3318_v55, 0.0  ;;  %v3823_v62 = vmax.f32 %v2353_v58, 0.0  ;;  %v5499_v0 = vpop.f32.mrb[114].mxu0 }
 0x1ca   : > { %v4015_v63 = vmax.f32 %v3313_v59, 0.0  ;;  %v5787_v1 = vpop.f32.mrb[114].mxu1  ;;  %4208 = vst [vmem:[%s6433_s4 + $0x388] sm:$0xff] %v3824_v60  ;;  %v2368_v2 = vadd.f32 %v7117_v23, %v5499_v0  ;;  %v2362_v4 = vpop.f32.mrb[115].mxu0 }
 0x1cb   : > { %4400 = vst [vmem:[%s6433_s4 + $0x988] sm:$0xff] %v4016_v61  ;;  %v3328_v3 = vadd.f32 %v7117_v23, %v5787_v1  ;;  %v3322_v5 = vpop.f32.mrb[115].mxu1  ;;  %4207 = vst [vmem:[%s6433_s4 + $0x380] sm:$0xff] %v3823_v62  ;;  %v2363_v6 = vadd.f32 %v7117_v23, %v2362_v4 }
 0x1cc   : > { %4399 = vst [vmem:[%s6433_s4 + $0x980] sm:$0xff] %v4015_v63  ;;  %v3323_v7 = vadd.f32 %v7117_v23, %v3322_v5  ;;  %v3826_v8 = vmax.f32 %v2368_v2, 0.0 }
 0x1cd   : > { %v4018_v9 = vmax.f32 %v3328_v3, 0.0  ;;  %v3825_v10 = vmax.f32 %v2363_v6, 0.0  ;;  %v5502_v12 = vpop.f32.mrb[116].mxu0 }
 0x1ce   : > { %v4017_v11 = vmax.f32 %v3323_v7, 0.0  ;;  %v5790_v13 = vpop.f32.mrb[116].mxu1  ;;  %4210 = vst [vmem:[%s6433_s4 + $0x398] sm:$0xff] %v3826_v8  ;;  %v2378_v14 = vadd.f32 %v7117_v23, %v5502_v12  ;;  %v2372_v16 = vpop.f32.mrb[117].mxu0 }
 0x1cf   : > { %4402 = vst [vmem:[%s6433_s4 + $0x998] sm:$0xff] %v4018_v9  ;;  %v3338_v15 = vadd.f32 %v7117_v23, %v5790_v13  ;;  %v3332_v17 = vpop.f32.mrb[117].mxu1  ;;  %4209 = vst [vmem:[%s6433_s4 + $0x390] sm:$0xff] %v3825_v10  ;;  %v2373_v18 = vadd.f32 %v7117_v23, %v2372_v16 }
 0x1d0   : > { %4401 = vst [vmem:[%s6433_s4 + $0x990] sm:$0xff] %v4017_v11  ;;  %v3333_v19 = vadd.f32 %v7117_v23, %v3332_v17  ;;  %v3828_v20 = vmax.f32 %v2378_v14, 0.0 }
 0x1d1   : > { %v4020_v21 = vmax.f32 %v3338_v15, 0.0  ;;  %v3827_v22 = vmax.f32 %v2373_v18, 0.0  ;;  %v5505_v25 = vpop.f32.mrb[118].mxu0 }
 0x1d2   : > { %v4019_v24 = vmax.f32 %v3333_v19, 0.0  ;;  %v5793_v28 = vpop.f32.mrb[118].mxu1  ;;  %4212 = vst [vmem:[%s6433_s4 + $0x3a8] sm:$0xff] %v3828_v20  ;;  %v2388_v26 = vadd.f32 %v7117_v23, %v5505_v25  ;;  %v2382_v29 = vpop.f32.mrb[119].mxu0 }
 0x1d3   : > { %4404 = vst [vmem:[%s6433_s4 + $0x9a8] sm:$0xff] %v4020_v21  ;;  %v3348_v27 = vadd.f32 %v7117_v23, %v5793_v28  ;;  %v3342_v30 = vpop.f32.mrb[119].mxu1  ;;  %4211 = vst [vmem:[%s6433_s4 + $0x3a0] sm:$0xff] %v3827_v22  ;;  %v2383_v31 = vadd.f32 %v7117_v23, %v2382_v29 }
 0x1d4   : > { %4403 = vst [vmem:[%s6433_s4 + $0x9a0] sm:$0xff] %v4019_v24  ;;  %v3343_v32 = vadd.f32 %v7117_v23, %v3342_v30  ;;  %v3830_v33 = vmax.f32 %v2388_v26, 0.0 }
 0x1d5   : > { %v4022_v34 = vmax.f32 %v3348_v27, 0.0  ;;  %v3829_v35 = vmax.f32 %v2383_v31, 0.0  ;;  %v5508_v37 = vpop.f32.mrb[120].mxu0 }
 0x1d6   : > { %v4021_v36 = vmax.f32 %v3343_v32, 0.0  ;;  %v5796_v38 = vpop.f32.mrb[120].mxu1  ;;  %4214 = vst [vmem:[%s6433_s4 + $0x3b8] sm:$0xff] %v3830_v33  ;;  %v2398_v39 = vadd.f32 %v7117_v23, %v5508_v37  ;;  %v2392_v41 = vpop.f32.mrb[121].mxu0 }
 0x1d7   : > { %4406 = vst [vmem:[%s6433_s4 + $0x9b8] sm:$0xff] %v4022_v34  ;;  %v3358_v40 = vadd.f32 %v7117_v23, %v5796_v38  ;;  %v3352_v42 = vpop.f32.mrb[121].mxu1  ;;  %4213 = vst [vmem:[%s6433_s4 + $0x3b0] sm:$0xff] %v3829_v35  ;;  %v2393_v43 = vadd.f32 %v7117_v23, %v2392_v41 }
 0x1d8   : > { %4405 = vst [vmem:[%s6433_s4 + $0x9b0] sm:$0xff] %v4021_v36  ;;  %v3353_v44 = vadd.f32 %v7117_v23, %v3352_v42  ;;  %v3832_v45 = vmax.f32 %v2398_v39, 0.0 }
 0x1d9   : > { %v4024_v46 = vmax.f32 %v3358_v40, 0.0  ;;  %v3831_v47 = vmax.f32 %v2393_v43, 0.0  ;;  %v5511_v49 = vpop.f32.mrb[122].mxu0 }
 0x1da   : > { %v4023_v48 = vmax.f32 %v3353_v44, 0.0  ;;  %v5799_v50 = vpop.f32.mrb[122].mxu1  ;;  %4216 = vst [vmem:[%s6433_s4 + $0x3c8] sm:$0xff] %v3832_v45  ;;  %v2408_v51 = vadd.f32 %v7117_v23, %v5511_v49  ;;  %v2402_v53 = vpop.f32.mrb[123].mxu0 }
 0x1db   : > { %4408 = vst [vmem:[%s6433_s4 + $0x9c8] sm:$0xff] %v4024_v46  ;;  %v3368_v52 = vadd.f32 %v7117_v23, %v5799_v50  ;;  %v3362_v54 = vpop.f32.mrb[123].mxu1  ;;  %4215 = vst [vmem:[%s6433_s4 + $0x3c0] sm:$0xff] %v3831_v47  ;;  %v2403_v55 = vadd.f32 %v7117_v23, %v2402_v53 }
 0x1dc   : > { %4407 = vst [vmem:[%s6433_s4 + $0x9c0] sm:$0xff] %v4023_v48  ;;  %v3363_v56 = vadd.f32 %v7117_v23, %v3362_v54  ;;  %v3834_v57 = vmax.f32 %v2408_v51, 0.0 }
 0x1dd   : > { %v4026_v58 = vmax.f32 %v3368_v52, 0.0  ;;  %v3833_v59 = vmax.f32 %v2403_v55, 0.0  ;;  %v5514_v61 = vpop.f32.mrb[124].mxu0 }
 0x1de   : > { %v4025_v60 = vmax.f32 %v3363_v56, 0.0  ;;  %v5802_v62 = vpop.f32.mrb[124].mxu1  ;;  %4218 = vst [vmem:[%s6433_s4 + $0x3d8] sm:$0xff] %v3834_v57  ;;  %v2418_v63 = vadd.f32 %v7117_v23, %v5514_v61  ;;  %v2412_v1 = vpop.f32.mrb[125].mxu0 }
 0x1df   : > { %4410 = vst [vmem:[%s6433_s4 + $0x9d8] sm:$0xff] %v4026_v58  ;;  %v3378_v0 = vadd.f32 %v7117_v23, %v5802_v62  ;;  %v3372_v2 = vpop.f32.mrb[125].mxu1  ;;  %4217 = vst [vmem:[%s6433_s4 + $0x3d0] sm:$0xff] %v3833_v59  ;;  %v2413_v3 = vadd.f32 %v7117_v23, %v2412_v1 }
 0x1e0   : > { %4409 = vst [vmem:[%s6433_s4 + $0x9d0] sm:$0xff] %v4025_v60  ;;  %v3373_v4 = vadd.f32 %v7117_v23, %v3372_v2  ;;  %v3836_v5 = vmax.f32 %v2418_v63, 0.0 }
 0x1e1   : > { %v4028_v6 = vmax.f32 %v3378_v0, 0.0  ;;  %v3835_v7 = vmax.f32 %v2413_v3, 0.0  ;;  %v5517_v9 = vpop.f32.mrb[126].mxu0 }
 0x1e2   : > { %v4027_v8 = vmax.f32 %v3373_v4, 0.0  ;;  %v5805_v10 = vpop.f32.mrb[126].mxu1  ;;  %4220 = vst [vmem:[%s6433_s4 + $0x3e8] sm:$0xff] %v3836_v5  ;;  %v2428_v11 = vadd.f32 %v7117_v23, %v5517_v9  ;;  %v2422_v13 = vpop.f32.mrb[127].mxu0 }
 0x1e3   : > { %4412 = vst [vmem:[%s6433_s4 + $0x9e8] sm:$0xff] %v4028_v6  ;;  %v3388_v12 = vadd.f32 %v7117_v23, %v5805_v10  ;;  %v3382_v14 = vpop.f32.mrb[127].mxu1  ;;  %4219 = vst [vmem:[%s6433_s4 + $0x3e0] sm:$0xff] %v3835_v7  ;;  %v2423_v15 = vadd.f32 %v7117_v23, %v2422_v13 }
 0x1e4   : > { %4411 = vst [vmem:[%s6433_s4 + $0x9e0] sm:$0xff] %v4027_v8  ;;  %v3383_v16 = vadd.f32 %v7117_v23, %v3382_v14  ;;  %v3838_v17 = vmax.f32 %v2428_v11, 0.0 }
 0x1e5   : > { %v4030_v18 = vmax.f32 %v3388_v12, 0.0  ;;  %v3837_v19 = vmax.f32 %v2423_v15, 0.0  ;;  %v5520_v21 = vpop.f32.mrb[128].mxu0 }
 0x1e6   : > { %v4029_v20 = vmax.f32 %v3383_v16, 0.0  ;;  %v5808_v22 = vpop.f32.mrb[128].mxu1  ;;  %4222 = vst [vmem:[%s6433_s4 + $0x3f8] sm:$0xff] %v3838_v17  ;;  %v2438_v24 = vadd.f32 %v7117_v23, %v5520_v21  ;;  %v2432_v28 = vpop.f32.mrb[129].mxu0 }
 0x1e7   : > { %4414 = vst [vmem:[%s6433_s4 + $0x9f8] sm:$0xff] %v4030_v18  ;;  %v3398_v25 = vadd.f32 %v7117_v23, %v5808_v22  ;;  %v3392_v26 = vpop.f32.mrb[129].mxu1  ;;  %4221 = vst [vmem:[%s6433_s4 + $0x3f0] sm:$0xff] %v3837_v19  ;;  %v2433_v27 = vadd.f32 %v7117_v23, %v2432_v28 }
 0x1e8   : > { %4413 = vst [vmem:[%s6433_s4 + $0x9f0] sm:$0xff] %v4029_v20  ;;  %v3393_v29 = vadd.f32 %v7117_v23, %v3392_v26  ;;  %v3840_v30 = vmax.f32 %v2438_v24, 0.0 }
 0x1e9   : > { %v4032_v31 = vmax.f32 %v3398_v25, 0.0  ;;  %v3839_v32 = vmax.f32 %v2433_v27, 0.0  ;;  %v5523_v34 = vpop.f32.mrb[130].mxu0 }
 0x1ea   : > { %v4031_v33 = vmax.f32 %v3393_v29, 0.0  ;;  %v5811_v35 = vpop.f32.mrb[130].mxu1  ;;  %4224 = vst [vmem:[%s6433_s4 + $0x408] sm:$0xff] %v3840_v30  ;;  %v2448_v36 = vadd.f32 %v7117_v23, %v5523_v34  ;;  %v2442_v38 = vpop.f32.mrb[131].mxu0 }
 0x1eb   : > { %4416 = vst [vmem:[%s6433_s4 + $0xa08] sm:$0xff] %v4032_v31  ;;  %v3408_v37 = vadd.f32 %v7117_v23, %v5811_v35  ;;  %v3402_v39 = vpop.f32.mrb[131].mxu1  ;;  %4223 = vst [vmem:[%s6433_s4 + $0x400] sm:$0xff] %v3839_v32  ;;  %v2443_v40 = vadd.f32 %v7117_v23, %v2442_v38 }
 0x1ec   : > { %4415 = vst [vmem:[%s6433_s4 + $0xa00] sm:$0xff] %v4031_v33  ;;  %v3403_v41 = vadd.f32 %v7117_v23, %v3402_v39  ;;  %v3842_v42 = vmax.f32 %v2448_v36, 0.0 }
 0x1ed   : > { %v4034_v43 = vmax.f32 %v3408_v37, 0.0  ;;  %v3841_v44 = vmax.f32 %v2443_v40, 0.0  ;;  %v5526_v46 = vpop.f32.mrb[132].mxu0 }
 0x1ee   : > { %v4033_v45 = vmax.f32 %v3403_v41, 0.0  ;;  %v5814_v47 = vpop.f32.mrb[132].mxu1  ;;  %4226 = vst [vmem:[%s6433_s4 + $0x418] sm:$0xff] %v3842_v42  ;;  %v2458_v48 = vadd.f32 %v7117_v23, %v5526_v46  ;;  %v2452_v50 = vpop.f32.mrb[133].mxu0 }
 0x1ef   : > { %4418 = vst [vmem:[%s6433_s4 + $0xa18] sm:$0xff] %v4034_v43  ;;  %v3418_v49 = vadd.f32 %v7117_v23, %v5814_v47  ;;  %v3412_v51 = vpop.f32.mrb[133].mxu1  ;;  %4225 = vst [vmem:[%s6433_s4 + $0x410] sm:$0xff] %v3841_v44  ;;  %v2453_v52 = vadd.f32 %v7117_v23, %v2452_v50 }
 0x1f0   : > { %4417 = vst [vmem:[%s6433_s4 + $0xa10] sm:$0xff] %v4033_v45  ;;  %v3413_v53 = vadd.f32 %v7117_v23, %v3412_v51  ;;  %v3844_v54 = vmax.f32 %v2458_v48, 0.0 }
 0x1f1   : > { %v4036_v55 = vmax.f32 %v3418_v49, 0.0  ;;  %v3843_v56 = vmax.f32 %v2453_v52, 0.0  ;;  %v5529_v58 = vpop.f32.mrb[134].mxu0 }
 0x1f2   : > { %v4035_v57 = vmax.f32 %v3413_v53, 0.0  ;;  %v5817_v59 = vpop.f32.mrb[134].mxu1  ;;  %4228 = vst [vmem:[%s6433_s4 + $0x428] sm:$0xff] %v3844_v54  ;;  %v2468_v60 = vadd.f32 %v7117_v23, %v5529_v58  ;;  %v2462_v62 = vpop.f32.mrb[135].mxu0 }
 0x1f3   : > { %4420 = vst [vmem:[%s6433_s4 + $0xa28] sm:$0xff] %v4036_v55  ;;  %v3428_v61 = vadd.f32 %v7117_v23, %v5817_v59  ;;  %v3422_v63 = vpop.f32.mrb[135].mxu1  ;;  %4227 = vst [vmem:[%s6433_s4 + $0x420] sm:$0xff] %v3843_v56  ;;  %v2463_v0 = vadd.f32 %v7117_v23, %v2462_v62 }
 0x1f4   : > { %4419 = vst [vmem:[%s6433_s4 + $0xa20] sm:$0xff] %v4035_v57  ;;  %v3423_v1 = vadd.f32 %v7117_v23, %v3422_v63  ;;  %v3846_v2 = vmax.f32 %v2468_v60, 0.0 }
 0x1f5   : > { %v4038_v3 = vmax.f32 %v3428_v61, 0.0  ;;  %v3845_v4 = vmax.f32 %v2463_v0, 0.0  ;;  %v5532_v6 = vpop.f32.mrb[136].mxu0 }
 0x1f6   : > { %v4037_v5 = vmax.f32 %v3423_v1, 0.0  ;;  %v5820_v7 = vpop.f32.mrb[136].mxu1  ;;  %4230 = vst [vmem:[%s6433_s4 + $0x438] sm:$0xff] %v3846_v2  ;;  %v2478_v8 = vadd.f32 %v7117_v23, %v5532_v6  ;;  %v2472_v10 = vpop.f32.mrb[137].mxu0 }
 0x1f7   : > { %4422 = vst [vmem:[%s6433_s4 + $0xa38] sm:$0xff] %v4038_v3  ;;  %v3438_v9 = vadd.f32 %v7117_v23, %v5820_v7  ;;  %v3432_v11 = vpop.f32.mrb[137].mxu1  ;;  %4229 = vst [vmem:[%s6433_s4 + $0x430] sm:$0xff] %v3845_v4  ;;  %v2473_v12 = vadd.f32 %v7117_v23, %v2472_v10 }
 0x1f8   : > { %4421 = vst [vmem:[%s6433_s4 + $0xa30] sm:$0xff] %v4037_v5  ;;  %v3433_v13 = vadd.f32 %v7117_v23, %v3432_v11  ;;  %v3848_v14 = vmax.f32 %v2478_v8, 0.0 }
 0x1f9   : > { %v4040_v15 = vmax.f32 %v3438_v9, 0.0  ;;  %v3847_v16 = vmax.f32 %v2473_v12, 0.0  ;;  %v5535_v18 = vpop.f32.mrb[138].mxu0 }
 0x1fa   : > { %v4039_v17 = vmax.f32 %v3433_v13, 0.0  ;;  %v5823_v19 = vpop.f32.mrb[138].mxu1  ;;  %4232 = vst [vmem:[%s6433_s4 + $0x448] sm:$0xff] %v3848_v14  ;;  %v2488_v20 = vadd.f32 %v7117_v23, %v5535_v18  ;;  %v2482_v22 = vpop.f32.mrb[139].mxu0 }
 0x1fb   : > { %4424 = vst [vmem:[%s6433_s4 + $0xa48] sm:$0xff] %v4040_v15  ;;  %v3448_v21 = vadd.f32 %v7117_v23, %v5823_v19  ;;  %v3442_v24 = vpop.f32.mrb[139].mxu1  ;;  %4231 = vst [vmem:[%s6433_s4 + $0x440] sm:$0xff] %v3847_v16  ;;  %v2483_v25 = vadd.f32 %v7117_v23, %v2482_v22 }
 0x1fc   : > { %4423 = vst [vmem:[%s6433_s4 + $0xa40] sm:$0xff] %v4039_v17  ;;  %v3443_v28 = vadd.f32 %v7117_v23, %v3442_v24  ;;  %v3850_v26 = vmax.f32 %v2488_v20, 0.0 }
 0x1fd   : > { %v4042_v27 = vmax.f32 %v3448_v21, 0.0  ;;  %v3849_v29 = vmax.f32 %v2483_v25, 0.0  ;;  %v5538_v31 = vpop.f32.mrb[140].mxu0 }
 0x1fe   : > { %v4041_v30 = vmax.f32 %v3443_v28, 0.0  ;;  %v5826_v32 = vpop.f32.mrb[140].mxu1  ;;  %4234 = vst [vmem:[%s6433_s4 + $0x458] sm:$0xff] %v3850_v26  ;;  %v2498_v33 = vadd.f32 %v7117_v23, %v5538_v31  ;;  %v2492_v35 = vpop.f32.mrb[141].mxu0 }
 0x1ff   : > { %4426 = vst [vmem:[%s6433_s4 + $0xa58] sm:$0xff] %v4042_v27  ;;  %v3458_v34 = vadd.f32 %v7117_v23, %v5826_v32  ;;  %v3452_v36 = vpop.f32.mrb[141].mxu1  ;;  %4233 = vst [vmem:[%s6433_s4 + $0x450] sm:$0xff] %v3849_v29  ;;  %v2493_v37 = vadd.f32 %v7117_v23, %v2492_v35 }
 0x200   : > { %4425 = vst [vmem:[%s6433_s4 + $0xa50] sm:$0xff] %v4041_v30  ;;  %v3453_v38 = vadd.f32 %v7117_v23, %v3452_v36  ;;  %v3852_v39 = vmax.f32 %v2498_v33, 0.0  ;;  %v7378_v30 = vld [vmem:[%s7555_s2] ss:$0 sm:$0xff] }
 0x201   : > { %v4044_v40 = vmax.f32 %v3458_v34, 0.0  ;;  %v3851_v41 = vmax.f32 %v2493_v37, 0.0  ;;  %v5541_v43 = vpop.f32.mrb[142].mxu0 }
 0x202   : > { %v4043_v42 = vmax.f32 %v3453_v38, 0.0  ;;  %v5829_v44 = vpop.f32.mrb[142].mxu1  ;;  %4236 = vst [vmem:[%s6433_s4 + $0x468] sm:$0xff] %v3852_v39  ;;  %v2508_v45 = vadd.f32 %v7117_v23, %v5541_v43  ;;  %v2502_v47 = vpop.f32.mrb[143].mxu0 }
 0x203   : > { %4428 = vst [vmem:[%s6433_s4 + $0xa68] sm:$0xff] %v4044_v40  ;;  %v3468_v46 = vadd.f32 %v7117_v23, %v5829_v44  ;;  %v3462_v48 = vpop.f32.mrb[143].mxu1  ;;  %4235 = vst [vmem:[%s6433_s4 + $0x460] sm:$0xff] %v3851_v41  ;;  %v2503_v49 = vadd.f32 %v7117_v23, %v2502_v47 }
 0x204   : > { %4427 = vst [vmem:[%s6433_s4 + $0xa60] sm:$0xff] %v4043_v42  ;;  %v3463_v50 = vadd.f32 %v7117_v23, %v3462_v48  ;;  %v3854_v51 = vmax.f32 %v2508_v45, 0.0 }
 0x205   : > { %v4046_v52 = vmax.f32 %v3468_v46, 0.0  ;;  %v3853_v53 = vmax.f32 %v2503_v49, 0.0  ;;  %v5544_v55 = vpop.f32.mrb[144].mxu0 }
 0x206   : > { %v4045_v54 = vmax.f32 %v3463_v50, 0.0  ;;  %v5832_v56 = vpop.f32.mrb[144].mxu1  ;;  %4238 = vst [vmem:[%s6433_s4 + $0x478] sm:$0xff] %v3854_v51  ;;  %v2518_v57 = vadd.f32 %v7117_v23, %v5544_v55  ;;  %v2512_v59 = vpop.f32.mrb[145].mxu0 }
 0x207   : > { %4430 = vst [vmem:[%s6433_s4 + $0xa78] sm:$0xff] %v4046_v52  ;;  %v3478_v58 = vadd.f32 %v7117_v23, %v5832_v56  ;;  %v3472_v60 = vpop.f32.mrb[145].mxu1  ;;  %4237 = vst [vmem:[%s6433_s4 + $0x470] sm:$0xff] %v3853_v53  ;;  %v2513_v61 = vadd.f32 %v7117_v23, %v2512_v59 }
 0x208   : > { %4429 = vst [vmem:[%s6433_s4 + $0xa70] sm:$0xff] %v4045_v54  ;;  %v3473_v62 = vadd.f32 %v7117_v23, %v3472_v60  ;;  %v3856_v63 = vmax.f32 %v2518_v57, 0.0 }
 0x209   : > { %v4048_v0 = vmax.f32 %v3478_v58, 0.0  ;;  %v3855_v1 = vmax.f32 %v2513_v61, 0.0  ;;  %v5547_v3 = vpop.f32.mrb[146].mxu0 }
 0x20a   : > { %v4047_v2 = vmax.f32 %v3473_v62, 0.0  ;;  %v5835_v4 = vpop.f32.mrb[146].mxu1  ;;  %4240 = vst [vmem:[%s6433_s4 + $0x488] sm:$0xff] %v3856_v63  ;;  %v2528_v5 = vadd.f32 %v7117_v23, %v5547_v3  ;;  %v2522_v7 = vpop.f32.mrb[147].mxu0 }
 0x20b   : > { %4432 = vst [vmem:[%s6433_s4 + $0xa88] sm:$0xff] %v4048_v0  ;;  %v3488_v6 = vadd.f32 %v7117_v23, %v5835_v4  ;;  %v3482_v8 = vpop.f32.mrb[147].mxu1  ;;  %4239 = vst [vmem:[%s6433_s4 + $0x480] sm:$0xff] %v3855_v1  ;;  %v2523_v9 = vadd.f32 %v7117_v23, %v2522_v7 }
 0x20c   : > { %4431 = vst [vmem:[%s6433_s4 + $0xa80] sm:$0xff] %v4047_v2  ;;  %v3483_v10 = vadd.f32 %v7117_v23, %v3482_v8  ;;  %v3858_v11 = vmax.f32 %v2528_v5, 0.0 }
 0x20d   : > { %v4050_v12 = vmax.f32 %v3488_v6, 0.0  ;;  %v3857_v13 = vmax.f32 %v2523_v9, 0.0  ;;  %v5550_v15 = vpop.f32.mrb[148].mxu0 }
 0x20e   : > { %v4049_v14 = vmax.f32 %v3483_v10, 0.0  ;;  %v5838_v16 = vpop.f32.mrb[148].mxu1  ;;  %4242 = vst [vmem:[%s6433_s4 + $0x498] sm:$0xff] %v3858_v11  ;;  %v2538_v17 = vadd.f32 %v7117_v23, %v5550_v15  ;;  %v2532_v19 = vpop.f32.mrb[149].mxu0 }
 0x20f   : > { %4434 = vst [vmem:[%s6433_s4 + $0xa98] sm:$0xff] %v4050_v12  ;;  %v3498_v18 = vadd.f32 %v7117_v23, %v5838_v16  ;;  %v3492_v20 = vpop.f32.mrb[149].mxu1  ;;  %4241 = vst [vmem:[%s6433_s4 + $0x490] sm:$0xff] %v3857_v13  ;;  %v2533_v21 = vadd.f32 %v7117_v23, %v2532_v19 }
 0x210   : > { %4433 = vst [vmem:[%s6433_s4 + $0xa90] sm:$0xff] %v4049_v14  ;;  %v3493_v22 = vadd.f32 %v7117_v23, %v3492_v20  ;;  %v3860_v24 = vmax.f32 %v2538_v17, 0.0 }
 0x211   : > { %v4052_v25 = vmax.f32 %v3498_v18, 0.0  ;;  %v3859_v28 = vmax.f32 %v2533_v21, 0.0  ;;  %v5553_v27 = vpop.f32.mrb[150].mxu0 }
 0x212   : > { %v4051_v26 = vmax.f32 %v3493_v22, 0.0  ;;  %v5841_v29 = vpop.f32.mrb[150].mxu1  ;;  %4244 = vst [vmem:[%s6433_s4 + $0x4a8] sm:$0xff] %v3860_v24  ;;  %v2548_v31 = vadd.f32 %v7378_v30, %v5553_v27  ;;  %v2542_v23 = vpop.f32.mrb[151].mxu0 }
 0x213   : > { %4436 = vst [vmem:[%s6433_s4 + $0xaa8] sm:$0xff] %v4052_v25  ;;  %v3508_v32 = vadd.f32 %v7378_v30, %v5841_v29  ;;  %v3502_v33 = vpop.f32.mrb[151].mxu1  ;;  %4243 = vst [vmem:[%s6433_s4 + $0x4a0] sm:$0xff] %v3859_v28  ;;  %v2543_v34 = vadd.f32 %v7378_v30, %v2542_v23 }
 0x214   : > { %4435 = vst [vmem:[%s6433_s4 + $0xaa0] sm:$0xff] %v4051_v26  ;;  %v3503_v35 = vadd.f32 %v7378_v30, %v3502_v33  ;;  %v3862_v36 = vmax.f32 %v2548_v31, 0.0 }
 0x215   : > { %v4054_v37 = vmax.f32 %v3508_v32, 0.0  ;;  %v3861_v38 = vmax.f32 %v2543_v34, 0.0  ;;  %v5556_v40 = vpop.f32.mrb[152].mxu0 }
 0x216   : > { %v4053_v39 = vmax.f32 %v3503_v35, 0.0  ;;  %v5844_v41 = vpop.f32.mrb[152].mxu1  ;;  %4246 = vst [vmem:[%s6433_s4 + $0x4b8] sm:$0xff] %v3862_v36  ;;  %v2558_v42 = vadd.f32 %v7378_v30, %v5556_v40  ;;  %v2552_v44 = vpop.f32.mrb[153].mxu0 }
 0x217   : > { %4438 = vst [vmem:[%s6433_s4 + $0xab8] sm:$0xff] %v4054_v37  ;;  %v3518_v43 = vadd.f32 %v7378_v30, %v5844_v41  ;;  %v3512_v45 = vpop.f32.mrb[153].mxu1  ;;  %4245 = vst [vmem:[%s6433_s4 + $0x4b0] sm:$0xff] %v3861_v38  ;;  %v2553_v46 = vadd.f32 %v7378_v30, %v2552_v44 }
 0x218   : > { %4437 = vst [vmem:[%s6433_s4 + $0xab0] sm:$0xff] %v4053_v39  ;;  %v3513_v47 = vadd.f32 %v7378_v30, %v3512_v45  ;;  %v3864_v48 = vmax.f32 %v2558_v42, 0.0 }
 0x219   : > { %v4056_v49 = vmax.f32 %v3518_v43, 0.0  ;;  %v3863_v50 = vmax.f32 %v2553_v46, 0.0  ;;  %v5559_v52 = vpop.f32.mrb[154].mxu0 }
 0x21a   : > { %v4055_v51 = vmax.f32 %v3513_v47, 0.0  ;;  %v5847_v53 = vpop.f32.mrb[154].mxu1  ;;  %4248 = vst [vmem:[%s6433_s4 + $0x4c8] sm:$0xff] %v3864_v48  ;;  %v2568_v54 = vadd.f32 %v7378_v30, %v5559_v52  ;;  %v2562_v56 = vpop.f32.mrb[155].mxu0 }
 0x21b   : > { %4440 = vst [vmem:[%s6433_s4 + $0xac8] sm:$0xff] %v4056_v49  ;;  %v3528_v55 = vadd.f32 %v7378_v30, %v5847_v53  ;;  %v3522_v57 = vpop.f32.mrb[155].mxu1  ;;  %4247 = vst [vmem:[%s6433_s4 + $0x4c0] sm:$0xff] %v3863_v50  ;;  %v2563_v58 = vadd.f32 %v7378_v30, %v2562_v56 }
 0x21c   : > { %4439 = vst [vmem:[%s6433_s4 + $0xac0] sm:$0xff] %v4055_v51  ;;  %v3523_v59 = vadd.f32 %v7378_v30, %v3522_v57  ;;  %v3866_v60 = vmax.f32 %v2568_v54, 0.0 }
 0x21d   : > { %v4058_v61 = vmax.f32 %v3528_v55, 0.0  ;;  %v3865_v62 = vmax.f32 %v2563_v58, 0.0  ;;  %v5562_v0 = vpop.f32.mrb[156].mxu0 }
 0x21e   : > { %v4057_v63 = vmax.f32 %v3523_v59, 0.0  ;;  %v5850_v1 = vpop.f32.mrb[156].mxu1  ;;  %4250 = vst [vmem:[%s6433_s4 + $0x4d8] sm:$0xff] %v3866_v60  ;;  %v2578_v2 = vadd.f32 %v7378_v30, %v5562_v0  ;;  %v2572_v4 = vpop.f32.mrb[157].mxu0 }
 0x21f   : > { %4442 = vst [vmem:[%s6433_s4 + $0xad8] sm:$0xff] %v4058_v61  ;;  %v3538_v3 = vadd.f32 %v7378_v30, %v5850_v1  ;;  %v3532_v5 = vpop.f32.mrb[157].mxu1  ;;  %4249 = vst [vmem:[%s6433_s4 + $0x4d0] sm:$0xff] %v3865_v62  ;;  %v2573_v6 = vadd.f32 %v7378_v30, %v2572_v4 }
 0x220   : > { %4441 = vst [vmem:[%s6433_s4 + $0xad0] sm:$0xff] %v4057_v63  ;;  %v3533_v7 = vadd.f32 %v7378_v30, %v3532_v5  ;;  %v3868_v8 = vmax.f32 %v2578_v2, 0.0 }
 0x221   : > { %v4060_v9 = vmax.f32 %v3538_v3, 0.0  ;;  %v3867_v10 = vmax.f32 %v2573_v6, 0.0  ;;  %v5565_v12 = vpop.f32.mrb[158].mxu0 }
 0x222   : > { %v4059_v11 = vmax.f32 %v3533_v7, 0.0  ;;  %v5853_v13 = vpop.f32.mrb[158].mxu1  ;;  %4252 = vst [vmem:[%s6433_s4 + $0x4e8] sm:$0xff] %v3868_v8  ;;  %v2588_v14 = vadd.f32 %v7378_v30, %v5565_v12  ;;  %v2582_v16 = vpop.f32.mrb[159].mxu0 }
 0x223   : > { %4444 = vst [vmem:[%s6433_s4 + $0xae8] sm:$0xff] %v4060_v9  ;;  %v3548_v15 = vadd.f32 %v7378_v30, %v5853_v13  ;;  %v3542_v17 = vpop.f32.mrb[159].mxu1  ;;  %4251 = vst [vmem:[%s6433_s4 + $0x4e0] sm:$0xff] %v3867_v10  ;;  %v2583_v18 = vadd.f32 %v7378_v30, %v2582_v16 }
 0x224   : > { %4443 = vst [vmem:[%s6433_s4 + $0xae0] sm:$0xff] %v4059_v11  ;;  %v3543_v19 = vadd.f32 %v7378_v30, %v3542_v17  ;;  %v3870_v20 = vmax.f32 %v2588_v14, 0.0 }
 0x225   : > { %v4062_v21 = vmax.f32 %v3548_v15, 0.0  ;;  %v3869_v22 = vmax.f32 %v2583_v18, 0.0  ;;  %v5568_v25 = vpop.f32.mrb[160].mxu0 }
 0x226   : > { %v4061_v24 = vmax.f32 %v3543_v19, 0.0  ;;  %v5856_v28 = vpop.f32.mrb[160].mxu1  ;;  %4254 = vst [vmem:[%s6433_s4 + $0x4f8] sm:$0xff] %v3870_v20  ;;  %v2598_v26 = vadd.f32 %v7378_v30, %v5568_v25  ;;  %v2592_v29 = vpop.f32.mrb[161].mxu0 }
 0x227   : > { %4446 = vst [vmem:[%s6433_s4 + $0xaf8] sm:$0xff] %v4062_v21  ;;  %v3558_v27 = vadd.f32 %v7378_v30, %v5856_v28  ;;  %v3552_v31 = vpop.f32.mrb[161].mxu1  ;;  %4253 = vst [vmem:[%s6433_s4 + $0x4f0] sm:$0xff] %v3869_v22  ;;  %v2593_v32 = vadd.f32 %v7378_v30, %v2592_v29 }
 0x228   : > { %4445 = vst [vmem:[%s6433_s4 + $0xaf0] sm:$0xff] %v4061_v24  ;;  %v3553_v23 = vadd.f32 %v7378_v30, %v3552_v31  ;;  %v3872_v33 = vmax.f32 %v2598_v26, 0.0 }
 0x229   : > { %v4064_v34 = vmax.f32 %v3558_v27, 0.0  ;;  %v3871_v35 = vmax.f32 %v2593_v32, 0.0  ;;  %v5571_v37 = vpop.f32.mrb[162].mxu0 }
 0x22a   : > { %v4063_v36 = vmax.f32 %v3553_v23, 0.0  ;;  %v5859_v38 = vpop.f32.mrb[162].mxu1  ;;  %4256 = vst [vmem:[%s6433_s4 + $0x508] sm:$0xff] %v3872_v33  ;;  %v2608_v39 = vadd.f32 %v7378_v30, %v5571_v37  ;;  %v2602_v41 = vpop.f32.mrb[163].mxu0 }
 0x22b   : > { %4448 = vst [vmem:[%s6433_s4 + $0xb08] sm:$0xff] %v4064_v34  ;;  %v3568_v40 = vadd.f32 %v7378_v30, %v5859_v38  ;;  %v3562_v42 = vpop.f32.mrb[163].mxu1  ;;  %4255 = vst [vmem:[%s6433_s4 + $0x500] sm:$0xff] %v3871_v35  ;;  %v2603_v43 = vadd.f32 %v7378_v30, %v2602_v41 }
 0x22c   : > { %4447 = vst [vmem:[%s6433_s4 + $0xb00] sm:$0xff] %v4063_v36  ;;  %v3563_v44 = vadd.f32 %v7378_v30, %v3562_v42  ;;  %v3874_v45 = vmax.f32 %v2608_v39, 0.0 }
 0x22d   : > { %v4066_v46 = vmax.f32 %v3568_v40, 0.0  ;;  %v3873_v47 = vmax.f32 %v2603_v43, 0.0  ;;  %v5574_v49 = vpop.f32.mrb[164].mxu0 }
 0x22e   : > { %v4065_v48 = vmax.f32 %v3563_v44, 0.0  ;;  %v5862_v50 = vpop.f32.mrb[164].mxu1  ;;  %4258 = vst [vmem:[%s6433_s4 + $0x518] sm:$0xff] %v3874_v45  ;;  %v2618_v51 = vadd.f32 %v7378_v30, %v5574_v49  ;;  %v2612_v53 = vpop.f32.mrb[165].mxu0 }
 0x22f   : > { %4450 = vst [vmem:[%s6433_s4 + $0xb18] sm:$0xff] %v4066_v46  ;;  %v3578_v52 = vadd.f32 %v7378_v30, %v5862_v50  ;;  %v3572_v54 = vpop.f32.mrb[165].mxu1  ;;  %4257 = vst [vmem:[%s6433_s4 + $0x510] sm:$0xff] %v3873_v47  ;;  %v2613_v55 = vadd.f32 %v7378_v30, %v2612_v53 }
 0x230   : > { %4449 = vst [vmem:[%s6433_s4 + $0xb10] sm:$0xff] %v4065_v48  ;;  %v3573_v56 = vadd.f32 %v7378_v30, %v3572_v54  ;;  %v3876_v57 = vmax.f32 %v2618_v51, 0.0 }
 0x231   : > { %v4068_v58 = vmax.f32 %v3578_v52, 0.0  ;;  %v3875_v59 = vmax.f32 %v2613_v55, 0.0  ;;  %v5577_v61 = vpop.f32.mrb[166].mxu0 }
 0x232   : > { %v4067_v60 = vmax.f32 %v3573_v56, 0.0  ;;  %v5865_v62 = vpop.f32.mrb[166].mxu1  ;;  %4260 = vst [vmem:[%s6433_s4 + $0x528] sm:$0xff] %v3876_v57  ;;  %v2628_v63 = vadd.f32 %v7378_v30, %v5577_v61  ;;  %v2622_v1 = vpop.f32.mrb[167].mxu0 }
 0x233   : > { %4452 = vst [vmem:[%s6433_s4 + $0xb28] sm:$0xff] %v4068_v58  ;;  %v3588_v0 = vadd.f32 %v7378_v30, %v5865_v62  ;;  %v3582_v2 = vpop.f32.mrb[167].mxu1  ;;  %4259 = vst [vmem:[%s6433_s4 + $0x520] sm:$0xff] %v3875_v59  ;;  %v2623_v3 = vadd.f32 %v7378_v30, %v2622_v1 }
 0x234   : > { %4451 = vst [vmem:[%s6433_s4 + $0xb20] sm:$0xff] %v4067_v60  ;;  %v3583_v4 = vadd.f32 %v7378_v30, %v3582_v2  ;;  %v3878_v5 = vmax.f32 %v2628_v63, 0.0 }
 0x235   : > { %v4070_v6 = vmax.f32 %v3588_v0, 0.0  ;;  %v3877_v7 = vmax.f32 %v2623_v3, 0.0  ;;  %v5580_v9 = vpop.f32.mrb[168].mxu0 }
 0x236   : > { %v4069_v8 = vmax.f32 %v3583_v4, 0.0  ;;  %v5868_v10 = vpop.f32.mrb[168].mxu1  ;;  %4262 = vst [vmem:[%s6433_s4 + $0x538] sm:$0xff] %v3878_v5  ;;  %v2638_v11 = vadd.f32 %v7378_v30, %v5580_v9  ;;  %v2632_v13 = vpop.f32.mrb[169].mxu0 }
 0x237   : > { %4454 = vst [vmem:[%s6433_s4 + $0xb38] sm:$0xff] %v4070_v6  ;;  %v3598_v12 = vadd.f32 %v7378_v30, %v5868_v10  ;;  %v3592_v14 = vpop.f32.mrb[169].mxu1  ;;  %4261 = vst [vmem:[%s6433_s4 + $0x530] sm:$0xff] %v3877_v7  ;;  %v2633_v15 = vadd.f32 %v7378_v30, %v2632_v13 }
 0x238   : > { %4453 = vst [vmem:[%s6433_s4 + $0xb30] sm:$0xff] %v4069_v8  ;;  %v3593_v16 = vadd.f32 %v7378_v30, %v3592_v14  ;;  %v3880_v17 = vmax.f32 %v2638_v11, 0.0 }
 0x239   : > { %v4072_v18 = vmax.f32 %v3598_v12, 0.0  ;;  %v3879_v19 = vmax.f32 %v2633_v15, 0.0  ;;  %v5583_v21 = vpop.f32.mrb[170].mxu0 }
 0x23a   : > { %v4071_v20 = vmax.f32 %v3593_v16, 0.0  ;;  %v5871_v22 = vpop.f32.mrb[170].mxu1  ;;  %4264 = vst [vmem:[%s6433_s4 + $0x548] sm:$0xff] %v3880_v17  ;;  %v2648_v24 = vadd.f32 %v7378_v30, %v5583_v21  ;;  %v2642_v28 = vpop.f32.mrb[171].mxu0 }
 0x23b   : > { %4456 = vst [vmem:[%s6433_s4 + $0xb48] sm:$0xff] %v4072_v18  ;;  %v3608_v25 = vadd.f32 %v7378_v30, %v5871_v22  ;;  %v3602_v26 = vpop.f32.mrb[171].mxu1  ;;  %4263 = vst [vmem:[%s6433_s4 + $0x540] sm:$0xff] %v3879_v19  ;;  %v2643_v27 = vadd.f32 %v7378_v30, %v2642_v28 }
 0x23c   : > { %4455 = vst [vmem:[%s6433_s4 + $0xb40] sm:$0xff] %v4071_v20  ;;  %v3603_v29 = vadd.f32 %v7378_v30, %v3602_v26  ;;  %v3882_v31 = vmax.f32 %v2648_v24, 0.0 }
 0x23d   : > { %v4074_v32 = vmax.f32 %v3608_v25, 0.0  ;;  %v3881_v23 = vmax.f32 %v2643_v27, 0.0  ;;  %v5586_v34 = vpop.f32.mrb[172].mxu0 }
 0x23e   : > { %v4073_v33 = vmax.f32 %v3603_v29, 0.0  ;;  %v5874_v35 = vpop.f32.mrb[172].mxu1  ;;  %4266 = vst [vmem:[%s6433_s4 + $0x558] sm:$0xff] %v3882_v31  ;;  %v2658_v36 = vadd.f32 %v7378_v30, %v5586_v34  ;;  %v2652_v38 = vpop.f32.mrb[173].mxu0 }
 0x23f   : > { %4458 = vst [vmem:[%s6433_s4 + $0xb58] sm:$0xff] %v4074_v32  ;;  %v3618_v37 = vadd.f32 %v7378_v30, %v5874_v35  ;;  %v3612_v39 = vpop.f32.mrb[173].mxu1  ;;  %4265 = vst [vmem:[%s6433_s4 + $0x550] sm:$0xff] %v3881_v23  ;;  %v2653_v40 = vadd.f32 %v7378_v30, %v2652_v38 }
 0x240   : > { %4457 = vst [vmem:[%s6433_s4 + $0xb50] sm:$0xff] %v4073_v33  ;;  %v3613_v41 = vadd.f32 %v7378_v30, %v3612_v39  ;;  %v3884_v42 = vmax.f32 %v2658_v36, 0.0 }
 0x241   : > { %v4076_v43 = vmax.f32 %v3618_v37, 0.0  ;;  %v3883_v44 = vmax.f32 %v2653_v40, 0.0  ;;  %v5589_v46 = vpop.f32.mrb[174].mxu0 }
 0x242   : > { %v4075_v45 = vmax.f32 %v3613_v41, 0.0  ;;  %v5877_v47 = vpop.f32.mrb[174].mxu1  ;;  %4268 = vst [vmem:[%s6433_s4 + $0x568] sm:$0xff] %v3884_v42  ;;  %v2668_v48 = vadd.f32 %v7378_v30, %v5589_v46  ;;  %v2662_v50 = vpop.f32.mrb[175].mxu0 }
 0x243   : > { %4460 = vst [vmem:[%s6433_s4 + $0xb68] sm:$0xff] %v4076_v43  ;;  %v3628_v49 = vadd.f32 %v7378_v30, %v5877_v47  ;;  %v3622_v51 = vpop.f32.mrb[175].mxu1  ;;  %4267 = vst [vmem:[%s6433_s4 + $0x560] sm:$0xff] %v3883_v44  ;;  %v2663_v52 = vadd.f32 %v7378_v30, %v2662_v50 }
 0x244   : > { %4459 = vst [vmem:[%s6433_s4 + $0xb60] sm:$0xff] %v4075_v45  ;;  %v3623_v53 = vadd.f32 %v7378_v30, %v3622_v51  ;;  %v3886_v54 = vmax.f32 %v2668_v48, 0.0 }
 0x245   : > { %v4078_v55 = vmax.f32 %v3628_v49, 0.0  ;;  %v3885_v56 = vmax.f32 %v2663_v52, 0.0  ;;  %v5592_v58 = vpop.f32.mrb[176].mxu0 }
 0x246   : > { %v4077_v57 = vmax.f32 %v3623_v53, 0.0  ;;  %v5880_v59 = vpop.f32.mrb[176].mxu1  ;;  %4270 = vst [vmem:[%s6433_s4 + $0x578] sm:$0xff] %v3886_v54  ;;  %v2678_v60 = vadd.f32 %v7378_v30, %v5592_v58  ;;  %v2672_v62 = vpop.f32.mrb[177].mxu0 }
 0x247   : > { %4462 = vst [vmem:[%s6433_s4 + $0xb78] sm:$0xff] %v4078_v55  ;;  %v3638_v61 = vadd.f32 %v7378_v30, %v5880_v59  ;;  %v3632_v63 = vpop.f32.mrb[177].mxu1  ;;  %4269 = vst [vmem:[%s6433_s4 + $0x570] sm:$0xff] %v3885_v56  ;;  %v2673_v0 = vadd.f32 %v7378_v30, %v2672_v62 }
 0x248   : > { %4461 = vst [vmem:[%s6433_s4 + $0xb70] sm:$0xff] %v4077_v57  ;;  %v3633_v1 = vadd.f32 %v7378_v30, %v3632_v63  ;;  %v3888_v2 = vmax.f32 %v2678_v60, 0.0 }
 0x249   : > { %v4080_v3 = vmax.f32 %v3638_v61, 0.0  ;;  %v3887_v4 = vmax.f32 %v2673_v0, 0.0  ;;  %v5595_v6 = vpop.f32.mrb[178].mxu0 }
 0x24a   : > { %v4079_v5 = vmax.f32 %v3633_v1, 0.0  ;;  %v5883_v7 = vpop.f32.mrb[178].mxu1  ;;  %4272 = vst [vmem:[%s6433_s4 + $0x588] sm:$0xff] %v3888_v2  ;;  %v2688_v8 = vadd.f32 %v7378_v30, %v5595_v6  ;;  %v2682_v10 = vpop.f32.mrb[179].mxu0 }
 0x24b   : > { %4464 = vst [vmem:[%s6433_s4 + $0xb88] sm:$0xff] %v4080_v3  ;;  %v3648_v9 = vadd.f32 %v7378_v30, %v5883_v7  ;;  %v3642_v11 = vpop.f32.mrb[179].mxu1  ;;  %4271 = vst [vmem:[%s6433_s4 + $0x580] sm:$0xff] %v3887_v4  ;;  %v2683_v12 = vadd.f32 %v7378_v30, %v2682_v10 }
 0x24c   : > { %4463 = vst [vmem:[%s6433_s4 + $0xb80] sm:$0xff] %v4079_v5  ;;  %v3643_v13 = vadd.f32 %v7378_v30, %v3642_v11  ;;  %v3890_v14 = vmax.f32 %v2688_v8, 0.0 }
 0x24d   : > { %v4082_v15 = vmax.f32 %v3648_v9, 0.0  ;;  %v3889_v16 = vmax.f32 %v2683_v12, 0.0  ;;  %v5598_v18 = vpop.f32.mrb[180].mxu0 }
 0x24e   : > { %v4081_v17 = vmax.f32 %v3643_v13, 0.0  ;;  %v5886_v19 = vpop.f32.mrb[180].mxu1  ;;  %4274 = vst [vmem:[%s6433_s4 + $0x598] sm:$0xff] %v3890_v14  ;;  %v2698_v20 = vadd.f32 %v7378_v30, %v5598_v18  ;;  %v2692_v22 = vpop.f32.mrb[181].mxu0 }
 0x24f   : > { %4466 = vst [vmem:[%s6433_s4 + $0xb98] sm:$0xff] %v4082_v15  ;;  %v3658_v21 = vadd.f32 %v7378_v30, %v5886_v19  ;;  %v3652_v24 = vpop.f32.mrb[181].mxu1  ;;  %4273 = vst [vmem:[%s6433_s4 + $0x590] sm:$0xff] %v3889_v16  ;;  %v2693_v25 = vadd.f32 %v7378_v30, %v2692_v22 }
 0x250   : > { %4465 = vst [vmem:[%s6433_s4 + $0xb90] sm:$0xff] %v4081_v17  ;;  %v3653_v28 = vadd.f32 %v7378_v30, %v3652_v24  ;;  %v3892_v26 = vmax.f32 %v2698_v20, 0.0 }
 0x251   : > { %v4084_v27 = vmax.f32 %v3658_v21, 0.0  ;;  %v3891_v29 = vmax.f32 %v2693_v25, 0.0  ;;  %v5601_v32 = vpop.f32.mrb[182].mxu0 }
 0x252   : > { %v4083_v31 = vmax.f32 %v3653_v28, 0.0  ;;  %v5889_v23 = vpop.f32.mrb[182].mxu1  ;;  %4276 = vst [vmem:[%s6433_s4 + $0x5a8] sm:$0xff] %v3892_v26  ;;  %v2708_v33 = vadd.f32 %v7378_v30, %v5601_v32  ;;  %v2702_v35 = vpop.f32.mrb[183].mxu0 }
 0x253   : > { %4468 = vst [vmem:[%s6433_s4 + $0xba8] sm:$0xff] %v4084_v27  ;;  %v3668_v34 = vadd.f32 %v7378_v30, %v5889_v23  ;;  %v3662_v36 = vpop.f32.mrb[183].mxu1  ;;  %4275 = vst [vmem:[%s6433_s4 + $0x5a0] sm:$0xff] %v3891_v29  ;;  %v2703_v37 = vadd.f32 %v7378_v30, %v2702_v35 }
 0x254   : > { %4467 = vst [vmem:[%s6433_s4 + $0xba0] sm:$0xff] %v4083_v31  ;;  %v3663_v38 = vadd.f32 %v7378_v30, %v3662_v36  ;;  %v3894_v39 = vmax.f32 %v2708_v33, 0.0 }
 0x255   : > { %v4086_v40 = vmax.f32 %v3668_v34, 0.0  ;;  %v3893_v41 = vmax.f32 %v2703_v37, 0.0  ;;  %v5604_v43 = vpop.f32.mrb[184].mxu0 }
 0x256   : > { %v4085_v42 = vmax.f32 %v3663_v38, 0.0  ;;  %v5892_v44 = vpop.f32.mrb[184].mxu1  ;;  %4278 = vst [vmem:[%s6433_s4 + $0x5b8] sm:$0xff] %v3894_v39  ;;  %v2718_v45 = vadd.f32 %v7378_v30, %v5604_v43  ;;  %v2712_v47 = vpop.f32.mrb[185].mxu0 }
 0x257   : > { %4470 = vst [vmem:[%s6433_s4 + $0xbb8] sm:$0xff] %v4086_v40  ;;  %v3678_v46 = vadd.f32 %v7378_v30, %v5892_v44  ;;  %v3672_v48 = vpop.f32.mrb[185].mxu1  ;;  %4277 = vst [vmem:[%s6433_s4 + $0x5b0] sm:$0xff] %v3893_v41  ;;  %v2713_v49 = vadd.f32 %v7378_v30, %v2712_v47 }
 0x258   : > { %4469 = vst [vmem:[%s6433_s4 + $0xbb0] sm:$0xff] %v4085_v42  ;;  %v3673_v50 = vadd.f32 %v7378_v30, %v3672_v48  ;;  %v3896_v51 = vmax.f32 %v2718_v45, 0.0 }
 0x259   : > { %v4088_v52 = vmax.f32 %v3678_v46, 0.0  ;;  %v3895_v53 = vmax.f32 %v2713_v49, 0.0  ;;  %v5607_v55 = vpop.f32.mrb[186].mxu0 }
 0x25a   : > { %v4087_v54 = vmax.f32 %v3673_v50, 0.0  ;;  %v5895_v56 = vpop.f32.mrb[186].mxu1  ;;  %4280 = vst [vmem:[%s6433_s4 + $0x5c8] sm:$0xff] %v3896_v51  ;;  %v2728_v57 = vadd.f32 %v7378_v30, %v5607_v55  ;;  %v2722_v59 = vpop.f32.mrb[187].mxu0 }
 0x25b   : > { %4472 = vst [vmem:[%s6433_s4 + $0xbc8] sm:$0xff] %v4088_v52  ;;  %v3688_v58 = vadd.f32 %v7378_v30, %v5895_v56  ;;  %v3682_v60 = vpop.f32.mrb[187].mxu1  ;;  %4279 = vst [vmem:[%s6433_s4 + $0x5c0] sm:$0xff] %v3895_v53  ;;  %v2723_v61 = vadd.f32 %v7378_v30, %v2722_v59 }
 0x25c   : > { %4471 = vst [vmem:[%s6433_s4 + $0xbc0] sm:$0xff] %v4087_v54  ;;  %v3683_v62 = vadd.f32 %v7378_v30, %v3682_v60  ;;  %v3898_v63 = vmax.f32 %v2728_v57, 0.0 }
 0x25d   : > { %v4090_v0 = vmax.f32 %v3688_v58, 0.0  ;;  %v3897_v1 = vmax.f32 %v2723_v61, 0.0  ;;  %v5610_v3 = vpop.f32.mrb[188].mxu0 }
 0x25e   : > { %v4089_v2 = vmax.f32 %v3683_v62, 0.0  ;;  %v5898_v4 = vpop.f32.mrb[188].mxu1  ;;  %4282 = vst [vmem:[%s6433_s4 + $0x5d8] sm:$0xff] %v3898_v63  ;;  %v2738_v5 = vadd.f32 %v7378_v30, %v5610_v3  ;;  %v2732_v7 = vpop.f32.mrb[189].mxu0 }
 0x25f   : > { %4474 = vst [vmem:[%s6433_s4 + $0xbd8] sm:$0xff] %v4090_v0  ;;  %v3698_v6 = vadd.f32 %v7378_v30, %v5898_v4  ;;  %v3692_v8 = vpop.f32.mrb[189].mxu1  ;;  %4281 = vst [vmem:[%s6433_s4 + $0x5d0] sm:$0xff] %v3897_v1  ;;  %v2733_v9 = vadd.f32 %v7378_v30, %v2732_v7 }
 0x260   : > { %4473 = vst [vmem:[%s6433_s4 + $0xbd0] sm:$0xff] %v4089_v2  ;;  %v3693_v10 = vadd.f32 %v7378_v30, %v3692_v8  ;;  %v3900_v11 = vmax.f32 %v2738_v5, 0.0 }
 0x261   : > { %v4092_v12 = vmax.f32 %v3698_v6, 0.0  ;;  %v3899_v13 = vmax.f32 %v2733_v9, 0.0  ;;  %v5613_v15 = vpop.f32.mrb[190].mxu0 }
 0x262   : > { %v4091_v14 = vmax.f32 %v3693_v10, 0.0  ;;  %v5901_v16 = vpop.f32.mrb[190].mxu1  ;;  %4284 = vst [vmem:[%s6433_s4 + $0x5e8] sm:$0xff] %v3900_v11  ;;  %v2748_v17 = vadd.f32 %v7378_v30, %v5613_v15  ;;  %v2742_v19 = vpop.f32.mrb[191].mxu0 }
 0x263   : > { %4476 = vst [vmem:[%s6433_s4 + $0xbe8] sm:$0xff] %v4092_v12  ;;  %v3708_v18 = vadd.f32 %v7378_v30, %v5901_v16  ;;  %v3702_v20 = vpop.f32.mrb[191].mxu1  ;;  %4283 = vst [vmem:[%s6433_s4 + $0x5e0] sm:$0xff] %v3899_v13  ;;  %v2743_v21 = vadd.f32 %v7378_v30, %v2742_v19 }
 0x264   : > { %4475 = vst [vmem:[%s6433_s4 + $0xbe0] sm:$0xff] %v4091_v14  ;;  %v3703_v22 = vadd.f32 %v7378_v30, %v3702_v20  ;;  %v3902_v24 = vmax.f32 %v2748_v17, 0.0 }
 0x265   : > { %v4094_v25 = vmax.f32 %v3708_v18, 0.0  ;;  %v3901_v28 = vmax.f32 %v2743_v21, 0.0 }
 0x266   : > { %v4093_v26 = vmax.f32 %v3703_v22, 0.0  ;;  %4286 = vst [vmem:[%s6433_s4 + $0x5f8] sm:$0xff] %v3902_v24 }
 0x267   : > { %4478 = vst [vmem:[%s6433_s4 + $0xbf8] sm:$0xff] %v4094_v25  ;;  %4285 = vst [vmem:[%s6433_s4 + $0x5f0] sm:$0xff] %v3901_v28 }
 0x268   : > { %4477 = vst [vmem:[%s6433_s4 + $0xbf0] sm:$0xff] %v4093_v26 }
 0x269 PF: > { %s13_s12 = sadd.s32 1, %s5934_s12  }
 0x26a   : > { %p10_p4 = scmp.ge.s32.totalorder %s13_s12, 5  }
 0x26c   :  { %12 = sbr.rel (!%p10_p4) target bundleno = 1 (0x1), region = 62 }

// kernel: gpt_forward.4
= control target key start
LH: loop header
LB: loop body
LE: loop exit
PB: predicated region body
PF: predicated region fallthrough
CT: control target
= control target key end

     0   :  { %s1995_s12 = smov 0   ;;  %s2698_s0 = inlined_call_operand.vmem [shape: f32[1024,500], index: 0, kind: input, shape index: {}]   ;;  %s2699_s1 = inlined_call_operand.vmem [shape: f32[500,128], index: 1, kind: input, shape index: {}]   ;;  %s2700_s2 = inlined_call_operand.vmem [shape: f32[1,128], index: 2, kind: input, shape index: {}]   ;;  %s2701_s3 = inlined_call_operand.vmem [shape: f32[1024,128], index: 3, kind: output, shape index: {}]  }
   0x1 LB: > { %s1654_s13 = sadd.s32 4294967295, %s1971_s12   ;;  %p1658_p0 = scmp.ge.s32.totalorder %s1971_s12, 1  ;;  %s1971_s12 = sphi %s1995_s12, %s13_s12  }
   0x2   : > { %p139_p1 = scmp.lt.s32.totalorder %s1971_s12, 3 }
   0x4   : > { %p140_p2 = pnand %p1658_p0, %p139_p1 }
   0x5   : > { %v433_v0 = vld [vmem:[%s2699_s1] sm:$0xff] (!%p140_p2)  ;;  %v434_v1 = vld [vmem:[%s2699_s1 + $0x8] sm:$0xff] (!%p140_p2)  ;;  %v1973_v3 = vmov (!%p140_p2), 0.0|0.0   ;;  %v435_v6 = vld [vmem:[%s2699_s1 + $0x10] sm:$0xff] (!%p140_p2)  ;;  %s1659_s30 = sshll.u32 (!%p140_p2), %s1654_s13, 6  ;;  %vm503_vm0 = vcmask (!%p140_p2), 949248  }
   0x6   : > { %143 = sbr.rel (%p140_p2) target bundleno = 542 (0x21e), region = 32  ;;  %v465_v2 = vld [vmem:[%s2699_s1 + $0x100] sm:$0xff] (!%p140_p2)  ;;  %1733 = vmatprep.subr.bf16.mxu1 (!%p140_p2), %v1973_v3  ;;  %v1734_v4 = vpack.c.bf16 (!%p140_p2), %v434_v1, %v433_v0  ;;  %1781 = vmatprep.subr.bf16.mxu0 (!%p140_p2), %v1973_v3  ;;  %v466_v5 = vld [vmem:[%s2699_s1 + $0x108] sm:$0xff] (!%p140_p2)  ;;  %v436_v7 = vld [vmem:[%s2699_s1 + $0x18] sm:$0xff] (!%p140_p2)  ;;  %p165_p3 = scmp.lt.s32.totalorder (!%p140_p2), %s1659_s30, 127  ;;  %vm696_vm1 = vcmask (!%p140_p2), 1043456  }
   0x7   : > { %v1782_v8 = vpack.c.bf16 (!%p140_p2), %v466_v5, %v465_v2  ;;  %v467_v9 = vld [vmem:[%s2699_s1 + $0x110] sm:$0xff] (!%p140_p2)  ;;  %v468_v10 = vld [vmem:[%s2699_s1 + $0x118] sm:$0xff] (!%p140_p2)  ;;  %v1737_v11 = vpack.c.bf16 (!%p140_p2), %v436_v7, %v435_v6  ;;  %v437_v13 = vld [vmem:[%s2699_s1 + $0x20] sm:$0xff] (!%p140_p2) }
   0x8   : > { %1735 = vmatpush1.bf16.msra.mxu1 (!%p140_p2), %v1734_v4  ;;  %v1785_v12 = vpack.c.bf16 (!%p140_p2), %v468_v10, %v467_v9  ;;  %v438_v14 = vld [vmem:[%s2699_s1 + $0x28] sm:$0xff] (!%p140_p2)  ;;  %v469_v15 = vld [vmem:[%s2699_s1 + $0x120] sm:$0xff] (!%p140_p2)  ;;  %v439_v19 = vld [vmem:[%s2699_s1 + $0x30] sm:$0xff] (!%p140_p2) }
   0x9   : > { %1736 = vmatprep.subr.bf16.mxu1 (!%p140_p2), %v1973_v3  ;;  %1783 = vmatpush1.bf16.msra.mxu0 (!%p140_p2), %v1782_v8  ;;  %v470_v16 = vld [vmem:[%s2699_s1 + $0x128] sm:$0xff] (!%p140_p2)  ;;  %v1740_v17 = vpack.c.bf16 (!%p140_p2), %v438_v14, %v437_v13  ;;  %v440_v20 = vld [vmem:[%s2699_s1 + $0x38] sm:$0xff] (!%p140_p2)  ;;  %v471_v21 = vld [vmem:[%s2699_s1 + $0x130] sm:$0xff] (!%p140_p2) }
   0xa   : > { %1784 = vmatprep.subr.bf16.mxu0 (!%p140_p2), %v1973_v3  ;;  %v1788_v18 = vpack.c.bf16 (!%p140_p2), %v470_v16, %v469_v15  ;;  %v472_v22 = vld [vmem:[%s2699_s1 + $0x138] sm:$0xff] (!%p140_p2)  ;;  %v1743_v23 = vpack.c.bf16 (!%p140_p2), %v440_v20, %v439_v19  ;;  %v441_v25 = vld [vmem:[%s2699_s1 + $0x40] sm:$0xff] (!%p140_p2)  ;;  %v442_v26 = vld [vmem:[%s2699_s1 + $0x48] sm:$0xff] (!%p140_p2) }
   0xb   : > { %v1791_v24 = vpack.c.bf16 (!%p140_p2), %v472_v22, %v471_v21  ;;  %v473_v27 = vld [vmem:[%s2699_s1 + $0x140] sm:$0xff] (!%p140_p2)  ;;  %v474_v28 = vld [vmem:[%s2699_s1 + $0x148] sm:$0xff] (!%p140_p2)  ;;  %v1746_v29 = vpack.c.bf16 (!%p140_p2), %v442_v26, %v441_v25  ;;  %v443_v31 = vld [vmem:[%s2699_s1 + $0x50] sm:$0xff] (!%p140_p2) }
   0xc   : > { %1738 = vmatpush1.bf16.msra.mxu1 (!%p140_p2), %v1737_v11  ;;  %v1794_v30 = vpack.c.bf16 (!%p140_p2), %v474_v28, %v473_v27  ;;  %v444_v32 = vld [vmem:[%s2699_s1 + $0x58] sm:$0xff] (!%p140_p2)  ;;  %v475_v33 = vld [vmem:[%s2699_s1 + $0x150] sm:$0xff] (!%p140_p2)  ;;  %v445_v37 = vld [vmem:[%s2699_s1 + $0x60] sm:$0xff] (!%p140_p2) }
   0xd   : > { %1739 = vmatprep.subr.bf16.mxu1 %v1973_v3  ;;  %1786 = vmatpush1.bf16.msra.mxu0 %v1785_v12  ;;  %s2703_s30 = smov (!%p165_p3, %s1659_s30), 127  ;;  %v476_v34 = vld [vmem:[%s2699_s1 + $0x158] sm:$0xff]  ;;  %v1749_v35 = vpack.c.bf16 %v444_v32, %v443_v31  ;;  %v446_v38 = vld [vmem:[%s2699_s1 + $0x68] sm:$0xff]  ;;  %v477_v40 = vld [vmem:[%s2699_s1 + $0x160] sm:$0xff] }
   0xe   : > { %1787 = vmatprep.subr.bf16.mxu0 %v1973_v3  ;;  %s1732_s29 = sshll.u32 %s2703_s30, 5  ;;  %v1797_v36 = vpack.c.bf16 %v476_v34, %v475_v33  ;;  %v478_v41 = vld [vmem:[%s2699_s1 + $0x168] sm:$0xff]  ;;  %v1752_v43 = vpack.c.bf16 %v446_v38, %v445_v37  ;;  %v447_v45 = vld [vmem:[%s2699_s1 + $0x70] sm:$0xff]  ;;  %v448_v46 = vld [vmem:[%s2699_s1 + $0x78] sm:$0xff]  ;;  %v1974_v33 = vmov 0.0   ;;  %s1663_s24 = sshll.u32 %s2703_s30, 3 }
   0xf   : > { %s2091_s15 = scalar_lea.vmem %s2698_s0, %s1732_s29  ;;  %v1800_v44 = vpack.c.bf16 %v478_v41, %v477_v40  ;;  %v479_v47 = vld [vmem:[%s2699_s1 + $0x170] sm:$0xff]  ;;  %v480_v48 = vld [vmem:[%s2699_s1 + $0x178] sm:$0xff]  ;;  %v1755_v49 = vpack.c.bf16 %v448_v46, %v447_v45  ;;  %v449_v51 = vld [vmem:[%s2699_s1 + $0x80] sm:$0xff]  ;;  %s2518_s27 = scalar_lea.vmem %s2701_s3, %s1663_s24 }
  0x10   : > { %1741 = vmatpush1.bf16.msra.mxu1 %v1740_v17  ;;  %v178_v39 = vld [vmem:[%s2091_s15 + $0x8] sm:$0xff]  ;;  %v180_v42 = vld [vmem:[%s2091_s15 + $0x18] sm:$0xff]  ;;  %v1803_v50 = vpack.c.bf16 %v480_v48, %v479_v47  ;;  %v481_v53 = vld [vmem:[%s2699_s1 + $0x180] sm:$0xff] }
  0x11   : > { %1742 = vmatprep.subr.bf16.mxu1 %v1973_v3  ;;  %1789 = vmatpush1.bf16.msra.mxu0 %v1788_v18  ;;  %v450_v52 = vld [vmem:[%s2699_s1 + $0x88] sm:$0xff]  ;;  %v451_v57 = vld [vmem:[%s2699_s1 + $0x90] sm:$0xff]  ;;  %v452_v58 = vld [vmem:[%s2699_s1 + $0x98] sm:$0xff] }
  0x12   : > { %1790 = vmatprep.subr.bf16.mxu0 %v1973_v3  ;;  %764 = vmatprep.mubr.f32.mxu1 %v178_v39  ;;  %v482_v54 = vld [vmem:[%s2699_s1 + $0x188] sm:$0xff]  ;;  %v1758_v55 = vpack.c.bf16 %v450_v52, %v449_v51  ;;  %v483_v59 = vld [vmem:[%s2699_s1 + $0x190] sm:$0xff]  ;;  %v484_v60 = vld [vmem:[%s2699_s1 + $0x198] sm:$0xff]  ;;  %v1761_v61 = vpack.c.bf16 %v452_v58, %v451_v57 }
  0x13   : > { %1666 = vmatprep.mubr.msk.f32.mxu0 %vm503_vm0, %v180_v42  ;;  %v1806_v56 = vpack.c.bf16 %v482_v54, %v481_v53  ;;  %v1809_v62 = vpack.c.bf16 %v484_v60, %v483_v59  ;;  %v453_v63 = vld [vmem:[%s2699_s1 + $0xa0] sm:$0xff]  ;;  %v454_v0 = vld [vmem:[%s2699_s1 + $0xa8] sm:$0xff]  ;;  %v455_v6 = vld [vmem:[%s2699_s1 + $0xb0] sm:$0xff] }
  0x14   : > { %1744 = vmatpush1.bf16.msra.mxu1 %v1743_v23  ;;  %v485_v1 = vld [vmem:[%s2699_s1 + $0x1a0] sm:$0xff]  ;;  %v486_v2 = vld [vmem:[%s2699_s1 + $0x1a8] sm:$0xff]  ;;  %v1764_v4 = vpack.c.bf16 %v454_v0, %v453_v63  ;;  %v456_v7 = vld [vmem:[%s2699_s1 + $0xb8] sm:$0xff] }
  0x15   : > { %1745 = vmatprep.subr.bf16.mxu1 %v1973_v3  ;;  %1792 = vmatpush1.bf16.msra.mxu0 %v1791_v24  ;;  %v1812_v5 = vpack.c.bf16 %v486_v2, %v485_v1  ;;  %v487_v8 = vld [vmem:[%s2699_s1 + $0x1b0] sm:$0xff]  ;;  %v488_v9 = vld [vmem:[%s2699_s1 + $0x1b8] sm:$0xff]  ;;  %v1767_v10 = vpack.c.bf16 %v456_v7, %v455_v6  ;;  %v457_v12 = vld [vmem:[%s2699_s1 + $0xc0] sm:$0xff] }
  0x16   : > { %1793 = vmatprep.subr.bf16.mxu0 %v1973_v3  ;;  %v1815_v11 = vpack.c.bf16 %v488_v9, %v487_v8  ;;  %v458_v13 = vld [vmem:[%s2699_s1 + $0xc8] sm:$0xff]  ;;  %v489_v14 = vld [vmem:[%s2699_s1 + $0x1c0] sm:$0xff]  ;;  %v459_v18 = vld [vmem:[%s2699_s1 + $0xd0] sm:$0xff] }
  0x17   : > { %v490_v15 = vld [vmem:[%s2699_s1 + $0x1c8] sm:$0xff]  ;;  %v1770_v16 = vpack.c.bf16 %v458_v13, %v457_v12  ;;  %v460_v19 = vld [vmem:[%s2699_s1 + $0xd8] sm:$0xff]  ;;  %v491_v20 = vld [vmem:[%s2699_s1 + $0x1d0] sm:$0xff] }
  0x18   : > { %1747 = vmatpush1.bf16.msra.mxu1 %v1746_v29  ;;  %v1818_v17 = vpack.c.bf16 %v490_v15, %v489_v14  ;;  %v492_v21 = vld [vmem:[%s2699_s1 + $0x1d8] sm:$0xff]  ;;  %v1773_v22 = vpack.c.bf16 %v460_v19, %v459_v18  ;;  %v461_v24 = vld [vmem:[%s2699_s1 + $0xe0] sm:$0xff]  ;;  %v462_v25 = vld [vmem:[%s2699_s1 + $0xe8] sm:$0xff] }
  0x19   : > { %1748 = vmatprep.subr.bf16.mxu1 %v1973_v3  ;;  %1795 = vmatpush1.bf16.msra.mxu0 %v1794_v30  ;;  %v1821_v23 = vpack.c.bf16 %v492_v21, %v491_v20  ;;  %v493_v26 = vld [vmem:[%s2699_s1 + $0x1e0] sm:$0xff]  ;;  %v494_v27 = vld [vmem:[%s2699_s1 + $0x1e8] sm:$0xff]  ;;  %v1776_v28 = vpack.c.bf16 %v462_v25, %v461_v24  ;;  %v463_v30 = vld [vmem:[%s2699_s1 + $0xf0] sm:$0xff] }
  0x1a   : > { %1796 = vmatprep.subr.bf16.mxu0 %v1973_v3  ;;  %v1824_v29 = vpack.c.bf16 %v494_v27, %v493_v26  ;;  %v464_v31 = vld [vmem:[%s2699_s1 + $0xf8] sm:$0xff]  ;;  %v495_v34 = vld [vmem:[%s2699_s1 + $0x1f0] sm:$0xf]  ;;  %v181_v39 = vld [vmem:[%s2091_s15 + $0x20] sm:$0xff] }
  0x1b   : > { %v1779_v32 = vpack.c.bf16 %v464_v31, %v463_v30  ;;  %v184_v37 = vld [vmem:[%s2091_s15 + $0x38] sm:$0xff]  ;;  %v183_v38 = vld [vmem:[%s2091_s15 + $0x30] sm:$0xff]  ;;  %v186_v41 = vld [vmem:[%s2091_s15 + $0x48] sm:$0xff] }
  0x1c   : > { %1750 = vmatpush1.bf16.msra.mxu1 %v1749_v35  ;;  %v179_v35 = vld [vmem:[%s2091_s15 + $0x10] sm:$0xff]  ;;  %v188_v40 = vld [vmem:[%s2091_s15 + $0x58] sm:$0xff]  ;;  %v190_v45 = vld [vmem:[%s2091_s15 + $0x68] sm:$0xff] }
  0x1d   : > { %1751 = vmatprep.subr.bf16.mxu1 %v1973_v3  ;;  %1798 = vmatpush1.bf16.msra.mxu0 %v1797_v36  ;;  %v177_v36 = vld [vmem:[%s2091_s15] sm:$0xff]  ;;  %v187_v42 = vld [vmem:[%s2091_s15 + $0x50] sm:$0xff]  ;;  %v196_v48 = vld [vmem:[%s2091_s15 + $0x98] sm:$0xff] }
  0x1e   : > { %1799 = vmatprep.subr.bf16.mxu0 %v1973_v3  ;;  %v191_v46 = vld [vmem:[%s2091_s15 + $0x70] sm:$0xff]  ;;  %v189_v47 = vld [vmem:[%s2091_s15 + $0x60] sm:$0xff]  ;;  %v200_v52 = vld [vmem:[%s2091_s15 + $0xb8] sm:$0xff] }
  0x1f   : > { %v193_v51 = vld [vmem:[%s2091_s15 + $0x80] sm:$0xff]  ;;  %v198_v53 = vld [vmem:[%s2091_s15 + $0xa8] sm:$0xff]  ;;  %v199_v54 = vld [vmem:[%s2091_s15 + $0xb0] sm:$0xff] }
  0x20   : > { %1753 = vmatpush1.bf16.msra.mxu1 %v1752_v43  ;;  %v185_v43 = vld [vmem:[%s2091_s15 + $0x40] sm:$0xff]  ;;  %v202_v57 = vld [vmem:[%s2091_s15 + $0xc8] sm:$0xff]  ;;  %v203_v58 = vld [vmem:[%s2091_s15 + $0xd0] sm:$0xff] }
  0x21   : > { %1754 = vmatprep.subr.bf16.mxu1 %v1973_v3  ;;  %1801 = vmatpush1.bf16.msra.mxu0 %v1800_v44  ;;  %v192_v44 = vld [vmem:[%s2091_s15 + $0x78] sm:$0xff]  ;;  %v201_v59 = vld [vmem:[%s2091_s15 + $0xc0] sm:$0xff]  ;;  %v210_v1 = vld [vmem:[%s2091_s15 + $0x108] sm:$0xff] }
  0x22   : > { %1802 = vmatprep.subr.bf16.mxu0 %v1973_v3  ;;  %v208_v60 = vld [vmem:[%s2091_s15 + $0xf8] sm:$0xff]  ;;  %v205_v63 = vld [vmem:[%s2091_s15 + $0xe0] sm:$0xff]  ;;  %v211_v2 = vld [vmem:[%s2091_s15 + $0x110] sm:$0xff] }
  0x23   : > { %v212_v0 = vld [vmem:[%s2091_s15 + $0x118] sm:$0xff]  ;;  %v214_v6 = vld [vmem:[%s2091_s15 + $0x128] sm:$0xff]  ;;  %v215_v7 = vld [vmem:[%s2091_s15 + $0x130] sm:$0xff] }
  0x24   : > { %1756 = vmatpush1.bf16.msra.mxu1 %v1755_v49  ;;  %v194_v49 = vld [vmem:[%s2091_s15 + $0x88] sm:$0xff]  ;;  %v213_v8 = vld [vmem:[%s2091_s15 + $0x120] sm:$0xff]  ;;  %v220_v9 = vld [vmem:[%s2091_s15 + $0x158] sm:$0xff] }
  0x25   : > { %1757 = vmatprep.subr.bf16.mxu1 %v1973_v3  ;;  %1804 = vmatpush1.bf16.msra.mxu0 %v1803_v50  ;;  %v195_v50 = vld [vmem:[%s2091_s15 + $0x90] sm:$0xff]  ;;  %v217_v12 = vld [vmem:[%s2091_s15 + $0x140] sm:$0xff]  ;;  %v224_v13 = vld [vmem:[%s2091_s15 + $0x178] sm:$0xff] }
  0x26   : > { %1805 = vmatprep.subr.bf16.mxu0 %v1973_v3  ;;  %v222_v14 = vld [vmem:[%s2091_s15 + $0x168] sm:$0xff]  ;;  %v223_v15 = vld [vmem:[%s2091_s15 + $0x170] sm:$0xff]  ;;  %v225_v20 = vld [vmem:[%s2091_s15 + $0x180] sm:$0xff] }
  0x27   : > { %v226_v18 = vld [vmem:[%s2091_s15 + $0x188] sm:$0xff]  ;;  %v227_v19 = vld [vmem:[%s2091_s15 + $0x190] sm:$0xff]  ;;  %v232_v21 = vld [vmem:[%s2091_s15 + $0x1b8] sm:$0xff] }
  0x28   : > { %1759 = vmatpush1.bf16.msra.mxu1 %v1758_v55  ;;  %v197_v55 = vld [vmem:[%s2091_s15 + $0xa0] sm:$0xff]  ;;  %v236_v25 = vld [vmem:[%s2091_s15 + $0x1d8] sm:$0xff]  ;;  %v234_v26 = vld [vmem:[%s2091_s15 + $0x1c8] sm:$0xff] }
  0x29   : > { %1760 = vmatprep.subr.bf16.mxu1 %v1973_v3  ;;  %1807 = vmatpush1.bf16.msra.mxu0 %v1806_v56  ;;  %v204_v56 = vld [vmem:[%s2091_s15 + $0xd8] sm:$0xff]  ;;  %v229_v24 = vld [vmem:[%s2091_s15 + $0x1a0] sm:$0xff]  ;;  %v235_v27 = vld [vmem:[%s2091_s15 + $0x1d0] sm:$0xff] }
  0x2a   : > { %1808 = vmatprep.subr.bf16.mxu0 %v1973_v3  ;;  %v238_v30 = vld [vmem:[%s2091_s15 + $0x1e8] sm:$0xff]  ;;  %v239_v31 = vld [vmem:[%s2091_s15 + $0x1f0] sm:$0xff] }
  0x2c   : > { %1762 = vmatpush1.bf16.msra.mxu1 %v1761_v61  ;;  %v206_v61 = vld [vmem:[%s2091_s15 + $0xe8] sm:$0xff] }
  0x2d   : > { %1763 = vmatprep.subr.bf16.mxu1 %v1973_v3  ;;  %1810 = vmatpush1.bf16.msra.mxu0 %v1809_v62  ;;  %v207_v62 = vld [vmem:[%s2091_s15 + $0xf0] sm:$0xff] }
  0x2e   : > { %1811 = vmatprep.subr.bf16.mxu0 %v1973_v3 }
  0x30   : > { %1765 = vmatpush1.bf16.msra.mxu1 %v1764_v4  ;;  %v209_v4 = vld [vmem:[%s2091_s15 + $0x100] sm:$0xff] }
  0x31   : > { %1766 = vmatprep.subr.bf16.mxu1 %v1973_v3  ;;  %1813 = vmatpush1.bf16.msra.mxu0 %v1812_v5  ;;  %v216_v5 = vld [vmem:[%s2091_s15 + $0x138] sm:$0xff] }
  0x32   : > { %1814 = vmatprep.subr.bf16.mxu0 %v1973_v3 }
  0x34   : > { %1768 = vmatpush1.bf16.msra.mxu1 %v1767_v10  ;;  %v218_v10 = vld [vmem:[%s2091_s15 + $0x148] sm:$0xff] }
  0x35   : > { %1769 = vmatprep.subr.bf16.mxu1 %v1973_v3  ;;  %1816 = vmatpush1.bf16.msra.mxu0 %v1815_v11  ;;  %v219_v11 = vld [vmem:[%s2091_s15 + $0x150] sm:$0xff] }
  0x36   : > { %1817 = vmatprep.subr.bf16.mxu0 %v1973_v3 }
  0x38   : > { %1771 = vmatpush1.bf16.msra.mxu1 %v1770_v16  ;;  %v221_v16 = vld [vmem:[%s2091_s15 + $0x160] sm:$0xff] }
  0x39   : > { %1772 = vmatprep.subr.bf16.mxu1 %v1973_v3  ;;  %1819 = vmatpush1.bf16.msra.mxu0 %v1818_v17  ;;  %v228_v17 = vld [vmem:[%s2091_s15 + $0x198] sm:$0xff] }
  0x3a   : > { %1820 = vmatprep.subr.bf16.mxu0 %v1973_v3 }
  0x3c   : > { %1774 = vmatpush1.bf16.msra.mxu1 %v1773_v22  ;;  %v230_v22 = vld [vmem:[%s2091_s15 + $0x1a8] sm:$0xff] }
  0x3d   : > { %1775 = vmatprep.subr.bf16.mxu1 %v1973_v3  ;;  %1822 = vmatpush1.bf16.msra.mxu0 %v1821_v23  ;;  %v231_v23 = vld [vmem:[%s2091_s15 + $0x1b0] sm:$0xff] }
  0x3e   : > { %1823 = vmatprep.subr.bf16.mxu0 %v1973_v3 }
  0x40   : > { %1777 = vmatpush1.bf16.msra.mxu1 %v1776_v28  ;;  %v233_v28 = vld [vmem:[%s2091_s15 + $0x1c0] sm:$0xff] }
  0x41   : > { %1778 = vmatprep.subr.bf16.mxu1 %v1973_v3  ;;  %1825 = vmatpush1.bf16.msra.mxu0 %v1824_v29  ;;  %v182_v3 = vld [vmem:[%s2091_s15 + $0x28] sm:$0xff]  ;;  %v240_v29 = vld [vmem:[%s2091_s15 + $0x1f8] sm:$0xff] }
  0x42   : > { %1145 = vmatprep.subr.mxu0 %v1974_v33  ;;  %v244_v33 = vld [vmem:[%s2091_s15 + $0x218] sm:$0xff] }
  0x44   : > { %1780 = vmatpush1.bf16.msra.mxu1 %v1779_v32  ;;  %v237_v32 = vld [vmem:[%s2091_s15 + $0x1e0] sm:$0xff] }
  0x45   : > { %1665 = vmatpush1.msk.msra.mxu0 %vm696_vm1, %v495_v34  ;;  %v242_v34 = vld [vmem:[%s2091_s15 + $0x208] sm:$0xff] }
  0x46   : > { %1150 = vmatmul.mubr.f32.vlgmr.msra.gmra.mrb[0].mxu0 %v179_v35  ;;  %v243_v35 = vld [vmem:[%s2091_s15 + $0x210] sm:$0xff] }
  0x47   : > { %765 = vmatmul.mubr.f32.vlgmr.msra.gmra.mrb[0].mxu1 %v177_v36  ;;  %1667 = vmatprep.mubr.msk.f32.mxu0 %vm503_vm0, %v184_v37  ;;  %v241_v36 = vld [vmem:[%s2091_s15 + $0x200] sm:$0xff]  ;;  %v248_v37 = vld [vmem:[%s2091_s15 + $0x238] sm:$0xff] }
  0x48   : > { %769 = vmatprep.mubr.f32.mxu1 %v182_v3  ;;  %v246_v3 = vld [vmem:[%s2091_s15 + $0x228] sm:$0xff] }
  0x4a   : > { %1155 = vmatmul.mubr.f32.gmra.mrb[2].mxu0 %v183_v38  ;;  %v247_v38 = vld [vmem:[%s2091_s15 + $0x230] sm:$0xff] }
  0x4b   : > { %770 = vmatmul.mubr.f32.gmra.mrb[2].mxu1 %v181_v39  ;;  %1668 = vmatprep.mubr.msk.f32.mxu0 %vm503_vm0, %v188_v40  ;;  %v245_v39 = vld [vmem:[%s2091_s15 + $0x220] sm:$0xff]  ;;  %v252_v40 = vld [vmem:[%s2091_s15 + $0x258] sm:$0xff] }
  0x4c   : > { %774 = vmatprep.mubr.f32.mxu1 %v186_v41  ;;  %v250_v41 = vld [vmem:[%s2091_s15 + $0x248] sm:$0xff] }
  0x4e   : > { %1160 = vmatmul.mubr.f32.gmra.mrb[4].mxu0 %v187_v42  ;;  %v251_v42 = vld [vmem:[%s2091_s15 + $0x250] sm:$0xff] }
  0x4f   : > { %775 = vmatmul.mubr.f32.gmra.mrb[4].mxu1 %v185_v43  ;;  %1669 = vmatprep.mubr.msk.f32.mxu0 %vm503_vm0, %v192_v44  ;;  %v249_v43 = vld [vmem:[%s2091_s15 + $0x240] sm:$0xff]  ;;  %v256_v44 = vld [vmem:[%s2091_s15 + $0x278] sm:$0xff] }
  0x50   : > { %779 = vmatprep.mubr.f32.mxu1 %v190_v45  ;;  %v254_v45 = vld [vmem:[%s2091_s15 + $0x268] sm:$0xff] }
  0x52   : > { %1165 = vmatmul.mubr.f32.gmra.mrb[6].mxu0 %v191_v46  ;;  %v255_v46 = vld [vmem:[%s2091_s15 + $0x270] sm:$0xff] }
  0x53   : > { %780 = vmatmul.mubr.f32.gmra.mrb[6].mxu1 %v189_v47  ;;  %1670 = vmatprep.mubr.msk.f32.mxu0 %vm503_vm0, %v196_v48  ;;  %v253_v47 = vld [vmem:[%s2091_s15 + $0x260] sm:$0xff]  ;;  %v260_v48 = vld [vmem:[%s2091_s15 + $0x298] sm:$0xff] }
  0x54   : > { %784 = vmatprep.mubr.f32.mxu1 %v194_v49  ;;  %v258_v49 = vld [vmem:[%s2091_s15 + $0x288] sm:$0xff] }
  0x56   : > { %1170 = vmatmul.mubr.f32.gmra.mrb[8].mxu0 %v195_v50  ;;  %v259_v50 = vld [vmem:[%s2091_s15 + $0x290] sm:$0xff] }
  0x57   : > { %785 = vmatmul.mubr.f32.gmra.mrb[8].mxu1 %v193_v51  ;;  %1671 = vmatprep.mubr.msk.f32.mxu0 %vm503_vm0, %v200_v52  ;;  %v257_v51 = vld [vmem:[%s2091_s15 + $0x280] sm:$0xff]  ;;  %v264_v52 = vld [vmem:[%s2091_s15 + $0x2b8] sm:$0xff] }
  0x58   : > { %789 = vmatprep.mubr.f32.mxu1 %v198_v53  ;;  %v262_v53 = vld [vmem:[%s2091_s15 + $0x2a8] sm:$0xff] }
  0x5a   : > { %1175 = vmatmul.mubr.f32.gmra.mrb[10].mxu0 %v199_v54  ;;  %v263_v54 = vld [vmem:[%s2091_s15 + $0x2b0] sm:$0xff] }
  0x5b   : > { %790 = vmatmul.mubr.f32.gmra.mrb[10].mxu1 %v197_v55  ;;  %1672 = vmatprep.mubr.msk.f32.mxu0 %vm503_vm0, %v204_v56  ;;  %v261_v55 = vld [vmem:[%s2091_s15 + $0x2a0] sm:$0xff]  ;;  %v268_v56 = vld [vmem:[%s2091_s15 + $0x2d8] sm:$0xff] }
  0x5c   : > { %794 = vmatprep.mubr.f32.mxu1 %v202_v57  ;;  %v266_v57 = vld [vmem:[%s2091_s15 + $0x2c8] sm:$0xff] }
  0x5e   : > { %1180 = vmatmul.mubr.f32.gmra.mrb[12].mxu0 %v203_v58  ;;  %v267_v58 = vld [vmem:[%s2091_s15 + $0x2d0] sm:$0xff] }
  0x5f   : > { %795 = vmatmul.mubr.f32.gmra.mrb[12].mxu1 %v201_v59  ;;  %1673 = vmatprep.mubr.msk.f32.mxu0 %vm503_vm0, %v208_v60  ;;  %v265_v59 = vld [vmem:[%s2091_s15 + $0x2c0] sm:$0xff]  ;;  %v272_v60 = vld [vmem:[%s2091_s15 + $0x2f8] sm:$0xff] }
  0x60   : > { %799 = vmatprep.mubr.f32.mxu1 %v206_v61  ;;  %v270_v61 = vld [vmem:[%s2091_s15 + $0x2e8] sm:$0xff] }
  0x62   : > { %1185 = vmatmul.mubr.f32.gmra.mrb[14].mxu0 %v207_v62  ;;  %v271_v62 = vld [vmem:[%s2091_s15 + $0x2f0] sm:$0xff] }
  0x63   : > { %800 = vmatmul.mubr.f32.gmra.mrb[14].mxu1 %v205_v63  ;;  %1674 = vmatprep.mubr.msk.f32.mxu0 %vm503_vm0, %v212_v0  ;;  %v269_v63 = vld [vmem:[%s2091_s15 + $0x2e0] sm:$0xff]  ;;  %v276_v0 = vld [vmem:[%s2091_s15 + $0x318] sm:$0xff] }
  0x64   : > { %804 = vmatprep.mubr.f32.mxu1 %v210_v1  ;;  %v274_v1 = vld [vmem:[%s2091_s15 + $0x308] sm:$0xff] }
  0x66   : > { %1190 = vmatmul.mubr.f32.gmra.mrb[16].mxu0 %v211_v2  ;;  %v275_v2 = vld [vmem:[%s2091_s15 + $0x310] sm:$0xff] }
  0x67   : > { %805 = vmatmul.mubr.f32.gmra.mrb[16].mxu1 %v209_v4  ;;  %1675 = vmatprep.mubr.msk.f32.mxu0 %vm503_vm0, %v216_v5  ;;  %v273_v4 = vld [vmem:[%s2091_s15 + $0x300] sm:$0xff]  ;;  %v280_v5 = vld [vmem:[%s2091_s15 + $0x338] sm:$0xff] }
  0x68   : > { %809 = vmatprep.mubr.f32.mxu1 %v214_v6  ;;  %v278_v6 = vld [vmem:[%s2091_s15 + $0x328] sm:$0xff] }
  0x6a   : > { %1195 = vmatmul.mubr.f32.gmra.mrb[18].mxu0 %v215_v7  ;;  %v279_v7 = vld [vmem:[%s2091_s15 + $0x330] sm:$0xff] }
  0x6b   : > { %810 = vmatmul.mubr.f32.gmra.mrb[18].mxu1 %v213_v8  ;;  %1676 = vmatprep.mubr.msk.f32.mxu0 %vm503_vm0, %v220_v9  ;;  %v277_v8 = vld [vmem:[%s2091_s15 + $0x320] sm:$0xff]  ;;  %v284_v9 = vld [vmem:[%s2091_s15 + $0x358] sm:$0xff] }
  0x6c   : > { %814 = vmatprep.mubr.f32.mxu1 %v218_v10  ;;  %v282_v10 = vld [vmem:[%s2091_s15 + $0x348] sm:$0xff] }
  0x6e   : > { %1200 = vmatmul.mubr.f32.gmra.mrb[20].mxu0 %v219_v11  ;;  %v283_v11 = vld [vmem:[%s2091_s15 + $0x350] sm:$0xff] }
  0x6f   : > { %815 = vmatmul.mubr.f32.gmra.mrb[20].mxu1 %v217_v12  ;;  %1677 = vmatprep.mubr.msk.f32.mxu0 %vm503_vm0, %v224_v13  ;;  %v281_v12 = vld [vmem:[%s2091_s15 + $0x340] sm:$0xff]  ;;  %v288_v13 = vld [vmem:[%s2091_s15 + $0x378] sm:$0xff] }
  0x70   : > { %819 = vmatprep.mubr.f32.mxu1 %v222_v14  ;;  %v286_v14 = vld [vmem:[%s2091_s15 + $0x368] sm:$0xff] }
  0x72   : > { %1205 = vmatmul.mubr.f32.gmra.mrb[22].mxu0 %v223_v15  ;;  %v287_v15 = vld [vmem:[%s2091_s15 + $0x370] sm:$0xff] }
  0x73   : > { %820 = vmatmul.mubr.f32.gmra.mrb[22].mxu1 %v221_v16  ;;  %1678 = vmatprep.mubr.msk.f32.mxu0 %vm503_vm0, %v228_v17  ;;  %v285_v16 = vld [vmem:[%s2091_s15 + $0x360] sm:$0xff]  ;;  %v292_v17 = vld [vmem:[%s2091_s15 + $0x398] sm:$0xff] }
  0x74   : > { %824 = vmatprep.mubr.f32.mxu1 %v226_v18  ;;  %v290_v18 = vld [vmem:[%s2091_s15 + $0x388] sm:$0xff] }
  0x76   : > { %1210 = vmatmul.mubr.f32.gmra.mrb[24].mxu0 %v227_v19  ;;  %v291_v19 = vld [vmem:[%s2091_s15 + $0x390] sm:$0xff] }
  0x77   : > { %825 = vmatmul.mubr.f32.gmra.mrb[24].mxu1 %v225_v20  ;;  %1679 = vmatprep.mubr.msk.f32.mxu0 %vm503_vm0, %v232_v21  ;;  %v289_v20 = vld [vmem:[%s2091_s15 + $0x380] sm:$0xff]  ;;  %v296_v21 = vld [vmem:[%s2091_s15 + $0x3b8] sm:$0xff] }
  0x78   : > { %829 = vmatprep.mubr.f32.mxu1 %v230_v22  ;;  %v294_v22 = vld [vmem:[%s2091_s15 + $0x3a8] sm:$0xff] }
  0x7a   : > { %1215 = vmatmul.mubr.f32.gmra.mrb[26].mxu0 %v231_v23  ;;  %v295_v23 = vld [vmem:[%s2091_s15 + $0x3b0] sm:$0xff] }
  0x7b   : > { %830 = vmatmul.mubr.f32.gmra.mrb[26].mxu1 %v229_v24  ;;  %1680 = vmatprep.mubr.msk.f32.mxu0 %vm503_vm0, %v236_v25  ;;  %v293_v24 = vld [vmem:[%s2091_s15 + $0x3a0] sm:$0xff]  ;;  %v300_v25 = vld [vmem:[%s2091_s15 + $0x3d8] sm:$0xff] }
  0x7c   : > { %834 = vmatprep.mubr.f32.mxu1 %v234_v26  ;;  %v298_v26 = vld [vmem:[%s2091_s15 + $0x3c8] sm:$0xff] }
  0x7e   : > { %1220 = vmatmul.mubr.f32.gmra.mrb[28].mxu0 %v235_v27  ;;  %v299_v27 = vld [vmem:[%s2091_s15 + $0x3d0] sm:$0xff] }
  0x7f   : > { %835 = vmatmul.mubr.f32.gmra.mrb[28].mxu1 %v233_v28  ;;  %1681 = vmatprep.mubr.msk.f32.mxu0 %vm503_vm0, %v240_v29  ;;  %v297_v28 = vld [vmem:[%s2091_s15 + $0x3c0] sm:$0xff]  ;;  %v304_v29 = vld [vmem:[%s2091_s15 + $0x3f8] sm:$0xff] }
  0x80   : > { %839 = vmatprep.mubr.f32.mxu1 %v238_v30  ;;  %v302_v30 = vld [vmem:[%s2091_s15 + $0x3e8] sm:$0xff] }
  0x82   : > { %1225 = vmatmul.mubr.f32.gmra.mrb[30].mxu0 %v239_v31  ;;  %v303_v31 = vld [vmem:[%s2091_s15 + $0x3f0] sm:$0xff] }
  0x83   : > { %840 = vmatmul.mubr.f32.gmra.mrb[30].mxu1 %v237_v32  ;;  %1682 = vmatprep.mubr.msk.f32.mxu0 %vm503_vm0, %v244_v33  ;;  %v301_v32 = vld [vmem:[%s2091_s15 + $0x3e0] sm:$0xff]  ;;  %v308_v33 = vld [vmem:[%s2091_s15 + $0x418] sm:$0xff] }
  0x84   : > { %844 = vmatprep.mubr.f32.mxu1 %v242_v34  ;;  %v306_v34 = vld [vmem:[%s2091_s15 + $0x408] sm:$0xff] }
  0x86   : > { %1230 = vmatmul.mubr.f32.gmra.mrb[32].mxu0 %v243_v35  ;;  %v307_v35 = vld [vmem:[%s2091_s15 + $0x410] sm:$0xff] }
  0x87   : > { %845 = vmatmul.mubr.f32.gmra.mrb[32].mxu1 %v241_v36  ;;  %1683 = vmatprep.mubr.msk.f32.mxu0 %vm503_vm0, %v248_v37  ;;  %v305_v36 = vld [vmem:[%s2091_s15 + $0x400] sm:$0xff]  ;;  %v312_v37 = vld [vmem:[%s2091_s15 + $0x438] sm:$0xff] }
  0x88   : > { %849 = vmatprep.mubr.f32.mxu1 %v246_v3  ;;  %v310_v3 = vld [vmem:[%s2091_s15 + $0x428] sm:$0xff] }
  0x8a   : > { %1235 = vmatmul.mubr.f32.gmra.mrb[34].mxu0 %v247_v38  ;;  %v311_v38 = vld [vmem:[%s2091_s15 + $0x430] sm:$0xff] }
  0x8b   : > { %850 = vmatmul.mubr.f32.gmra.mrb[34].mxu1 %v245_v39  ;;  %1684 = vmatprep.mubr.msk.f32.mxu0 %vm503_vm0, %v252_v40  ;;  %v309_v39 = vld [vmem:[%s2091_s15 + $0x420] sm:$0xff]  ;;  %v316_v40 = vld [vmem:[%s2091_s15 + $0x458] sm:$0xff] }
  0x8c   : > { %854 = vmatprep.mubr.f32.mxu1 %v250_v41  ;;  %v314_v41 = vld [vmem:[%s2091_s15 + $0x448] sm:$0xff] }
  0x8e   : > { %1240 = vmatmul.mubr.f32.gmra.mrb[36].mxu0 %v251_v42  ;;  %v315_v42 = vld [vmem:[%s2091_s15 + $0x450] sm:$0xff] }
  0x8f   : > { %855 = vmatmul.mubr.f32.gmra.mrb[36].mxu1 %v249_v43  ;;  %1685 = vmatprep.mubr.msk.f32.mxu0 %vm503_vm0, %v256_v44  ;;  %v313_v43 = vld [vmem:[%s2091_s15 + $0x440] sm:$0xff]  ;;  %v320_v44 = vld [vmem:[%s2091_s15 + $0x478] sm:$0xff] }
  0x90   : > { %859 = vmatprep.mubr.f32.mxu1 %v254_v45  ;;  %v318_v45 = vld [vmem:[%s2091_s15 + $0x468] sm:$0xff] }
  0x92   : > { %1245 = vmatmul.mubr.f32.gmra.mrb[38].mxu0 %v255_v46  ;;  %v319_v46 = vld [vmem:[%s2091_s15 + $0x470] sm:$0xff] }
  0x93   : > { %860 = vmatmul.mubr.f32.gmra.mrb[38].mxu1 %v253_v47  ;;  %1686 = vmatprep.mubr.msk.f32.mxu0 %vm503_vm0, %v260_v48  ;;  %v317_v47 = vld [vmem:[%s2091_s15 + $0x460] sm:$0xff]  ;;  %v324_v48 = vld [vmem:[%s2091_s15 + $0x498] sm:$0xff] }
  0x94   : > { %864 = vmatprep.mubr.f32.mxu1 %v258_v49  ;;  %v322_v49 = vld [vmem:[%s2091_s15 + $0x488] sm:$0xff] }
  0x96   : > { %1250 = vmatmul.mubr.f32.gmra.mrb[40].mxu0 %v259_v50  ;;  %v323_v50 = vld [vmem:[%s2091_s15 + $0x490] sm:$0xff] }
  0x97   : > { %865 = vmatmul.mubr.f32.gmra.mrb[40].mxu1 %v257_v51  ;;  %1687 = vmatprep.mubr.msk.f32.mxu0 %vm503_vm0, %v264_v52  ;;  %v321_v51 = vld [vmem:[%s2091_s15 + $0x480] sm:$0xff]  ;;  %v328_v52 = vld [vmem:[%s2091_s15 + $0x4b8] sm:$0xff] }
  0x98   : > { %869 = vmatprep.mubr.f32.mxu1 %v262_v53  ;;  %v326_v53 = vld [vmem:[%s2091_s15 + $0x4a8] sm:$0xff] }
  0x9a   : > { %1255 = vmatmul.mubr.f32.gmra.mrb[42].mxu0 %v263_v54  ;;  %v327_v54 = vld [vmem:[%s2091_s15 + $0x4b0] sm:$0xff] }
  0x9b   : > { %870 = vmatmul.mubr.f32.gmra.mrb[42].mxu1 %v261_v55  ;;  %1688 = vmatprep.mubr.msk.f32.mxu0 %vm503_vm0, %v268_v56  ;;  %v325_v55 = vld [vmem:[%s2091_s15 + $0x4a0] sm:$0xff]  ;;  %v332_v56 = vld [vmem:[%s2091_s15 + $0x4d8] sm:$0xff] }
  0x9c   : > { %874 = vmatprep.mubr.f32.mxu1 %v266_v57  ;;  %v330_v57 = vld [vmem:[%s2091_s15 + $0x4c8] sm:$0xff] }
  0x9e   : > { %1260 = vmatmul.mubr.f32.gmra.mrb[44].mxu0 %v267_v58  ;;  %v331_v58 = vld [vmem:[%s2091_s15 + $0x4d0] sm:$0xff] }
  0x9f   : > { %875 = vmatmul.mubr.f32.gmra.mrb[44].mxu1 %v265_v59  ;;  %1689 = vmatprep.mubr.msk.f32.mxu0 %vm503_vm0, %v272_v60  ;;  %v329_v59 = vld [vmem:[%s2091_s15 + $0x4c0] sm:$0xff]  ;;  %v336_v60 = vld [vmem:[%s2091_s15 + $0x4f8] sm:$0xff] }
  0xa0   : > { %879 = vmatprep.mubr.f32.mxu1 %v270_v61  ;;  %v334_v61 = vld [vmem:[%s2091_s15 + $0x4e8] sm:$0xff] }
  0xa2   : > { %1265 = vmatmul.mubr.f32.gmra.mrb[46].mxu0 %v271_v62  ;;  %v335_v62 = vld [vmem:[%s2091_s15 + $0x4f0] sm:$0xff] }
  0xa3   : > { %880 = vmatmul.mubr.f32.gmra.mrb[46].mxu1 %v269_v63  ;;  %1690 = vmatprep.mubr.msk.f32.mxu0 %vm503_vm0, %v276_v0  ;;  %v333_v63 = vld [vmem:[%s2091_s15 + $0x4e0] sm:$0xff]  ;;  %v340_v0 = vld [vmem:[%s2091_s15 + $0x518] sm:$0xff] }
  0xa4   : > { %884 = vmatprep.mubr.f32.mxu1 %v274_v1  ;;  %v338_v1 = vld [vmem:[%s2091_s15 + $0x508] sm:$0xff] }
  0xa6   : > { %1270 = vmatmul.mubr.f32.gmra.mrb[48].mxu0 %v275_v2  ;;  %v339_v2 = vld [vmem:[%s2091_s15 + $0x510] sm:$0xff] }
  0xa7   : > { %885 = vmatmul.mubr.f32.gmra.mrb[48].mxu1 %v273_v4  ;;  %1691 = vmatprep.mubr.msk.f32.mxu0 %vm503_vm0, %v280_v5  ;;  %v337_v4 = vld [vmem:[%s2091_s15 + $0x500] sm:$0xff]  ;;  %v344_v5 = vld [vmem:[%s2091_s15 + $0x538] sm:$0xff] }
  0xa8   : > { %889 = vmatprep.mubr.f32.mxu1 %v278_v6  ;;  %v342_v6 = vld [vmem:[%s2091_s15 + $0x528] sm:$0xff] }
  0xaa   : > { %1275 = vmatmul.mubr.f32.gmra.mrb[50].mxu0 %v279_v7  ;;  %v343_v7 = vld [vmem:[%s2091_s15 + $0x530] sm:$0xff] }
  0xab   : > { %890 = vmatmul.mubr.f32.gmra.mrb[50].mxu1 %v277_v8  ;;  %1692 = vmatprep.mubr.msk.f32.mxu0 %vm503_vm0, %v284_v9  ;;  %v341_v8 = vld [vmem:[%s2091_s15 + $0x520] sm:$0xff]  ;;  %v348_v9 = vld [vmem:[%s2091_s15 + $0x558] sm:$0xff] }
  0xac   : > { %894 = vmatprep.mubr.f32.mxu1 %v282_v10  ;;  %v346_v10 = vld [vmem:[%s2091_s15 + $0x548] sm:$0xff] }
  0xae   : > { %1280 = vmatmul.mubr.f32.gmra.mrb[52].mxu0 %v283_v11  ;;  %v347_v11 = vld [vmem:[%s2091_s15 + $0x550] sm:$0xff] }
  0xaf   : > { %895 = vmatmul.mubr.f32.gmra.mrb[52].mxu1 %v281_v12  ;;  %1693 = vmatprep.mubr.msk.f32.mxu0 %vm503_vm0, %v288_v13  ;;  %v345_v12 = vld [vmem:[%s2091_s15 + $0x540] sm:$0xff]  ;;  %v352_v13 = vld [vmem:[%s2091_s15 + $0x578] sm:$0xff] }
  0xb0   : > { %899 = vmatprep.mubr.f32.mxu1 %v286_v14  ;;  %v350_v14 = vld [vmem:[%s2091_s15 + $0x568] sm:$0xff] }
  0xb2   : > { %1285 = vmatmul.mubr.f32.gmra.mrb[54].mxu0 %v287_v15  ;;  %v351_v15 = vld [vmem:[%s2091_s15 + $0x570] sm:$0xff] }
  0xb3   : > { %900 = vmatmul.mubr.f32.gmra.mrb[54].mxu1 %v285_v16  ;;  %1694 = vmatprep.mubr.msk.f32.mxu0 %vm503_vm0, %v292_v17  ;;  %v349_v16 = vld [vmem:[%s2091_s15 + $0x560] sm:$0xff]  ;;  %v356_v17 = vld [vmem:[%s2091_s15 + $0x598] sm:$0xff] }
  0xb4   : > { %904 = vmatprep.mubr.f32.mxu1 %v290_v18  ;;  %v354_v18 = vld [vmem:[%s2091_s15 + $0x588] sm:$0xff] }
  0xb6   : > { %1290 = vmatmul.mubr.f32.gmra.mrb[56].mxu0 %v291_v19  ;;  %v355_v19 = vld [vmem:[%s2091_s15 + $0x590] sm:$0xff] }
  0xb7   : > { %905 = vmatmul.mubr.f32.gmra.mrb[56].mxu1 %v289_v20  ;;  %1695 = vmatprep.mubr.msk.f32.mxu0 %vm503_vm0, %v296_v21  ;;  %v353_v20 = vld [vmem:[%s2091_s15 + $0x580] sm:$0xff]  ;;  %v360_v21 = vld [vmem:[%s2091_s15 + $0x5b8] sm:$0xff] }
  0xb8   : > { %909 = vmatprep.mubr.f32.mxu1 %v294_v22  ;;  %v358_v22 = vld [vmem:[%s2091_s15 + $0x5a8] sm:$0xff] }
  0xba   : > { %1295 = vmatmul.mubr.f32.gmra.mrb[58].mxu0 %v295_v23  ;;  %v359_v23 = vld [vmem:[%s2091_s15 + $0x5b0] sm:$0xff] }
  0xbb   : > { %910 = vmatmul.mubr.f32.gmra.mrb[58].mxu1 %v293_v24  ;;  %1696 = vmatprep.mubr.msk.f32.mxu0 %vm503_vm0, %v300_v25  ;;  %v357_v24 = vld [vmem:[%s2091_s15 + $0x5a0] sm:$0xff]  ;;  %v364_v25 = vld [vmem:[%s2091_s15 + $0x5d8] sm:$0xff] }
  0xbc   : > { %914 = vmatprep.mubr.f32.mxu1 %v298_v26  ;;  %v362_v26 = vld [vmem:[%s2091_s15 + $0x5c8] sm:$0xff] }
  0xbe   : > { %1300 = vmatmul.mubr.f32.gmra.mrb[60].mxu0 %v299_v27  ;;  %v363_v27 = vld [vmem:[%s2091_s15 + $0x5d0] sm:$0xff] }
  0xbf   : > { %915 = vmatmul.mubr.f32.gmra.mrb[60].mxu1 %v297_v28  ;;  %1697 = vmatprep.mubr.msk.f32.mxu0 %vm503_vm0, %v304_v29  ;;  %v361_v28 = vld [vmem:[%s2091_s15 + $0x5c0] sm:$0xff]  ;;  %v368_v29 = vld [vmem:[%s2091_s15 + $0x5f8] sm:$0xff] }
  0xc0   : > { %919 = vmatprep.mubr.f32.mxu1 %v302_v30  ;;  %v366_v30 = vld [vmem:[%s2091_s15 + $0x5e8] sm:$0xff] }
  0xc2   : > { %1305 = vmatmul.mubr.f32.gmra.mrb[62].mxu0 %v303_v31  ;;  %v367_v31 = vld [vmem:[%s2091_s15 + $0x5f0] sm:$0xff] }
  0xc3   : > { %920 = vmatmul.mubr.f32.gmra.mrb[62].mxu1 %v301_v32  ;;  %1698 = vmatprep.mubr.msk.f32.mxu0 %vm503_vm0, %v308_v33  ;;  %v365_v32 = vld [vmem:[%s2091_s15 + $0x5e0] sm:$0xff]  ;;  %v372_v33 = vld [vmem:[%s2091_s15 + $0x618] sm:$0xff] }
  0xc4   : > { %924 = vmatprep.mubr.f32.mxu1 %v306_v34  ;;  %v370_v34 = vld [vmem:[%s2091_s15 + $0x608] sm:$0xff] }
  0xc6   : > { %1310 = vmatmul.mubr.f32.gmra.mrb[64].mxu0 %v307_v35  ;;  %v371_v35 = vld [vmem:[%s2091_s15 + $0x610] sm:$0xff] }
  0xc7   : > { %925 = vmatmul.mubr.f32.gmra.mrb[64].mxu1 %v305_v36  ;;  %1699 = vmatprep.mubr.msk.f32.mxu0 %vm503_vm0, %v312_v37  ;;  %v369_v36 = vld [vmem:[%s2091_s15 + $0x600] sm:$0xff]  ;;  %v376_v37 = vld [vmem:[%s2091_s15 + $0x638] sm:$0xff] }
  0xc8   : > { %929 = vmatprep.mubr.f32.mxu1 %v310_v3  ;;  %v374_v3 = vld [vmem:[%s2091_s15 + $0x628] sm:$0xff] }
  0xca   : > { %1315 = vmatmul.mubr.f32.gmra.mrb[66].mxu0 %v311_v38  ;;  %v375_v38 = vld [vmem:[%s2091_s15 + $0x630] sm:$0xff] }
  0xcb   : > { %930 = vmatmul.mubr.f32.gmra.mrb[66].mxu1 %v309_v39  ;;  %1700 = vmatprep.mubr.msk.f32.mxu0 %vm503_vm0, %v316_v40  ;;  %v373_v39 = vld [vmem:[%s2091_s15 + $0x620] sm:$0xff]  ;;  %v380_v40 = vld [vmem:[%s2091_s15 + $0x658] sm:$0xff] }
  0xcc   : > { %934 = vmatprep.mubr.f32.mxu1 %v314_v41  ;;  %v378_v41 = vld [vmem:[%s2091_s15 + $0x648] sm:$0xff] }
  0xce   : > { %1320 = vmatmul.mubr.f32.gmra.mrb[68].mxu0 %v315_v42  ;;  %v379_v42 = vld [vmem:[%s2091_s15 + $0x650] sm:$0xff] }
  0xcf   : > { %935 = vmatmul.mubr.f32.gmra.mrb[68].mxu1 %v313_v43  ;;  %1701 = vmatprep.mubr.msk.f32.mxu0 %vm503_vm0, %v320_v44  ;;  %v377_v43 = vld [vmem:[%s2091_s15 + $0x640] sm:$0xff]  ;;  %v384_v44 = vld [vmem:[%s2091_s15 + $0x678] sm:$0xff] }
  0xd0   : > { %939 = vmatprep.mubr.f32.mxu1 %v318_v45  ;;  %v382_v45 = vld [vmem:[%s2091_s15 + $0x668] sm:$0xff] }
  0xd2   : > { %1325 = vmatmul.mubr.f32.gmra.mrb[70].mxu0 %v319_v46  ;;  %v383_v46 = vld [vmem:[%s2091_s15 + $0x670] sm:$0xff] }
  0xd3   : > { %940 = vmatmul.mubr.f32.gmra.mrb[70].mxu1 %v317_v47  ;;  %1702 = vmatprep.mubr.msk.f32.mxu0 %vm503_vm0, %v324_v48  ;;  %v381_v47 = vld [vmem:[%s2091_s15 + $0x660] sm:$0xff]  ;;  %v388_v48 = vld [vmem:[%s2091_s15 + $0x698] sm:$0xff] }
  0xd4   : > { %944 = vmatprep.mubr.f32.mxu1 %v322_v49  ;;  %v386_v49 = vld [vmem:[%s2091_s15 + $0x688] sm:$0xff] }
  0xd6   : > { %1330 = vmatmul.mubr.f32.gmra.mrb[72].mxu0 %v323_v50  ;;  %v387_v50 = vld [vmem:[%s2091_s15 + $0x690] sm:$0xff] }
  0xd7   : > { %945 = vmatmul.mubr.f32.gmra.mrb[72].mxu1 %v321_v51  ;;  %1703 = vmatprep.mubr.msk.f32.mxu0 %vm503_vm0, %v328_v52  ;;  %v385_v51 = vld [vmem:[%s2091_s15 + $0x680] sm:$0xff]  ;;  %v392_v52 = vld [vmem:[%s2091_s15 + $0x6b8] sm:$0xff] }
  0xd8   : > { %949 = vmatprep.mubr.f32.mxu1 %v326_v53  ;;  %v390_v53 = vld [vmem:[%s2091_s15 + $0x6a8] sm:$0xff] }
  0xda   : > { %1335 = vmatmul.mubr.f32.gmra.mrb[74].mxu0 %v327_v54  ;;  %v391_v54 = vld [vmem:[%s2091_s15 + $0x6b0] sm:$0xff] }
  0xdb   : > { %950 = vmatmul.mubr.f32.gmra.mrb[74].mxu1 %v325_v55  ;;  %1704 = vmatprep.mubr.msk.f32.mxu0 %vm503_vm0, %v332_v56  ;;  %v2503_v55 = vld [vmem:[%s2700_s2] ss:$0 sm:$0xff] }
  0xdc   : > { %954 = vmatprep.mubr.f32.mxu1 %v330_v57  ;;  %v389_v56 = vld [vmem:[%s2091_s15 + $0x6a0] sm:$0xff]  ;;  %v396_v57 = vld [vmem:[%s2091_s15 + $0x6d8] sm:$0xff] }
  0xde   : > { %1340 = vmatmul.mubr.f32.gmra.mrb[76].mxu0 %v331_v58 }
  0xdf   : > { %955 = vmatmul.mubr.f32.gmra.mrb[76].mxu1 %v329_v59  ;;  %1705 = vmatprep.mubr.msk.f32.mxu0 %vm503_vm0, %v336_v60  ;;  %v394_v59 = vld [vmem:[%s2091_s15 + $0x6c8] sm:$0xff] }
  0xe0   : > { %959 = vmatprep.mubr.f32.mxu1 %v334_v61 }
  0xe2   : > { %1345 = vmatmul.mubr.f32.gmra.mrb[78].mxu0 %v335_v62 }
  0xe3   : > { %960 = vmatmul.mubr.f32.gmra.mrb[78].mxu1 %v333_v63  ;;  %1706 = vmatprep.mubr.msk.f32.mxu0 %vm503_vm0, %v340_v0  ;;  %v395_v0 = vld [vmem:[%s2091_s15 + $0x6d0] sm:$0xff] }
  0xe4   : > { %964 = vmatprep.mubr.f32.mxu1 %v338_v1  ;;  %v393_v1 = vld [vmem:[%s2091_s15 + $0x6c0] sm:$0xff] }
  0xe6   : > { %1350 = vmatmul.mubr.f32.gmra.mrb[80].mxu0 %v339_v2  ;;  %v400_v2 = vld [vmem:[%s2091_s15 + $0x6f8] sm:$0xff] }
  0xe7   : > { %965 = vmatmul.mubr.f32.gmra.mrb[80].mxu1 %v337_v4  ;;  %1707 = vmatprep.mubr.msk.f32.mxu0 %vm503_vm0, %v344_v5 }
  0xe8   : > { %969 = vmatprep.mubr.f32.mxu1 %v342_v6  ;;  %v398_v6 = vld [vmem:[%s2091_s15 + $0x6e8] sm:$0xff] }
  0xea   : > { %1355 = vmatmul.mubr.f32.gmra.mrb[82].mxu0 %v343_v7 }
  0xeb   : > { %970 = vmatmul.mubr.f32.gmra.mrb[82].mxu1 %v341_v8  ;;  %1708 = vmatprep.mubr.msk.f32.mxu0 %vm503_vm0, %v348_v9 }
  0xec   : > { %974 = vmatprep.mubr.f32.mxu1 %v346_v10 }
  0xee   : > { %1360 = vmatmul.mubr.f32.gmra.mrb[84].mxu0 %v347_v11 }
  0xef   : > { %975 = vmatmul.mubr.f32.gmra.mrb[84].mxu1 %v345_v12  ;;  %1709 = vmatprep.mubr.msk.f32.mxu0 %vm503_vm0, %v352_v13  ;;  %v399_v12 = vld [vmem:[%s2091_s15 + $0x6f0] sm:$0xff]  ;;  %v397_v13 = vld [vmem:[%s2091_s15 + $0x6e0] sm:$0xff] }
  0xf0   : > { %979 = vmatprep.mubr.f32.mxu1 %v350_v14  ;;  %v404_v14 = vld [vmem:[%s2091_s15 + $0x718] sm:$0xff] }
  0xf2   : > { %1365 = vmatmul.mubr.f32.gmra.mrb[86].mxu0 %v351_v15 }
  0xf3   : > { %980 = vmatmul.mubr.f32.gmra.mrb[86].mxu1 %v349_v16  ;;  %1710 = vmatprep.mubr.msk.f32.mxu0 %vm503_vm0, %v356_v17  ;;  %v402_v17 = vld [vmem:[%s2091_s15 + $0x708] sm:$0xff] }
  0xf4   : > { %984 = vmatprep.mubr.f32.mxu1 %v354_v18 }
  0xf6   : > { %1370 = vmatmul.mubr.f32.gmra.mrb[88].mxu0 %v355_v19 }
  0xf7   : > { %985 = vmatmul.mubr.f32.gmra.mrb[88].mxu1 %v353_v20  ;;  %1711 = vmatprep.mubr.msk.f32.mxu0 %vm503_vm0, %v360_v21 }
  0xf8   : > { %989 = vmatprep.mubr.f32.mxu1 %v358_v22 }
  0xfa   : > { %1375 = vmatmul.mubr.f32.gmra.mrb[90].mxu0 %v359_v23  ;;  %v403_v23 = vld [vmem:[%s2091_s15 + $0x710] sm:$0xff] }
  0xfb   : > { %990 = vmatmul.mubr.f32.gmra.mrb[90].mxu1 %v357_v24  ;;  %1712 = vmatprep.mubr.msk.f32.mxu0 %vm503_vm0, %v364_v25  ;;  %v401_v24 = vld [vmem:[%s2091_s15 + $0x700] sm:$0xff]  ;;  %v408_v25 = vld [vmem:[%s2091_s15 + $0x738] sm:$0xff] }
  0xfc   : > { %994 = vmatprep.mubr.f32.mxu1 %v362_v26 }
  0xfe   : > { %1380 = vmatmul.mubr.f32.gmra.mrb[92].mxu0 %v363_v27 }
  0xff   : > { %995 = vmatmul.mubr.f32.gmra.mrb[92].mxu1 %v361_v28  ;;  %1713 = vmatprep.mubr.msk.f32.mxu0 %vm503_vm0, %v368_v29  ;;  %v406_v28 = vld [vmem:[%s2091_s15 + $0x728] sm:$0xff] }
 0x100   : > { %999 = vmatprep.mubr.f32.mxu1 %v366_v30 }
 0x102   : > { %1385 = vmatmul.mubr.f32.gmra.mrb[94].mxu0 %v367_v31 }
 0x103   : > { %1000 = vmatmul.mubr.f32.gmra.mrb[94].mxu1 %v365_v32  ;;  %1714 = vmatprep.mubr.msk.f32.mxu0 %vm503_vm0, %v372_v33 }
 0x104   : > { %1004 = vmatprep.mubr.f32.mxu1 %v370_v34  ;;  %v407_v34 = vld [vmem:[%s2091_s15 + $0x730] sm:$0xff] }
 0x106   : > { %1390 = vmatmul.mubr.f32.gmra.mrb[96].mxu0 %v371_v35  ;;  %v405_v35 = vld [vmem:[%s2091_s15 + $0x720] sm:$0xff] }
 0x107   : > { %1005 = vmatmul.mubr.f32.gmra.mrb[96].mxu1 %v369_v36  ;;  %1715 = vmatprep.mubr.msk.f32.mxu0 %vm503_vm0, %v376_v37  ;;  %v412_v36 = vld [vmem:[%s2091_s15 + $0x758] sm:$0xff] }
 0x108   : > { %1009 = vmatprep.mubr.f32.mxu1 %v374_v3 }
 0x10a   : > { %1395 = vmatmul.mubr.f32.gmra.mrb[98].mxu0 %v375_v38  ;;  %v410_v38 = vld [vmem:[%s2091_s15 + $0x748] sm:$0xff] }
 0x10b   : > { %1010 = vmatmul.mubr.f32.gmra.mrb[98].mxu1 %v373_v39  ;;  %1716 = vmatprep.mubr.msk.f32.mxu0 %vm503_vm0, %v380_v40 }
 0x10c   : > { %1014 = vmatprep.mubr.f32.mxu1 %v378_v41 }
 0x10e   : > { %1400 = vmatmul.mubr.f32.gmra.mrb[100].mxu0 %v379_v42 }
 0x10f   : > { %1015 = vmatmul.mubr.f32.gmra.mrb[100].mxu1 %v377_v43  ;;  %1717 = vmatprep.mubr.msk.f32.mxu0 %vm503_vm0, %v384_v44  ;;  %v411_v44 = vld [vmem:[%s2091_s15 + $0x750] sm:$0xff] }
 0x110   : > { %1019 = vmatprep.mubr.f32.mxu1 %v382_v45  ;;  %v409_v45 = vld [vmem:[%s2091_s15 + $0x740] sm:$0xff] }
 0x112   : > { %1405 = vmatmul.mubr.f32.gmra.mrb[102].mxu0 %v383_v46  ;;  %v416_v46 = vld [vmem:[%s2091_s15 + $0x778] sm:$0xff] }
 0x113   : > { %1020 = vmatmul.mubr.f32.gmra.mrb[102].mxu1 %v381_v47  ;;  %1718 = vmatprep.mubr.msk.f32.mxu0 %vm503_vm0, %v388_v48 }
 0x114   : > { %1024 = vmatprep.mubr.f32.mxu1 %v386_v49  ;;  %v414_v49 = vld [vmem:[%s2091_s15 + $0x768] sm:$0xff] }
 0x116   : > { %1410 = vmatmul.mubr.f32.gmra.mrb[104].mxu0 %v387_v50 }
 0x117   : > { %1025 = vmatmul.mubr.f32.gmra.mrb[104].mxu1 %v385_v51  ;;  %1719 = vmatprep.mubr.msk.f32.mxu0 %vm503_vm0, %v392_v52 }
 0x118   : > { %1029 = vmatprep.mubr.f32.mxu1 %v390_v53 }
 0x119   : > { %v1151_v58 = vpop.f32.mrb[0].mxu0 }
 0x11a   : > { %v766_v60 = vpop.f32.mrb[0].mxu1  ;;  %v1153_v61 = vpop.f32.mrb[1].mxu0  ;;  %1415 = vmatmul.mubr.f32.gmra.mrb[106].mxu0 %v391_v54 }
 0x11b   : > { %v767_v62 = vadd.f32 %v2503_v55, %v766_v60  ;;  %v768_v63 = vpop.f32.mrb[1].mxu1  ;;  %1030 = vmatmul.mubr.f32.gmra.mrb[106].mxu1 %v389_v56  ;;  %1720 = vmatprep.mubr.msk.f32.mxu0 %vm503_vm0, %v396_v57  ;;  %v415_v56 = vld [vmem:[%s2091_s15 + $0x770] sm:$0xff]  ;;  %v413_v57 = vld [vmem:[%s2091_s15 + $0x760] sm:$0xff]  ;;  %v418_v61 = vld [vmem:[%s2091_s15 + $0x788] sm:$0xff] }
 0x11c   : > { %1034 = vmatprep.mubr.f32.mxu1 %v394_v59 }
 0x11d   : > { %v1152_v4 = vadd.f32 %v1151_v58, %v767_v62  ;;  %v1156_v5 = vpop.f32.mrb[2].mxu0  ;;  %v420_v58 = vld [vmem:[%s2091_s15 + $0x798] sm:$0xff] }
 0x11e   : > { %v771_v7 = vpop.f32.mrb[2].mxu1  ;;  %v1158_v8 = vpop.f32.mrb[3].mxu0  ;;  %1420 = vmatmul.mubr.f32.gmra.mrb[108].mxu0 %v395_v0 }
 0x11f   : > { %v1470_v9 = vmax.f32 %v1152_v4, 0.0  ;;  %v772_v10 = vadd.f32 %v2503_v55, %v771_v7  ;;  %v773_v11 = vpop.f32.mrb[3].mxu1  ;;  %1035 = vmatmul.mubr.f32.gmra.mrb[108].mxu1 %v393_v1  ;;  %1721 = vmatprep.mubr.msk.f32.mxu0 %vm503_vm0, %v400_v2  ;;  %v419_v4 = vld [vmem:[%s2091_s15 + $0x790] sm:$0xff] }
 0x120   : > { %1039 = vmatprep.mubr.f32.mxu1 %v398_v6  ;;  %v424_v6 = vld [vmem:[%s2091_s15 + $0x7b8] sm:$0xff] }
 0x121   : > { %1534 = vst [vmem:[%s2518_s27] sm:$0xff] %v1470_v9  ;;  %v1157_v15 = vadd.f32 %v1156_v5, %v772_v10  ;;  %v1161_v16 = vpop.f32.mrb[4].mxu0  ;;  %v417_v5 = vld [vmem:[%s2091_s15 + $0x780] sm:$0xff]  ;;  %v422_v9 = vld [vmem:[%s2091_s15 + $0x7a8] sm:$0xff] }
 0x122   : > { %v776_v18 = vpop.f32.mrb[4].mxu1  ;;  %v1163_v19 = vpop.f32.mrb[5].mxu0  ;;  %1425 = vmatmul.mubr.f32.gmra.mrb[110].mxu0 %v399_v12 }
 0x123   : > { %v1471_v20 = vmax.f32 %v1157_v15, 0.0  ;;  %v777_v21 = vadd.f32 %v2503_v55, %v776_v18  ;;  %v778_v22 = vpop.f32.mrb[5].mxu1  ;;  %1040 = vmatmul.mubr.f32.gmra.mrb[110].mxu1 %v397_v13  ;;  %1722 = vmatprep.mubr.msk.f32.mxu0 %vm503_vm0, %v404_v14  ;;  %v423_v15 = vld [vmem:[%s2091_s15 + $0x7b0] sm:$0xff] }
 0x124   : > { %1044 = vmatprep.mubr.f32.mxu1 %v402_v17  ;;  %v428_v17 = vld [vmem:[%s2091_s15 + $0x7d8] sm:$0xff] }
 0x125   : > { %1535 = vst [vmem:[%s2518_s27 + $0x8] sm:$0xff] %v1471_v20  ;;  %v1162_v26 = vadd.f32 %v1161_v16, %v777_v21  ;;  %v1166_v27 = vpop.f32.mrb[6].mxu0  ;;  %v421_v16 = vld [vmem:[%s2091_s15 + $0x7a0] sm:$0xff]  ;;  %v426_v20 = vld [vmem:[%s2091_s15 + $0x7c8] sm:$0xff] }
 0x126   : > { %v781_v29 = vpop.f32.mrb[6].mxu1  ;;  %v1168_v30 = vpop.f32.mrb[7].mxu0  ;;  %1430 = vmatmul.mubr.f32.gmra.mrb[112].mxu0 %v403_v23 }
 0x127   : > { %v1472_v31 = vmax.f32 %v1162_v26, 0.0  ;;  %v782_v32 = vadd.f32 %v2503_v55, %v781_v29  ;;  %v783_v33 = vpop.f32.mrb[7].mxu1  ;;  %1045 = vmatmul.mubr.f32.gmra.mrb[112].mxu1 %v401_v24  ;;  %1723 = vmatprep.mubr.msk.f32.mxu0 %vm503_vm0, %v408_v25  ;;  %v427_v26 = vld [vmem:[%s2091_s15 + $0x7d0] sm:$0xff] }
 0x128   : > { %1049 = vmatprep.mubr.f32.mxu1 %v406_v28  ;;  %v432_v28 = vld [vmem:[%s2091_s15 + $0x7f8] sm:$0xff] }
 0x129   : > { %1536 = vst [vmem:[%s2518_s27 + $0x10] sm:$0xff] %v1472_v31  ;;  %v1167_v37 = vadd.f32 %v1166_v27, %v782_v32  ;;  %v1171_v3 = vpop.f32.mrb[8].mxu0  ;;  %v425_v27 = vld [vmem:[%s2091_s15 + $0x7c0] sm:$0xff]  ;;  %v430_v31 = vld [vmem:[%s2091_s15 + $0x7e8] sm:$0xff] }
 0x12a   : > { %v786_v39 = vpop.f32.mrb[8].mxu1  ;;  %v1173_v40 = vpop.f32.mrb[9].mxu0  ;;  %1435 = vmatmul.mubr.f32.gmra.mrb[114].mxu0 %v407_v34 }
 0x12b   : > { %v1473_v41 = vmax.f32 %v1167_v37, 0.0  ;;  %v787_v42 = vadd.f32 %v2503_v55, %v786_v39  ;;  %v788_v43 = vpop.f32.mrb[9].mxu1  ;;  %1050 = vmatmul.mubr.f32.gmra.mrb[114].mxu1 %v405_v35  ;;  %1724 = vmatprep.mubr.msk.f32.mxu0 %vm503_vm0, %v412_v36  ;;  %v431_v37 = vld [vmem:[%s2091_s15 + $0x7f0] sm:$0xff] }
 0x12c   : > { %1054 = vmatprep.mubr.f32.mxu1 %v410_v38 }
 0x12d   : > { %1537 = vst [vmem:[%s2518_s27 + $0x18] sm:$0xff] %v1473_v41  ;;  %v1172_v47 = vadd.f32 %v1171_v3, %v787_v42  ;;  %v1176_v48 = vpop.f32.mrb[10].mxu0  ;;  %v429_v3 = vld [vmem:[%s2091_s15 + $0x7e0] sm:$0xff] }
 0x12e   : > { %v791_v50 = vpop.f32.mrb[10].mxu1  ;;  %v1178_v51 = vpop.f32.mrb[11].mxu0  ;;  %1440 = vmatmul.mubr.f32.gmra.mrb[116].mxu0 %v411_v44 }
 0x12f   : > { %v1474_v52 = vmax.f32 %v1172_v47, 0.0  ;;  %v792_v53 = vadd.f32 %v2503_v55, %v791_v50  ;;  %v793_v54 = vpop.f32.mrb[11].mxu1  ;;  %1055 = vmatmul.mubr.f32.gmra.mrb[116].mxu1 %v409_v45  ;;  %1725 = vmatprep.mubr.msk.f32.mxu0 %vm503_vm0, %v416_v46 }
 0x130   : > { %1059 = vmatprep.mubr.f32.mxu1 %v414_v49 }
 0x131   : > { %1538 = vst [vmem:[%s2518_s27 + $0x20] sm:$0xff] %v1474_v52  ;;  %v1177_v59 = vadd.f32 %v1176_v48, %v792_v53  ;;  %v1181_v60 = vpop.f32.mrb[12].mxu0 }
 0x132   : > { %v796_v62 = vpop.f32.mrb[12].mxu1  ;;  %v1183_v63 = vpop.f32.mrb[13].mxu0  ;;  %1445 = vmatmul.mubr.f32.gmra.mrb[118].mxu0 %v415_v56 }
 0x133   : > { %v1475_v0 = vmax.f32 %v1177_v59, 0.0  ;;  %v797_v1 = vadd.f32 %v2503_v55, %v796_v62  ;;  %v798_v2 = vpop.f32.mrb[13].mxu1  ;;  %1060 = vmatmul.mubr.f32.gmra.mrb[118].mxu1 %v413_v57  ;;  %1726 = vmatprep.mubr.msk.f32.mxu0 %vm503_vm0, %v420_v58 }
 0x134   : > { %1064 = vmatprep.mubr.f32.mxu1 %v418_v61 }
 0x135   : > { %1539 = vst [vmem:[%s2518_s27 + $0x28] sm:$0xff] %v1475_v0  ;;  %v1182_v7 = vadd.f32 %v1181_v60, %v797_v1  ;;  %v1186_v8 = vpop.f32.mrb[14].mxu0 }
 0x136   : > { %v801_v10 = vpop.f32.mrb[14].mxu1  ;;  %v1188_v11 = vpop.f32.mrb[15].mxu0  ;;  %1450 = vmatmul.mubr.f32.gmra.mrb[120].mxu0 %v419_v4 }
 0x137   : > { %v1476_v12 = vmax.f32 %v1182_v7, 0.0  ;;  %v802_v13 = vadd.f32 %v2503_v55, %v801_v10  ;;  %v803_v14 = vpop.f32.mrb[15].mxu1  ;;  %1065 = vmatmul.mubr.f32.gmra.mrb[120].mxu1 %v417_v5  ;;  %1727 = vmatprep.mubr.msk.f32.mxu0 %vm503_vm0, %v424_v6 }
 0x138   : > { %1069 = vmatprep.mubr.f32.mxu1 %v422_v9 }
 0x139   : > { %1540 = vst [vmem:[%s2518_s27 + $0x30] sm:$0xff] %v1476_v12  ;;  %v1187_v18 = vadd.f32 %v1186_v8, %v802_v13  ;;  %v1191_v19 = vpop.f32.mrb[16].mxu0 }
 0x13a   : > { %v806_v21 = vpop.f32.mrb[16].mxu1  ;;  %v1193_v22 = vpop.f32.mrb[17].mxu0  ;;  %1455 = vmatmul.mubr.f32.gmra.mrb[122].mxu0 %v423_v15 }
 0x13b   : > { %v1477_v23 = vmax.f32 %v1187_v18, 0.0  ;;  %v807_v24 = vadd.f32 %v2503_v55, %v806_v21  ;;  %v808_v25 = vpop.f32.mrb[17].mxu1  ;;  %1070 = vmatmul.mubr.f32.gmra.mrb[122].mxu1 %v421_v16  ;;  %1728 = vmatprep.mubr.msk.f32.mxu0 %vm503_vm0, %v428_v17 }
 0x13c   : > { %1074 = vmatprep.mubr.f32.mxu1 %v426_v20 }
 0x13d   : > { %1541 = vst [vmem:[%s2518_s27 + $0x38] sm:$0xff] %v1477_v23  ;;  %v1192_v29 = vadd.f32 %v1191_v19, %v807_v24  ;;  %v1196_v30 = vpop.f32.mrb[18].mxu0 }
 0x13e   : > { %v811_v32 = vpop.f32.mrb[18].mxu1  ;;  %v1198_v33 = vpop.f32.mrb[19].mxu0  ;;  %1460 = vmatmul.mubr.f32.gmra.mrb[124].mxu0 %v427_v26 }
 0x13f   : > { %v1478_v34 = vmax.f32 %v1192_v29, 0.0  ;;  %v812_v35 = vadd.f32 %v2503_v55, %v811_v32  ;;  %v813_v36 = vpop.f32.mrb[19].mxu1  ;;  %1075 = vmatmul.mubr.f32.gmra.mrb[124].mxu1 %v425_v27  ;;  %1729 = vmatprep.mubr.msk.f32.mxu0 %vm503_vm0, %v432_v28 }
 0x140   : > { %1079 = vmatprep.mubr.f32.mxu1 %v430_v31 }
 0x141   : > { %1542 = vst [vmem:[%s2518_s27 + $0x40] sm:$0xff] %v1478_v34  ;;  %v1197_v38 = vadd.f32 %v1196_v30, %v812_v35  ;;  %v1201_v39 = vpop.f32.mrb[20].mxu0 }
 0x142   : > { %v816_v40 = vpop.f32.mrb[20].mxu1  ;;  %v1203_v41 = vpop.f32.mrb[21].mxu0  ;;  %1465 = vmatmul.mubr.f32.gmra.mrb[126].mxu0 %v431_v37 }
 0x143   : > { %v1479_v42 = vmax.f32 %v1197_v38, 0.0  ;;  %v817_v43 = vadd.f32 %v2503_v55, %v816_v40  ;;  %v818_v44 = vpop.f32.mrb[21].mxu1  ;;  %1080 = vmatmul.mubr.f32.gmra.mrb[126].mxu1 %v429_v3 }
 0x145   : > { %1543 = vst [vmem:[%s2518_s27 + $0x48] sm:$0xff] %v1479_v42  ;;  %v1202_v45 = vadd.f32 %v1201_v39, %v817_v43  ;;  %v1206_v46 = vpop.f32.mrb[22].mxu0 }
 0x146   : > { %v821_v47 = vpop.f32.mrb[22].mxu1  ;;  %v1208_v48 = vpop.f32.mrb[23].mxu0 }
 0x147   : > { %v1480_v49 = vmax.f32 %v1202_v45, 0.0  ;;  %v822_v50 = vadd.f32 %v2503_v55, %v821_v47  ;;  %v823_v51 = vpop.f32.mrb[23].mxu1 }
 0x149   : > { %1544 = vst [vmem:[%s2518_s27 + $0x50] sm:$0xff] %v1480_v49  ;;  %v1207_v52 = vadd.f32 %v1206_v46, %v822_v50  ;;  %v1211_v53 = vpop.f32.mrb[24].mxu0 }
 0x14a   : > { %v826_v54 = vpop.f32.mrb[24].mxu1  ;;  %v1213_v56 = vpop.f32.mrb[25].mxu0 }
 0x14b   : > { %v1481_v57 = vmax.f32 %v1207_v52, 0.0  ;;  %v827_v58 = vadd.f32 %v2503_v55, %v826_v54  ;;  %v828_v59 = vpop.f32.mrb[25].mxu1 }
 0x14d   : > { %1545 = vst [vmem:[%s2518_s27 + $0x58] sm:$0xff] %v1481_v57  ;;  %v1212_v60 = vadd.f32 %v1211_v53, %v827_v58  ;;  %v1216_v61 = vpop.f32.mrb[26].mxu0 }
 0x14e   : > { %v831_v62 = vpop.f32.mrb[26].mxu1  ;;  %v1218_v63 = vpop.f32.mrb[27].mxu0 }
 0x14f   : > { %v1482_v0 = vmax.f32 %v1212_v60, 0.0  ;;  %v832_v1 = vadd.f32 %v2503_v55, %v831_v62  ;;  %v833_v2 = vpop.f32.mrb[27].mxu1 }
 0x151   : > { %1546 = vst [vmem:[%s2518_s27 + $0x60] sm:$0xff] %v1482_v0  ;;  %v1217_v4 = vadd.f32 %v1216_v61, %v832_v1  ;;  %v1221_v5 = vpop.f32.mrb[28].mxu0 }
 0x152   : > { %v836_v6 = vpop.f32.mrb[28].mxu1  ;;  %v1223_v7 = vpop.f32.mrb[29].mxu0 }
 0x153   : > { %v1483_v8 = vmax.f32 %v1217_v4, 0.0  ;;  %v837_v9 = vadd.f32 %v2503_v55, %v836_v6  ;;  %v838_v10 = vpop.f32.mrb[29].mxu1 }
 0x155   : > { %1547 = vst [vmem:[%s2518_s27 + $0x68] sm:$0xff] %v1483_v8  ;;  %v1222_v11 = vadd.f32 %v1221_v5, %v837_v9  ;;  %v1226_v12 = vpop.f32.mrb[30].mxu0 }
 0x156   : > { %v841_v13 = vpop.f32.mrb[30].mxu1  ;;  %v1228_v14 = vpop.f32.mrb[31].mxu0 }
 0x157   : > { %v1484_v15 = vmax.f32 %v1222_v11, 0.0  ;;  %v842_v16 = vadd.f32 %v2503_v55, %v841_v13  ;;  %v843_v17 = vpop.f32.mrb[31].mxu1 }
 0x159   : > { %1548 = vst [vmem:[%s2518_s27 + $0x70] sm:$0xff] %v1484_v15  ;;  %v1227_v18 = vadd.f32 %v1226_v12, %v842_v16  ;;  %v1231_v19 = vpop.f32.mrb[32].mxu0 }
 0x15a   : > { %v846_v20 = vpop.f32.mrb[32].mxu1  ;;  %v1233_v21 = vpop.f32.mrb[33].mxu0 }
 0x15b   : > { %v1485_v22 = vmax.f32 %v1227_v18, 0.0  ;;  %v847_v23 = vadd.f32 %v2503_v55, %v846_v20  ;;  %v848_v24 = vpop.f32.mrb[33].mxu1 }
 0x15d   : > { %1549 = vst [vmem:[%s2518_s27 + $0x78] sm:$0xff] %v1485_v22  ;;  %v1232_v25 = vadd.f32 %v1231_v19, %v847_v23  ;;  %v1236_v26 = vpop.f32.mrb[34].mxu0 }
 0x15e   : > { %v851_v27 = vpop.f32.mrb[34].mxu1  ;;  %v1238_v28 = vpop.f32.mrb[35].mxu0 }
 0x15f   : > { %v1486_v29 = vmax.f32 %v1232_v25, 0.0  ;;  %v852_v30 = vadd.f32 %v2503_v55, %v851_v27  ;;  %v853_v31 = vpop.f32.mrb[35].mxu1 }
 0x161   : > { %1550 = vst [vmem:[%s2518_s27 + $0x80] sm:$0xff] %v1486_v29  ;;  %v1237_v32 = vadd.f32 %v1236_v26, %v852_v30  ;;  %v1241_v33 = vpop.f32.mrb[36].mxu0 }
 0x162   : > { %v856_v34 = vpop.f32.mrb[36].mxu1  ;;  %v1243_v35 = vpop.f32.mrb[37].mxu0 }
 0x163   : > { %v1487_v36 = vmax.f32 %v1237_v32, 0.0  ;;  %v857_v37 = vadd.f32 %v2503_v55, %v856_v34  ;;  %v858_v3 = vpop.f32.mrb[37].mxu1 }
 0x165   : > { %1551 = vst [vmem:[%s2518_s27 + $0x88] sm:$0xff] %v1487_v36  ;;  %v1242_v38 = vadd.f32 %v1241_v33, %v857_v37  ;;  %v1246_v39 = vpop.f32.mrb[38].mxu0 }
 0x166   : > { %v861_v40 = vpop.f32.mrb[38].mxu1  ;;  %v1248_v41 = vpop.f32.mrb[39].mxu0 }
 0x167   : > { %v1488_v42 = vmax.f32 %v1242_v38, 0.0  ;;  %v862_v43 = vadd.f32 %v2503_v55, %v861_v40  ;;  %v863_v44 = vpop.f32.mrb[39].mxu1 }
 0x169   : > { %1552 = vst [vmem:[%s2518_s27 + $0x90] sm:$0xff] %v1488_v42  ;;  %v1247_v45 = vadd.f32 %v1246_v39, %v862_v43  ;;  %v1251_v46 = vpop.f32.mrb[40].mxu0 }
 0x16a   : > { %v866_v47 = vpop.f32.mrb[40].mxu1  ;;  %v1253_v48 = vpop.f32.mrb[41].mxu0 }
 0x16b   : > { %v1489_v49 = vmax.f32 %v1247_v45, 0.0  ;;  %v867_v50 = vadd.f32 %v2503_v55, %v866_v47  ;;  %v868_v51 = vpop.f32.mrb[41].mxu1 }
 0x16d   : > { %1553 = vst [vmem:[%s2518_s27 + $0x98] sm:$0xff] %v1489_v49  ;;  %v1252_v52 = vadd.f32 %v1251_v46, %v867_v50  ;;  %v1256_v53 = vpop.f32.mrb[42].mxu0 }
 0x16e   : > { %v871_v54 = vpop.f32.mrb[42].mxu1  ;;  %v1258_v56 = vpop.f32.mrb[43].mxu0 }
 0x16f   : > { %v1490_v57 = vmax.f32 %v1252_v52, 0.0  ;;  %v872_v58 = vadd.f32 %v2503_v55, %v871_v54  ;;  %v873_v59 = vpop.f32.mrb[43].mxu1 }
 0x171   : > { %1554 = vst [vmem:[%s2518_s27 + $0xa0] sm:$0xff] %v1490_v57  ;;  %v1257_v60 = vadd.f32 %v1256_v53, %v872_v58  ;;  %v1261_v61 = vpop.f32.mrb[44].mxu0 }
 0x172   : > { %v876_v62 = vpop.f32.mrb[44].mxu1  ;;  %v1263_v63 = vpop.f32.mrb[45].mxu0 }
 0x173   : > { %v1491_v0 = vmax.f32 %v1257_v60, 0.0  ;;  %v877_v1 = vadd.f32 %v2503_v55, %v876_v62  ;;  %v878_v2 = vpop.f32.mrb[45].mxu1 }
 0x175   : > { %1555 = vst [vmem:[%s2518_s27 + $0xa8] sm:$0xff] %v1491_v0  ;;  %v1262_v4 = vadd.f32 %v1261_v61, %v877_v1  ;;  %v1266_v5 = vpop.f32.mrb[46].mxu0 }
 0x176   : > { %v881_v6 = vpop.f32.mrb[46].mxu1  ;;  %v1268_v7 = vpop.f32.mrb[47].mxu0 }
 0x177   : > { %v1492_v8 = vmax.f32 %v1262_v4, 0.0  ;;  %v882_v9 = vadd.f32 %v2503_v55, %v881_v6  ;;  %v883_v10 = vpop.f32.mrb[47].mxu1 }
 0x179   : > { %1556 = vst [vmem:[%s2518_s27 + $0xb0] sm:$0xff] %v1492_v8  ;;  %v1267_v11 = vadd.f32 %v1266_v5, %v882_v9  ;;  %v1271_v12 = vpop.f32.mrb[48].mxu0 }
 0x17a   : > { %v886_v13 = vpop.f32.mrb[48].mxu1  ;;  %v1273_v14 = vpop.f32.mrb[49].mxu0 }
 0x17b   : > { %v1493_v15 = vmax.f32 %v1267_v11, 0.0  ;;  %v887_v16 = vadd.f32 %v2503_v55, %v886_v13  ;;  %v888_v17 = vpop.f32.mrb[49].mxu1 }
 0x17d   : > { %1557 = vst [vmem:[%s2518_s27 + $0xb8] sm:$0xff] %v1493_v15  ;;  %v1272_v18 = vadd.f32 %v1271_v12, %v887_v16  ;;  %v1276_v19 = vpop.f32.mrb[50].mxu0 }
 0x17e   : > { %v891_v20 = vpop.f32.mrb[50].mxu1  ;;  %v1278_v21 = vpop.f32.mrb[51].mxu0 }
 0x17f   : > { %v1494_v22 = vmax.f32 %v1272_v18, 0.0  ;;  %v892_v23 = vadd.f32 %v2503_v55, %v891_v20  ;;  %v893_v24 = vpop.f32.mrb[51].mxu1 }
 0x181   : > { %1558 = vst [vmem:[%s2518_s27 + $0xc0] sm:$0xff] %v1494_v22  ;;  %v1277_v25 = vadd.f32 %v1276_v19, %v892_v23  ;;  %v1281_v26 = vpop.f32.mrb[52].mxu0 }
 0x182   : > { %v896_v27 = vpop.f32.mrb[52].mxu1  ;;  %v1283_v28 = vpop.f32.mrb[53].mxu0 }
 0x183   : > { %v1495_v29 = vmax.f32 %v1277_v25, 0.0  ;;  %v897_v30 = vadd.f32 %v2503_v55, %v896_v27  ;;  %v898_v31 = vpop.f32.mrb[53].mxu1 }
 0x185   : > { %1559 = vst [vmem:[%s2518_s27 + $0xc8] sm:$0xff] %v1495_v29  ;;  %v1282_v32 = vadd.f32 %v1281_v26, %v897_v30  ;;  %v1286_v33 = vpop.f32.mrb[54].mxu0 }
 0x186   : > { %v901_v34 = vpop.f32.mrb[54].mxu1  ;;  %v1288_v35 = vpop.f32.mrb[55].mxu0 }
 0x187   : > { %v1496_v36 = vmax.f32 %v1282_v32, 0.0  ;;  %v902_v37 = vadd.f32 %v2503_v55, %v901_v34  ;;  %v903_v3 = vpop.f32.mrb[55].mxu1 }
 0x189   : > { %1560 = vst [vmem:[%s2518_s27 + $0xd0] sm:$0xff] %v1496_v36  ;;  %v1287_v38 = vadd.f32 %v1286_v33, %v902_v37  ;;  %v1291_v39 = vpop.f32.mrb[56].mxu0 }
 0x18a   : > { %v906_v40 = vpop.f32.mrb[56].mxu1  ;;  %v1293_v41 = vpop.f32.mrb[57].mxu0 }
 0x18b   : > { %v1497_v42 = vmax.f32 %v1287_v38, 0.0  ;;  %v907_v43 = vadd.f32 %v2503_v55, %v906_v40  ;;  %v908_v44 = vpop.f32.mrb[57].mxu1 }
 0x18d   : > { %1561 = vst [vmem:[%s2518_s27 + $0xd8] sm:$0xff] %v1497_v42  ;;  %v1292_v45 = vadd.f32 %v1291_v39, %v907_v43  ;;  %v1296_v46 = vpop.f32.mrb[58].mxu0 }
 0x18e   : > { %v911_v47 = vpop.f32.mrb[58].mxu1  ;;  %v1298_v48 = vpop.f32.mrb[59].mxu0 }
 0x18f   : > { %v1498_v49 = vmax.f32 %v1292_v45, 0.0  ;;  %v912_v50 = vadd.f32 %v2503_v55, %v911_v47  ;;  %v913_v51 = vpop.f32.mrb[59].mxu1 }
 0x191   : > { %1562 = vst [vmem:[%s2518_s27 + $0xe0] sm:$0xff] %v1498_v49  ;;  %v1297_v52 = vadd.f32 %v1296_v46, %v912_v50  ;;  %v1301_v53 = vpop.f32.mrb[60].mxu0 }
 0x192   : > { %v916_v54 = vpop.f32.mrb[60].mxu1  ;;  %v1303_v56 = vpop.f32.mrb[61].mxu0 }
 0x193   : > { %v1499_v57 = vmax.f32 %v1297_v52, 0.0  ;;  %v917_v58 = vadd.f32 %v2503_v55, %v916_v54  ;;  %v918_v59 = vpop.f32.mrb[61].mxu1 }
 0x195   : > { %1563 = vst [vmem:[%s2518_s27 + $0xe8] sm:$0xff] %v1499_v57  ;;  %v1302_v60 = vadd.f32 %v1301_v53, %v917_v58  ;;  %v1306_v61 = vpop.f32.mrb[62].mxu0 }
 0x196   : > { %v921_v62 = vpop.f32.mrb[62].mxu1  ;;  %v1308_v63 = vpop.f32.mrb[63].mxu0 }
 0x197   : > { %v1500_v0 = vmax.f32 %v1302_v60, 0.0  ;;  %v922_v1 = vadd.f32 %v2503_v55, %v921_v62  ;;  %v923_v2 = vpop.f32.mrb[63].mxu1 }
 0x199   : > { %1564 = vst [vmem:[%s2518_s27 + $0xf0] sm:$0xff] %v1500_v0  ;;  %v1307_v4 = vadd.f32 %v1306_v61, %v922_v1  ;;  %v1311_v5 = vpop.f32.mrb[64].mxu0 }
 0x19a   : > { %v926_v6 = vpop.f32.mrb[64].mxu1  ;;  %v1313_v7 = vpop.f32.mrb[65].mxu0 }
 0x19b   : > { %v1501_v8 = vmax.f32 %v1307_v4, 0.0  ;;  %v927_v9 = vadd.f32 %v2503_v55, %v926_v6  ;;  %v928_v10 = vpop.f32.mrb[65].mxu1 }
 0x19d   : > { %1565 = vst [vmem:[%s2518_s27 + $0xf8] sm:$0xff] %v1501_v8  ;;  %v1312_v11 = vadd.f32 %v1311_v5, %v927_v9  ;;  %v1316_v12 = vpop.f32.mrb[66].mxu0 }
 0x19e   : > { %v931_v13 = vpop.f32.mrb[66].mxu1  ;;  %v1318_v14 = vpop.f32.mrb[67].mxu0 }
 0x19f   : > { %v1502_v15 = vmax.f32 %v1312_v11, 0.0  ;;  %v932_v16 = vadd.f32 %v2503_v55, %v931_v13  ;;  %v933_v17 = vpop.f32.mrb[67].mxu1 }
 0x1a1   : > { %1566 = vst [vmem:[%s2518_s27 + $0x100] sm:$0xff] %v1502_v15  ;;  %v1317_v18 = vadd.f32 %v1316_v12, %v932_v16  ;;  %v1321_v19 = vpop.f32.mrb[68].mxu0 }
 0x1a2   : > { %v936_v20 = vpop.f32.mrb[68].mxu1  ;;  %v1323_v21 = vpop.f32.mrb[69].mxu0 }
 0x1a3   : > { %v1503_v22 = vmax.f32 %v1317_v18, 0.0  ;;  %v937_v23 = vadd.f32 %v2503_v55, %v936_v20  ;;  %v938_v24 = vpop.f32.mrb[69].mxu1 }
 0x1a5   : > { %1567 = vst [vmem:[%s2518_s27 + $0x108] sm:$0xff] %v1503_v22  ;;  %v1322_v25 = vadd.f32 %v1321_v19, %v937_v23  ;;  %v1326_v26 = vpop.f32.mrb[70].mxu0 }
 0x1a6   : > { %v941_v27 = vpop.f32.mrb[70].mxu1  ;;  %v1328_v28 = vpop.f32.mrb[71].mxu0 }
 0x1a7   : > { %v1504_v29 = vmax.f32 %v1322_v25, 0.0  ;;  %v942_v30 = vadd.f32 %v2503_v55, %v941_v27  ;;  %v943_v31 = vpop.f32.mrb[71].mxu1 }
 0x1a9   : > { %1568 = vst [vmem:[%s2518_s27 + $0x110] sm:$0xff] %v1504_v29  ;;  %v1327_v32 = vadd.f32 %v1326_v26, %v942_v30  ;;  %v1331_v33 = vpop.f32.mrb[72].mxu0 }
 0x1aa   : > { %v946_v34 = vpop.f32.mrb[72].mxu1  ;;  %v1333_v35 = vpop.f32.mrb[73].mxu0 }
 0x1ab   : > { %v1505_v36 = vmax.f32 %v1327_v32, 0.0  ;;  %v947_v37 = vadd.f32 %v2503_v55, %v946_v34  ;;  %v948_v3 = vpop.f32.mrb[73].mxu1 }
 0x1ad   : > { %1569 = vst [vmem:[%s2518_s27 + $0x118] sm:$0xff] %v1505_v36  ;;  %v1332_v38 = vadd.f32 %v1331_v33, %v947_v37  ;;  %v1336_v39 = vpop.f32.mrb[74].mxu0 }
 0x1ae   : > { %v951_v40 = vpop.f32.mrb[74].mxu1  ;;  %v1338_v41 = vpop.f32.mrb[75].mxu0 }
 0x1af   : > { %v1506_v42 = vmax.f32 %v1332_v38, 0.0  ;;  %v952_v43 = vadd.f32 %v2503_v55, %v951_v40  ;;  %v953_v44 = vpop.f32.mrb[75].mxu1 }
 0x1b1   : > { %1570 = vst [vmem:[%s2518_s27 + $0x120] sm:$0xff] %v1506_v42  ;;  %v1337_v45 = vadd.f32 %v1336_v39, %v952_v43  ;;  %v1341_v46 = vpop.f32.mrb[76].mxu0 }
 0x1b2   : > { %v956_v47 = vpop.f32.mrb[76].mxu1  ;;  %v1343_v48 = vpop.f32.mrb[77].mxu0 }
 0x1b3   : > { %v1507_v49 = vmax.f32 %v1337_v45, 0.0  ;;  %v957_v50 = vadd.f32 %v2503_v55, %v956_v47  ;;  %v958_v51 = vpop.f32.mrb[77].mxu1 }
 0x1b5   : > { %1571 = vst [vmem:[%s2518_s27 + $0x128] sm:$0xff] %v1507_v49  ;;  %v1342_v52 = vadd.f32 %v1341_v46, %v957_v50  ;;  %v1346_v53 = vpop.f32.mrb[78].mxu0 }
 0x1b6   : > { %v961_v54 = vpop.f32.mrb[78].mxu1  ;;  %v1348_v56 = vpop.f32.mrb[79].mxu0 }
 0x1b7   : > { %v1508_v57 = vmax.f32 %v1342_v52, 0.0  ;;  %v962_v58 = vadd.f32 %v2503_v55, %v961_v54  ;;  %v963_v59 = vpop.f32.mrb[79].mxu1 }
 0x1b9   : > { %1572 = vst [vmem:[%s2518_s27 + $0x130] sm:$0xff] %v1508_v57  ;;  %v1347_v60 = vadd.f32 %v1346_v53, %v962_v58  ;;  %v1351_v61 = vpop.f32.mrb[80].mxu0 }
 0x1ba   : > { %v966_v62 = vpop.f32.mrb[80].mxu1  ;;  %v1353_v63 = vpop.f32.mrb[81].mxu0 }
 0x1bb   : > { %v1509_v0 = vmax.f32 %v1347_v60, 0.0  ;;  %v967_v1 = vadd.f32 %v2503_v55, %v966_v62  ;;  %v968_v2 = vpop.f32.mrb[81].mxu1 }
 0x1bd   : > { %1573 = vst [vmem:[%s2518_s27 + $0x138] sm:$0xff] %v1509_v0  ;;  %v1352_v4 = vadd.f32 %v1351_v61, %v967_v1  ;;  %v1356_v5 = vpop.f32.mrb[82].mxu0 }
 0x1be   : > { %v971_v6 = vpop.f32.mrb[82].mxu1  ;;  %v1358_v7 = vpop.f32.mrb[83].mxu0 }
 0x1bf   : > { %v1510_v8 = vmax.f32 %v1352_v4, 0.0  ;;  %v972_v9 = vadd.f32 %v2503_v55, %v971_v6  ;;  %v973_v10 = vpop.f32.mrb[83].mxu1 }
 0x1c1   : > { %1574 = vst [vmem:[%s2518_s27 + $0x140] sm:$0xff] %v1510_v8  ;;  %v1357_v11 = vadd.f32 %v1356_v5, %v972_v9  ;;  %v1361_v12 = vpop.f32.mrb[84].mxu0 }
 0x1c2   : > { %v976_v13 = vpop.f32.mrb[84].mxu1  ;;  %v1363_v14 = vpop.f32.mrb[85].mxu0 }
 0x1c3   : > { %v1511_v15 = vmax.f32 %v1357_v11, 0.0  ;;  %v977_v16 = vadd.f32 %v2503_v55, %v976_v13  ;;  %v978_v17 = vpop.f32.mrb[85].mxu1 }
 0x1c5   : > { %1575 = vst [vmem:[%s2518_s27 + $0x148] sm:$0xff] %v1511_v15  ;;  %v1362_v18 = vadd.f32 %v1361_v12, %v977_v16  ;;  %v1366_v19 = vpop.f32.mrb[86].mxu0 }
 0x1c6   : > { %v981_v20 = vpop.f32.mrb[86].mxu1  ;;  %v1368_v21 = vpop.f32.mrb[87].mxu0 }
 0x1c7   : > { %v1512_v22 = vmax.f32 %v1362_v18, 0.0  ;;  %v982_v23 = vadd.f32 %v2503_v55, %v981_v20  ;;  %v983_v24 = vpop.f32.mrb[87].mxu1 }
 0x1c9   : > { %1576 = vst [vmem:[%s2518_s27 + $0x150] sm:$0xff] %v1512_v22  ;;  %v1367_v25 = vadd.f32 %v1366_v19, %v982_v23  ;;  %v1371_v26 = vpop.f32.mrb[88].mxu0 }
 0x1ca   : > { %v986_v27 = vpop.f32.mrb[88].mxu1  ;;  %v1373_v28 = vpop.f32.mrb[89].mxu0 }
 0x1cb   : > { %v1513_v29 = vmax.f32 %v1367_v25, 0.0  ;;  %v987_v30 = vadd.f32 %v2503_v55, %v986_v27  ;;  %v988_v31 = vpop.f32.mrb[89].mxu1 }
 0x1cd   : > { %1577 = vst [vmem:[%s2518_s27 + $0x158] sm:$0xff] %v1513_v29  ;;  %v1372_v32 = vadd.f32 %v1371_v26, %v987_v30  ;;  %v1376_v33 = vpop.f32.mrb[90].mxu0  ;;  %v2670_v30 = vld [vmem:[%s2700_s2] ss:$0 sm:$0xff] }
 0x1ce   : > { %v991_v34 = vpop.f32.mrb[90].mxu1  ;;  %v1378_v35 = vpop.f32.mrb[91].mxu0 }
 0x1cf   : > { %v1514_v36 = vmax.f32 %v1372_v32, 0.0  ;;  %v992_v37 = vadd.f32 %v2503_v55, %v991_v34  ;;  %v993_v3 = vpop.f32.mrb[91].mxu1 }
 0x1d1   : > { %1578 = vst [vmem:[%s2518_s27 + $0x160] sm:$0xff] %v1514_v36  ;;  %v1377_v38 = vadd.f32 %v1376_v33, %v992_v37  ;;  %v1381_v39 = vpop.f32.mrb[92].mxu0 }
 0x1d2   : > { %v996_v40 = vpop.f32.mrb[92].mxu1  ;;  %v1383_v41 = vpop.f32.mrb[93].mxu0 }
 0x1d3   : > { %v1515_v42 = vmax.f32 %v1377_v38, 0.0  ;;  %v997_v43 = vadd.f32 %v2503_v55, %v996_v40  ;;  %v998_v44 = vpop.f32.mrb[93].mxu1 }
 0x1d5   : > { %1579 = vst [vmem:[%s2518_s27 + $0x168] sm:$0xff] %v1515_v42  ;;  %v1382_v45 = vadd.f32 %v1381_v39, %v997_v43  ;;  %v1386_v46 = vpop.f32.mrb[94].mxu0 }
 0x1d6   : > { %v1001_v47 = vpop.f32.mrb[94].mxu1  ;;  %v1388_v48 = vpop.f32.mrb[95].mxu0 }
 0x1d7   : > { %v1516_v49 = vmax.f32 %v1382_v45, 0.0  ;;  %v1002_v50 = vadd.f32 %v2503_v55, %v1001_v47  ;;  %v1003_v51 = vpop.f32.mrb[95].mxu1 }
 0x1d9   : > { %1580 = vst [vmem:[%s2518_s27 + $0x170] sm:$0xff] %v1516_v49  ;;  %v1387_v52 = vadd.f32 %v1386_v46, %v1002_v50  ;;  %v1391_v53 = vpop.f32.mrb[96].mxu0 }
 0x1da   : > { %v1006_v54 = vpop.f32.mrb[96].mxu1  ;;  %v1393_v56 = vpop.f32.mrb[97].mxu0 }
 0x1db   : > { %v1517_v57 = vmax.f32 %v1387_v52, 0.0  ;;  %v1007_v58 = vadd.f32 %v2503_v55, %v1006_v54  ;;  %v1008_v59 = vpop.f32.mrb[97].mxu1 }
 0x1dd   : > { %1581 = vst [vmem:[%s2518_s27 + $0x178] sm:$0xff] %v1517_v57  ;;  %v1392_v60 = vadd.f32 %v1391_v53, %v1007_v58  ;;  %v1396_v61 = vpop.f32.mrb[98].mxu0 }
 0x1de   : > { %v1011_v62 = vpop.f32.mrb[98].mxu1  ;;  %v1398_v63 = vpop.f32.mrb[99].mxu0 }
 0x1df   : > { %v1518_v0 = vmax.f32 %v1392_v60, 0.0  ;;  %v1012_v1 = vadd.f32 %v2503_v55, %v1011_v62  ;;  %v1013_v2 = vpop.f32.mrb[99].mxu1 }
 0x1e1   : > { %1582 = vst [vmem:[%s2518_s27 + $0x180] sm:$0xff] %v1518_v0  ;;  %v1397_v4 = vadd.f32 %v1396_v61, %v1012_v1  ;;  %v1401_v5 = vpop.f32.mrb[100].mxu0 }
 0x1e2   : > { %v1016_v6 = vpop.f32.mrb[100].mxu1  ;;  %v1403_v7 = vpop.f32.mrb[101].mxu0 }
 0x1e3   : > { %v1519_v8 = vmax.f32 %v1397_v4, 0.0  ;;  %v1017_v9 = vadd.f32 %v2503_v55, %v1016_v6  ;;  %v1018_v10 = vpop.f32.mrb[101].mxu1 }
 0x1e5   : > { %1583 = vst [vmem:[%s2518_s27 + $0x188] sm:$0xff] %v1519_v8  ;;  %v1402_v11 = vadd.f32 %v1401_v5, %v1017_v9  ;;  %v1406_v12 = vpop.f32.mrb[102].mxu0 }
 0x1e6   : > { %v1021_v13 = vpop.f32.mrb[102].mxu1  ;;  %v1408_v14 = vpop.f32.mrb[103].mxu0 }
 0x1e7   : > { %v1520_v15 = vmax.f32 %v1402_v11, 0.0  ;;  %v1022_v16 = vadd.f32 %v2503_v55, %v1021_v13  ;;  %v1023_v17 = vpop.f32.mrb[103].mxu1 }
 0x1e9   : > { %1584 = vst [vmem:[%s2518_s27 + $0x190] sm:$0xff] %v1520_v15  ;;  %v1407_v18 = vadd.f32 %v1406_v12, %v1022_v16  ;;  %v1411_v19 = vpop.f32.mrb[104].mxu0 }
 0x1ea   : > { %v1026_v20 = vpop.f32.mrb[104].mxu1  ;;  %v1413_v21 = vpop.f32.mrb[105].mxu0 }
 0x1eb   : > { %v1521_v22 = vmax.f32 %v1407_v18, 0.0  ;;  %v1027_v23 = vadd.f32 %v2503_v55, %v1026_v20  ;;  %v1028_v24 = vpop.f32.mrb[105].mxu1 }
 0x1ed   : > { %1585 = vst [vmem:[%s2518_s27 + $0x198] sm:$0xff] %v1521_v22  ;;  %v1412_v25 = vadd.f32 %v1411_v19, %v1027_v23  ;;  %v1416_v26 = vpop.f32.mrb[106].mxu0 }
 0x1ee   : > { %v1031_v27 = vpop.f32.mrb[106].mxu1  ;;  %v1418_v28 = vpop.f32.mrb[107].mxu0 }
 0x1ef   : > { %v1522_v29 = vmax.f32 %v1412_v25, 0.0  ;;  %v1032_v31 = vadd.f32 %v2670_v30, %v1031_v27  ;;  %v1033_v32 = vpop.f32.mrb[107].mxu1 }
 0x1f1   : > { %1586 = vst [vmem:[%s2518_s27 + $0x1a0] sm:$0xff] %v1522_v29  ;;  %v1417_v33 = vadd.f32 %v1416_v26, %v1032_v31  ;;  %v1421_v55 = vpop.f32.mrb[108].mxu0 }
 0x1f2   : > { %v1036_v34 = vpop.f32.mrb[108].mxu1  ;;  %v1423_v35 = vpop.f32.mrb[109].mxu0 }
 0x1f3   : > { %v1523_v36 = vmax.f32 %v1417_v33, 0.0  ;;  %v1037_v37 = vadd.f32 %v2670_v30, %v1036_v34  ;;  %v1038_v3 = vpop.f32.mrb[109].mxu1 }
 0x1f5   : > { %1587 = vst [vmem:[%s2518_s27 + $0x1a8] sm:$0xff] %v1523_v36  ;;  %v1422_v38 = vadd.f32 %v1421_v55, %v1037_v37  ;;  %v1426_v39 = vpop.f32.mrb[110].mxu0 }
 0x1f6   : > { %v1041_v40 = vpop.f32.mrb[110].mxu1  ;;  %v1428_v41 = vpop.f32.mrb[111].mxu0 }
 0x1f7   : > { %v1524_v42 = vmax.f32 %v1422_v38, 0.0  ;;  %v1042_v43 = vadd.f32 %v2670_v30, %v1041_v40  ;;  %v1043_v44 = vpop.f32.mrb[111].mxu1 }
 0x1f9   : > { %1588 = vst [vmem:[%s2518_s27 + $0x1b0] sm:$0xff] %v1524_v42  ;;  %v1427_v45 = vadd.f32 %v1426_v39, %v1042_v43  ;;  %v1431_v46 = vpop.f32.mrb[112].mxu0 }
 0x1fa   : > { %v1046_v47 = vpop.f32.mrb[112].mxu1  ;;  %v1433_v48 = vpop.f32.mrb[113].mxu0 }
 0x1fb   : > { %v1525_v49 = vmax.f32 %v1427_v45, 0.0  ;;  %v1047_v50 = vadd.f32 %v2670_v30, %v1046_v47  ;;  %v1048_v51 = vpop.f32.mrb[113].mxu1 }
 0x1fd   : > { %1589 = vst [vmem:[%s2518_s27 + $0x1b8] sm:$0xff] %v1525_v49  ;;  %v1432_v52 = vadd.f32 %v1431_v46, %v1047_v50  ;;  %v1436_v53 = vpop.f32.mrb[114].mxu0 }
 0x1fe   : > { %v1051_v54 = vpop.f32.mrb[114].mxu1  ;;  %v1438_v56 = vpop.f32.mrb[115].mxu0 }
 0x1ff   : > { %v1526_v57 = vmax.f32 %v1432_v52, 0.0  ;;  %v1052_v58 = vadd.f32 %v2670_v30, %v1051_v54  ;;  %v1053_v59 = vpop.f32.mrb[115].mxu1 }
 0x201   : > { %1590 = vst [vmem:[%s2518_s27 + $0x1c0] sm:$0xff] %v1526_v57  ;;  %v1437_v60 = vadd.f32 %v1436_v53, %v1052_v58  ;;  %v1441_v61 = vpop.f32.mrb[116].mxu0 }
 0x202   : > { %v1056_v62 = vpop.f32.mrb[116].mxu1  ;;  %v1443_v63 = vpop.f32.mrb[117].mxu0 }
 0x203   : > { %v1527_v0 = vmax.f32 %v1437_v60, 0.0  ;;  %v1057_v1 = vadd.f32 %v2670_v30, %v1056_v62  ;;  %v1058_v2 = vpop.f32.mrb[117].mxu1 }
 0x205   : > { %1591 = vst [vmem:[%s2518_s27 + $0x1c8] sm:$0xff] %v1527_v0  ;;  %v1442_v4 = vadd.f32 %v1441_v61, %v1057_v1  ;;  %v1446_v5 = vpop.f32.mrb[118].mxu0 }
 0x206   : > { %v1061_v6 = vpop.f32.mrb[118].mxu1  ;;  %v1448_v7 = vpop.f32.mrb[119].mxu0 }
 0x207   : > { %v1528_v8 = vmax.f32 %v1442_v4, 0.0  ;;  %v1062_v9 = vadd.f32 %v2670_v30, %v1061_v6  ;;  %v1063_v10 = vpop.f32.mrb[119].mxu1 }
 0x209   : > { %1592 = vst [vmem:[%s2518_s27 + $0x1d0] sm:$0xff] %v1528_v8  ;;  %v1447_v11 = vadd.f32 %v1446_v5, %v1062_v9  ;;  %v1451_v12 = vpop.f32.mrb[120].mxu0 }
 0x20a   : > { %v1066_v13 = vpop.f32.mrb[120].mxu1  ;;  %v1453_v14 = vpop.f32.mrb[121].mxu0 }
 0x20b   : > { %v1529_v15 = vmax.f32 %v1447_v11, 0.0  ;;  %v1067_v16 = vadd.f32 %v2670_v30, %v1066_v13  ;;  %v1068_v17 = vpop.f32.mrb[121].mxu1 }
 0x20d   : > { %1593 = vst [vmem:[%s2518_s27 + $0x1d8] sm:$0xff] %v1529_v15  ;;  %v1452_v18 = vadd.f32 %v1451_v12, %v1067_v16  ;;  %v1456_v19 = vpop.f32.mrb[122].mxu0 }
 0x20e   : > { %v1071_v20 = vpop.f32.mrb[122].mxu1  ;;  %v1458_v21 = vpop.f32.mrb[123].mxu0 }
 0x20f   : > { %v1530_v22 = vmax.f32 %v1452_v18, 0.0  ;;  %v1072_v23 = vadd.f32 %v2670_v30, %v1071_v20  ;;  %v1073_v24 = vpop.f32.mrb[123].mxu1 }
 0x211   : > { %1594 = vst [vmem:[%s2518_s27 + $0x1e0] sm:$0xff] %v1530_v22  ;;  %v1457_v25 = vadd.f32 %v1456_v19, %v1072_v23  ;;  %v1461_v26 = vpop.f32.mrb[124].mxu0 }
 0x212   : > { %v1076_v27 = vpop.f32.mrb[124].mxu1  ;;  %v1463_v28 = vpop.f32.mrb[125].mxu0 }
 0x213   : > { %v1531_v29 = vmax.f32 %v1457_v25, 0.0  ;;  %v1077_v31 = vadd.f32 %v2670_v30, %v1076_v27  ;;  %v1078_v32 = vpop.f32.mrb[125].mxu1 }
 0x215   : > { %1595 = vst [vmem:[%s2518_s27 + $0x1e8] sm:$0xff] %v1531_v29  ;;  %v1462_v33 = vadd.f32 %v1461_v26, %v1077_v31  ;;  %v1466_v55 = vpop.f32.mrb[126].mxu0 }
 0x216   : > { %v1081_v34 = vpop.f32.mrb[126].mxu1  ;;  %v1468_v35 = vpop.f32.mrb[127].mxu0 }
 0x217   : > { %v1532_v36 = vmax.f32 %v1462_v33, 0.0  ;;  %v1082_v37 = vadd.f32 %v2670_v30, %v1081_v34  ;;  %v1083_v3 = vpop.f32.mrb[127].mxu1 }
 0x219   : > { %1596 = vst [vmem:[%s2518_s27 + $0x1f0] sm:$0xff] %v1532_v36  ;;  %v1467_v38 = vadd.f32 %v1466_v55, %v1082_v37 }
 0x21b   : > { %v1533_v39 = vmax.f32 %v1467_v38, 0.0 }
 0x21d   : > { %1597 = vst [vmem:[%s2518_s27 + $0x1f8] sm:$0xff] %v1533_v39 }
 0x21e PF: > { %s13_s12 = sadd.s32 1, %s1971_s12  }
 0x21f   : > { %p10_p4 = scmp.ge.s32.totalorder %s13_s12, 4  }
 0x221   :  { %12 = sbr.rel (!%p10_p4) target bundleno = 1 (0x1), region = 62 }

// kernel: gpt_forward.5
= control target key start
LH: loop header
LB: loop body
LE: loop exit
PB: predicated region body
PF: predicated region fallthrough
CT: control target
= control target key end

     0   :  { %s8474_s29 = smov 0   ;;  %s8480_s30 = smov 0   ;;  %s10871_s0 = inlined_call_operand.vmem [shape: f32[16,800], index: 0, kind: input, shape index: {}]   ;;  %s10872_s1 = inlined_call_operand.vmem [shape: f32[8,32], index: 1, kind: input, shape index: {}]   ;;  %s10873_s2 = inlined_call_operand.vmem [shape: f32[800,500], index: 2, kind: input, shape index: {}]   ;;  %s10874_s3 = inlined_call_operand.vmem [shape: f32[1,500], index: 3, kind: input, shape index: {}]   ;;  %s10875_s4 = inlined_call_operand.vmem [shape: f32[500,32], index: 4, kind: input, shape index: {}]   ;;  %s10876_s5 = inlined_call_operand.vmem [shape: f32[1,32], index: 5, kind: input, shape index: {}]   ;;  %s10877_s6 = inlined_call_operand.vmem [shape: f32[2,1,32], index: 6, kind: input, shape index: {}]   ;;  %s10878_s7 = inlined_call_operand.vmem [shape: f32[2,1,32], index: 7, kind: input, shape index: {}]   ;;  %s10879_s8 = inlined_call_operand.vmem [shape: f32[8,32,8], index: 8, kind: input, shape index: {}]   ;;  %s10880_s9 = inlined_call_operand.vmem [shape: f32[8,1,8], index: 9, kind: input, shape index: {}]   ;;  %s10881_s10 = inlined_call_operand.vmem [shape: f32[8,32,8], index: 10, kind: input, shape index: {}]   ;;  %s10882_s11 = inlined_call_operand.vmem [shape: f32[8,1,8], index: 11, kind: input, shape index: {}]   ;;  %s10883_s12 = inlined_call_operand.vmem [shape: f32[8,32,8], index: 12, kind: input, shape index: {}]   ;;  %s10884_s13 = inlined_call_operand.vmem [shape: f32[8,1,8], index: 13, kind: input, shape index: {}]   ;;  %s10885_s14 = inlined_call_operand.vmem [shape: f32[8,8,32], index: 14, kind: input, shape index: {}]   ;;  %s10886_s15 = inlined_call_operand.vmem [shape: f32[2,1,32], index: 15, kind: input, shape index: {}]   ;;  %s10887_s16 = inlined_call_operand.vmem [shape: f32[2,1,32], index: 16, kind: input, shape index: {}]   ;;  %s10888_s17 = inlined_call_operand.vmem [shape: f32[2,1,32], index: 17, kind: input, shape index: {}]   ;;  %s10889_s18 = inlined_call_operand.vmem [shape: f32[2,32,128], index: 18, kind: input, shape index: {}]   ;;  %s10890_s19 = inlined_call_operand.vmem [shape: f32[2,1,128], index: 19, kind: input, shape index: {}]   ;;  %s10891_s20 = inlined_call_operand.vmem [shape: f32[2,128,32], index: 20, kind: input, shape index: {}]   ;;  %s10892_s21 = inlined_call_operand.vmem [shape: f32[2,1,32], index: 21, kind: input, shape index: {}]   ;;  %s10893_s22 = inlined_call_operand.vmem [shape: f32[1,32], index: 22, kind: input, shape index: {}]   ;;  %s10894_s23 = inlined_call_operand.vmem [shape: f32[1,32], index: 23, kind: input, shape index: {}]   ;;  %s10895_s24 = inlined_call_operand.vmem [shape: f32[32,128], index: 24, kind: input, shape index: {}]   ;;  %s10896_s25 = inlined_call_operand.vmem [shape: f32[16,128], index: 25, kind: output, shape index: {}]  }
   0x1   :  { %10907 = sst [smem:[#allocation8_spill]] %s10871_s0 }
   0x2   :  { %10908 = sst [smem:[#allocation9_spill]] %s10872_s1 }
   0x3   :  { %10909 = sst [smem:[#allocation10_spill]] %s10873_s2  ;;  %s8476_s2 = smov 0  }
   0x4   :  { %10910 = sst [smem:[#allocation11_spill]] %s10874_s3 }
   0x5   :  { %10911 = sst [smem:[#allocation12_spill]] %s10875_s4 }
   0x6   :  { %10912 = sst [smem:[#allocation13_spill]] %s10876_s5 }
   0x7   :  { %10913 = sst [smem:[#allocation14_spill]] %s10877_s6  ;;  %s8478_s6 = smov 0  }
   0x8   :  { %10914 = sst [smem:[#allocation15_spill]] %s10878_s7  ;;  %s8482_s7 = smov 0  }
   0x9   :  { %10915 = sst [smem:[#allocation16_spill]] %s10879_s8 }
   0xa   :  { %10916 = sst [smem:[#allocation17_spill]] %s10880_s9 }
   0xb   :  { %10917 = sst [smem:[#allocation18_spill]] %s10893_s22 }
   0xc   :  { %10918 = sst [smem:[#allocation19_spill]] %s10894_s23 }
   0xd   :  { %10919 = sst [smem:[#allocation20_spill]] %s10896_s25 }
   0xe LB: > { %10920 = sst [smem:[#allocation3_spill]] %s8326_s6  ;;  %s44_s3 = sadd.s32 1, %s8326_s6  ;;  %s8334_s7 = sphi %s8482_s7, %s35_s7   ;;  %s8330_s30 = sphi %s8480_s30, %s10945_s30   ;;  %s8326_s6 = sphi %s8478_s6, %s10944_s6   ;;  %s8322_s2 = sphi %s8476_s2, %s10943_s2   ;;  %s8318_s29 = sphi %s8474_s29, %s10942_s29  }
   0xf   : > { %10921 = sst [smem:[#allocation4_spill]] %s8330_s30  ;;  %s47_s26 = sadd.s32 1, %s8330_s30 }
  0x10   : > { %10922 = sst [smem:[#allocation5_spill]] %s8334_s7  ;;  %p45_p0 = scmp.ge.s32.totalorder %s44_s3, 2 }
  0x11   : > { %p6557_p1 = scmp.ge.s32.totalorder %s8334_s7, 1  ;;  %p699_p2 = scmp.lt.s32.totalorder %s8334_s7, 5 }
  0x12   : > { %s10947_s3 = smov (%p45_p0, %s44_s3), 0  ;;  %s10949_s26 = smov (!%p45_p0, %s47_s26), %s8330_s30 }
  0x13   : > { %10923 = sst [smem:[#allocation6_spill]] %s10947_s3  ;;  %p700_p3 = pnand %p6557_p1, %p699_p2 }
  0x14   : > { %p49_p4 = scmp.ge.s32.totalorder %s10949_s26, 2  ;;  %p766_p5 = scmp.lt.s32.totalorder (!%p700_p3), %s8322_s2, 1 }
  0x15   : > { %703 = sbr.rel (%p700_p3) target bundleno = 5805 (0x16ad), region = 120  ;;  %s10925_s25 = sld [smem:[#allocation20_spill]] (!%p700_p3) }
  0x16   : > { %s10951_s26 = smov (%p49_p4, %s10949_s26), 0  ;;  %s10926_s0 = sld [smem:[#allocation8_spill]] (!%p700_p3) }
  0x17   : > { %10924 = sst [smem:[#allocation7_spill]] %s10951_s26  ;;  %p6560_p6 = scmp.ne.s32.totalorder (!%p700_p3), %s8318_s29, 0 }
  0x1c   : > { %s10953_s2 = smov (!%p766_p5, %s8322_s2), 1  ;;  %778 = sbr.rel (%p6560_p6) target bundleno = 683 (0x2ab), region = 124 }
  0x1d   : > { %s8201_s1 = smul.u32 56, %s10953_s2  ;;  %s6559_s8 = sshll.u32 %s10953_s2, 3  ;;  %vm1208_vm0 = vcmask (!%p6560_p6), 261120   ;;  %vm1858_vm1 = vcmask (!%p6560_p6), 1043456   ;;  %vm1854_vm2 = vcmask (!%p6560_p6), 949248  }
  0x1e   : > { %s8509_s28 = scalar_lea.vmem %s10925_s25, %s6559_s8  ;;  %s10927_s30 = sld [smem:[#allocation10_spill]] (!%p6560_p6) }
  0x1f   : > { %s8514_s6 = scalar_lea.vmem %s10926_s0, %s8201_s1  ;;  %s10929_s26 = sld [smem:[#allocation12_spill]] (!%p6560_p6) }
  0x20   : > { %s10930_s1 = sld [smem:[#allocation11_spill]] (!%p6560_p6)  ;;  %s10931_s3 = sld [smem:[#allocation13_spill]] (!%p6560_p6) }
  0x24   : > { %s10928_s23 = smov %s10927_s30  ;;  %v787_v0 = vld [vmem:[%s10927_s30 + $0x8] sm:$0xff]  ;;  %s10932_s30 = sld [smem:[#allocation9_spill]] }
  0x25   : > { %v791_v1 = vld [vmem:[%s10928_s23 + $0x28] sm:$0xff]  ;;  %v789_v2 = vld [vmem:[%s10928_s23 + $0x18] sm:$0xff]  ;;  %v786_v5 = vld [vmem:[%s10928_s23] sm:$0xff] }
  0x26   : > { %v7498_v3 = vpack.c.bf16 %v791_v1, %v787_v0  ;;  %v793_v4 = vld [vmem:[%s10928_s23 + $0x38] sm:$0xff]  ;;  %v790_v6 = vld [vmem:[%s10928_s23 + $0x20] sm:$0xff]  ;;  %v788_v9 = vld [vmem:[%s10928_s23 + $0x10] sm:$0xff] }
  0x27   : > { %v7698_v7 = vpack.c.bf16 %v793_v4, %v789_v2  ;;  %v7500_v8 = vpack.c.bf16 %v790_v6, %v786_v5  ;;  %v792_v10 = vld [vmem:[%s10928_s23 + $0x30] sm:$0xff]  ;;  %v795_v11 = vld [vmem:[%s10928_s23 + $0x48] sm:$0xff]  ;;  %v797_v14 = vld [vmem:[%s10928_s23 + $0x58] sm:$0xff] }
  0x28   : > { %7499 = vmatprep.subr.bf16.mxu0 %v7498_v3  ;;  %v7700_v12 = vpack.c.bf16 %v792_v10, %v788_v9  ;;  %v799_v13 = vld [vmem:[%s10928_s23 + $0x68] sm:$0xff]  ;;  %v801_v15 = vld [vmem:[%s10928_s23 + $0x78] sm:$0xff]  ;;  %v794_v18 = vld [vmem:[%s10928_s23 + $0x40] sm:$0xff] }
  0x29   : > { %7699 = vmatprep.subr.bf16.mxu1 %v7698_v7  ;;  %7501 = vmatpush1.bf16.msra.mxu0 %v7500_v8  ;;  %v7502_v16 = vpack.c.bf16 %v799_v13, %v795_v11  ;;  %v7702_v17 = vpack.c.bf16 %v801_v15, %v797_v14  ;;  %v798_v19 = vld [vmem:[%s10928_s23 + $0x60] sm:$0xff]  ;;  %v796_v20 = vld [vmem:[%s10928_s23 + $0x50] sm:$0xff]  ;;  %v803_v23 = vld [vmem:[%s10928_s23 + $0x88] sm:$0xff] }
  0x2a   : > { %7701 = vmatpush1.bf16.msra.mxu1 %v7700_v12  ;;  %v7504_v21 = vpack.c.bf16 %v798_v19, %v794_v18  ;;  %v800_v22 = vld [vmem:[%s10928_s23 + $0x70] sm:$0xff]  ;;  %v807_v24 = vld [vmem:[%s10928_s23 + $0xa8] sm:$0xff]  ;;  %v805_v27 = vld [vmem:[%s10928_s23 + $0x98] sm:$0xff] }
  0x2b   : > { %7503 = vmatprep.subr.bf16.mxu0 %v7502_v16  ;;  %7703 = vmatprep.subr.bf16.mxu1 %v7702_v17  ;;  %v7704_v25 = vpack.c.bf16 %v800_v22, %v796_v20  ;;  %v7506_v26 = vpack.c.bf16 %v807_v24, %v803_v23  ;;  %v809_v28 = vld [vmem:[%s10928_s23 + $0xb8] sm:$0xff]  ;;  %v802_v29 = vld [vmem:[%s10928_s23 + $0x80] sm:$0xff]  ;;  %v804_v32 = vld [vmem:[%s10928_s23 + $0x90] sm:$0xff] }
  0x2c   : > { %v7706_v30 = vpack.c.bf16 %v809_v28, %v805_v27  ;;  %v806_v31 = vld [vmem:[%s10928_s23 + $0xa0] sm:$0xff]  ;;  %v808_v33 = vld [vmem:[%s10928_s23 + $0xb0] sm:$0xff]  ;;  %v811_v35 = vld [vmem:[%s10928_s23 + $0xc8] sm:$0xff] }
  0x2d   : > { %7505 = vmatpush1.bf16.msra.mxu0 %v7504_v21  ;;  %v7508_v34 = vpack.c.bf16 %v806_v31, %v802_v29  ;;  %v815_v36 = vld [vmem:[%s10928_s23 + $0xe8] sm:$0xff]  ;;  %v813_v37 = vld [vmem:[%s10928_s23 + $0xd8] sm:$0xff]  ;;  %v7708_v38 = vpack.c.bf16 %v808_v33, %v804_v32  ;;  %v810_v41 = vld [vmem:[%s10928_s23 + $0xc0] sm:$0xff] }
  0x2e   : > { %7705 = vmatpush1.bf16.msra.mxu1 %v7704_v25  ;;  %7507 = vmatprep.subr.bf16.mxu0 %v7506_v26  ;;  %v7510_v39 = vpack.c.bf16 %v815_v36, %v811_v35  ;;  %v817_v40 = vld [vmem:[%s10928_s23 + $0xf8] sm:$0xff]  ;;  %v814_v42 = vld [vmem:[%s10928_s23 + $0xe0] sm:$0xff]  ;;  %v812_v44 = vld [vmem:[%s10928_s23 + $0xd0] sm:$0xff] }
  0x2f   : > { %7707 = vmatprep.subr.bf16.mxu1 %v7706_v30  ;;  %v7710_v43 = vpack.c.bf16 %v817_v40, %v813_v37  ;;  %v816_v45 = vld [vmem:[%s10928_s23 + $0xf0] sm:$0xff]  ;;  %v819_v46 = vld [vmem:[%s10928_s23 + $0x108] sm:$0xff]  ;;  %v821_v48 = vld [vmem:[%s10928_s23 + $0x118] sm:$0xff]  ;;  %v7512_v50 = vpack.c.bf16 %v814_v42, %v810_v41 }
  0x30   : > { %v823_v47 = vld [vmem:[%s10928_s23 + $0x128] sm:$0xff]  ;;  %v825_v49 = vld [vmem:[%s10928_s23 + $0x138] sm:$0xff]  ;;  %v7712_v51 = vpack.c.bf16 %v816_v45, %v812_v44  ;;  %v818_v53 = vld [vmem:[%s10928_s23 + $0x100] sm:$0xff] }
  0x31   : > { %7509 = vmatpush1.bf16.msra.mxu0 %v7508_v34  ;;  %v7514_v52 = vpack.c.bf16 %v823_v47, %v819_v46  ;;  %v822_v54 = vld [vmem:[%s10928_s23 + $0x120] sm:$0xff]  ;;  %v820_v55 = vld [vmem:[%s10928_s23 + $0x110] sm:$0xff]  ;;  %v7714_v56 = vpack.c.bf16 %v825_v49, %v821_v48  ;;  %v827_v58 = vld [vmem:[%s10928_s23 + $0x148] sm:$0xff] }
  0x32   : > { %7709 = vmatpush1.bf16.msra.mxu1 %v7708_v38  ;;  %7511 = vmatprep.subr.bf16.mxu0 %v7510_v39  ;;  %v824_v57 = vld [vmem:[%s10928_s23 + $0x130] sm:$0xff]  ;;  %v831_v59 = vld [vmem:[%s10928_s23 + $0x168] sm:$0xff]  ;;  %v829_v60 = vld [vmem:[%s10928_s23 + $0x158] sm:$0xff]  ;;  %v7516_v62 = vpack.c.bf16 %v822_v54, %v818_v53 }
  0x33   : > { %7711 = vmatprep.subr.bf16.mxu1 %v7710_v43  ;;  %v833_v61 = vld [vmem:[%s10928_s23 + $0x178] sm:$0xff]  ;;  %v7716_v63 = vpack.c.bf16 %v824_v57, %v820_v55  ;;  %v7518_v0 = vpack.c.bf16 %v831_v59, %v827_v58  ;;  %v826_v1 = vld [vmem:[%s10928_s23 + $0x140] sm:$0xff]  ;;  %v828_v3 = vld [vmem:[%s10928_s23 + $0x150] sm:$0xff] }
  0x34   : > { %v830_v2 = vld [vmem:[%s10928_s23 + $0x160] sm:$0xff]  ;;  %v7718_v4 = vpack.c.bf16 %v833_v61, %v829_v60  ;;  %v832_v5 = vld [vmem:[%s10928_s23 + $0x170] sm:$0xff]  ;;  %v835_v6 = vld [vmem:[%s10928_s23 + $0x188] sm:$0xff] }
  0x35   : > { %7513 = vmatpush1.bf16.msra.mxu0 %v7512_v50  ;;  %v839_v7 = vld [vmem:[%s10928_s23 + $0x1a8] sm:$0xff]  ;;  %v837_v8 = vld [vmem:[%s10928_s23 + $0x198] sm:$0xff]  ;;  %v7520_v10 = vpack.c.bf16 %v830_v2, %v826_v1  ;;  %v7720_v11 = vpack.c.bf16 %v832_v5, %v828_v3  ;;  %v834_v13 = vld [vmem:[%s10928_s23 + $0x180] sm:$0xff] }
  0x36   : > { %7713 = vmatpush1.bf16.msra.mxu1 %v7712_v51  ;;  %7515 = vmatprep.subr.bf16.mxu0 %v7514_v52  ;;  %v841_v9 = vld [vmem:[%s10928_s23 + $0x1b8] sm:$0xff]  ;;  %v7522_v12 = vpack.c.bf16 %v839_v7, %v835_v6  ;;  %v838_v14 = vld [vmem:[%s10928_s23 + $0x1a0] sm:$0xff]  ;;  %v836_v15 = vld [vmem:[%s10928_s23 + $0x190] sm:$0xff] }
  0x37   : > { %7715 = vmatprep.subr.bf16.mxu1 %v7714_v56  ;;  %v7722_v16 = vpack.c.bf16 %v841_v9, %v837_v8  ;;  %v840_v17 = vld [vmem:[%s10928_s23 + $0x1b0] sm:$0xff]  ;;  %v843_v18 = vld [vmem:[%s10928_s23 + $0x1c8] sm:$0xff]  ;;  %v845_v20 = vld [vmem:[%s10928_s23 + $0x1d8] sm:$0xff]  ;;  %v7524_v22 = vpack.c.bf16 %v838_v14, %v834_v13 }
  0x38   : > { %v847_v19 = vld [vmem:[%s10928_s23 + $0x1e8] sm:$0xff]  ;;  %v849_v21 = vld [vmem:[%s10928_s23 + $0x1f8] sm:$0xff]  ;;  %v7724_v23 = vpack.c.bf16 %v840_v17, %v836_v15  ;;  %v842_v25 = vld [vmem:[%s10928_s23 + $0x1c0] sm:$0xff] }
  0x39   : > { %7517 = vmatpush1.bf16.msra.mxu0 %v7516_v62  ;;  %v7526_v24 = vpack.c.bf16 %v847_v19, %v843_v18  ;;  %v846_v26 = vld [vmem:[%s10928_s23 + $0x1e0] sm:$0xff]  ;;  %v844_v27 = vld [vmem:[%s10928_s23 + $0x1d0] sm:$0xff]  ;;  %v7726_v28 = vpack.c.bf16 %v849_v21, %v845_v20  ;;  %v851_v30 = vld [vmem:[%s10928_s23 + $0x208] sm:$0xff] }
  0x3a   : > { %7717 = vmatpush1.bf16.msra.mxu1 %v7716_v63  ;;  %7519 = vmatprep.subr.bf16.mxu0 %v7518_v0  ;;  %v848_v29 = vld [vmem:[%s10928_s23 + $0x1f0] sm:$0xff]  ;;  %v855_v31 = vld [vmem:[%s10928_s23 + $0x228] sm:$0xff]  ;;  %v853_v32 = vld [vmem:[%s10928_s23 + $0x218] sm:$0xff]  ;;  %v7528_v34 = vpack.c.bf16 %v846_v26, %v842_v25 }
  0x3b   : > { %7719 = vmatprep.subr.bf16.mxu1 %v7718_v4  ;;  %v857_v33 = vld [vmem:[%s10928_s23 + $0x238] sm:$0xff]  ;;  %v7728_v35 = vpack.c.bf16 %v848_v29, %v844_v27  ;;  %v7530_v36 = vpack.c.bf16 %v855_v31, %v851_v30  ;;  %v850_v37 = vld [vmem:[%s10928_s23 + $0x200] sm:$0xff]  ;;  %v852_v39 = vld [vmem:[%s10928_s23 + $0x210] sm:$0xff] }
  0x3c   : > { %v854_v38 = vld [vmem:[%s10928_s23 + $0x220] sm:$0xff]  ;;  %v7730_v40 = vpack.c.bf16 %v857_v33, %v853_v32  ;;  %v856_v41 = vld [vmem:[%s10928_s23 + $0x230] sm:$0xff]  ;;  %v859_v42 = vld [vmem:[%s10928_s23 + $0x248] sm:$0xff] }
  0x3d   : > { %7521 = vmatpush1.bf16.msra.mxu0 %v7520_v10  ;;  %v863_v43 = vld [vmem:[%s10928_s23 + $0x268] sm:$0xff]  ;;  %v861_v44 = vld [vmem:[%s10928_s23 + $0x258] sm:$0xff]  ;;  %v7532_v46 = vpack.c.bf16 %v854_v38, %v850_v37  ;;  %v7732_v47 = vpack.c.bf16 %v856_v41, %v852_v39  ;;  %v858_v49 = vld [vmem:[%s10928_s23 + $0x240] sm:$0xff] }
  0x3e   : > { %7721 = vmatpush1.bf16.msra.mxu1 %v7720_v11  ;;  %7523 = vmatprep.subr.bf16.mxu0 %v7522_v12  ;;  %v865_v45 = vld [vmem:[%s10928_s23 + $0x278] sm:$0xff]  ;;  %v7534_v48 = vpack.c.bf16 %v863_v43, %v859_v42  ;;  %v862_v50 = vld [vmem:[%s10928_s23 + $0x260] sm:$0xff]  ;;  %v860_v51 = vld [vmem:[%s10928_s23 + $0x250] sm:$0xff] }
  0x3f   : > { %7723 = vmatprep.subr.bf16.mxu1 %v7722_v16  ;;  %v7734_v52 = vpack.c.bf16 %v865_v45, %v861_v44  ;;  %v864_v53 = vld [vmem:[%s10928_s23 + $0x270] sm:$0xff]  ;;  %v867_v54 = vld [vmem:[%s10928_s23 + $0x288] sm:$0xff]  ;;  %v869_v56 = vld [vmem:[%s10928_s23 + $0x298] sm:$0xff]  ;;  %v7536_v58 = vpack.c.bf16 %v862_v50, %v858_v49 }
  0x40   : > { %v871_v55 = vld [vmem:[%s10928_s23 + $0x2a8] sm:$0xff]  ;;  %v873_v57 = vld [vmem:[%s10928_s23 + $0x2b8] sm:$0xff]  ;;  %v7736_v59 = vpack.c.bf16 %v864_v53, %v860_v51  ;;  %v866_v61 = vld [vmem:[%s10928_s23 + $0x280] sm:$0xff] }
  0x41   : > { %7525 = vmatpush1.bf16.msra.mxu0 %v7524_v22  ;;  %v7538_v60 = vpack.c.bf16 %v871_v55, %v867_v54  ;;  %v870_v62 = vld [vmem:[%s10928_s23 + $0x2a0] sm:$0xff]  ;;  %v868_v63 = vld [vmem:[%s10928_s23 + $0x290] sm:$0xff]  ;;  %v7738_v0 = vpack.c.bf16 %v873_v57, %v869_v56  ;;  %v875_v2 = vld [vmem:[%s10928_s23 + $0x2c8] sm:$0xff] }
  0x42   : > { %7725 = vmatpush1.bf16.msra.mxu1 %v7724_v23  ;;  %7527 = vmatprep.subr.bf16.mxu0 %v7526_v24  ;;  %v872_v1 = vld [vmem:[%s10928_s23 + $0x2b0] sm:$0xff]  ;;  %v879_v3 = vld [vmem:[%s10928_s23 + $0x2e8] sm:$0xff]  ;;  %v877_v4 = vld [vmem:[%s10928_s23 + $0x2d8] sm:$0xff]  ;;  %v7540_v6 = vpack.c.bf16 %v870_v62, %v866_v61 }
  0x43   : > { %7727 = vmatprep.subr.bf16.mxu1 %v7726_v28  ;;  %v881_v5 = vld [vmem:[%s10928_s23 + $0x2f8] sm:$0xff]  ;;  %v874_v7 = vld [vmem:[%s10928_s23 + $0x2c0] sm:$0xff]  ;;  %v7740_v8 = vpack.c.bf16 %v872_v1, %v868_v63  ;;  %v7542_v9 = vpack.c.bf16 %v879_v3, %v875_v2  ;;  %v876_v11 = vld [vmem:[%s10928_s23 + $0x2d0] sm:$0xff] }
  0x44   : > { %v878_v10 = vld [vmem:[%s10928_s23 + $0x2e0] sm:$0xff]  ;;  %v880_v12 = vld [vmem:[%s10928_s23 + $0x2f0] sm:$0xff]  ;;  %v7742_v13 = vpack.c.bf16 %v881_v5, %v877_v4  ;;  %v883_v14 = vld [vmem:[%s10928_s23 + $0x308] sm:$0xff] }
  0x45   : > { %7529 = vmatpush1.bf16.msra.mxu0 %v7528_v34  ;;  %v887_v15 = vld [vmem:[%s10928_s23 + $0x328] sm:$0xff]  ;;  %v885_v17 = vld [vmem:[%s10928_s23 + $0x318] sm:$0xff]  ;;  %v7544_v19 = vpack.c.bf16 %v878_v10, %v874_v7  ;;  %v7744_v20 = vpack.c.bf16 %v880_v12, %v876_v11  ;;  %v882_v22 = vld [vmem:[%s10928_s23 + $0x300] sm:$0xff] }
  0x46   : > { %7729 = vmatpush1.bf16.msra.mxu1 %v7728_v35  ;;  %7531 = vmatprep.subr.bf16.mxu0 %v7530_v36  ;;  %v780_v16 = vld [vmem:[%s8514_s6 + $0x8] sm:$0xff]  ;;  %v889_v18 = vld [vmem:[%s10928_s23 + $0x338] sm:$0xff]  ;;  %v7546_v21 = vpack.c.bf16 %v887_v15, %v883_v14  ;;  %v886_v23 = vld [vmem:[%s10928_s23 + $0x320] sm:$0xff] }
  0x47   : > { %7731 = vmatprep.subr.bf16.mxu1 %v7730_v40  ;;  %1276 = vmatprep.mubr.f32.mxu0 %v780_v16  ;;  %v884_v24 = vld [vmem:[%s10928_s23 + $0x310] sm:$0xff]  ;;  %v7746_v25 = vpack.c.bf16 %v889_v18, %v885_v17  ;;  %v891_v27 = vld [vmem:[%s10928_s23 + $0x348] sm:$0xff]  ;;  %v893_v29 = vld [vmem:[%s10928_s23 + $0x358] sm:$0xff]  ;;  %v7548_v31 = vpack.c.bf16 %v886_v23, %v882_v22 }
  0x48   : > { %1560 = vmatprep.mubr.f32.mxu1 %v780_v16  ;;  %v888_v26 = vld [vmem:[%s10928_s23 + $0x330] sm:$0xff]  ;;  %v895_v28 = vld [vmem:[%s10928_s23 + $0x368] sm:$0xff]  ;;  %v897_v30 = vld [vmem:[%s10928_s23 + $0x378] sm:$0xff] }
  0x49   : > { %7533 = vmatpush1.bf16.msra.mxu0 %v7532_v46  ;;  %v7748_v32 = vpack.c.bf16 %v888_v26, %v884_v24  ;;  %v7550_v33 = vpack.c.bf16 %v895_v28, %v891_v27  ;;  %v890_v34 = vld [vmem:[%s10928_s23 + $0x340] sm:$0xff]  ;;  %v892_v36 = vld [vmem:[%s10928_s23 + $0x350] sm:$0xff]  ;;  %v7750_v37 = vpack.c.bf16 %v897_v30, %v893_v29  ;;  %v899_v39 = vld [vmem:[%s10928_s23 + $0x388] sm:$0xff] }
  0x4a   : > { %7733 = vmatpush1.bf16.msra.mxu1 %v7732_v47  ;;  %7535 = vmatprep.subr.bf16.mxu0 %v7534_v48  ;;  %v894_v35 = vld [vmem:[%s10928_s23 + $0x360] sm:$0xff]  ;;  %v896_v38 = vld [vmem:[%s10928_s23 + $0x370] sm:$0xff]  ;;  %v903_v40 = vld [vmem:[%s10928_s23 + $0x3a8] sm:$0xff] }
  0x4b   : > { %7735 = vmatprep.subr.bf16.mxu1 %v7734_v52  ;;  %v901_v41 = vld [vmem:[%s10928_s23 + $0x398] sm:$0xff]  ;;  %v7552_v43 = vpack.c.bf16 %v894_v35, %v890_v34  ;;  %v7752_v44 = vpack.c.bf16 %v896_v38, %v892_v36  ;;  %v7554_v45 = vpack.c.bf16 %v903_v40, %v899_v39  ;;  %v898_v46 = vld [vmem:[%s10928_s23 + $0x380] sm:$0xff]  ;;  %v900_v48 = vld [vmem:[%s10928_s23 + $0x390] sm:$0xff] }
  0x4c   : > { %v905_v42 = vld [vmem:[%s10928_s23 + $0x3b8] sm:$0xff]  ;;  %v902_v47 = vld [vmem:[%s10928_s23 + $0x3a0] sm:$0xff]  ;;  %v904_v50 = vld [vmem:[%s10928_s23 + $0x3b0] sm:$0xff] }
  0x4d   : > { %7537 = vmatpush1.bf16.msra.mxu0 %v7536_v58  ;;  %v7754_v49 = vpack.c.bf16 %v905_v42, %v901_v41  ;;  %v907_v51 = vld [vmem:[%s10928_s23 + $0x3c8] sm:$0xff]  ;;  %v909_v53 = vld [vmem:[%s10928_s23 + $0x3d8] sm:$0xff]  ;;  %v7556_v55 = vpack.c.bf16 %v902_v47, %v898_v46  ;;  %v7756_v56 = vpack.c.bf16 %v904_v50, %v900_v48  ;;  %v906_v58 = vld [vmem:[%s10928_s23 + $0x3c0] sm:$0xff] }
  0x4e   : > { %7737 = vmatpush1.bf16.msra.mxu1 %v7736_v59  ;;  %7539 = vmatprep.subr.bf16.mxu0 %v7538_v60  ;;  %v911_v52 = vld [vmem:[%s10928_s23 + $0x3e8] sm:$0xff]  ;;  %v913_v54 = vld [vmem:[%s10928_s23 + $0x3f8] sm:$0xff]  ;;  %v910_v59 = vld [vmem:[%s10928_s23 + $0x3e0] sm:$0xff] }
  0x4f   : > { %7739 = vmatprep.subr.bf16.mxu1 %v7738_v0  ;;  %v7558_v57 = vpack.c.bf16 %v911_v52, %v907_v51  ;;  %v908_v60 = vld [vmem:[%s10928_s23 + $0x3d0] sm:$0xff]  ;;  %v7758_v61 = vpack.c.bf16 %v913_v54, %v909_v53  ;;  %v915_v63 = vld [vmem:[%s10928_s23 + $0x408] sm:$0xff]  ;;  %v917_v1 = vld [vmem:[%s10928_s23 + $0x418] sm:$0xff]  ;;  %v7560_v3 = vpack.c.bf16 %v910_v59, %v906_v58 }
  0x50   : > { %v912_v62 = vld [vmem:[%s10928_s23 + $0x3f0] sm:$0xff]  ;;  %v919_v0 = vld [vmem:[%s10928_s23 + $0x428] sm:$0xff]  ;;  %v921_v2 = vld [vmem:[%s10928_s23 + $0x438] sm:$0xff] }
  0x51   : > { %7541 = vmatpush1.bf16.msra.mxu0 %v7540_v6  ;;  %v7760_v4 = vpack.c.bf16 %v912_v62, %v908_v60  ;;  %v7562_v5 = vpack.c.bf16 %v919_v0, %v915_v63  ;;  %v914_v6 = vld [vmem:[%s10928_s23 + $0x400] sm:$0xff]  ;;  %v920_v10 = vld [vmem:[%s10928_s23 + $0x430] sm:$0xff]  ;;  %v923_v11 = vld [vmem:[%s10928_s23 + $0x448] sm:$0xff] }
  0x52   : > { %7741 = vmatpush1.bf16.msra.mxu1 %v7740_v8  ;;  %7543 = vmatprep.subr.bf16.mxu0 %v7542_v9  ;;  %v918_v7 = vld [vmem:[%s10928_s23 + $0x420] sm:$0xff]  ;;  %v916_v8 = vld [vmem:[%s10928_s23 + $0x410] sm:$0xff]  ;;  %v7762_v9 = vpack.c.bf16 %v921_v2, %v917_v1  ;;  %v927_v12 = vld [vmem:[%s10928_s23 + $0x468] sm:$0xff] }
  0x53   : > { %7743 = vmatprep.subr.bf16.mxu1 %v7742_v13  ;;  %v925_v13 = vld [vmem:[%s10928_s23 + $0x458] sm:$0xff]  ;;  %v779_v15 = vld [vmem:[%s8514_s6] sm:$0xff]  ;;  %v7564_v16 = vpack.c.bf16 %v918_v7, %v914_v6  ;;  %v7764_v17 = vpack.c.bf16 %v920_v10, %v916_v8  ;;  %v7566_v18 = vpack.c.bf16 %v927_v12, %v923_v11  ;;  %v928_v23 = vld [vmem:[%s10928_s23 + $0x470] sm:$0xff] }
  0x54   : > { %v929_v14 = vld [vmem:[%s10928_s23 + $0x478] sm:$0xff]  ;;  %v931_v24 = vld [vmem:[%s10928_s23 + $0x488] sm:$0xff]  ;;  %v936_v35 = vld [vmem:[%s10928_s23 + $0x4b0] sm:$0xff] }
  0x55   : > { %7545 = vmatpush1.bf16.msra.mxu0 %v7544_v19  ;;  %v922_v19 = vld [vmem:[%s10928_s23 + $0x440] sm:$0xff]  ;;  %v7766_v22 = vpack.c.bf16 %v929_v14, %v925_v13  ;;  %v933_v26 = vld [vmem:[%s10928_s23 + $0x498] sm:$0xff]  ;;  %v939_v36 = vld [vmem:[%s10928_s23 + $0x4c8] sm:$0xff] }
  0x56   : > { %7745 = vmatpush1.bf16.msra.mxu1 %v7744_v20  ;;  %7547 = vmatprep.subr.bf16.mxu0 %v7546_v21  ;;  %v926_v20 = vld [vmem:[%s10928_s23 + $0x460] sm:$0xff]  ;;  %v924_v21 = vld [vmem:[%s10928_s23 + $0x450] sm:$0xff]  ;;  %v937_v27 = vld [vmem:[%s10928_s23 + $0x4b8] sm:$0xff] }
  0x57   : > { %7747 = vmatprep.subr.bf16.mxu1 %v7746_v25  ;;  %v935_v25 = vld [vmem:[%s10928_s23 + $0x4a8] sm:$0xff]  ;;  %v7568_v28 = vpack.c.bf16 %v926_v20, %v922_v19  ;;  %v7768_v29 = vpack.c.bf16 %v928_v23, %v924_v21  ;;  %v7770_v34 = vpack.c.bf16 %v937_v27, %v933_v26  ;;  %v941_v38 = vld [vmem:[%s10928_s23 + $0x4d8] sm:$0xff]  ;;  %v944_v47 = vld [vmem:[%s10928_s23 + $0x4f0] sm:$0xff] }
  0x58   : > { %v7570_v30 = vpack.c.bf16 %v935_v25, %v931_v24  ;;  %v945_v39 = vld [vmem:[%s10928_s23 + $0x4f8] sm:$0xff]  ;;  %v947_v48 = vld [vmem:[%s10928_s23 + $0x508] sm:$0xff]  ;;  %v952_v59 = vld [vmem:[%s10928_s23 + $0x530] sm:$0xff] }
  0x59   : > { %7549 = vmatpush1.bf16.msra.mxu0 %v7548_v31  ;;  %v930_v31 = vld [vmem:[%s10928_s23 + $0x480] sm:$0xff]  ;;  %v7774_v46 = vpack.c.bf16 %v945_v39, %v941_v38  ;;  %v949_v50 = vld [vmem:[%s10928_s23 + $0x518] sm:$0xff]  ;;  %v955_v60 = vld [vmem:[%s10928_s23 + $0x548] sm:$0xff] }
  0x5a   : > { %7749 = vmatpush1.bf16.msra.mxu1 %v7748_v32  ;;  %7551 = vmatprep.subr.bf16.mxu0 %v7550_v33  ;;  %v934_v32 = vld [vmem:[%s10928_s23 + $0x4a0] sm:$0xff]  ;;  %v932_v33 = vld [vmem:[%s10928_s23 + $0x490] sm:$0xff]  ;;  %v953_v51 = vld [vmem:[%s10928_s23 + $0x538] sm:$0xff] }
  0x5b   : > { %7751 = vmatprep.subr.bf16.mxu1 %v7750_v37  ;;  %v943_v37 = vld [vmem:[%s10928_s23 + $0x4e8] sm:$0xff]  ;;  %v7572_v40 = vpack.c.bf16 %v934_v32, %v930_v31  ;;  %v7772_v41 = vpack.c.bf16 %v936_v35, %v932_v33  ;;  %v7778_v58 = vpack.c.bf16 %v953_v51, %v949_v50  ;;  %v957_v62 = vld [vmem:[%s10928_s23 + $0x558] sm:$0xff]  ;;  %v960_v7 = vld [vmem:[%s10928_s23 + $0x570] sm:$0xff] }
  0x5c   : > { %v7574_v42 = vpack.c.bf16 %v943_v37, %v939_v36  ;;  %v961_v63 = vld [vmem:[%s10928_s23 + $0x578] sm:$0xff]  ;;  %v963_v8 = vld [vmem:[%s10928_s23 + $0x588] sm:$0xff]  ;;  %v962_v13 = vld [vmem:[%s10928_s23 + $0x580] sm:$0xff] }
  0x5d   : > { %7553 = vmatpush1.bf16.msra.mxu0 %v7552_v43  ;;  %v938_v43 = vld [vmem:[%s10928_s23 + $0x4c0] sm:$0xff]  ;;  %v7782_v6 = vpack.c.bf16 %v961_v63, %v957_v62  ;;  %v965_v10 = vld [vmem:[%s10928_s23 + $0x598] sm:$0xff]  ;;  %v971_v20 = vld [vmem:[%s10928_s23 + $0x5c8] sm:$0xff] }
  0x5e   : > { %7753 = vmatpush1.bf16.msra.mxu1 %v7752_v44  ;;  %7555 = vmatprep.subr.bf16.mxu0 %v7554_v45  ;;  %v942_v44 = vld [vmem:[%s10928_s23 + $0x4e0] sm:$0xff]  ;;  %v940_v45 = vld [vmem:[%s10928_s23 + $0x4d0] sm:$0xff]  ;;  %v969_v11 = vld [vmem:[%s10928_s23 + $0x5b8] sm:$0xff] }
  0x5f   : > { %7755 = vmatprep.subr.bf16.mxu1 %v7754_v49  ;;  %v951_v49 = vld [vmem:[%s10928_s23 + $0x528] sm:$0xff]  ;;  %v7576_v52 = vpack.c.bf16 %v942_v44, %v938_v43  ;;  %v7776_v53 = vpack.c.bf16 %v944_v47, %v940_v45  ;;  %v7786_v19 = vpack.c.bf16 %v969_v11, %v965_v10  ;;  %v973_v23 = vld [vmem:[%s10928_s23 + $0x5d8] sm:$0xff]  ;;  %v976_v32 = vld [vmem:[%s10928_s23 + $0x5f0] sm:$0xff] }
  0x60   : > { %v7578_v54 = vpack.c.bf16 %v951_v49, %v947_v48  ;;  %v975_v21 = vld [vmem:[%s10928_s23 + $0x5e8] sm:$0xff]  ;;  %v977_v24 = vld [vmem:[%s10928_s23 + $0x5f8] sm:$0xff]  ;;  %v984_v44 = vld [vmem:[%s10928_s23 + $0x630] sm:$0xff] }
  0x61   : > { %7557 = vmatpush1.bf16.msra.mxu0 %v7556_v55  ;;  %v946_v55 = vld [vmem:[%s10928_s23 + $0x500] sm:$0xff]  ;;  %v7590_v27 = vpack.c.bf16 %v975_v21, %v971_v20  ;;  %v7790_v31 = vpack.c.bf16 %v977_v24, %v973_v23  ;;  %v979_v33 = vld [vmem:[%s10928_s23 + $0x608] sm:$0xff]  ;;  %v981_v35 = vld [vmem:[%s10928_s23 + $0x618] sm:$0xff] }
  0x62   : > { %7757 = vmatpush1.bf16.msra.mxu1 %v7756_v56  ;;  %7559 = vmatprep.subr.bf16.mxu0 %v7558_v57  ;;  %v950_v56 = vld [vmem:[%s10928_s23 + $0x520] sm:$0xff]  ;;  %v948_v57 = vld [vmem:[%s10928_s23 + $0x510] sm:$0xff]  ;;  %v985_v36 = vld [vmem:[%s10928_s23 + $0x638] sm:$0xff] }
  0x63   : > { %7759 = vmatprep.subr.bf16.mxu1 %v7758_v61  ;;  %v959_v61 = vld [vmem:[%s10928_s23 + $0x568] sm:$0xff]  ;;  %v7580_v0 = vpack.c.bf16 %v950_v56, %v946_v55  ;;  %v7780_v1 = vpack.c.bf16 %v952_v59, %v948_v57  ;;  %v7794_v43 = vpack.c.bf16 %v985_v36, %v981_v35  ;;  %v989_v47 = vld [vmem:[%s10928_s23 + $0x658] sm:$0xff]  ;;  %v992_v56 = vld [vmem:[%s10928_s23 + $0x670] sm:$0xff] }
  0x64   : > { %v7582_v2 = vpack.c.bf16 %v959_v61, %v955_v60  ;;  %v987_v45 = vld [vmem:[%s10928_s23 + $0x648] sm:$0xff]  ;;  %v993_v48 = vld [vmem:[%s10928_s23 + $0x678] sm:$0xff]  ;;  %v1010_v24 = vld [vmem:[%s10928_s23 + $0x700] sm:$0xff] }
  0x65   : > { %7561 = vmatpush1.bf16.msra.mxu0 %v7560_v3  ;;  %v954_v3 = vld [vmem:[%s10928_s23 + $0x540] sm:$0xff]  ;;  %v7798_v55 = vpack.c.bf16 %v993_v48, %v989_v47  ;;  %v995_v57 = vld [vmem:[%s10928_s23 + $0x688] sm:$0xff]  ;;  %v997_v59 = vld [vmem:[%s10928_s23 + $0x698] sm:$0xff] }
  0x66   : > { %7761 = vmatpush1.bf16.msra.mxu1 %v7760_v4  ;;  %7563 = vmatprep.subr.bf16.mxu0 %v7562_v5  ;;  %v958_v4 = vld [vmem:[%s10928_s23 + $0x560] sm:$0xff]  ;;  %v956_v5 = vld [vmem:[%s10928_s23 + $0x550] sm:$0xff]  ;;  %v1001_v60 = vld [vmem:[%s10928_s23 + $0x6b8] sm:$0xff] }
  0x67   : > { %7763 = vmatprep.subr.bf16.mxu1 %v7762_v9  ;;  %v967_v9 = vld [vmem:[%s10928_s23 + $0x5a8] sm:$0xff]  ;;  %v7584_v12 = vpack.c.bf16 %v958_v4, %v954_v3  ;;  %v7784_v14 = vpack.c.bf16 %v960_v7, %v956_v5  ;;  %v7802_v3 = vpack.c.bf16 %v1001_v60, %v997_v59  ;;  %v1000_v4 = vld [vmem:[%s10928_s23 + $0x6b0] sm:$0xff]  ;;  %v1005_v7 = vld [vmem:[%s10928_s23 + $0x6d8] sm:$0xff] }
  0x68   : > { %1277 = vmatmul.mubr.f32.vlgmr.msra.gmra.mrb[0].mxu0 %v779_v15  ;;  %v1003_v5 = vld [vmem:[%s10928_s23 + $0x6c8] sm:$0xff]  ;;  %v1017_v20 = vld [vmem:[%s10928_s23 + $0x738] sm:$0xff]  ;;  %v1018_v36 = vld [vmem:[%s10928_s23 + $0x740] sm:$0xff] }
  0x69   : > { %7565 = vmatpush1.bf16.msra.mxu0 %v7564_v16  ;;  %1561 = vmatmul.mubr.f32.vlgmr.msra.gmra.mrb[0].mxu1 %v779_v15  ;;  %v7586_v15 = vpack.c.bf16 %v967_v9, %v963_v8  ;;  %v966_v16 = vld [vmem:[%s10928_s23 + $0x5a0] sm:$0xff]  ;;  %v1009_v8 = vld [vmem:[%s10928_s23 + $0x6f8] sm:$0xff] }
  0x6a   : > { %7765 = vmatpush1.bf16.msra.mxu1 %v7764_v17  ;;  %7567 = vmatprep.subr.bf16.mxu0 %v7566_v18  ;;  %v964_v17 = vld [vmem:[%s10928_s23 + $0x590] sm:$0xff]  ;;  %v7588_v25 = vpack.c.bf16 %v966_v16, %v962_v13  ;;  %v1006_v13 = vld [vmem:[%s10928_s23 + $0x6e0] sm:$0xff] }
  0x6b   : > { %7767 = vmatprep.subr.bf16.mxu1 %v7766_v22  ;;  %v968_v18 = vld [vmem:[%s10928_s23 + $0x5b0] sm:$0xff]  ;;  %v782_v22 = vld [vmem:[%s8514_s6 + $0x18] sm:$0xff]  ;;  %v1026_v48 = vld [vmem:[%s10928_s23 + $0x780] sm:$0xff] }
  0x6c   : > { %1347 = vmatprep.mubr.f32.mxu0 %v782_v22  ;;  %1631 = vmatprep.mubr.f32.mxu1 %v782_v22  ;;  %v7788_v26 = vpack.c.bf16 %v968_v18, %v964_v17  ;;  %v1008_v16 = vld [vmem:[%s10928_s23 + $0x6f0] sm:$0xff]  ;;  %v1011_v17 = vld [vmem:[%s10928_s23 + $0x708] sm:$0xff]  ;;  %v1034_v60 = vld [vmem:[%s10928_s23 + $0x7c0] sm:$0xff] }
  0x6d   : > { %7569 = vmatpush1.bf16.msra.mxu0 %v7568_v28  ;;  %v970_v28 = vld [vmem:[%s10928_s23 + $0x5c0] sm:$0xff]  ;;  %v1015_v18 = vld [vmem:[%s10928_s23 + $0x728] sm:$0xff] }
  0x6e   : > { %7769 = vmatpush1.bf16.msra.mxu1 %v7768_v29  ;;  %7571 = vmatprep.subr.bf16.mxu0 %v7570_v30  ;;  %v974_v29 = vld [vmem:[%s10928_s23 + $0x5e0] sm:$0xff]  ;;  %v972_v30 = vld [vmem:[%s10928_s23 + $0x5d0] sm:$0xff]  ;;  %v7610_v23 = vpack.c.bf16 %v1015_v18, %v1011_v17 }
  0x6f   : > { %7771 = vmatprep.subr.bf16.mxu1 %v7770_v34  ;;  %v983_v34 = vld [vmem:[%s10928_s23 + $0x628] sm:$0xff]  ;;  %v7592_v37 = vpack.c.bf16 %v974_v29, %v970_v28  ;;  %v7792_v38 = vpack.c.bf16 %v976_v32, %v972_v30  ;;  %v1016_v28 = vld [vmem:[%s10928_s23 + $0x730] sm:$0xff]  ;;  %v1025_v32 = vld [vmem:[%s10928_s23 + $0x778] sm:$0xff] }
  0x70   : > { %v7594_v39 = vpack.c.bf16 %v983_v34, %v979_v33  ;;  %v1019_v29 = vld [vmem:[%s10928_s23 + $0x748] sm:$0xff]  ;;  %v781_v17 = vld [vmem:[%s8514_s6 + $0x10] sm:$0xff] }
  0x71   : > { %7573 = vmatpush1.bf16.msra.mxu0 %v7572_v40  ;;  %v978_v40 = vld [vmem:[%s10928_s23 + $0x600] sm:$0xff]  ;;  %v1023_v30 = vld [vmem:[%s10928_s23 + $0x768] sm:$0xff] }
  0x72   : > { %7773 = vmatpush1.bf16.msra.mxu1 %v7772_v41  ;;  %7575 = vmatprep.subr.bf16.mxu0 %v7574_v42  ;;  %v982_v41 = vld [vmem:[%s10928_s23 + $0x620] sm:$0xff]  ;;  %v980_v42 = vld [vmem:[%s10928_s23 + $0x610] sm:$0xff]  ;;  %v7614_v35 = vpack.c.bf16 %v1023_v30, %v1019_v29  ;;  %v1065_v29 = vld [vmem:[%s10928_s23 + $0x8b8] sm:$0xff] }
  0x73   : > { %7775 = vmatprep.subr.bf16.mxu1 %v7774_v46  ;;  %v991_v46 = vld [vmem:[%s10928_s23 + $0x668] sm:$0xff]  ;;  %v7596_v49 = vpack.c.bf16 %v982_v41, %v978_v40  ;;  %v7796_v50 = vpack.c.bf16 %v984_v44, %v980_v42  ;;  %v1024_v40 = vld [vmem:[%s10928_s23 + $0x770] sm:$0xff]  ;;  %v1033_v44 = vld [vmem:[%s10928_s23 + $0x7b8] sm:$0xff] }
  0x74   : > { %v7598_v51 = vpack.c.bf16 %v991_v46, %v987_v45  ;;  %v1027_v41 = vld [vmem:[%s10928_s23 + $0x788] sm:$0xff] }
  0x75   : > { %7577 = vmatpush1.bf16.msra.mxu0 %v7576_v52  ;;  %v986_v52 = vld [vmem:[%s10928_s23 + $0x640] sm:$0xff]  ;;  %v1031_v42 = vld [vmem:[%s10928_s23 + $0x7a8] sm:$0xff] }
  0x76   : > { %7777 = vmatpush1.bf16.msra.mxu1 %v7776_v53  ;;  %7579 = vmatprep.subr.bf16.mxu0 %v7578_v54  ;;  %v990_v53 = vld [vmem:[%s10928_s23 + $0x660] sm:$0xff]  ;;  %v988_v54 = vld [vmem:[%s10928_s23 + $0x650] sm:$0xff]  ;;  %v7618_v47 = vpack.c.bf16 %v1031_v42, %v1027_v41  ;;  %v784_v30 = vld [vmem:[%s8514_s6 + $0x28] sm:$0xff] }
  0x77   : > { %7779 = vmatprep.subr.bf16.mxu1 %v7778_v58  ;;  %v999_v58 = vld [vmem:[%s10928_s23 + $0x6a8] sm:$0xff]  ;;  %v7600_v61 = vpack.c.bf16 %v990_v53, %v986_v52  ;;  %v7800_v62 = vpack.c.bf16 %v992_v56, %v988_v54  ;;  %v1032_v52 = vld [vmem:[%s10928_s23 + $0x7b0] sm:$0xff]  ;;  %v1041_v56 = vld [vmem:[%s10928_s23 + $0x7f8] sm:$0xff] }
  0x78   : > { %v7602_v63 = vpack.c.bf16 %v999_v58, %v995_v57  ;;  %v1035_v53 = vld [vmem:[%s10928_s23 + $0x7c8] sm:$0xff]  ;;  %v1069_v41 = vld [vmem:[%s10928_s23 + $0x8d8] sm:$0xff] }
  0x79   : > { %7581 = vmatpush1.bf16.msra.mxu0 %v7580_v0  ;;  %v994_v0 = vld [vmem:[%s10928_s23 + $0x680] sm:$0xff]  ;;  %v1039_v54 = vld [vmem:[%s10928_s23 + $0x7e8] sm:$0xff]  ;;  %v1073_v42 = vld [vmem:[%s10928_s23 + $0x8f8] sm:$0xff] }
  0x7a   : > { %7781 = vmatpush1.bf16.msra.mxu1 %v7780_v1  ;;  %7583 = vmatprep.subr.bf16.mxu0 %v7582_v2  ;;  %v998_v1 = vld [vmem:[%s10928_s23 + $0x6a0] sm:$0xff]  ;;  %v996_v2 = vld [vmem:[%s10928_s23 + $0x690] sm:$0xff]  ;;  %v7622_v59 = vpack.c.bf16 %v1039_v54, %v1035_v53  ;;  %v1077_v53 = vld [vmem:[%s10928_s23 + $0x918] sm:$0xff] }
  0x7b   : > { %7783 = vmatprep.subr.bf16.mxu1 %v7782_v6  ;;  %v1007_v6 = vld [vmem:[%s10928_s23 + $0x6e8] sm:$0xff]  ;;  %v7604_v9 = vpack.c.bf16 %v998_v1, %v994_v0  ;;  %v7804_v10 = vpack.c.bf16 %v1000_v4, %v996_v2  ;;  %v1040_v0 = vld [vmem:[%s10928_s23 + $0x7f0] sm:$0xff]  ;;  %v1049_v4 = vld [vmem:[%s10928_s23 + $0x838] sm:$0xff] }
  0x7c   : > { %v7606_v11 = vpack.c.bf16 %v1007_v6, %v1003_v5  ;;  %v1043_v1 = vld [vmem:[%s10928_s23 + $0x808] sm:$0xff]  ;;  %v1081_v54 = vld [vmem:[%s10928_s23 + $0x938] sm:$0xff] }
  0x7d   : > { %7585 = vmatpush1.bf16.msra.mxu0 %v7584_v12  ;;  %v1002_v12 = vld [vmem:[%s10928_s23 + $0x6c0] sm:$0xff]  ;;  %v1047_v2 = vld [vmem:[%s10928_s23 + $0x828] sm:$0xff] }
  0x7e   : > { %7785 = vmatpush1.bf16.msra.mxu1 %v7784_v14  ;;  %7587 = vmatprep.subr.bf16.mxu0 %v7586_v15  ;;  %v1004_v14 = vld [vmem:[%s10928_s23 + $0x6d0] sm:$0xff]  ;;  %v7806_v15 = vpack.c.bf16 %v1009_v8, %v1005_v7  ;;  %v7608_v21 = vpack.c.bf16 %v1006_v13, %v1002_v12  ;;  %v7626_v7 = vpack.c.bf16 %v1047_v2, %v1043_v1  ;;  %v1042_v8 = vld [vmem:[%s10928_s23 + $0x800] sm:$0xff]  ;;  %v1051_v13 = vld [vmem:[%s10928_s23 + $0x848] sm:$0xff] }
  0x7f   : > { %7787 = vmatprep.subr.bf16.mxu1 %v7786_v19  ;;  %v1013_v19 = vld [vmem:[%s10928_s23 + $0x718] sm:$0xff]  ;;  %v7808_v22 = vpack.c.bf16 %v1008_v16, %v1004_v14  ;;  %v1048_v12 = vld [vmem:[%s10928_s23 + $0x830] sm:$0xff]  ;;  %v1055_v14 = vld [vmem:[%s10928_s23 + $0x868] sm:$0xff] }
  0x80   : > { %v1057_v16 = vld [vmem:[%s10928_s23 + $0x878] sm:$0xff] }
  0x81   : > { %7589 = vmatpush1.bf16.msra.mxu0 %v7588_v25  ;;  %v1014_v25 = vld [vmem:[%s10928_s23 + $0x720] sm:$0xff]  ;;  %v1085_v1 = vld [vmem:[%s10928_s23 + $0x958] sm:$0xff] }
  0x82   : > { %7789 = vmatpush1.bf16.msra.mxu1 %v7788_v26  ;;  %7591 = vmatprep.subr.bf16.mxu0 %v7590_v27  ;;  %v1012_v26 = vld [vmem:[%s10928_s23 + $0x710] sm:$0xff]  ;;  %v7810_v27 = vpack.c.bf16 %v1017_v20, %v1013_v19  ;;  %v7612_v33 = vpack.c.bf16 %v1014_v25, %v1010_v24  ;;  %v7630_v20 = vpack.c.bf16 %v1055_v14, %v1051_v13  ;;  %v1089_v2 = vld [vmem:[%s10928_s23 + $0x978] sm:$0xff] }
  0x83   : > { %7791 = vmatprep.subr.bf16.mxu1 %v7790_v31  ;;  %v1021_v31 = vld [vmem:[%s10928_s23 + $0x758] sm:$0xff]  ;;  %v7812_v34 = vpack.c.bf16 %v1016_v28, %v1012_v26  ;;  %v1056_v25 = vld [vmem:[%s10928_s23 + $0x870] sm:$0xff]  ;;  %v1059_v26 = vld [vmem:[%s10928_s23 + $0x888] sm:$0xff] }
  0x84   : > { %v1061_v28 = vld [vmem:[%s10928_s23 + $0x898] sm:$0xff] }
  0x85   : > { %7593 = vmatpush1.bf16.msra.mxu0 %v7592_v37  ;;  %v1022_v37 = vld [vmem:[%s10928_s23 + $0x760] sm:$0xff]  ;;  %v1093_v13 = vld [vmem:[%s10928_s23 + $0x998] sm:$0xff] }
  0x86   : > { %7793 = vmatpush1.bf16.msra.mxu1 %v7792_v38  ;;  %7595 = vmatprep.subr.bf16.mxu0 %v7594_v39  ;;  %v1020_v38 = vld [vmem:[%s10928_s23 + $0x750] sm:$0xff]  ;;  %v7814_v39 = vpack.c.bf16 %v1025_v32, %v1021_v31  ;;  %v7616_v45 = vpack.c.bf16 %v1022_v37, %v1018_v36  ;;  %v7834_v37 = vpack.c.bf16 %v1065_v29, %v1061_v28  ;;  %v1097_v14 = vld [vmem:[%s10928_s23 + $0x9b8] sm:$0xff] }
  0x87   : > { %7795 = vmatprep.subr.bf16.mxu1 %v7794_v43  ;;  %v1029_v43 = vld [vmem:[%s10928_s23 + $0x798] sm:$0xff]  ;;  %v7816_v46 = vpack.c.bf16 %v1024_v40, %v1020_v38  ;;  %v1060_v36 = vld [vmem:[%s10928_s23 + $0x890] sm:$0xff]  ;;  %v1071_v40 = vld [vmem:[%s10928_s23 + $0x8e8] sm:$0xff] }
  0x88   : > { %v1064_v38 = vld [vmem:[%s10928_s23 + $0x8b0] sm:$0xff] }
  0x89   : > { %7597 = vmatpush1.bf16.msra.mxu0 %v7596_v49  ;;  %v1030_v49 = vld [vmem:[%s10928_s23 + $0x7a0] sm:$0xff] }
  0x8a   : > { %7797 = vmatpush1.bf16.msra.mxu1 %v7796_v50  ;;  %7599 = vmatprep.subr.bf16.mxu0 %v7598_v51  ;;  %v1028_v50 = vld [vmem:[%s10928_s23 + $0x790] sm:$0xff]  ;;  %v7818_v51 = vpack.c.bf16 %v1033_v44, %v1029_v43  ;;  %v7620_v57 = vpack.c.bf16 %v1030_v49, %v1026_v48  ;;  %v7836_v44 = vpack.c.bf16 %v1064_v38, %v1060_v36  ;;  %v1111_v36 = vld [vmem:[%s10928_s23 + $0xa28] sm:$0xff]  ;;  %v1113_v38 = vld [vmem:[%s10928_s23 + $0xa38] sm:$0xff] }
  0x8b   : > { %7799 = vmatprep.subr.bf16.mxu1 %v7798_v55  ;;  %v1037_v55 = vld [vmem:[%s10928_s23 + $0x7d8] sm:$0xff]  ;;  %v7820_v58 = vpack.c.bf16 %v1032_v52, %v1028_v50  ;;  %v1068_v48 = vld [vmem:[%s10928_s23 + $0x8d0] sm:$0xff]  ;;  %v7838_v49 = vpack.c.bf16 %v1073_v42, %v1069_v41  ;;  %v1079_v52 = vld [vmem:[%s10928_s23 + $0x928] sm:$0xff] }
  0x8c   : > { %v1072_v50 = vld [vmem:[%s10928_s23 + $0x8f0] sm:$0xff]  ;;  %v1106_v42 = vld [vmem:[%s10928_s23 + $0xa00] sm:$0xff] }
  0x8d   : > { %7601 = vmatpush1.bf16.msra.mxu0 %v7600_v61  ;;  %v1038_v61 = vld [vmem:[%s10928_s23 + $0x7e0] sm:$0xff] }
  0x8e   : > { %7801 = vmatpush1.bf16.msra.mxu1 %v7800_v62  ;;  %7603 = vmatprep.subr.bf16.mxu0 %v7602_v63  ;;  %v1036_v62 = vld [vmem:[%s10928_s23 + $0x7d0] sm:$0xff]  ;;  %v7822_v63 = vpack.c.bf16 %v1041_v56, %v1037_v55  ;;  %v7624_v5 = vpack.c.bf16 %v1038_v61, %v1034_v60  ;;  %v7840_v56 = vpack.c.bf16 %v1072_v50, %v1068_v48  ;;  %v1119_v48 = vld [vmem:[%s10928_s23 + $0xa68] sm:$0xff]  ;;  %v1121_v50 = vld [vmem:[%s10928_s23 + $0xa78] sm:$0xff] }
  0x8f   : > { %7803 = vmatprep.subr.bf16.mxu1 %v7802_v3  ;;  %v1045_v3 = vld [vmem:[%s10928_s23 + $0x818] sm:$0xff]  ;;  %v7824_v6 = vpack.c.bf16 %v1040_v0, %v1036_v62  ;;  %v1076_v60 = vld [vmem:[%s10928_s23 + $0x910] sm:$0xff]  ;;  %v7842_v61 = vpack.c.bf16 %v1081_v54, %v1077_v53  ;;  %v1087_v0 = vld [vmem:[%s10928_s23 + $0x968] sm:$0xff] }
  0x90   : > { %v1080_v62 = vld [vmem:[%s10928_s23 + $0x930] sm:$0xff]  ;;  %v1114_v54 = vld [vmem:[%s10928_s23 + $0xa40] sm:$0xff] }
  0x91   : > { %7605 = vmatpush1.bf16.msra.mxu0 %v7604_v9  ;;  %v1046_v9 = vld [vmem:[%s10928_s23 + $0x820] sm:$0xff] }
  0x92   : > { %7805 = vmatpush1.bf16.msra.mxu1 %v7804_v10  ;;  %7607 = vmatprep.subr.bf16.mxu0 %v7606_v11  ;;  %v1044_v10 = vld [vmem:[%s10928_s23 + $0x810] sm:$0xff]  ;;  %v7826_v11 = vpack.c.bf16 %v1049_v4, %v1045_v3  ;;  %v7628_v18 = vpack.c.bf16 %v1046_v9, %v1042_v8  ;;  %v7844_v4 = vpack.c.bf16 %v1080_v62, %v1076_v60  ;;  %v1127_v60 = vld [vmem:[%s10928_s23 + $0xaa8] sm:$0xff]  ;;  %v1129_v62 = vld [vmem:[%s10928_s23 + $0xab8] sm:$0xff] }
  0x93   : > { %7807 = vmatprep.subr.bf16.mxu1 %v7806_v15  ;;  %v1053_v15 = vld [vmem:[%s10928_s23 + $0x858] sm:$0xff]  ;;  %v7828_v19 = vpack.c.bf16 %v1048_v12, %v1044_v10  ;;  %v1084_v8 = vld [vmem:[%s10928_s23 + $0x950] sm:$0xff]  ;;  %v7846_v9 = vpack.c.bf16 %v1089_v2, %v1085_v1  ;;  %v1095_v12 = vld [vmem:[%s10928_s23 + $0x9a8] sm:$0xff] }
  0x94   : > { %v7830_v24 = vpack.c.bf16 %v1057_v16, %v1053_v15  ;;  %v1088_v10 = vld [vmem:[%s10928_s23 + $0x970] sm:$0xff]  ;;  %v1122_v2 = vld [vmem:[%s10928_s23 + $0xa80] sm:$0xff] }
  0x95   : > { %7609 = vmatpush1.bf16.msra.mxu0 %v7608_v21  ;;  %v1050_v21 = vld [vmem:[%s10928_s23 + $0x840] sm:$0xff]  ;;  %v7848_v16 = vpack.c.bf16 %v1088_v10, %v1084_v8  ;;  %v1135_v8 = vld [vmem:[%s10928_s23 + $0xae8] sm:$0xff]  ;;  %v1137_v10 = vld [vmem:[%s10928_s23 + $0xaf8] sm:$0xff] }
  0x96   : > { %7809 = vmatpush1.bf16.msra.mxu1 %v7808_v22  ;;  %7611 = vmatprep.subr.bf16.mxu0 %v7610_v23  ;;  %v1054_v22 = vld [vmem:[%s10928_s23 + $0x860] sm:$0xff]  ;;  %v1052_v23 = vld [vmem:[%s10928_s23 + $0x850] sm:$0xff] }
  0x97   : > { %7811 = vmatprep.subr.bf16.mxu1 %v7810_v27  ;;  %v1063_v27 = vld [vmem:[%s10928_s23 + $0x8a8] sm:$0xff]  ;;  %v7632_v31 = vpack.c.bf16 %v1054_v22, %v1050_v21  ;;  %v7832_v32 = vpack.c.bf16 %v1056_v25, %v1052_v23  ;;  %v7850_v21 = vpack.c.bf16 %v1097_v14, %v1093_v13  ;;  %v1096_v22 = vld [vmem:[%s10928_s23 + $0x9b0] sm:$0xff]  ;;  %v1101_v25 = vld [vmem:[%s10928_s23 + $0x9d8] sm:$0xff] }
  0x98   : > { %v1099_v23 = vld [vmem:[%s10928_s23 + $0x9c8] sm:$0xff]  ;;  %v1130_v14 = vld [vmem:[%s10928_s23 + $0xac0] sm:$0xff] }
  0x99   : > { %7613 = vmatpush1.bf16.msra.mxu0 %v7612_v33  ;;  %v7634_v33 = vpack.c.bf16 %v1063_v27, %v1059_v26  ;;  %v1105_v26 = vld [vmem:[%s10928_s23 + $0x9f8] sm:$0xff] }
  0x9a   : > { %7813 = vmatpush1.bf16.msra.mxu1 %v7812_v34  ;;  %7615 = vmatprep.subr.bf16.mxu0 %v7614_v35  ;;  %v1058_v34 = vld [vmem:[%s10928_s23 + $0x880] sm:$0xff] }
  0x9b   : > { %7815 = vmatprep.subr.bf16.mxu1 %v7814_v39  ;;  %v1062_v35 = vld [vmem:[%s10928_s23 + $0x8a0] sm:$0xff]  ;;  %v1067_v39 = vld [vmem:[%s10928_s23 + $0x8c8] sm:$0xff] }
  0x9c   : > { %v7636_v43 = vpack.c.bf16 %v1062_v35, %v1058_v34  ;;  %v1104_v34 = vld [vmem:[%s10928_s23 + $0x9f0] sm:$0xff]  ;;  %v1107_v35 = vld [vmem:[%s10928_s23 + $0xa08] sm:$0xff] }
  0x9d   : > { %7617 = vmatpush1.bf16.msra.mxu0 %v7616_v45  ;;  %v7638_v45 = vpack.c.bf16 %v1071_v40, %v1067_v39  ;;  %v7658_v41 = vpack.c.bf16 %v1111_v36, %v1107_v35 }
  0x9e   : > { %7817 = vmatpush1.bf16.msra.mxu1 %v7816_v46  ;;  %7619 = vmatprep.subr.bf16.mxu0 %v7618_v47  ;;  %v1066_v46 = vld [vmem:[%s10928_s23 + $0x8c0] sm:$0xff] }
  0x9f   : > { %7819 = vmatprep.subr.bf16.mxu1 %v7818_v51  ;;  %v1070_v47 = vld [vmem:[%s10928_s23 + $0x8e0] sm:$0xff]  ;;  %v1075_v51 = vld [vmem:[%s10928_s23 + $0x908] sm:$0xff] }
  0xa0   : > { %v7640_v55 = vpack.c.bf16 %v1070_v47, %v1066_v46  ;;  %v1112_v46 = vld [vmem:[%s10928_s23 + $0xa30] sm:$0xff]  ;;  %v1115_v47 = vld [vmem:[%s10928_s23 + $0xa48] sm:$0xff] }
  0xa1   : > { %7621 = vmatpush1.bf16.msra.mxu0 %v7620_v57  ;;  %v7642_v57 = vpack.c.bf16 %v1079_v52, %v1075_v51  ;;  %v7662_v53 = vpack.c.bf16 %v1119_v48, %v1115_v47 }
  0xa2   : > { %7821 = vmatpush1.bf16.msra.mxu1 %v7820_v58  ;;  %7623 = vmatprep.subr.bf16.mxu0 %v7622_v59  ;;  %v1074_v58 = vld [vmem:[%s10928_s23 + $0x900] sm:$0xff] }
  0xa3   : > { %7823 = vmatprep.subr.bf16.mxu1 %v7822_v63  ;;  %v1078_v59 = vld [vmem:[%s10928_s23 + $0x920] sm:$0xff]  ;;  %v1083_v63 = vld [vmem:[%s10928_s23 + $0x948] sm:$0xff] }
  0xa4   : > { %v7644_v3 = vpack.c.bf16 %v1078_v59, %v1074_v58  ;;  %v1120_v58 = vld [vmem:[%s10928_s23 + $0xa70] sm:$0xff]  ;;  %v1123_v59 = vld [vmem:[%s10928_s23 + $0xa88] sm:$0xff] }
  0xa5   : > { %7625 = vmatpush1.bf16.msra.mxu0 %v7624_v5  ;;  %v7646_v5 = vpack.c.bf16 %v1087_v0, %v1083_v63  ;;  %v7666_v1 = vpack.c.bf16 %v1127_v60, %v1123_v59 }
  0xa6   : > { %7825 = vmatpush1.bf16.msra.mxu1 %v7824_v6  ;;  %7627 = vmatprep.subr.bf16.mxu0 %v7626_v7  ;;  %v1082_v6 = vld [vmem:[%s10928_s23 + $0x940] sm:$0xff] }
  0xa7   : > { %7827 = vmatprep.subr.bf16.mxu1 %v7826_v11  ;;  %v1086_v7 = vld [vmem:[%s10928_s23 + $0x960] sm:$0xff]  ;;  %v1091_v11 = vld [vmem:[%s10928_s23 + $0x988] sm:$0xff] }
  0xa8   : > { %1348 = vmatmul.mubr.f32.vlgmr.msra.gmra.mrb[0].mxu0 %v781_v17  ;;  %v7648_v15 = vpack.c.bf16 %v1086_v7, %v1082_v6  ;;  %v1128_v6 = vld [vmem:[%s10928_s23 + $0xab0] sm:$0xff]  ;;  %v1131_v7 = vld [vmem:[%s10928_s23 + $0xac8] sm:$0xff] }
  0xa9   : > { %7629 = vmatpush1.bf16.msra.mxu0 %v7628_v18  ;;  %1632 = vmatmul.mubr.f32.vlgmr.msra.gmra.mrb[0].mxu1 %v781_v17  ;;  %v7650_v17 = vpack.c.bf16 %v1095_v12, %v1091_v11  ;;  %v1090_v18 = vld [vmem:[%s10928_s23 + $0x980] sm:$0xff]  ;;  %v7670_v13 = vpack.c.bf16 %v1135_v8, %v1131_v7 }
  0xaa   : > { %7829 = vmatpush1.bf16.msra.mxu1 %v7828_v19  ;;  %7631 = vmatprep.subr.bf16.mxu0 %v7630_v20  ;;  %v1094_v19 = vld [vmem:[%s10928_s23 + $0x9a0] sm:$0xff]  ;;  %v1092_v20 = vld [vmem:[%s10928_s23 + $0x990] sm:$0xff] }
  0xab   : > { %7831 = vmatprep.subr.bf16.mxu1 %v7830_v24  ;;  %1418 = vmatprep.mubr.f32.mxu0 %v784_v30  ;;  %v1103_v24 = vld [vmem:[%s10928_s23 + $0x9e8] sm:$0xff]  ;;  %v7652_v27 = vpack.c.bf16 %v1094_v19, %v1090_v18  ;;  %v7852_v28 = vpack.c.bf16 %v1096_v22, %v1092_v20  ;;  %v1136_v18 = vld [vmem:[%s10928_s23 + $0xaf0] sm:$0xff]  ;;  %v1145_v22 = vld [vmem:[%s10928_s23 + $0xb38] sm:$0xff] }
  0xac   : > { %1702 = vmatprep.mubr.f32.mxu1 %v784_v30  ;;  %v7654_v29 = vpack.c.bf16 %v1103_v24, %v1099_v23  ;;  %v1098_v30 = vld [vmem:[%s10928_s23 + $0x9c0] sm:$0xff]  ;;  %v1139_v19 = vld [vmem:[%s10928_s23 + $0xb08] sm:$0xff] }
  0xad   : > { %7633 = vmatpush1.bf16.msra.mxu0 %v7632_v31  ;;  %v1102_v31 = vld [vmem:[%s10928_s23 + $0x9e0] sm:$0xff]  ;;  %v1143_v20 = vld [vmem:[%s10928_s23 + $0xb28] sm:$0xff] }
  0xae   : > { %7833 = vmatpush1.bf16.msra.mxu1 %v7832_v32  ;;  %7635 = vmatprep.subr.bf16.mxu0 %v7634_v33  ;;  %v1100_v32 = vld [vmem:[%s10928_s23 + $0x9d0] sm:$0xff]  ;;  %v7854_v33 = vpack.c.bf16 %v1105_v26, %v1101_v25  ;;  %v7656_v39 = vpack.c.bf16 %v1102_v31, %v1098_v30  ;;  %v7674_v25 = vpack.c.bf16 %v1143_v20, %v1139_v19  ;;  %v1138_v26 = vld [vmem:[%s10928_s23 + $0xb00] sm:$0xff]  ;;  %v1147_v31 = vld [vmem:[%s10928_s23 + $0xb48] sm:$0xff] }
  0xaf   : > { %7835 = vmatprep.subr.bf16.mxu1 %v7834_v37  ;;  %v1109_v37 = vld [vmem:[%s10928_s23 + $0xa18] sm:$0xff]  ;;  %v7856_v40 = vpack.c.bf16 %v1104_v34, %v1100_v32  ;;  %v1144_v30 = vld [vmem:[%s10928_s23 + $0xb30] sm:$0xff]  ;;  %v1151_v32 = vld [vmem:[%s10928_s23 + $0xb68] sm:$0xff] }
  0xb0   : > { %v1153_v34 = vld [vmem:[%s10928_s23 + $0xb78] sm:$0xff]  ;;  %v1170_v8 = vld [vmem:[%s10928_s23 + $0xc00] sm:$0xff] }
  0xb1   : > { %7637 = vmatpush1.bf16.msra.mxu0 %v7636_v43  ;;  %v1110_v43 = vld [vmem:[%s10928_s23 + $0xa20] sm:$0xff]  ;;  %v1173_v19 = vld [vmem:[%s10928_s23 + $0xc18] sm:$0xff] }
  0xb2   : > { %7837 = vmatpush1.bf16.msra.mxu1 %v7836_v44  ;;  %7639 = vmatprep.subr.bf16.mxu0 %v7638_v45  ;;  %v1108_v44 = vld [vmem:[%s10928_s23 + $0xa10] sm:$0xff]  ;;  %v7858_v45 = vpack.c.bf16 %v1113_v38, %v1109_v37  ;;  %v7660_v51 = vpack.c.bf16 %v1110_v43, %v1106_v42  ;;  %v7678_v37 = vpack.c.bf16 %v1151_v32, %v1147_v31  ;;  %v1146_v38 = vld [vmem:[%s10928_s23 + $0xb40] sm:$0xff]  ;;  %v1155_v43 = vld [vmem:[%s10928_s23 + $0xb88] sm:$0xff] }
  0xb3   : > { %7839 = vmatprep.subr.bf16.mxu1 %v7838_v49  ;;  %v1117_v49 = vld [vmem:[%s10928_s23 + $0xa58] sm:$0xff]  ;;  %v7860_v52 = vpack.c.bf16 %v1112_v46, %v1108_v44  ;;  %v1152_v42 = vld [vmem:[%s10928_s23 + $0xb70] sm:$0xff]  ;;  %v1159_v44 = vld [vmem:[%s10928_s23 + $0xba8] sm:$0xff] }
  0xb4   : > { %v1161_v46 = vld [vmem:[%s10928_s23 + $0xbb8] sm:$0xff] }
  0xb5   : > { %7641 = vmatpush1.bf16.msra.mxu0 %v7640_v55  ;;  %v1118_v55 = vld [vmem:[%s10928_s23 + $0xa60] sm:$0xff]  ;;  %v1177_v20 = vld [vmem:[%s10928_s23 + $0xc38] sm:$0xff] }
  0xb6   : > { %7841 = vmatpush1.bf16.msra.mxu1 %v7840_v56  ;;  %7643 = vmatprep.subr.bf16.mxu0 %v7642_v57  ;;  %v1116_v56 = vld [vmem:[%s10928_s23 + $0xa50] sm:$0xff]  ;;  %v7862_v57 = vpack.c.bf16 %v1121_v50, %v1117_v49  ;;  %v7664_v63 = vpack.c.bf16 %v1118_v55, %v1114_v54  ;;  %v7682_v49 = vpack.c.bf16 %v1159_v44, %v1155_v43  ;;  %v1154_v50 = vld [vmem:[%s10928_s23 + $0xb80] sm:$0xff]  ;;  %v1163_v55 = vld [vmem:[%s10928_s23 + $0xbc8] sm:$0xff] }
  0xb7   : > { %7843 = vmatprep.subr.bf16.mxu1 %v7842_v61  ;;  %v1125_v61 = vld [vmem:[%s10928_s23 + $0xa98] sm:$0xff]  ;;  %v7864_v0 = vpack.c.bf16 %v1120_v58, %v1116_v56  ;;  %v1160_v54 = vld [vmem:[%s10928_s23 + $0xbb0] sm:$0xff]  ;;  %v1167_v56 = vld [vmem:[%s10928_s23 + $0xbe8] sm:$0xff] }
  0xb8   : > { %v1169_v58 = vld [vmem:[%s10928_s23 + $0xbf8] sm:$0xff]  ;;  %v1822_v43 = vld [vmem:[%s10929_s26 + $0x130] sm:$0xff] }
  0xb9   : > { %7645 = vmatpush1.bf16.msra.mxu0 %v7644_v3  ;;  %v1126_v3 = vld [vmem:[%s10928_s23 + $0xaa0] sm:$0xff]  ;;  %v1185_v31 = vld [vmem:[%s10928_s23 + $0xc78] sm:$0xff] }
  0xba   : > { %7845 = vmatpush1.bf16.msra.mxu1 %v7844_v4  ;;  %7647 = vmatprep.subr.bf16.mxu0 %v7646_v5  ;;  %v1124_v4 = vld [vmem:[%s10928_s23 + $0xa90] sm:$0xff]  ;;  %v7866_v5 = vpack.c.bf16 %v1129_v62, %v1125_v61  ;;  %v7668_v11 = vpack.c.bf16 %v1126_v3, %v1122_v2  ;;  %v7686_v61 = vpack.c.bf16 %v1167_v56, %v1163_v55  ;;  %v1162_v62 = vld [vmem:[%s10928_s23 + $0xbc0] sm:$0xff]  ;;  %v1171_v3 = vld [vmem:[%s10928_s23 + $0xc08] sm:$0xff] }
  0xbb   : > { %7847 = vmatprep.subr.bf16.mxu1 %v7846_v9  ;;  %v1133_v9 = vld [vmem:[%s10928_s23 + $0xad8] sm:$0xff]  ;;  %v7868_v12 = vpack.c.bf16 %v1128_v6, %v1124_v4  ;;  %v1168_v2 = vld [vmem:[%s10928_s23 + $0xbf0] sm:$0xff]  ;;  %v1175_v4 = vld [vmem:[%s10928_s23 + $0xc28] sm:$0xff] }
  0xbc   : > { %v7690_v7 = vpack.c.bf16 %v1175_v4, %v1171_v3  ;;  %v1823_v44 = vld [vmem:[%s10929_s26 + $0x138] sm:$0xff]  ;;  %v1786_v56 = vld [vmem:[%s10929_s26 + $0x10] sm:$0xff] }
  0xbd   : > { %7649 = vmatpush1.bf16.msra.mxu0 %v7648_v15  ;;  %v1134_v15 = vld [vmem:[%s10928_s23 + $0xae0] sm:$0xff]  ;;  %v1806_v4 = vld [vmem:[%s10929_s26 + $0xb0] sm:$0xff] }
  0xbe   : > { %7849 = vmatpush1.bf16.msra.mxu1 %v7848_v16  ;;  %7651 = vmatprep.subr.bf16.mxu0 %v7650_v17  ;;  %v1132_v16 = vld [vmem:[%s10928_s23 + $0xad0] sm:$0xff]  ;;  %v7870_v17 = vpack.c.bf16 %v1137_v10, %v1133_v9  ;;  %v7672_v23 = vpack.c.bf16 %v1134_v15, %v1130_v14  ;;  %v1174_v9 = vld [vmem:[%s10928_s23 + $0xc20] sm:$0xff]  ;;  %v1179_v10 = vld [vmem:[%s10928_s23 + $0xc48] sm:$0xff] }
  0xbf   : > { %7851 = vmatprep.subr.bf16.mxu1 %v7850_v21  ;;  %v1141_v21 = vld [vmem:[%s10928_s23 + $0xb18] sm:$0xff]  ;;  %v7872_v24 = vpack.c.bf16 %v1136_v18, %v1132_v16  ;;  %v783_v14 = vld [vmem:[%s8514_s6 + $0x20] sm:$0xff]  ;;  %v7692_v15 = vpack.c.bf16 %v1174_v9, %v1170_v8 }
  0xc0   : > { %v1182_v18 = vld [vmem:[%s10928_s23 + $0xc60] sm:$0xff] }
  0xc1   : > { %7653 = vmatpush1.bf16.msra.mxu0 %v7652_v27  ;;  %v1142_v27 = vld [vmem:[%s10928_s23 + $0xb20] sm:$0xff] }
  0xc2   : > { %7853 = vmatpush1.bf16.msra.mxu1 %v7852_v28  ;;  %7655 = vmatprep.subr.bf16.mxu0 %v7654_v29  ;;  %v1140_v28 = vld [vmem:[%s10928_s23 + $0xb10] sm:$0xff]  ;;  %v7874_v29 = vpack.c.bf16 %v1145_v22, %v1141_v21  ;;  %v7676_v35 = vpack.c.bf16 %v1142_v27, %v1138_v26  ;;  %v8336_v21 = vmov 0.0|0.0   ;;  %v8337_v26 = vmov 0.0  }
  0xc3   : > { %7855 = vmatprep.subr.bf16.mxu1 %v7854_v33  ;;  %v1149_v33 = vld [vmem:[%s10928_s23 + $0xb58] sm:$0xff]  ;;  %v7876_v36 = vpack.c.bf16 %v1144_v30, %v1140_v28  ;;  %v7890_v27 = vpack.c.bf16 %v1177_v20, %v1173_v19  ;;  %v1172_v28 = vld [vmem:[%s10928_s23 + $0xc10] sm:$0xff]  ;;  %v1832_v20 = vld [vmem:[%s10929_s26 + $0x180] sm:$0xff] }
  0xc4   : > { %v1181_v30 = vld [vmem:[%s10928_s23 + $0xc58] sm:$0xff] }
  0xc5   : > { %7657 = vmatpush1.bf16.msra.mxu0 %v7656_v39  ;;  %v1150_v39 = vld [vmem:[%s10928_s23 + $0xb60] sm:$0xff] }
  0xc6   : > { %7857 = vmatpush1.bf16.msra.mxu1 %v7856_v40  ;;  %7659 = vmatprep.subr.bf16.mxu0 %v7658_v41  ;;  %v1148_v40 = vld [vmem:[%s10928_s23 + $0xb50] sm:$0xff]  ;;  %v7878_v41 = vpack.c.bf16 %v1153_v34, %v1149_v33  ;;  %v7680_v47 = vpack.c.bf16 %v1150_v39, %v1146_v38  ;;  %v1820_v33 = vld [vmem:[%s10929_s26 + $0x120] sm:$0xff]  ;;  %v1821_v34 = vld [vmem:[%s10929_s26 + $0x128] sm:$0xff] }
  0xc7   : > { %7859 = vmatprep.subr.bf16.mxu1 %v7858_v45  ;;  %v1157_v45 = vld [vmem:[%s10928_s23 + $0xb98] sm:$0xff]  ;;  %v7880_v48 = vpack.c.bf16 %v1152_v42, %v1148_v40  ;;  %v1180_v38 = vld [vmem:[%s10928_s23 + $0xc50] sm:$0xff]  ;;  %v7937_v40 = vpack.c.bf16 %v1821_v34, %v1820_v33  ;;  %v1801_v42 = vld [vmem:[%s10929_s26 + $0x88] sm:$0xff] }
  0xc8   : > { %v1184_v39 = vld [vmem:[%s10928_s23 + $0xc70] sm:$0xff] }
  0xc9   : > { %7661 = vmatpush1.bf16.msra.mxu0 %v7660_v51  ;;  %v1158_v51 = vld [vmem:[%s10928_s23 + $0xba0] sm:$0xff]  ;;  %v1810_v34 = vld [vmem:[%s10929_s26 + $0xd0] sm:$0xff] }
  0xca   : > { %7861 = vmatpush1.bf16.msra.mxu1 %v7860_v52  ;;  %7663 = vmatprep.subr.bf16.mxu0 %v7662_v53  ;;  %v1156_v52 = vld [vmem:[%s10928_s23 + $0xb90] sm:$0xff]  ;;  %v7882_v53 = vpack.c.bf16 %v1161_v46, %v1157_v45  ;;  %v7684_v59 = vpack.c.bf16 %v1158_v51, %v1154_v50  ;;  %v7896_v45 = vpack.c.bf16 %v1184_v39, %v1180_v38  ;;  %v1803_v51 = vld [vmem:[%s10929_s26 + $0x98] sm:$0xff] }
  0xcb   : > { %7863 = vmatprep.subr.bf16.mxu1 %v7862_v57  ;;  %v1165_v57 = vld [vmem:[%s10928_s23 + $0xbd8] sm:$0xff]  ;;  %v7884_v60 = vpack.c.bf16 %v1160_v54, %v1156_v52  ;;  %v1802_v50 = vld [vmem:[%s10929_s26 + $0x90] sm:$0xff]  ;;  %v1824_v52 = vld [vmem:[%s10929_s26 + $0x140] sm:$0xff] }
  0xcc   : > { %v7902_v55 = vpack.c.bf16 %v1803_v51, %v1802_v50  ;;  %v1795_v38 = vld [vmem:[%s10929_s26 + $0x58] sm:$0xff]  ;;  %v1841_v50 = vld [vmem:[%s10929_s26 + $0x1c8] sm:$0xff] }
  0xcd   : > { %7665 = vmatpush1.bf16.msra.mxu0 %v7664_v63  ;;  %v1166_v63 = vld [vmem:[%s10928_s23 + $0xbe0] sm:$0xff] }
  0xce   : > { %7865 = vmatpush1.bf16.msra.mxu1 %v7864_v0  ;;  %7667 = vmatprep.subr.bf16.mxu0 %v7666_v1  ;;  %v1164_v0 = vld [vmem:[%s10928_s23 + $0xbd0] sm:$0xff]  ;;  %v7886_v1 = vpack.c.bf16 %v1169_v58, %v1165_v57  ;;  %v1787_v57 = vld [vmem:[%s10929_s26 + $0x18] sm:$0xff] }
  0xcf   : > { %7867 = vmatprep.subr.bf16.mxu1 %v7866_v5  ;;  %v7688_v5 = vpack.c.bf16 %v1166_v63, %v1162_v62  ;;  %v7888_v6 = vpack.c.bf16 %v1168_v2, %v1164_v0  ;;  %v1827_v62 = vld [vmem:[%s10929_s26 + $0x158] sm:$0xff]  ;;  %v7904_v63 = vpack.c.bf16 %v1787_v57, %v1786_v56  ;;  %v1789_v2 = vld [vmem:[%s10929_s26 + $0x28] sm:$0xff] }
  0xd0   : > { %v1799_v56 = vld [vmem:[%s10929_s26 + $0x78] sm:$0xff] }
  0xd1   : > { %7669 = vmatpush1.bf16.msra.mxu0 %v7668_v11  ;;  %v1183_v11 = vld [vmem:[%s10928_s23 + $0xc68] sm:$0xff] }
  0xd2   : > { %7869 = vmatpush1.bf16.msra.mxu1 %v7868_v12  ;;  %7671 = vmatprep.subr.bf16.mxu0 %v7670_v13  ;;  %v1816_v12 = vld [vmem:[%s10929_s26 + $0x100] sm:$0xff]  ;;  %v1817_v13 = vld [vmem:[%s10929_s26 + $0x108] sm:$0xff]  ;;  %v7694_v16 = vpack.c.bf16 %v1183_v11, %v1179_v10  ;;  %v1790_v10 = vld [vmem:[%s10929_s26 + $0x30] sm:$0xff] }
  0xd3   : > { %7871 = vmatprep.subr.bf16.mxu1 %v7870_v17  ;;  %v1178_v17 = vld [vmem:[%s10928_s23 + $0xc40] sm:$0xff]  ;;  %v7931_v22 = vpack.c.bf16 %v1817_v13, %v1816_v12  ;;  %v1791_v11 = vld [vmem:[%s10929_s26 + $0x38] sm:$0xff] }
  0xd4   : > { %v1808_v13 = vld [vmem:[%s10929_s26 + $0xc0] sm:$0xff] }
  0xd5   : > { %7673 = vmatpush1.bf16.msra.mxu0 %v7672_v23  ;;  %v1818_v23 = vld [vmem:[%s10929_s26 + $0x110] sm:$0xff] }
  0xd6   : > { %7873 = vmatpush1.bf16.msra.mxu1 %v7872_v24  ;;  %7675 = vmatprep.subr.bf16.mxu0 %v7674_v25  ;;  %v1819_v24 = vld [vmem:[%s10929_s26 + $0x118] sm:$0xff]  ;;  %v7696_v25 = vpack.c.bf16 %v1182_v18, %v1178_v17  ;;  %v7912_v17 = vpack.c.bf16 %v1791_v11, %v1790_v10 }
  0xd7   : > { %7875 = vmatprep.subr.bf16.mxu1 %v7874_v29  ;;  %v1176_v29 = vld [vmem:[%s10928_s23 + $0xc30] sm:$0xff]  ;;  %v7934_v32 = vpack.c.bf16 %v1819_v24, %v1818_v23 }
  0xd8   : > { %v1834_v24 = vld [vmem:[%s10929_s26 + $0x190] sm:$0xff] }
  0xd9   : > { %7677 = vmatpush1.bf16.msra.mxu0 %v7676_v35  ;;  %v785_v35 = vld [vmem:[%s8514_s6 + $0x30] sm:$0xff] }
  0xda   : > { %7877 = vmatpush1.bf16.msra.mxu1 %v7876_v36  ;;  %7679 = vmatprep.subr.bf16.mxu0 %v7678_v37  ;;  %v7892_v36 = vpack.c.bf16 %v1176_v29, %v1172_v28  ;;  %v7894_v37 = vpack.c.bf16 %v1185_v31, %v1181_v30  ;;  %v1792_v28 = vld [vmem:[%s10929_s26 + $0x40] sm:$0xff]  ;;  %v1793_v29 = vld [vmem:[%s10929_s26 + $0x48] sm:$0xff] }
  0xdb   : > { %7879 = vmatprep.subr.bf16.mxu1 %v7878_v41  ;;  %v1800_v41 = vld [vmem:[%s10929_s26 + $0x80] sm:$0xff]  ;;  %v7916_v30 = vpack.c.bf16 %v1793_v29, %v1792_v28 }
  0xdc   : > { %v7898_v46 = vpack.c.bf16 %v1801_v42, %v1800_v41  ;;  %v1836_v31 = vld [vmem:[%s10929_s26 + $0x1a0] sm:$0xff]  ;;  %v1839_v41 = vld [vmem:[%s10929_s26 + $0x1b8] sm:$0xff] }
  0xdd   : > { %7681 = vmatpush1.bf16.msra.mxu0 %v7680_v47  ;;  %v1784_v47 = vld [vmem:[%s10929_s26] sm:$0xff] }
  0xde   : > { %7881 = vmatpush1.bf16.msra.mxu1 %v7880_v48  ;;  %7683 = vmatprep.subr.bf16.mxu0 %v7682_v49  ;;  %v1785_v48 = vld [vmem:[%s10929_s26 + $0x8] sm:$0xff]  ;;  %v7940_v49 = vpack.c.bf16 %v1823_v44, %v1822_v43  ;;  %v1812_v42 = vld [vmem:[%s10929_s26 + $0xe0] sm:$0xff] }
  0xdf   : > { %7883 = vmatprep.subr.bf16.mxu1 %v7882_v53  ;;  %v1825_v53 = vld [vmem:[%s10929_s26 + $0x148] sm:$0xff]  ;;  %v7900_v54 = vpack.c.bf16 %v1785_v48, %v1784_v47 }
  0xe0   : > { %v7943_v58 = vpack.c.bf16 %v1825_v53, %v1824_v52  ;;  %v1813_v44 = vld [vmem:[%s10929_s26 + $0xe8] sm:$0xff]  ;;  %v1814_v52 = vld [vmem:[%s10929_s26 + $0xf0] sm:$0xff]  ;;  %v1815_v53 = vld [vmem:[%s10929_s26 + $0xf8] sm:$0xff] }
  0xe1   : > { %7685 = vmatpush1.bf16.msra.mxu0 %v7684_v59  ;;  %v1804_v59 = vld [vmem:[%s10929_s26 + $0xa0] sm:$0xff]  ;;  %v1797_v47 = vld [vmem:[%s10929_s26 + $0x68] sm:$0xff] }
  0xe2   : > { %7885 = vmatpush1.bf16.msra.mxu1 %v7884_v60  ;;  %7687 = vmatprep.subr.bf16.mxu0 %v7686_v61  ;;  %v1805_v60 = vld [vmem:[%s10929_s26 + $0xa8] sm:$0xff]  ;;  %v1826_v61 = vld [vmem:[%s10929_s26 + $0x150] sm:$0xff] }
  0xe3   : > { %7887 = vmatprep.subr.bf16.mxu1 %v7886_v1  ;;  %v7906_v0 = vpack.c.bf16 %v1805_v60, %v1804_v59  ;;  %v1788_v1 = vld [vmem:[%s10929_s26 + $0x20] sm:$0xff]  ;;  %v7946_v3 = vpack.c.bf16 %v1827_v62, %v1826_v61  ;;  %v1843_v59 = vld [vmem:[%s10929_s26 + $0x1d8] sm:$0xff]  ;;  %v1845_v62 = vld [vmem:[%s10929_s26 + $0x1e8] sm:$0xff] }
  0xe4   : > { %v7908_v8 = vpack.c.bf16 %v1789_v2, %v1788_v1  ;;  %v1844_v61 = vld [vmem:[%s10929_s26 + $0x1e0] sm:$0xff]  ;;  %v1188_v1 = vlaneseq }
  0xe5   : > { %7689 = vmatpush1.bf16.msra.mxu0 %v7688_v5  ;;  %v1807_v5 = vld [vmem:[%s10929_s26 + $0xb8] sm:$0xff] }
  0xe6   : > { %7889 = vmatpush1.bf16.msra.mxu1 %v7888_v6  ;;  %7691 = vmatprep.subr.bf16.mxu0 %v7690_v7  ;;  %v1828_v6 = vld [vmem:[%s10929_s26 + $0x160] sm:$0xff]  ;;  %v1829_v7 = vld [vmem:[%s10929_s26 + $0x168] sm:$0xff]  ;;  %v7910_v9 = vpack.c.bf16 %v1807_v5, %v1806_v4 }
  0xe7   : > { %7930 = vmatprep.subr.bf16.mxu1 %v8336_v21  ;;  %v7949_v12 = vpack.c.bf16 %v1829_v7, %v1828_v6  ;;  %v1186_v6 = vld [vmem:[%s10930_s1] sm:$0xf] }
  0xe8   : > { %1419 = vmatmul.mubr.f32.vlgmr.msra.gmra.mrb[0].mxu0 %v783_v14 }
  0xe9   : > { %1703 = vmatmul.mubr.f32.vlgmr.msra.gmra.mrb[0].mxu1 %v783_v14  ;;  %7693 = vmatpush1.bf16.msra.mxu0 %v7692_v15  ;;  %v1809_v14 = vld [vmem:[%s10929_s26 + $0xc8] sm:$0xff]  ;;  %v1830_v15 = vld [vmem:[%s10929_s26 + $0x170] sm:$0xff] }
  0xea   : > { %7695 = vmatprep.subr.bf16.mxu0 %v7694_v16  ;;  %1489 = vmatprep.mubr.f32.mxu0 %v8337_v26  ;;  %v1831_v16 = vld [vmem:[%s10929_s26 + $0x178] sm:$0xff]  ;;  %v7914_v18 = vpack.c.bf16 %v1809_v14, %v1808_v13 }
  0xeb   : > { %7932 = vmatpush1.bf16.msra.mxu1 %v7931_v22  ;;  %v7952_v19 = vpack.c.bf16 %v1831_v16, %v1830_v15  ;;  %v1833_v22 = vld [vmem:[%s10929_s26 + $0x188] sm:$0xff] }
  0xec   : > { %7933 = vmatprep.subr.bf16.mxu1 %v8336_v21  ;;  %v7955_v23 = vpack.c.bf16 %v1833_v22, %v1832_v20 }
  0xed   : > { %7697 = vmatpush1.bf16.msra.mxu0 %v7696_v25  ;;  %v1835_v25 = vld [vmem:[%s10929_s26 + $0x198] sm:$0xff] }
  0xee   : > { %7891 = vmatprep.subr.bf16.mxu0 %v7890_v27  ;;  %v7958_v27 = vpack.c.bf16 %v1835_v25, %v1834_v24 }
  0xef   : > { %7935 = vmatpush1.bf16.msra.mxu1 %v7934_v32  ;;  %v1837_v32 = vld [vmem:[%s10929_s26 + $0x1a8] sm:$0xff] }
  0xf0   : > { %6561 = vmatmul.mubr.msk.f32.vlgmr.msra.gmra.mrb[0].mxu0 %vm1208_vm0, %v785_v35  ;;  %7936 = vmatprep.subr.bf16.mxu1 %v8336_v21  ;;  %v7961_v33 = vpack.c.bf16 %v1837_v32, %v1836_v31  ;;  %v6563_v31 = vld [vmem:[%s10931_s3] ss:$0 sm:$0xff] }
  0xf1   : > { %7893 = vmatpush1.bf16.msra.mxu0 %v7892_v36  ;;  %1773 = vmatprep.mubr.f32.mxu0 %v8337_v26 }
  0xf2   : > { %7895 = vmatprep.subr.bf16.mxu0 %v7894_v37  ;;  %v1794_v37 = vld [vmem:[%s10929_s26 + $0x50] sm:$0xff] }
  0xf3   : > { %7938 = vmatpush1.bf16.msra.mxu1 %v7937_v40  ;;  %v7920_v39 = vpack.c.bf16 %v1795_v38, %v1794_v37  ;;  %v1838_v40 = vld [vmem:[%s10929_s26 + $0x1b0] sm:$0xff] }
  0xf4   : > { %7939 = vmatprep.subr.bf16.mxu1 %v8336_v21  ;;  %v7964_v43 = vpack.c.bf16 %v1839_v41, %v1838_v40 }
  0xf5   : > { %7897 = vmatpush1.bf16.msra.mxu0 %v7896_v45  ;;  %v7922_v45 = vpack.c.bf16 %v1813_v44, %v1812_v42 }
  0xf6   : > { %7899 = vmatprep.subr.bf16.mxu0 %v7898_v46  ;;  %v1796_v46 = vld [vmem:[%s10929_s26 + $0x60] sm:$0xff] }
  0xf7   : > { %7941 = vmatpush1.bf16.msra.mxu1 %v7940_v49  ;;  %v7924_v48 = vpack.c.bf16 %v1797_v47, %v1796_v46  ;;  %v1840_v49 = vld [vmem:[%s10929_s26 + $0x1c0] sm:$0xff] }
  0xf8   : > { %6562 = vmatmul.mubr.msk.f32.vlgmr.msra.gmra.mrb[2].mxu0 %vm1208_vm0, %v785_v35  ;;  %7942 = vmatprep.subr.bf16.mxu1 %v8336_v21  ;;  %v1811_v35 = vld [vmem:[%s10929_s26 + $0xd8] sm:$0xff]  ;;  %v7967_v51 = vpack.c.bf16 %v1841_v50, %v1840_v49 }
  0xf9   : > { %7901 = vmatpush3.bf16.msra.mxu0 %v7900_v54  ;;  %v7918_v36 = vpack.c.bf16 %v1811_v35, %v1810_v34  ;;  %v7926_v54 = vpack.c.bf16 %v1815_v53, %v1814_v52  ;;  %v2002_v34 = vld [vmem:[%s10932_s30] sm:$0xff] }
  0xfa   : > { %7903 = vmatprep.subr.bf16.mxu0 %v7902_v55  ;;  %v1798_v55 = vld [vmem:[%s10929_s26 + $0x70] sm:$0xff] }
  0xfb   : > { %7944 = vmatpush1.bf16.msra.mxu1 %v7943_v58  ;;  %v7928_v57 = vpack.c.bf16 %v1799_v56, %v1798_v55  ;;  %v1842_v58 = vld [vmem:[%s10929_s26 + $0x1d0] sm:$0xff] }
  0xfc   : > { %7945 = vmatprep.subr.bf16.mxu1 %v8336_v21  ;;  %v7970_v60 = vpack.c.bf16 %v1843_v59, %v1842_v58 }
  0xfd   : > { %7905 = vmatpush3.bf16.msra.mxu0 %v7904_v63  ;;  %v7973_v63 = vpack.c.bf16 %v1845_v62, %v1844_v61 }
  0xfe   : > { %7907 = vmatprep.subr.bf16.mxu0 %v7906_v0  ;;  %v1846_v0 = vld [vmem:[%s10929_s26 + $0x1f0] sm:$0xf] }
  0xff   : > { %7947 = vmatpush1.bf16.msra.mxu1 %v7946_v3 }
 0x100   : > { %7948 = vmatprep.subr.bf16.mxu1 %v8336_v21 }
 0x101   : > { %7909 = vmatpush3.bf16.msra.mxu0 %v7908_v8 }
 0x102   : > { %7911 = vmatprep.subr.bf16.mxu0 %v7910_v9 }
 0x103   : > { %7950 = vmatpush1.bf16.msra.mxu1 %v7949_v12 }
 0x104   : > { %7951 = vmatprep.subr.bf16.mxu1 %v8336_v21 }
 0x105   : > { %7913 = vmatpush3.bf16.msra.mxu0 %v7912_v17 }
 0x106   : > { %7915 = vmatprep.subr.bf16.mxu0 %v7914_v18 }
 0x107   : > { %7953 = vmatpush1.bf16.msra.mxu1 %v7952_v19 }
 0x108   : > { %7954 = vmatprep.subr.bf16.mxu1 %v8336_v21 }
 0x109   : > { %7917 = vmatpush3.bf16.msra.mxu0 %v7916_v30 }
 0x10a   : > { %7919 = vmatprep.subr.bf16.mxu0 %v7918_v36 }
 0x10b   : > { %7956 = vmatpush1.bf16.msra.mxu1 %v7955_v23 }
 0x10c   : > { %7957 = vmatprep.subr.bf16.mxu1 %v8336_v21 }
 0x10d   : > { %7921 = vmatpush3.bf16.msra.mxu0 %v7920_v39 }
 0x10e   : > { %7923 = vmatprep.subr.bf16.mxu0 %v7922_v45 }
 0x10f   : > { %7959 = vmatpush1.bf16.msra.mxu1 %v7958_v27 }
 0x110   : > { %7960 = vmatprep.subr.bf16.mxu1 %v8336_v21 }
 0x111   : > { %7925 = vmatpush3.bf16.msra.mxu0 %v7924_v48 }
 0x112   : > { %7927 = vmatprep.subr.bf16.mxu0 %v7926_v54 }
 0x113   : > { %7962 = vmatpush1.bf16.msra.mxu1 %v7961_v33 }
 0x114   : > { %7963 = vmatprep.subr.bf16.mxu1 %v8336_v21 }
 0x115   : > { %7929 = vmatpush3.bf16.msra.mxu0 %v7928_v57 }
 0x117   : > { %7965 = vmatpush1.bf16.msra.mxu1 %v7964_v43 }
 0x118   : > { %7966 = vmatprep.subr.bf16.mxu1 %v8336_v21 }
 0x11b   : > { %7968 = vmatpush1.bf16.msra.mxu1 %v7967_v51 }
 0x11c   : > { %7969 = vmatprep.subr.bf16.mxu1 %v8336_v21 }
 0x11f   : > { %7971 = vmatpush1.bf16.msra.mxu1 %v7970_v60 }
 0x120   : > { %7972 = vmatprep.subr.bf16.mxu1 %v8336_v21  ;;  %v1189_v21 = vshrl.u32 %v1188_v1, 7 }
 0x122   : > { %v1190_v3 = vsub.s32 0, %v1189_v21  ;;  %v1194_v5 = vsub.s32 1, %v1189_v21  ;;  %v1198_v9 = vsub.s32 2, %v1189_v21 }
 0x123   : > { %7974 = vmatpush1.bf16.msra.mxu1 %v7973_v63 }
 0x124   : > { %1992 = vmatprep.subr.mxu1 %v8337_v26  ;;  %v1191_v7 = vrot.slane %v1186_v6, %v1190_v3  ;;  %v1195_v8 = vrot.slane %v1186_v6, %v1194_v5  ;;  %v1202_v26 = vsub.s32 3, %v1189_v21  ;;  %v1199_v14 = vrot.slane %v1186_v6, %v1198_v9 }
 0x126   : > { %v1203_v15 = vrot.slane %v1186_v6, %v1202_v26 }
 0x127   : > { %6564 = vmatpush1.msk.msra.mxu1 %vm1858_vm1, %v1846_v0 }
 0x1bc   : > { %v1704_v2 = vpop.f32.mrb[0].mxu1 }
 0x1bd   : > { %v1706_v4 = vpop.f32.mrb[1].mxu1  ;;  %v8187_v18 = vadd.f32 %v1704_v2, %v1199_v14 }
 0x1be   : > { %v8189_v19 = vadd.f32 %v1706_v4, %v1203_v15 }
 0x1c3   : > { %v1491_v10 = vpop.f32.mrb[0].mxu0 }
 0x1c4   : > { %v8185_v11 = vadd.f32 %v1491_v10, %v1191_v7  ;;  %v1493_v12 = vpop.f32.mrb[1].mxu0 }
 0x1c5   : > { %v8186_v13 = vadd.f32 %v1493_v12, %v1195_v8 }
 0x1c6   : > { %v1780_v17 = vmax.f32 %v8185_v11, 0.0 }
 0x1c7   : > { %v1781_v16 = vmax.f32 %v8186_v13, 0.0 }
 0x1c9   : > { %1926 = vmatprep.mubr.f32.mxu0 %v1781_v16 }
 0x1ca   : > { %1927 = vmatmul.mubr.f32.vlgmr.msra.gmra.mrb[4].mxu0 %v1780_v17 }
 0x1cb   : > { %v1775_v20 = vpop.f32.mrb[2].mxu0 }
 0x1cc   : > { %v8188_v22 = vadd.f32 %v8187_v18, %v1775_v20  ;;  %v1777_v23 = vpop.f32.mrb[3].mxu0 }
 0x1cd   : > { %v8190_v24 = vadd.f32 %v8189_v19, %v1777_v23 }
 0x1ce   : > { %v1782_v27 = vmax.f32 %v8188_v22, 0.0 }
 0x1cf   : > { %v1783_v25 = vmax.f32 %v8190_v24, 0.0 }
 0x1d1   : > { %6565 = vmatprep.mubr.msk.f32.mxu1 %vm1854_vm2, %v1783_v25 }
 0x1d2   : > { %1997 = vmatmul.mubr.f32.vlgmr.msra.gmra.mrb[2].mxu1 %v1782_v27 }
 0x29d   : > { %v6791_v28 = vpop.f32.mrb[4].mxu0 }
 0x29e   : > { %v6792_v29 = vpop.f32.mrb[5].mxu0 }
 0x29f   : > { %v6793_v30 = vadd.f32 %v6792_v29, %v6791_v28 }
 0x2a1   : > { %v1929_v32 = vadd.f32 %v6793_v30, %v6563_v31 }
 0x2a5   : > { %v1998_v33 = vpop.f32.mrb[2].mxu1 }
 0x2a6   : > { %v1999_v35 = vadd.f32 %v1998_v33, %v1929_v32  ;;  %v2000_v36 = vpop.f32.mrb[3].mxu1 }
 0x2a8   : > { %v2003_v37 = vadd.f32 %v2002_v34, %v1999_v35 }
 0x2aa   : > { %2004 = vst.msk [vmem:[#allocation2] sm:$0xff] %vm1208_vm0, %v2003_v37 }
 0x2ab PF: > { %vm2072_vm3 = vcmask 261120   ;;  %s10933_s2 = sld [smem:[#allocation16_spill]]  ;;  %v8338_v50 = vmov 0.0|0.0   ;;  %vm8339_vm4 = vmmov 0   ;;  %v8340_v58 = vmov 0.0   ;;  %s10935_s5 = sld [smem:[#allocation14_spill]] }
 0x2ac   : > { %7975 = vmatprep.subr.bf16.mxu0 %v8338_v50  ;;  %7993 = vmatprep.subr.bf16.mxu1 %v8338_v50  ;;  %v2026_v2 = vld [vmem:[%s10881_s10 + $0x20] sm:$0xff]  ;;  %v2027_v3 = vld [vmem:[%s10881_s10 + $0x28] sm:$0xff]  ;;  %s10936_s9 = sld [smem:[#allocation15_spill]]  ;;  %v2028_v10 = vld [vmem:[%s10881_s10 + $0x30] sm:$0xff]  ;;  %vm3016_vm5 = vcmask 64512   ;;  %p6753_p7 = scmp.ne.s32.totalorder %s8318_s29, 1 }
 0x2ad   : > { %7019 = vmatprep.mubr.msk.f32.mxu0 %vm8339_vm4, %v8340_v58  ;;  %7052 = vmatprep.mubr.msk.f32.mxu1 %vm8339_vm4, %v8340_v58  ;;  %v8006_v7 = vpack.c.bf16 %v2027_v3, %v2026_v2  ;;  %v2029_v11 = vld [vmem:[%s10881_s10 + $0x38] sm:$0xff]  ;;  %v2034_v16 = vld [vmem:[%s10881_s10 + $0x60] sm:$0xff]  ;;  %v2035_v17 = vld [vmem:[%s10881_s10 + $0x68] sm:$0xff]  ;;  %vm8342_vm6 = vmmov (!%p6753_p7), 0   ;;  %s10939_s6 = sld [smem:[#allocation18_spill]] (!%p6753_p7)  ;;  %s10940_s7 = sld [smem:[#allocation19_spill]] (!%p6753_p7) }
 0x2ae   : > { %v8009_v13 = vpack.c.bf16 %v2029_v11, %v2028_v10  ;;  %v8018_v19 = vpack.c.bf16 %v2035_v17, %v2034_v16  ;;  %v2036_v23 = vld [vmem:[%s10881_s10 + $0x70] sm:$0xff]  ;;  %v2037_v24 = vld [vmem:[%s10881_s10 + $0x78] sm:$0xff]  ;;  %v2022_v28 = vld [vmem:[%s10881_s10] sm:$0xff] }
 0x2af   : > { %v8021_v27 = vpack.c.bf16 %v2037_v24, %v2036_v23  ;;  %v2023_v29 = vld [vmem:[%s10881_s10 + $0x8] sm:$0xff]  ;;  %v2042_v30 = vld [vmem:[%s10883_s12 + $0x20] sm:$0xff]  ;;  %v2024_v34 = vld [vmem:[%s10881_s10 + $0x10] sm:$0xff] }
 0x2b0   : > { %v2043_v31 = vld [vmem:[%s10883_s12 + $0x28] sm:$0xff]  ;;  %v8000_v32 = vpack.c.bf16 %v2023_v29, %v2022_v28  ;;  %v2025_v35 = vld [vmem:[%s10881_s10 + $0x18] sm:$0xff]  ;;  %v2044_v36 = vld [vmem:[%s10883_s12 + $0x30] sm:$0xff] }
 0x2b1   : > { %v9943_v38 = vld [vmem:[#allocation2] sm:$0xff]  ;;  %s10934_s27 = smov %s10933_s2  ;;  %v8030_v33 = vpack.c.bf16 %v2043_v31, %v2042_v30  ;;  %v2045_v37 = vld [vmem:[%s10883_s12 + $0x38] sm:$0xff] }
 0x2b2   : > { %v2073_v39 = vsel %vm2072_vm3, %v9943_v38, 0.0  ;;  %v2006_v45 = vld [vmem:[%s10933_s2] sm:$0xff]  ;;  %v2007_v46 = vld [vmem:[%s10934_s27 + $0x8] sm:$0xff]  ;;  %v2008_v52 = vld [vmem:[%s10934_s27 + $0x10] sm:$0xff]  ;;  %s10937_s2 = sld [smem:[#allocation17_spill]] }
 0x2b3   : > { %2074 = vadd.xlane.f32.xlu0 %v2073_v39  ;;  %v2018_v47 = vld [vmem:[%s10934_s27 + $0x60] sm:$0xff]  ;;  %v7976_v48 = vpack.c.bf16 %v2007_v46, %v2006_v45  ;;  %v2019_v49 = vld [vmem:[%s10934_s27 + $0x68] sm:$0xff]  ;;  %v2009_v53 = vld [vmem:[%s10934_s27 + $0x18] sm:$0xff]  ;;  %v8003_v39 = vpack.c.bf16 %v2025_v35, %v2024_v34 }
 0x2b4   : > { %v7994_v51 = vpack.c.bf16 %v2019_v49, %v2018_v47  ;;  %v2020_v54 = vld [vmem:[%s10934_s27 + $0x70] sm:$0xff]  ;;  %v7979_v55 = vpack.c.bf16 %v2009_v53, %v2008_v52  ;;  %v2021_v56 = vld [vmem:[%s10934_s27 + $0x78] sm:$0xff]  ;;  %v6566_v63 = vld [vmem:[%s10935_s5] ss:$0 sm:$0xff] }
 0x2b5   : > { %7977 = vmatpush3.bf16.msra.mxu0 %v7976_v48  ;;  %v7997_v57 = vpack.c.bf16 %v2021_v56, %v2020_v54  ;;  %v2010_v0 = vld [vmem:[%s10934_s27 + $0x20] sm:$0xff]  ;;  %v2011_v21 = vld [vmem:[%s10934_s27 + $0x28] sm:$0xff]  ;;  %v2012_v8 = vld [vmem:[%s10934_s27 + $0x30] sm:$0xff] }
 0x2b6   : > { %7995 = vmatpush3.bf16.msra.mxu1 %v7994_v51  ;;  %7978 = vmatprep.subr.bf16.mxu0 %v8338_v50  ;;  %v6567_v4 = vld [vmem:[%s10936_s9] ss:$0 sm:$0xff]  ;;  %v7982_v6 = vpack.c.bf16 %v2011_v21, %v2010_v0  ;;  %v2013_v26 = vld [vmem:[%s10934_s27 + $0x38] sm:$0xff]  ;;  %v2015_v15 = vld [vmem:[%s10934_s27 + $0x48] sm:$0xff] }
 0x2b7   : > { %7996 = vmatprep.subr.bf16.mxu1 %v8338_v50  ;;  %v7985_v12 = vpack.c.bf16 %v2013_v26, %v2012_v8  ;;  %v2014_v14 = vld [vmem:[%s10934_s27 + $0x40] sm:$0xff]  ;;  %v2016_v20 = vld [vmem:[%s10934_s27 + $0x50] sm:$0xff]  ;;  %v2017_v22 = vld [vmem:[%s10934_s27 + $0x58] sm:$0xff] }
 0x2b8   : > { %v7988_v18 = vpack.c.bf16 %v2015_v15, %v2014_v14  ;;  %v7991_v25 = vpack.c.bf16 %v2017_v22, %v2016_v20  ;;  %v2032_v47 = vld [vmem:[%s10881_s10 + $0x50] sm:$0xff]  ;;  %v2033_v48 = vld [vmem:[%s10881_s10 + $0x58] sm:$0xff]  ;;  %v2038_v54 = vld [vmem:[%s10883_s12] sm:$0xff]  ;;  %s10938_s8 = smov %s10937_s2 }
 0x2b9   : > { %7980 = vmatpush3.bf16.msra.mxu0 %v7979_v55  ;;  %v2052_v49 = vld [vmem:[%s10883_s12 + $0x70] sm:$0xff]  ;;  %v2053_v51 = vld [vmem:[%s10883_s12 + $0x78] sm:$0xff]  ;;  %v8015_v52 = vpack.c.bf16 %v2033_v48, %v2032_v47  ;;  %v2039_v55 = vld [vmem:[%s10883_s12 + $0x8] sm:$0xff] }
 0x2ba   : > { %7998 = vmatpush3.bf16.msra.mxu1 %v7997_v57  ;;  %7981 = vmatprep.subr.bf16.mxu0 %v8338_v50  ;;  %v8045_v53 = vpack.c.bf16 %v2053_v51, %v2052_v49  ;;  %v8024_v56 = vpack.c.bf16 %v2039_v55, %v2038_v54  ;;  %v2040_v57 = vld [vmem:[%s10883_s12 + $0x10] sm:$0xff]  ;;  %v6579_v10 = vld [vmem:[%s10882_s11 + $0x3] ss:$0 sm:$0xff]  ;;  %v6576_v17 = vld [vmem:[%s10882_s11] ss:$0 sm:$0xff] }
 0x2bb   : > { %8005 = vmatprep.subr.bf16.mxu1 %v8338_v50  ;;  %v2048_v0 = vld [vmem:[%s10883_s12 + $0x50] sm:$0xff]  ;;  %v6568_v22 = vld [vmem:[%s10938_s8] ss:$0 sm:$0xff]  ;;  %v6577_v28 = vld [vmem:[%s10882_s11 + $0x1] ss:$0 sm:$0xff] }
 0x2bc   : > { %v6569_v30 = vld [vmem:[%s10938_s8 + $0x1] ss:$0 sm:$0xff] }
 0x340   : > { %v2075_v40 = vpop.xlane.xlu0 %2074 }
 0x341   : > { %v2077_v41 = vmul.f32 0.03125, %v2075_v40  ;;  %v8033_v40 = vpack.c.bf16 %v2045_v37, %v2044_v36  ;;  %v6570_v36 = vld [vmem:[%s10938_s8 + $0x2] ss:$0 sm:$0xff] }
 0x343   : > { %v2078_v42 = vsub.f32 %v9943_v38, %v2077_v41  ;;  %v2030_v41 = vld [vmem:[%s10881_s10 + $0x40] sm:$0xff] }
 0x345   : > { %v2079_v43 = vmul.f32 %v2078_v42, %v2078_v42 }
 0x347   : > { %v2080_v44 = vsel %vm2072_vm3, %v2079_v43, 0.0  ;;  %v2050_v43 = vld [vmem:[%s10883_s12 + $0x60] sm:$0xff] }
 0x348   : > { %2081 = vadd.xlane.f32.xlu0 %v2080_v44  ;;  %v2051_v44 = vld [vmem:[%s10883_s12 + $0x68] sm:$0xff] }
 0x349   : > { %v8042_v46 = vpack.c.bf16 %v2051_v44, %v2050_v43 }
 0x3d5   : > { %v2082_v59 = vpop.xlane.xlu0 %2081 }
 0x3d6   : > { %v2083_v60 = vmul.f32 0.03125, %v2082_v59  ;;  %v2041_v59 = vld [vmem:[%s10883_s12 + $0x18] sm:$0xff] }
 0x3d8   : > { %v2084_v61 = vadd.f32 1e-05, %v2083_v60  ;;  %v8027_v60 = vpack.c.bf16 %v2041_v59, %v2040_v57 }
 0x3da   : > { %8250 = vrsqrt.f32 %v2084_v61  ;;  %v2046_v61 = vld [vmem:[%s10883_s12 + $0x40] sm:$0xff] }
 0x3e4   : > { %v8251_v62 = vpop.eup %8250 }
 0x3e5   : > { %v2086_v1 = vmul.f32 %v8251_v62, %v2078_v42  ;;  %v2031_v42 = vld [vmem:[%s10881_s10 + $0x48] sm:$0xff] }
 0x3e6   : > { %v8012_v45 = vpack.c.bf16 %v2031_v42, %v2030_v41  ;;  %v2047_v62 = vld [vmem:[%s10883_s12 + $0x48] sm:$0xff]  ;;  %v6584_v42 = vld [vmem:[%s10884_s13] ss:$0 sm:$0xff] }
 0x3e7   : > { %v2093_v5 = vmul.f32 %v6566_v63, %v2086_v1  ;;  %v8036_v63 = vpack.c.bf16 %v2047_v62, %v2046_v61  ;;  %v2049_v1 = vld [vmem:[%s10883_s12 + $0x58] sm:$0xff] }
 0x3e8   : > { %v8039_v21 = vpack.c.bf16 %v2049_v1, %v2048_v0 }
 0x3e9   : > { %v10004_v9 = vadd.f32 %v6567_v4, %v2093_v5 }
 0x3eb   : > { %7020 = vmatmul.mubr.msk.f32.vlgmr.msra.gmra.mrb[0].mxu0 %vm2072_vm3, %v10004_v9  ;;  %7053 = vmatmul.mubr.msk.f32.vlgmr.msra.gmra.mrb[0].mxu1 %vm2072_vm3, %v10004_v9 }
 0x3ec   : > { %7983 = vmatpush3.bf16.msra.mxu0 %v7982_v6  ;;  %8007 = vmatpush3.bf16.msra.mxu1 %v8006_v7 }
 0x3ed   : > { %7984 = vmatprep.subr.bf16.mxu0 %v8338_v50  ;;  %8008 = vmatprep.subr.bf16.mxu1 %v8338_v50 }
 0x3ee   : > { %7030 = vmatprep.mubr.msk.f32.mxu0 %vm8339_vm4, %v8340_v58  ;;  %7074 = vmatprep.mubr.msk.f32.mxu1 %vm8339_vm4, %v8340_v58 }
 0x3f0   : > { %7986 = vmatpush3.bf16.msra.mxu0 %v7985_v12  ;;  %8010 = vmatpush3.bf16.msra.mxu1 %v8009_v13 }
 0x3f1   : > { %7987 = vmatprep.subr.bf16.mxu0 %v8338_v50  ;;  %8017 = vmatprep.subr.bf16.mxu1 %v8338_v50 }
 0x3f3   : > { %7031 = vmatmul.mubr.msk.f32.vlgmr.msra.gmra.mrb[2].mxu0 %vm2072_vm3, %v10004_v9  ;;  %7075 = vmatmul.mubr.msk.f32.vlgmr.msra.gmra.mrb[2].mxu1 %vm2072_vm3, %v10004_v9 }
 0x3f4   : > { %7989 = vmatpush3.bf16.msra.mxu0 %v7988_v18  ;;  %8019 = vmatpush3.bf16.msra.mxu1 %v8018_v19  ;;  %v6585_v18 = vld [vmem:[%s10884_s13 + $0x1] ss:$0 sm:$0xff] }
 0x3f5   : > { %7990 = vmatprep.subr.bf16.mxu0 %v8338_v50  ;;  %8020 = vmatprep.subr.bf16.mxu1 %v8338_v50 }
 0x3f6   : > { %7041 = vmatprep.mubr.msk.f32.mxu0 %vm8339_vm4, %v8340_v58  ;;  %7096 = vmatprep.mubr.msk.f32.mxu1 %vm8339_vm4, %v8340_v58 }
 0x3f8   : > { %7992 = vmatpush3.bf16.msra.mxu0 %v7991_v25  ;;  %8022 = vmatpush3.bf16.msra.mxu1 %v8021_v27 }
 0x3f9   : > { %7999 = vmatprep.subr.bf16.mxu0 %v8338_v50  ;;  %8029 = vmatprep.subr.bf16.mxu1 %v8338_v50 }
 0x3fb   : > { %7042 = vmatmul.mubr.msk.f32.vlgmr.msra.gmra.mrb[4].mxu0 %vm2072_vm3, %v10004_v9  ;;  %7097 = vmatmul.mubr.msk.f32.vlgmr.msra.gmra.mrb[4].mxu1 %vm2072_vm3, %v10004_v9 }
 0x3fc   : > { %8001 = vmatpush3.bf16.msra.mxu0 %v8000_v32  ;;  %8031 = vmatpush3.bf16.msra.mxu1 %v8030_v33  ;;  %v6578_v32 = vld [vmem:[%s10882_s11 + $0x2] ss:$0 sm:$0xff] }
 0x3fd   : > { %8002 = vmatprep.subr.bf16.mxu0 %v8338_v50  ;;  %8032 = vmatprep.subr.bf16.mxu1 %v8338_v50 }
 0x3fe   : > { %7063 = vmatprep.mubr.msk.f32.mxu0 %vm8339_vm4, %v8340_v58  ;;  %7118 = vmatprep.mubr.msk.f32.mxu1 %vm8339_vm4, %v8340_v58 }
 0x400   : > { %8004 = vmatpush3.bf16.msra.mxu0 %v8003_v39  ;;  %8034 = vmatpush3.bf16.msra.mxu1 %v8033_v40 }
 0x401   : > { %8011 = vmatprep.subr.bf16.mxu0 %v8338_v50  ;;  %8041 = vmatprep.subr.bf16.mxu1 %v8338_v50 }
 0x403   : > { %7064 = vmatmul.mubr.msk.f32.vlgmr.msra.gmra.mrb[6].mxu0 %vm2072_vm3, %v10004_v9  ;;  %7119 = vmatmul.mubr.msk.f32.vlgmr.msra.gmra.mrb[6].mxu1 %vm2072_vm3, %v10004_v9 }
 0x404   : > { %8013 = vmatpush3.bf16.msra.mxu0 %v8012_v45  ;;  %8043 = vmatpush3.bf16.msra.mxu1 %v8042_v46 }
 0x405   : > { %8014 = vmatprep.subr.bf16.mxu0 %v8338_v50  ;;  %8044 = vmatprep.subr.bf16.mxu1 %v8338_v50 }
 0x406   : > { %7085 = vmatprep.mubr.msk.f32.mxu0 %vm8339_vm4, %v8340_v58  ;;  %7140 = vmatprep.mubr.msk.f32.mxu1 %vm8339_vm4, %v8340_v58 }
 0x408   : > { %8016 = vmatpush3.bf16.msra.mxu0 %v8015_v52  ;;  %8046 = vmatpush3.bf16.msra.mxu1 %v8045_v53 }
 0x409   : > { %8023 = vmatprep.subr.bf16.mxu0 %v8338_v50  ;;  %7158 = vmatprep.subr.mxu1 %v8340_v58 }
 0x40b   : > { %7086 = vmatmul.mubr.msk.f32.vlgmr.msra.gmra.mrb[8].mxu0 %vm2072_vm3, %v10004_v9  ;;  %7141 = vmatmul.mubr.msk.f32.vlgmr.msra.gmra.mrb[8].mxu1 %vm2072_vm3, %v10004_v9 }
 0x40c   : > { %8025 = vmatpush3.bf16.msra.mxu0 %v8024_v56  ;;  %7107 = vmatprep.mubr.msk.f32.mxu0 %vm8339_vm4, %v8340_v58 }
 0x40d   : > { %8026 = vmatprep.subr.bf16.mxu0 %v8338_v50  ;;  %7160 = vmatprep.mubr.msk.f32.mxu1 %vm8339_vm4, %v8340_v58 }
 0x410   : > { %8028 = vmatpush3.bf16.msra.mxu0 %v8027_v60 }
 0x411   : > { %8035 = vmatprep.subr.bf16.mxu0 %v8338_v50 }
 0x413   : > { %7108 = vmatmul.mubr.msk.f32.vlgmr.msra.gmra.mrb[10].mxu0 %vm2072_vm3, %v10004_v9 }
 0x414   : > { %8037 = vmatpush3.bf16.msra.mxu0 %v8036_v63  ;;  %7129 = vmatprep.mubr.msk.f32.mxu0 %vm8339_vm4, %v8340_v58 }
 0x415   : > { %8038 = vmatprep.subr.bf16.mxu0 %v8338_v50 }
 0x418   : > { %8040 = vmatpush3.bf16.msra.mxu0 %v8039_v21 }
 0x419   : > { %7143 = vmatprep.subr.mxu0 %v8340_v58 }
 0x41b   : > { %7130 = vmatmul.mubr.msk.f32.vlgmr.msra.gmra.mrb[12].mxu0 %vm2072_vm3, %v10004_v9  ;;  %v6571_v9 = vld [vmem:[%s10937_s2 + $0x3] ss:$0 sm:$0xff] }
 0x41c   : > { %7145 = vmatprep.mubr.msk.f32.mxu0 %vm8339_vm4, %v8340_v58 }
 0x4be   : > { %v2194_v2 = vpop.f32.mrb[0].mxu0  ;;  %v2404_v3 = vpop.f32.mrb[0].mxu1 }
 0x4bf   : > { %v7021_v4 = vpop.f32.mrb[1].mxu0  ;;  %v7054_v5 = vpop.f32.mrb[1].mxu1  ;;  %v2405_v16 = vadd.f32 %v6571_v9, %v2404_v3  ;;  %v2195_v29 = vadd.f32 %v6568_v22, %v2194_v2 }
 0x4c6   : > { %v2264_v6 = vpop.f32.mrb[2].mxu0  ;;  %v2568_v7 = vpop.f32.mrb[2].mxu1 }
 0x4c7   : > { %v7032_v8 = vpop.f32.mrb[3].mxu0  ;;  %v7076_v26 = vpop.f32.mrb[3].mxu1  ;;  %v2569_v31 = vadd.f32 %v6577_v28, %v2568_v7  ;;  %v2265_v33 = vadd.f32 %v6569_v30, %v2264_v6  ;;  %v6587_v30 = vld [vmem:[%s10884_s13 + $0x3] ss:$0 sm:$0xff] }
 0x4ce   : > { %v2334_v11 = vpop.f32.mrb[4].mxu0  ;;  %v2708_v12 = vpop.f32.mrb[4].mxu1 }
 0x4cf   : > { %v2709_v13 = vadd.f32 %v6579_v10, %v2708_v12  ;;  %v7043_v14 = vpop.f32.mrb[5].mxu0  ;;  %v7098_v15 = vpop.f32.mrb[5].mxu1  ;;  %v2335_v41 = vadd.f32 %v6570_v36, %v2334_v11 }
 0x4d1   : > { %7159 = vmatpush3.xpose.msk.msra.mxu1 %vm3016_vm5, %v2709_v13 }
 0x4d2   : > { %7168 = vmatprep.subr.mxu1 %v8340_v58 }
 0x4d4   : > { %7161 = vmatmul.mubr.msk.f32.vlgmr.msra.gmra.mrb[10].mxu1 %vm3016_vm5, %v2405_v16 }
 0x4d5   : > { %7170 = vmatprep.mubr.msk.f32.mxu1 %vm8339_vm4, %v8340_v58 }
 0x4d6   : > { %v2498_v19 = vpop.f32.mrb[6].mxu0  ;;  %v2872_v20 = vpop.f32.mrb[6].mxu1 }
 0x4d7   : > { %v2499_v23 = vadd.f32 %v6576_v17, %v2498_v19  ;;  %v2873_v24 = vadd.f32 %v6585_v18, %v2872_v20  ;;  %v7065_v25 = vpop.f32.mrb[7].mxu0  ;;  %v7120_v27 = vpop.f32.mrb[7].mxu1 }
 0x4d8   : > { %v6586_v25 = vld [vmem:[%s10884_s13 + $0x2] ss:$0 sm:$0xff] }
 0x4d9   : > { %7144 = vmatpush3.xpose.msk.msra.mxu0 %vm3016_vm5, %v2499_v23  ;;  %7169 = vmatpush3.msra.mxu1 %v2873_v24 }
 0x4da   : > { %7148 = vmatprep.subr.mxu0 %v8340_v58  ;;  %7178 = vmatprep.subr.mxu1 %v8340_v58 }
 0x4dc   : > { %7146 = vmatmul.mubr.msk.f32.vlgmr.msra.gmra.mrb[14].mxu0 %vm3016_vm5, %v2195_v29 }
 0x4dd   : > { %7149 = vmatpush3.xpose.msk.msra.mxu0 %vm3016_vm5, %v2569_v31  ;;  %7150 = vmatprep.mubr.msk.f32.mxu0 %vm8339_vm4, %v8340_v58 }
 0x4de   : > { %v2638_v34 = vpop.f32.mrb[8].mxu0  ;;  %v10215_v35 = vpop.f32.mrb[8].mxu1  ;;  %7153 = vmatprep.subr.mxu0 %v8340_v58 }
 0x4df   : > { %v2639_v37 = vadd.f32 %v6578_v32, %v2638_v34  ;;  %v7087_v39 = vpop.f32.mrb[9].mxu0  ;;  %v7142_v40 = vpop.f32.mrb[9].mxu1 }
 0x4e0   : > { %7151 = vmatmul.mubr.msk.f32.vlgmr.msra.gmra.mrb[16].mxu0 %vm3016_vm5, %v2265_v33  ;;  %v3013_v33 = vadd.f32 %v6587_v30, %v10215_v35  ;;  %v2054_v35 = vld [vmem:[%s10885_s14] sm:$0xff]  ;;  %v2055_v40 = vld [vmem:[%s10885_s14 + $0x8] sm:$0xff]  ;;  %v4093_v30 = vld [vmem:[%s10891_s20 + $0x10] sm:$0xff] }
 0x4e1   : > { %7154 = vmatpush3.xpose.msk.msra.mxu0 %vm3016_vm5, %v2639_v37  ;;  %7155 = vmatprep.mubr.msk.f32.mxu0 %vm8339_vm4, %v8340_v58 }
 0x4e2   : > { %7163 = vmatprep.subr.mxu0 %v8340_v58 }
 0x4e4   : > { %7156 = vmatmul.mubr.msk.f32.vlgmr.msra.gmra.mrb[18].mxu0 %vm3016_vm5, %v2335_v41  ;;  %v2056_v41 = vld [vmem:[%s10885_s14 + $0x10] sm:$0xff] }
 0x4e5   : > { %7165 = vmatprep.mubr.msk.f32.mxu0 %vm8339_vm4, %v8340_v58 }
 0x4e6   : > { %v2802_v43 = vpop.f32.mrb[10].mxu0 }
 0x4e7   : > { %v2803_v44 = vadd.f32 %v6584_v42, %v2802_v43  ;;  %v7109_v45 = vpop.f32.mrb[11].mxu0 }
 0x4e9   : > { %7164 = vmatpush3.msra.mxu0 %v2803_v44  ;;  %v2057_v44 = vld [vmem:[%s10885_s14 + $0x18] sm:$0xff] }
 0x4ea   : > { %7173 = vmatprep.subr.mxu0 %v8340_v58 }
 0x4ee   : > { %v2942_v46 = vpop.f32.mrb[12].mxu0 }
 0x4ef   : > { %v7131_v47 = vpop.f32.mrb[13].mxu0  ;;  %v2943_v29 = vadd.f32 %v6586_v25, %v2942_v46 }
 0x5a7   : > { %v3317_v48 = vpop.f32.mrb[10].mxu1 }
 0x5a8   : > { %v7162_v49 = vpop.f32.mrb[11].mxu1  ;;  %v3324_v59 = vmul.f32 0.35355338, %v3317_v48 }
 0x5aa   : > { %v3334_v0 = vsel %vm3016_vm5, %v3324_v59, -inf }
 0x5af   : > { %v3089_v51 = vpop.f32.mrb[14].mxu0 }
 0x5b0   : > { %v3321_v52 = vmul.f32 0.35355338, %v3089_v51  ;;  %v7147_v53 = vpop.f32.mrb[15].mxu0 }
 0x5b2   : > { %v3325_v54 = vsel %vm3016_vm5, %v3321_v52, -inf }
 0x5b3   : > { %3326 = vmax.xlane.f32.xlu1 %v3325_v54  ;;  %v3165_v55 = vpop.f32.mrb[16].mxu0 }
 0x5b4   : > { %v3322_v56 = vmul.f32 0.35355338, %v3165_v55  ;;  %v7152_v57 = vpop.f32.mrb[17].mxu0 }
 0x5b6   : > { %v3328_v60 = vsel %vm3016_vm5, %v3322_v56, -inf }
 0x5b7   : > { %3329 = vmax.xlane.f32.xlu1 %v3328_v60  ;;  %v3241_v61 = vpop.f32.mrb[18].mxu0 }
 0x5b8   : > { %v3323_v62 = vmul.f32 0.35355338, %v3241_v61  ;;  %v7157_v63 = vpop.f32.mrb[19].mxu0 }
 0x5ba   : > { %v3331_v1 = vsel %vm3016_vm5, %v3323_v62, -inf }
 0x5bb   : > { %3335 = vmax.xlane.f32.xlu1 %v3334_v0  ;;  %3332 = vmax.xlane.f32.xlu0 %v3331_v1 }
 0x640   : > { %v3327_v21 = vpop.xlane.xlu1 %3326 }
 0x641   : > { %v3337_v2 = vsub.f32 %v3321_v52, %v3327_v21 }
 0x643   : > { %v3341_v3 = vmul.f32 1.442695, %v3337_v2 }
 0x644   : > { %v3330_v4 = vpop.xlane.xlu1 %3329 }
 0x645   : > { %8252 = vpow2.f32 %v3341_v3  ;;  %v3338_v5 = vsub.f32 %v3322_v56, %v3330_v4  ;;  %v6608_v3 = vld [vmem:[%s10886_s15] ss:$0 sm:$0xff] }
 0x647   : > { %v3343_v6 = vmul.f32 1.442695, %v3338_v5 }
 0x648   : > { %v3336_v7 = vpop.xlane.xlu1 %3335  ;;  %v3333_v8 = vpop.xlane.xlu0 %3332 }
 0x649   : > { %8254 = vpow2.f32 %v3343_v6  ;;  %v3340_v26 = vsub.f32 %v3324_v59, %v3336_v7  ;;  %v3339_v10 = vsub.f32 %v3323_v62, %v3333_v8 }
 0x64b   : > { %v3347_v11 = vmul.f32 1.442695, %v3340_v26  ;;  %v3345_v12 = vmul.f32 1.442695, %v3339_v10 }
 0x64d   : > { %8256 = vpow2.f32 %v3347_v11 }
 0x64e   : > { %8258 = vpow2.f32 %v3345_v12  ;;  %v3998_v12 = vld [vmem:[%s10889_s18] sm:$0xff] }
 0x64f   : > { %v8253_v9 = vpop.eup %8252 }
 0x650   : > { %v3349_v13 = vsel %vm3016_vm5, %v8253_v9, 0.0 }
 0x651   : > { %3350 = vadd.xlane.f32.xlu0 %v3349_v13  ;;  %v4000_v13 = vld [vmem:[%s10889_s18 + $0x10] sm:$0xff] }
 0x653   : > { %v8255_v14 = vpop.eup %8254 }
 0x654   : > { %v3352_v15 = vsel %vm3016_vm5, %v8255_v14, 0.0 }
 0x655   : > { %3353 = vadd.xlane.f32.xlu1 %v3352_v15 }
 0x657   : > { %v8257_v16 = vpop.eup %8256 }
 0x658   : > { %v8259_v17 = vpop.eup %8258  ;;  %v3358_v18 = vsel %vm3016_vm5, %v8257_v16, 0.0 }
 0x659   : > { %3359 = vadd.xlane.f32.xlu1 %v3358_v18  ;;  %v3355_v19 = vsel %vm3016_vm5, %v8259_v17, 0.0 }
 0x65a   : > { %3356 = vadd.xlane.f32.xlu0 %v3355_v19 }
 0x6de   : > { %v3351_v20 = vpop.xlane.xlu0 %3350 }
 0x6df   : > { %8260 = vrcp.f32 %v3351_v20 }
 0x6e2   : > { %v3354_v22 = vpop.xlane.xlu1 %3353 }
 0x6e3   : > { %8262 = vrcp.f32 %v3354_v22 }
 0x6e6   : > { %v3360_v23 = vpop.xlane.xlu1 %3359 }
 0x6e7   : > { %8264 = vrcp.f32 %v3360_v23  ;;  %v3357_v24 = vpop.xlane.xlu0 %3356 }
 0x6e8   : > { %8266 = vrcp.f32 %v3357_v24  ;;  %v6609_v24 = vld [vmem:[%s10887_s16] ss:$0 sm:$0xff] }
 0x6e9   : > { %v8261_v27 = vpop.eup %8260 }
 0x6ea   : > { %v3365_v28 = vmul.f32 %v8261_v27, %v8253_v9  ;;  %v6610_v27 = vld [vmem:[%s10888_s17] ss:$0 sm:$0xff] }
 0x6ec   : > { %7166 = vmatmul.mubr.msk.f32.vlgmr.msra.gmra.mrb[20].mxu0 %vm3016_vm5, %v3365_v28 }
 0x6ed   : > { %v8263_v31 = vpop.eup %8262  ;;  %7174 = vmatpush3.msra.mxu0 %v2943_v29  ;;  %7175 = vmatprep.mubr.msk.f32.mxu0 %vm8339_vm4, %v8340_v58 }
 0x6ee   : > { %v3366_v32 = vmul.f32 %v8263_v31, %v8255_v14  ;;  %7183 = vmatprep.subr.mxu0 %v8340_v58  ;;  %v4001_v14 = vld [vmem:[%s10889_s18 + $0x18] sm:$0xff] }
 0x6ef   : > { %v8051_v15 = vpack.c.bf16 %v4001_v14, %v4000_v13  ;;  %v4094_v31 = vld [vmem:[%s10891_s20 + $0x18] sm:$0xff]  ;;  %v6630_v13 = vld [vmem:[%s10881_s10 + $0x80] sm:$0xff] }
 0x6f0   : > { %7171 = vmatmul.mubr.msk.f32.vlgmr.msra.gmra.mrb[12].mxu1 %vm3016_vm5, %v3366_v32  ;;  %v8057_v32 = vpack.c.bf16 %v4094_v31, %v4093_v30  ;;  %v6618_v30 = vld [vmem:[%s10934_s27 + $0xa0] sm:$0xff] }
 0x6f1   : > { %v8265_v34 = vpop.eup %8264  ;;  %7179 = vmatpush3.msra.mxu1 %v3013_v33  ;;  %7180 = vmatprep.mubr.msk.f32.mxu1 %vm8339_vm4, %v8340_v58  ;;  %v4095_v33 = vld [vmem:[%s10891_s20 + $0x20] sm:$0xff] }
 0x6f2   : > { %v8267_v36 = vpop.eup %8266  ;;  %v3368_v37 = vmul.f32 %v8265_v34, %v8257_v16  ;;  %7188 = vmatprep.subr.mxu1 %v8340_v58  ;;  %v4091_v16 = vld [vmem:[%s10891_s20] sm:$0xff]  ;;  %v4096_v34 = vld [vmem:[%s10891_s20 + $0x28] sm:$0xff] }
 0x6f3   : > { %v3367_v39 = vmul.f32 %v8267_v36, %v8259_v17  ;;  %v4092_v17 = vld [vmem:[%s10891_s20 + $0x8] sm:$0xff]  ;;  %v8060_v36 = vpack.c.bf16 %v4096_v34, %v4095_v33  ;;  %v6638_v33 = vld [vmem:[%s10881_s10 + $0xc0] sm:$0xff] }
 0x6f4   : > { %7181 = vmatmul.mubr.msk.f32.vlgmr.msra.gmra.mrb[14].mxu1 %vm3016_vm5, %v3368_v37  ;;  %v8054_v18 = vpack.c.bf16 %v4092_v17, %v4091_v16  ;;  %v4097_v37 = vld [vmem:[%s10891_s20 + $0x30] sm:$0xff]  ;;  %v6639_v34 = vld [vmem:[%s10881_s10 + $0xc8] sm:$0xff] }
 0x6f5   : > { %7176 = vmatmul.mubr.msk.f32.vlgmr.msra.gmra.mrb[22].mxu0 %vm3016_vm5, %v3367_v39  ;;  %7190 = vmatprep.mubr.msk.f32.mxu1 %vm8339_vm4, %v8340_v58  ;;  %v4098_v39 = vld [vmem:[%s10891_s20 + $0x38] sm:$0xff]  ;;  %v6616_v17 = vld [vmem:[%s10934_s27 + $0x90] sm:$0xff] }
 0x6f6   : > { %7185 = vmatprep.mubr.msk.f32.mxu0 %vm8339_vm4, %v8340_v58  ;;  %7184 = vmatpush3.msra.mxu0 %v2054_v35  ;;  %v8063_v35 = vpack.c.bf16 %v4098_v39, %v4097_v37 }
 0x6f7   : > { %7193 = vmatprep.subr.mxu0 %v8340_v58  ;;  %7189 = vmatpush3.msra.mxu1 %v2055_v40  ;;  %v4099_v40 = vld [vmem:[%s10891_s20 + $0x40] sm:$0xff] }
 0x6f8   : > { %7198 = vmatprep.subr.mxu1 %v8340_v58 }
 0x7bf   : > { %v3438_v42 = vpop.f32.mrb[20].mxu0 }
 0x7c0   : > { %v7167_v43 = vpop.f32.mrb[21].mxu0  ;;  %7186 = vmatmul.mubr.msk.f32.vlgmr.msra.gmra.mrb[24].mxu0 %vm3016_vm5, %v3438_v42 }
 0x7c1   : > { %7194 = vmatpush3.msra.mxu0 %v2056_v41  ;;  %7195 = vmatprep.mubr.msk.f32.mxu0 %vm8339_vm4, %v8340_v58  ;;  %v4100_v41 = vld [vmem:[%s10891_s20 + $0x48] sm:$0xff]  ;;  %v4101_v43 = vld [vmem:[%s10891_s20 + $0x50] sm:$0xff] }
 0x7c2   : > { %8047 = vmatprep.subr.bf16.mxu0 %v8338_v50  ;;  %v8066_v42 = vpack.c.bf16 %v4100_v41, %v4099_v40  ;;  %v6620_v40 = vld [vmem:[%s10934_s27 + $0xb0] sm:$0xff] }
 0x7c3   : > { %v3511_v45 = vpop.f32.mrb[12].mxu1 }
 0x7c4   : > { %v7172_v46 = vpop.f32.mrb[13].mxu1  ;;  %7191 = vmatmul.mubr.msk.f32.vlgmr.msra.gmra.mrb[16].mxu1 %vm3016_vm5, %v3511_v45 }
 0x7c5   : > { %7199 = vmatpush3.msra.mxu1 %v2057_v44  ;;  %7200 = vmatprep.mubr.msk.f32.mxu1 %vm8339_vm4, %v8340_v58  ;;  %v4102_v44 = vld [vmem:[%s10891_s20 + $0x58] sm:$0xff]  ;;  %v4103_v46 = vld [vmem:[%s10891_s20 + $0x60] sm:$0xff] }
 0x7c6   : > { %8053 = vmatprep.subr.bf16.mxu1 %v8338_v50  ;;  %v8069_v45 = vpack.c.bf16 %v4102_v44, %v4101_v43  ;;  %v6640_v43 = vld [vmem:[%s10881_s10 + $0xd0] sm:$0xff]  ;;  %v6641_v44 = vld [vmem:[%s10881_s10 + $0xd8] sm:$0xff] }
 0x7c7   : > { %v3657_v47 = vpop.f32.mrb[14].mxu1 }
 0x7c8   : > { %v3584_v48 = vpop.f32.mrb[22].mxu0  ;;  %v7182_v49 = vpop.f32.mrb[15].mxu1  ;;  %7201 = vmatmul.mubr.msk.f32.vlgmr.msra.gmra.mrb[18].mxu1 %vm3016_vm5, %v3657_v47  ;;  %v4104_v47 = vld [vmem:[%s10891_s20 + $0x68] sm:$0xff] }
 0x7c9   : > { %v7177_v51 = vpop.f32.mrb[23].mxu0  ;;  %7196 = vmatmul.mubr.msk.f32.vlgmr.msra.gmra.mrb[26].mxu0 %vm3016_vm5, %v3584_v48  ;;  %7246 = vmatprep.mubr.msk.f32.mxu1 %vm8339_vm4, %v8340_v58  ;;  %v8072_v48 = vpack.c.bf16 %v4104_v47, %v4103_v46  ;;  %v4105_v49 = vld [vmem:[%s10891_s20 + $0x70] sm:$0xff]  ;;  %v8117_v46 = vpack.c.bf16 %v6641_v44, %v6640_v43  ;;  %v6622_v47 = vld [vmem:[%s10934_s27 + $0xc0] sm:$0xff] }
 0x7ca   : > { %7211 = vmatprep.mubr.msk.f32.mxu0 %vm8339_vm4, %v8340_v58  ;;  %8055 = vmatpush3.bf16.msra.mxu1 %v8054_v18  ;;  %v4106_v51 = vld [vmem:[%s10891_s20 + $0x78] sm:$0xff] }
 0x7cb   : > { %8056 = vmatprep.subr.bf16.mxu1 %v8338_v50  ;;  %v6617_v18 = vld [vmem:[%s10934_s27 + $0x98] sm:$0xff] }
 0x7ce   : > { %8058 = vmatpush3.bf16.msra.mxu1 %v8057_v32  ;;  %v6619_v32 = vld [vmem:[%s10934_s27 + $0xa8] sm:$0xff] }
 0x7cf   : > { %8059 = vmatprep.subr.bf16.mxu1 %v8338_v50  ;;  %v8084_v39 = vpack.c.bf16 %v6619_v32, %v6618_v30  ;;  %v6660_v30 = vld [vmem:[%s10883_s12 + $0xf0] sm:$0xff] }
 0x7d2   : > { %8061 = vmatpush3.bf16.msra.mxu1 %v8060_v36  ;;  %v6681_v36 = vld [vmem:[%s10936_s9 + $0x1] ss:$0 sm:$0xff] }
 0x7d3   : > { %8062 = vmatprep.subr.bf16.mxu1 %v8338_v50 }
 0x7d6   : > { %8064 = vmatpush3.bf16.msra.mxu1 %v8063_v35  ;;  %v8114_v35 = vpack.c.bf16 %v6639_v34, %v6638_v33  ;;  %v6690_v33 = vld [vmem:[%s10882_s11 + $0x4] ss:$0 sm:$0xff] }
 0x7d7   : > { %8065 = vmatprep.subr.bf16.mxu1 %v8338_v50 }
 0x7da   : > { %8067 = vmatpush3.bf16.msra.mxu1 %v8066_v42  ;;  %v6621_v42 = vld [vmem:[%s10934_s27 + $0xb8] sm:$0xff] }
 0x7db   : > { %8068 = vmatprep.subr.bf16.mxu1 %v8338_v50 }
 0x7de   : > { %8070 = vmatpush3.bf16.msra.mxu1 %v8069_v45  ;;  %v8087_v45 = vpack.c.bf16 %v6621_v42, %v6620_v40 }
 0x7df   : > { %8071 = vmatprep.subr.bf16.mxu1 %v8338_v50 }
 0x7e2   : > { %8073 = vmatpush3.bf16.msra.mxu1 %v8072_v48  ;;  %v6623_v48 = vld [vmem:[%s10934_s27 + $0xc8] sm:$0xff] }
 0x7e3   : > { %8074 = vmatprep.subr.bf16.mxu1 %v8338_v50 }
 0x893   : > { %v3730_v52 = vpop.f32.mrb[24].mxu0 }
 0x894   : > { %v7187_v53 = vpop.f32.mrb[25].mxu0  ;;  %v3953_v55 = vsel %vm2072_vm3, %v3730_v52, 0.0  ;;  %v8075_v52 = vpack.c.bf16 %v4106_v51, %v4105_v49  ;;  %v6646_v49 = vld [vmem:[%s10883_s12 + $0x80] sm:$0xff]  ;;  %v6647_v51 = vld [vmem:[%s10883_s12 + $0x88] sm:$0xff] }
 0x895   : > { %v6611_v53 = vld [vmem:[%s10890_s19] ss:$0 sm:$0xff] }
 0x896   : > { %8076 = vmatpush3.bf16.msra.mxu1 %v8075_v52  ;;  %v8090_v52 = vpack.c.bf16 %v6623_v48, %v6622_v47  ;;  %v6684_v48 = vld [vmem:[%s10938_s8 + $0x6] ss:$0 sm:$0xff] }
 0x897   : > { %v3803_v54 = vpop.f32.mrb[16].mxu1  ;;  %8101 = vmatprep.subr.bf16.mxu1 %v8338_v50 }
 0x898   : > { %v3954_v56 = vsel %vm2072_vm3, %v3803_v54, 0.0  ;;  %v7192_v57 = vpop.f32.mrb[17].mxu1 }
 0x899   : > { %v3955_v59 = vadd.f32 %v3954_v56, %v3953_v55 }
 0x89b   : > { %v3949_v60 = vpop.f32.mrb[18].mxu1 }
 0x89c   : > { %v3876_v61 = vpop.f32.mrb[26].mxu0  ;;  %v7202_v62 = vpop.f32.mrb[19].mxu1  ;;  %v3958_v21 = vsel %vm2072_vm3, %v3949_v60, 0.0 }
 0x89d   : > { %v3956_v63 = vsel %vm2072_vm3, %v3876_v61, 0.0  ;;  %v7197_v0 = vpop.f32.mrb[27].mxu0 }
 0x89e   : > { %v3957_v1 = vadd.f32 %v3956_v63, %v3955_v59 }
 0x8a0   : > { %v3959_v2 = vadd.f32 %v3958_v21, %v3957_v1 }
 0x8a2   : > { %v3960_v4 = vadd.f32 %v3959_v2, %v9943_v38  ;;  %v3999_v38 = vld [vmem:[%s10889_s18 + $0x8] sm:$0xff]  ;;  %v6613_v2 = vld [vmem:[%s10892_s21] ss:$0 sm:$0xff] }
 0x8a3   : > { %v8048_v9 = vpack.c.bf16 %v3999_v38, %v3998_v12 }
 0x8a4   : > { %v10298_v5 = vadd.f32 %v6608_v3, %v3960_v4 }
 0x8a5   : > { %8049 = vmatpush3.bf16.msra.mxu0 %v8048_v9  ;;  %v6614_v9 = vld [vmem:[%s10934_s27 + $0x80] sm:$0xff] }
 0x8a6   : > { %v3971_v6 = vsel %vm2072_vm3, %v10298_v5, 0.0  ;;  %8050 = vmatprep.subr.bf16.mxu0 %v8338_v50 }
 0x8a7   : > { %3972 = vadd.xlane.f32.xlu0 %v3971_v6 }
 0x8a9   : > { %8052 = vmatpush3.bf16.msra.mxu0 %v8051_v15  ;;  %v6631_v15 = vld [vmem:[%s10881_s10 + $0x88] sm:$0xff] }
 0x8aa   : > { %8077 = vmatprep.subr.bf16.mxu0 %v8338_v50  ;;  %v8102_v16 = vpack.c.bf16 %v6631_v15, %v6630_v13  ;;  %v6642_v13 = vld [vmem:[%s10881_s10 + $0xe0] sm:$0xff] }
 0x934   : > { %v3973_v7 = vpop.xlane.xlu0 %3972 }
 0x935   : > { %v3974_v8 = vmul.f32 0.03125, %v3973_v7 }
 0x937   : > { %v3975_v26 = vsub.f32 %v10298_v5, %v3974_v8 }
 0x939   : > { %v3976_v10 = vmul.f32 %v3975_v26, %v3975_v26 }
 0x93b   : > { %v3977_v11 = vsel %vm2072_vm3, %v3976_v10, 0.0 }
 0x93c   : > { %3978 = vadd.xlane.f32.xlu1 %v3977_v11 }
 0x9c9   : > { %v3979_v19 = vpop.xlane.xlu1 %3978 }
 0x9ca   : > { %v3980_v20 = vmul.f32 0.03125, %v3979_v19  ;;  %v6632_v19 = vld [vmem:[%s10881_s10 + $0x90] sm:$0xff] }
 0x9cc   : > { %v3981_v22 = vadd.f32 1e-05, %v3980_v20  ;;  %v8081_v20 = vpack.c.bf16 %v6617_v18, %v6616_v17  ;;  %v6645_v17 = vld [vmem:[%s10881_s10 + $0xf8] sm:$0xff] }
 0x9ce   : > { %8268 = vrsqrt.f32 %v3981_v22  ;;  %v6633_v22 = vld [vmem:[%s10881_s10 + $0x98] sm:$0xff] }
 0x9d8   : > { %v8269_v23 = vpop.eup %8268 }
 0x9d9   : > { %v3983_v25 = vmul.f32 %v8269_v23, %v3975_v26  ;;  %v8105_v23 = vpack.c.bf16 %v6633_v22, %v6632_v19  ;;  %v6650_v19 = vld [vmem:[%s10883_s12 + $0xa0] sm:$0xff] }
 0x9db   : > { %v3990_v28 = vmul.f32 %v6609_v24, %v3983_v25 }
 0x9dd   : > { %v3997_v29 = vadd.f32 %v6610_v27, %v3990_v28 }
 0x9df   : > { %7212 = vmatmul.mubr.msk.f32.vlgmr.msra.gmra.mrb[28].mxu0 %vm2072_vm3, %v3997_v29  ;;  %v6680_v29 = vld [vmem:[%s10935_s5 + $0x1] ss:$0 sm:$0xff] }
 0x9e0   : > { %7257 = vmatprep.mubr.msk.f32.mxu0 %vm8339_vm4, %v8340_v58 }
 0xab2   : > { %v4078_v54 = vpop.f32.mrb[28].mxu0 }
 0xab3   : > { %v4079_v55 = vadd.f32 %v6611_v53, %v4078_v54  ;;  %v7213_v56 = vpop.f32.mrb[29].mxu0  ;;  %v8126_v53 = vpack.c.bf16 %v6647_v51, %v6646_v49  ;;  %v6624_v54 = vld [vmem:[%s10934_s27 + $0xd0] sm:$0xff]  ;;  %v6698_v49 = vld [vmem:[%s10884_s13 + $0x4] ss:$0 sm:$0xff] }
 0xab4   : > { %v6648_v56 = vld [vmem:[%s10883_s12 + $0x90] sm:$0xff] }
 0xab5   : > { %v4083_v57 = vmul.f32 0.044715, %v4079_v55  ;;  %v4082_v0 = vmul.f32 0.5, %v4079_v55 }
 0xab7   : > { %v4084_v59 = vmul.f32 %v4083_v57, %v4079_v55  ;;  %v6649_v57 = vld [vmem:[%s10883_s12 + $0x98] sm:$0xff] }
 0xab9   : > { %v4085_v60 = vmul.f32 %v4084_v59, %v4079_v55 }
 0xabb   : > { %v4086_v61 = vadd.f32 %v4085_v60, %v4079_v55  ;;  %v6625_v55 = vld [vmem:[%s10934_s27 + $0xd8] sm:$0xff]  ;;  %v8129_v60 = vpack.c.bf16 %v6649_v57, %v6648_v56 }
 0xabc   : > { %v8093_v59 = vpack.c.bf16 %v6625_v55, %v6624_v54 }
 0xabd   : > { %v4087_v62 = vmul.f32 0.7978846, %v4086_v61  ;;  %v6626_v61 = vld [vmem:[%s10934_s27 + $0xe0] sm:$0xff] }
 0xabf   : > { %8270 = vtanh.f32 %v4087_v62  ;;  %v6627_v62 = vld [vmem:[%s10934_s27 + $0xe8] sm:$0xff] }
 0xac9   : > { %v8271_v63 = vpop.eup %8270 }
 0xaca   : > { %v4089_v1 = vadd.f32 1.0, %v8271_v63  ;;  %v6654_v63 = vld [vmem:[%s10883_s12 + $0xc0] sm:$0xff] }
 0xacc   : > { %v4090_v21 = vmul.f32 %v4089_v1, %v4082_v0  ;;  %v6655_v0 = vld [vmem:[%s10883_s12 + $0xc8] sm:$0xff]  ;;  %v8096_v1 = vpack.c.bf16 %v6627_v62, %v6626_v61  ;;  %v6691_v62 = vld [vmem:[%s10882_s11 + $0x5] ss:$0 sm:$0xff] }
 0xace   : > { %7247 = vmatmul.mubr.f32.vlgmr.msra.gmra.mrb[20].mxu1 %v4090_v21  ;;  %v8138_v21 = vpack.c.bf16 %v6655_v0, %v6654_v63  ;;  %v6683_v0 = vld [vmem:[%s10938_s8 + $0x5] ss:$0 sm:$0xff] }
 0xacf   : > { %7301 = vmatprep.mubr.msk.f32.mxu1 %vm8339_vm4, %v8340_v58  ;;  %8103 = vmatpush3.bf16.msra.mxu1 %v8102_v16  ;;  %v6644_v16 = vld [vmem:[%s10881_s10 + $0xf0] sm:$0xff] }
 0xad0   : > { %8104 = vmatprep.subr.bf16.mxu1 %v8338_v50  ;;  %v8123_v18 = vpack.c.bf16 %v6645_v17, %v6644_v16 }
 0xad3   : > { %8106 = vmatpush3.bf16.msra.mxu1 %v8105_v23  ;;  %v6652_v23 = vld [vmem:[%s10883_s12 + $0xb0] sm:$0xff] }
 0xad4   : > { %8113 = vmatprep.subr.bf16.mxu1 %v8338_v50 }
 0xba1   : > { %v4180_v3 = vpop.f32.mrb[20].mxu1 }
 0xba2   : > { %v4181_v4 = vadd.f32 %v6613_v2, %v4180_v3  ;;  %v7248_v6 = vpop.f32.mrb[21].mxu1  ;;  %v6628_v2 = vld [vmem:[%s10934_s27 + $0xf0] sm:$0xff]  ;;  %v6629_v3 = vld [vmem:[%s10934_s27 + $0xf8] sm:$0xff] }
 0xba3   : > { %v6657_v6 = vld [vmem:[%s10883_s12 + $0xd8] sm:$0xff] }
 0xba4   : > { %v10392_v7 = vadd.f32 %v4181_v4, %v10298_v5  ;;  %v6615_v5 = vld [vmem:[%s10934_s27 + $0x88] sm:$0xff]  ;;  %v6656_v4 = vld [vmem:[%s10883_s12 + $0xd0] sm:$0xff] }
 0xba5   : > { %v8078_v14 = vpack.c.bf16 %v6615_v5, %v6614_v9  ;;  %v6637_v9 = vld [vmem:[%s10881_s10 + $0xb8] sm:$0xff] }
 0xba6   : > { %v4260_v8 = vsel %vm2072_vm3, %v10392_v7, 0.0 }
 0xba7   : > { %4261 = vadd.xlane.f32.xlu0 %v4260_v8  ;;  %8079 = vmatpush3.bf16.msra.mxu0 %v8078_v14  ;;  %v8099_v8 = vpack.c.bf16 %v6629_v3, %v6628_v2  ;;  %v6643_v14 = vld [vmem:[%s10881_s10 + $0xe8] sm:$0xff]  ;;  %v6693_v3 = vld [vmem:[%s10882_s11 + $0x7] ss:$0 sm:$0xff] }
 0xba8   : > { %8080 = vmatprep.subr.bf16.mxu0 %v8338_v50  ;;  %v8120_v15 = vpack.c.bf16 %v6643_v14, %v6642_v13 }
 0xbab   : > { %8082 = vmatpush3.bf16.msra.mxu0 %v8081_v20  ;;  %v6651_v20 = vld [vmem:[%s10883_s12 + $0xa8] sm:$0xff] }
 0xbac   : > { %8083 = vmatprep.subr.bf16.mxu0 %v8338_v50  ;;  %v8132_v22 = vpack.c.bf16 %v6651_v20, %v6650_v19 }
 0xc34   : > { %v4262_v26 = vpop.xlane.xlu0 %4261 }
 0xc35   : > { %v4263_v10 = vmul.f32 0.03125, %v4262_v26  ;;  %v8141_v26 = vpack.c.bf16 %v6657_v6, %v6656_v4  ;;  %v6685_v6 = vld [vmem:[%s10938_s8 + $0x7] ss:$0 sm:$0xff] }
 0xc37   : > { %v4264_v11 = vsub.f32 %v10392_v7, %v4263_v10  ;;  %v6634_v10 = vld [vmem:[%s10881_s10 + $0xa0] sm:$0xff] }
 0xc39   : > { %v4265_v12 = vmul.f32 %v4264_v11, %v4264_v11 }
 0xc3b   : > { %v4266_v38 = vsel %vm2072_vm3, %v4265_v12, 0.0 }
 0xc3c   : > { %4267 = vadd.xlane.f32.xlu1 %v4266_v38  ;;  %v6636_v38 = vld [vmem:[%s10881_s10 + $0xb0] sm:$0xff] }
 0xc3d   : > { %v8111_v5 = vpack.c.bf16 %v6637_v9, %v6636_v38 }
 0xcc9   : > { %v4268_v24 = vpop.xlane.xlu1 %4267 }
 0xcca   : > { %v4269_v25 = vmul.f32 0.03125, %v4268_v24  ;;  %v6653_v24 = vld [vmem:[%s10883_s12 + $0xb8] sm:$0xff] }
 0xccc   : > { %v4270_v27 = vadd.f32 1e-05, %v4269_v25  ;;  %v8135_v25 = vpack.c.bf16 %v6653_v24, %v6652_v23 }
 0xcce   : > { %8272 = vrsqrt.f32 %v4270_v27  ;;  %v6658_v27 = vld [vmem:[%s10883_s12 + $0xe0] sm:$0xff] }
 0xcd8   : > { %v8273_v28 = vpop.eup %8272 }
 0xcd9   : > { %v4272_v31 = vmul.f32 %v8273_v28, %v4264_v11  ;;  %v6635_v11 = vld [vmem:[%s10881_s10 + $0xa8] sm:$0xff] }
 0xcda   : > { %v8108_v12 = vpack.c.bf16 %v6635_v11, %v6634_v10  ;;  %v6659_v28 = vld [vmem:[%s10883_s12 + $0xe8] sm:$0xff]  ;;  %v6699_v11 = vld [vmem:[%s10884_s13 + $0x5] ss:$0 sm:$0xff] }
 0xcdb   : > { %v4279_v37 = vmul.f32 %v6680_v29, %v4272_v31  ;;  %v8144_v29 = vpack.c.bf16 %v6659_v28, %v6658_v27  ;;  %v6661_v31 = vld [vmem:[%s10883_s12 + $0xf8] sm:$0xff] }
 0xcdc   : > { %v8147_v32 = vpack.c.bf16 %v6661_v31, %v6660_v30 }
 0xcdd   : > { %v10447_v41 = vadd.f32 %v6681_v36, %v4279_v37  ;;  %v6682_v37 = vld [vmem:[%s10938_s8 + $0x4] ss:$0 sm:$0xff] }
 0xcdf   : > { %7258 = vmatmul.mubr.msk.f32.vlgmr.msra.gmra.mrb[30].mxu0 %vm2072_vm3, %v10447_v41  ;;  %7302 = vmatmul.mubr.msk.f32.vlgmr.msra.gmra.mrb[22].mxu1 %vm2072_vm3, %v10447_v41 }
 0xce0   : > { %8085 = vmatpush3.bf16.msra.mxu0 %v8084_v39  ;;  %8115 = vmatpush3.bf16.msra.mxu1 %v8114_v35 }
 0xce1   : > { %8086 = vmatprep.subr.bf16.mxu0 %v8338_v50  ;;  %8116 = vmatprep.subr.bf16.mxu1 %v8338_v50 }
 0xce2   : > { %7268 = vmatprep.mubr.msk.f32.mxu0 %vm8339_vm4, %v8340_v58  ;;  %7323 = vmatprep.mubr.msk.f32.mxu1 %vm8339_vm4, %v8340_v58 }
 0xce4   : > { %8088 = vmatpush3.bf16.msra.mxu0 %v8087_v45  ;;  %8118 = vmatpush3.bf16.msra.mxu1 %v8117_v46 }
 0xce5   : > { %8089 = vmatprep.subr.bf16.mxu0 %v8338_v50  ;;  %8125 = vmatprep.subr.bf16.mxu1 %v8338_v50 }
 0xce7   : > { %7269 = vmatmul.mubr.msk.f32.vlgmr.msra.gmra.mrb[32].mxu0 %vm2072_vm3, %v10447_v41  ;;  %7324 = vmatmul.mubr.msk.f32.vlgmr.msra.gmra.mrb[24].mxu1 %vm2072_vm3, %v10447_v41 }
 0xce8   : > { %8091 = vmatpush3.bf16.msra.mxu0 %v8090_v52  ;;  %8127 = vmatpush3.bf16.msra.mxu1 %v8126_v53 }
 0xce9   : > { %8092 = vmatprep.subr.bf16.mxu0 %v8338_v50  ;;  %8128 = vmatprep.subr.bf16.mxu1 %v8338_v50 }
 0xcea   : > { %7279 = vmatprep.mubr.msk.f32.mxu0 %vm8339_vm4, %v8340_v58  ;;  %7345 = vmatprep.mubr.msk.f32.mxu1 %vm8339_vm4, %v8340_v58 }
 0xcec   : > { %8094 = vmatpush3.bf16.msra.mxu0 %v8093_v59  ;;  %8130 = vmatpush3.bf16.msra.mxu1 %v8129_v60 }
 0xced   : > { %8095 = vmatprep.subr.bf16.mxu0 %v8338_v50  ;;  %8137 = vmatprep.subr.bf16.mxu1 %v8338_v50 }
 0xcef   : > { %7280 = vmatmul.mubr.msk.f32.vlgmr.msra.gmra.mrb[34].mxu0 %vm2072_vm3, %v10447_v41  ;;  %7346 = vmatmul.mubr.msk.f32.vlgmr.msra.gmra.mrb[26].mxu1 %vm2072_vm3, %v10447_v41 }
 0xcf0   : > { %8097 = vmatpush3.bf16.msra.mxu0 %v8096_v1  ;;  %8139 = vmatpush3.bf16.msra.mxu1 %v8138_v21 }
 0xcf1   : > { %8098 = vmatprep.subr.bf16.mxu0 %v8338_v50  ;;  %8140 = vmatprep.subr.bf16.mxu1 %v8338_v50 }
 0xcf2   : > { %7290 = vmatprep.mubr.msk.f32.mxu0 %vm8339_vm4, %v8340_v58  ;;  %7367 = vmatprep.mubr.msk.f32.mxu1 %vm8339_vm4, %v8340_v58 }
 0xcf4   : > { %8100 = vmatpush3.bf16.msra.mxu0 %v8099_v8  ;;  %8142 = vmatpush3.bf16.msra.mxu1 %v8141_v26 }
 0xcf5   : > { %8107 = vmatprep.subr.bf16.mxu0 %v8338_v50  ;;  %7381 = vmatprep.subr.mxu1 %v8340_v58 }
 0xcf7   : > { %7291 = vmatmul.mubr.msk.f32.vlgmr.msra.gmra.mrb[36].mxu0 %vm2072_vm3, %v10447_v41  ;;  %7368 = vmatmul.mubr.msk.f32.vlgmr.msra.gmra.mrb[28].mxu1 %vm2072_vm3, %v10447_v41 }
 0xcf8   : > { %8109 = vmatpush3.bf16.msra.mxu0 %v8108_v12  ;;  %7312 = vmatprep.mubr.msk.f32.mxu0 %vm8339_vm4, %v8340_v58 }
 0xcf9   : > { %8110 = vmatprep.subr.bf16.mxu0 %v8338_v50  ;;  %7383 = vmatprep.mubr.msk.f32.mxu1 %vm8339_vm4, %v8340_v58 }
 0xcfc   : > { %8112 = vmatpush3.bf16.msra.mxu0 %v8111_v5 }
 0xcfd   : > { %8119 = vmatprep.subr.bf16.mxu0 %v8338_v50 }
 0xcff   : > { %7313 = vmatmul.mubr.msk.f32.vlgmr.msra.gmra.mrb[38].mxu0 %vm2072_vm3, %v10447_v41 }
 0xd00   : > { %8121 = vmatpush3.bf16.msra.mxu0 %v8120_v15  ;;  %7334 = vmatprep.mubr.msk.f32.mxu0 %vm8339_vm4, %v8340_v58 }
 0xd01   : > { %8122 = vmatprep.subr.bf16.mxu0 %v8338_v50 }
 0xd04   : > { %8124 = vmatpush3.bf16.msra.mxu0 %v8123_v18 }
 0xd05   : > { %8131 = vmatprep.subr.bf16.mxu0 %v8338_v50 }
 0xd07   : > { %7335 = vmatmul.mubr.msk.f32.vlgmr.msra.gmra.mrb[40].mxu0 %vm2072_vm3, %v10447_v41 }
 0xd08   : > { %8133 = vmatpush3.bf16.msra.mxu0 %v8132_v22  ;;  %7356 = vmatprep.mubr.msk.f32.mxu0 %vm8339_vm4, %v8340_v58 }
 0xd09   : > { %8134 = vmatprep.subr.bf16.mxu0 %v8338_v50 }
 0xd0c   : > { %8136 = vmatpush3.bf16.msra.mxu0 %v8135_v25 }
 0xd0d   : > { %8143 = vmatprep.subr.bf16.mxu0 %v8338_v50 }
 0xd0f   : > { %7357 = vmatmul.mubr.msk.f32.vlgmr.msra.gmra.mrb[42].mxu0 %vm2072_vm3, %v10447_v41 }
 0xd10   : > { %8145 = vmatpush3.bf16.msra.mxu0 %v8144_v29  ;;  %7378 = vmatprep.mubr.msk.f32.mxu0 %vm8339_vm4, %v8340_v58 }
 0xd11   : > { %8146 = vmatprep.subr.bf16.mxu0 %v8338_v50 }
 0xd14   : > { %8148 = vmatpush3.bf16.msra.mxu0 %v8147_v32 }
 0xd15   : > { %7391 = vmatprep.subr.mxu0 %v8340_v58 }
 0xd17   : > { %7379 = vmatmul.mubr.msk.f32.vlgmr.msra.gmra.mrb[44].mxu0 %vm2072_vm3, %v10447_v41  ;;  %v6692_v41 = vld [vmem:[%s10882_s11 + $0x6] ss:$0 sm:$0xff] }
 0xd18   : > { %7393 = vmatprep.mubr.msk.f32.mxu0 %vm8339_vm4, %v8340_v58 }
 0xdb2   : > { %v4380_v34 = vpop.f32.mrb[30].mxu0  ;;  %v4684_v36 = vpop.f32.mrb[22].mxu1 }
 0xdb3   : > { %v4685_v39 = vadd.f32 %v6690_v33, %v4684_v36  ;;  %v7259_v35 = vpop.f32.mrb[31].mxu0  ;;  %v7303_v40 = vpop.f32.mrb[23].mxu1  ;;  %v4381_v42 = vadd.f32 %v6682_v37, %v4380_v34 }
 0xdb5   : > { %7382 = vmatpush3.xpose.msk.msra.mxu1 %vm3016_vm5, %v4685_v39 }
 0xdb6   : > { %7386 = vmatprep.subr.mxu1 %v8340_v58 }
 0xdb8   : > { %7384 = vmatmul.mubr.msk.f32.vlgmr.msra.gmra.mrb[30].mxu1 %vm3016_vm5, %v4381_v42 }
 0xdb9   : > { %7388 = vmatprep.mubr.msk.f32.mxu1 %vm8339_vm4, %v8340_v58 }
 0xdba   : > { %v4450_v43 = vpop.f32.mrb[32].mxu0  ;;  %v4824_v44 = vpop.f32.mrb[24].mxu1 }
 0xdbb   : > { %v4825_v45 = vadd.f32 %v6692_v41, %v4824_v44  ;;  %v7270_v46 = vpop.f32.mrb[33].mxu0  ;;  %v7325_v47 = vpop.f32.mrb[25].mxu1  ;;  %v4451_v2 = vadd.f32 %v6683_v0, %v4450_v43 }
 0xdbd   : > { %7392 = vmatpush3.xpose.msk.msra.mxu0 %vm3016_vm5, %v4825_v45 }
 0xdbe   : > { %7401 = vmatprep.subr.mxu0 %v8340_v58 }
 0xdc2   : > { %v4520_v51 = vpop.f32.mrb[34].mxu0  ;;  %v4988_v52 = vpop.f32.mrb[26].mxu1 }
 0xdc3   : > { %v4521_v53 = vadd.f32 %v6684_v48, %v4520_v51  ;;  %v4989_v54 = vadd.f32 %v6698_v49, %v4988_v52  ;;  %v7281_v55 = vpop.f32.mrb[35].mxu0  ;;  %v7347_v56 = vpop.f32.mrb[27].mxu1 }
 0xdc4   : > { %v6700_v55 = vld [vmem:[%s10884_s13 + $0x6] ss:$0 sm:$0xff] }
 0xdc5   : > { %7394 = vmatmul.mubr.msk.f32.vlgmr.msra.gmra.mrb[46].mxu0 %vm3016_vm5, %v4521_v53 }
 0xdc6   : > { %7402 = vmatpush3.msra.mxu0 %v4989_v54  ;;  %7403 = vmatprep.mubr.msk.f32.mxu0 %vm8339_vm4, %v8340_v58 }
 0xdc7   : > { %7411 = vmatprep.subr.mxu0 %v8340_v58 }
 0xdca   : > { %v4590_v57 = vpop.f32.mrb[36].mxu0  ;;  %v10648_v59 = vpop.f32.mrb[28].mxu1 }
 0xdcb   : > { %v7292_v60 = vpop.f32.mrb[37].mxu0  ;;  %v7369_v61 = vpop.f32.mrb[29].mxu1  ;;  %v4591_v10 = vadd.f32 %v6685_v6, %v4590_v57 }
 0xdcc   : > { %v5129_v60 = vadd.f32 %v6700_v55, %v10648_v59 }
 0xdd2   : > { %v4754_v63 = vpop.f32.mrb[38].mxu0 }
 0xdd3   : > { %v4755_v1 = vadd.f32 %v6691_v62, %v4754_v63  ;;  %v7314_v21 = vpop.f32.mrb[39].mxu0 }
 0xdd5   : > { %7387 = vmatpush3.xpose.msk.msra.mxu1 %vm3016_vm5, %v4755_v1  ;;  %v6701_v1 = vld [vmem:[%s10884_s13 + $0x7] ss:$0 sm:$0xff] }
 0xdd6   : > { %7396 = vmatprep.subr.mxu1 %v8340_v58 }
 0xdd8   : > { %7389 = vmatmul.mubr.msk.f32.vlgmr.msra.gmra.mrb[32].mxu1 %vm3016_vm5, %v4451_v2 }
 0xdd9   : > { %7398 = vmatprep.mubr.msk.f32.mxu1 %vm8339_vm4, %v8340_v58 }
 0xdda   : > { %v4894_v4 = vpop.f32.mrb[40].mxu0 }
 0xddb   : > { %v4895_v8 = vadd.f32 %v6693_v3, %v4894_v4  ;;  %v7336_v26 = vpop.f32.mrb[41].mxu0 }
 0xddc   : > { %v6663_v26 = vld [vmem:[%s10885_s14 + $0x28] sm:$0xff] }
 0xddd   : > { %7397 = vmatpush3.xpose.msk.msra.mxu1 %vm3016_vm5, %v4895_v8  ;;  %v6662_v8 = vld [vmem:[%s10885_s14 + $0x20] sm:$0xff] }
 0xdde   : > { %7406 = vmatprep.subr.mxu1 %v8340_v58 }
 0xde0   : > { %7399 = vmatmul.mubr.msk.f32.vlgmr.msra.gmra.mrb[34].mxu1 %vm3016_vm5, %v4591_v10  ;;  %v6664_v10 = vld [vmem:[%s10885_s14 + $0x30] sm:$0xff] }
 0xde1   : > { %7408 = vmatprep.mubr.msk.f32.mxu1 %vm8339_vm4, %v8340_v58 }
 0xde2   : > { %v5058_v12 = vpop.f32.mrb[42].mxu0 }
 0xde3   : > { %v5059_v38 = vadd.f32 %v6699_v11, %v5058_v12  ;;  %v7358_v9 = vpop.f32.mrb[43].mxu0 }
 0xde5   : > { %7407 = vmatpush3.msra.mxu1 %v5059_v38 }
 0xde6   : > { %7416 = vmatprep.subr.mxu1 %v8340_v58 }
 0xdea   : > { %v10676_v5 = vpop.f32.mrb[44].mxu0 }
 0xdeb   : > { %v7380_v13 = vpop.f32.mrb[45].mxu0  ;;  %v5199_v3 = vadd.f32 %v6701_v1, %v10676_v5  ;;  %v6665_v5 = vld [vmem:[%s10885_s14 + $0x38] sm:$0xff]  ;;  %v6739_v1 = vld [vmem:[%s10891_s20 + $0xa0] sm:$0xff] }
 0xe8b   : > { %v5274_v14 = vpop.f32.mrb[30].mxu1 }
 0xe8c   : > { %v5506_v15 = vmul.f32 0.35355338, %v5274_v14  ;;  %v7385_v16 = vpop.f32.mrb[31].mxu1 }
 0xe8e   : > { %v5510_v17 = vsel %vm3016_vm5, %v5506_v15, -inf }
 0xe8f   : > { %5511 = vmax.xlane.f32.xlu0 %v5510_v17 }
 0xe98   : > { %v5426_v18 = vpop.f32.mrb[46].mxu0 }
 0xe99   : > { %v5508_v19 = vmul.f32 0.35355338, %v5426_v18  ;;  %v7395_v20 = vpop.f32.mrb[47].mxu0 }
 0xe9b   : > { %v5516_v22 = vsel %vm3016_vm5, %v5508_v19, -inf }
 0xe9c   : > { %5517 = vmax.xlane.f32.xlu0 %v5516_v22 }
 0xeab   : > { %v5350_v23 = vpop.f32.mrb[32].mxu1 }
 0xeac   : > { %v5507_v24 = vmul.f32 0.35355338, %v5350_v23  ;;  %v7390_v25 = vpop.f32.mrb[33].mxu1 }
 0xeae   : > { %v5513_v27 = vsel %vm3016_vm5, %v5507_v24, -inf }
 0xeaf   : > { %5514 = vmax.xlane.f32.xlu1 %v5513_v27 }
 0xeb3   : > { %v5502_v28 = vpop.f32.mrb[34].mxu1 }
 0xeb4   : > { %v5509_v29 = vmul.f32 0.35355338, %v5502_v28  ;;  %v7400_v30 = vpop.f32.mrb[35].mxu1 }
 0xeb6   : > { %v5519_v31 = vsel %vm3016_vm5, %v5509_v29, -inf }
 0xeb7   : > { %5520 = vmax.xlane.f32.xlu1 %v5519_v31 }
 0xf1c   : > { %v5512_v32 = vpop.xlane.xlu0 %5511 }
 0xf1d   : > { %v5522_v33 = vsub.f32 %v5506_v15, %v5512_v32 }
 0xf1f   : > { %v5526_v34 = vmul.f32 1.442695, %v5522_v33 }
 0xf21   : > { %8274 = vpow2.f32 %v5526_v34 }
 0xf29   : > { %v5518_v36 = vpop.xlane.xlu0 %5517 }
 0xf2a   : > { %v5524_v37 = vsub.f32 %v5508_v19, %v5518_v36 }
 0xf2b   : > { %v8275_v39 = vpop.eup %8274 }
 0xf2c   : > { %v5530_v35 = vmul.f32 1.442695, %v5524_v37  ;;  %v5534_v40 = vsel %vm3016_vm5, %v8275_v39, 0.0 }
 0xf2d   : > { %5535 = vadd.xlane.f32.xlu0 %v5534_v40 }
 0xf2e   : > { %8276 = vpow2.f32 %v5530_v35 }
 0xf38   : > { %v8277_v42 = vpop.eup %8276 }
 0xf39   : > { %v5540_v41 = vsel %vm3016_vm5, %v8277_v42, 0.0 }
 0xf3a   : > { %5541 = vadd.xlane.f32.xlu0 %v5540_v41 }
 0xf3c   : > { %v5515_v43 = vpop.xlane.xlu1 %5514 }
 0xf3d   : > { %v5523_v44 = vsub.f32 %v5507_v24, %v5515_v43  ;;  %v6728_v43 = vld [vmem:[%s10889_s18 + $0x20] sm:$0xff] }
 0xf3f   : > { %v5528_v45 = vmul.f32 1.442695, %v5523_v44 }
 0xf41   : > { %8278 = vpow2.f32 %v5528_v45  ;;  %v6730_v45 = vld [vmem:[%s10889_s18 + $0x30] sm:$0xff] }
 0xf44   : > { %v5521_v46 = vpop.xlane.xlu1 %5520 }
 0xf45   : > { %v5525_v47 = vsub.f32 %v5509_v29, %v5521_v46  ;;  %v6731_v46 = vld [vmem:[%s10889_s18 + $0x38] sm:$0xff] }
 0xf47   : > { %v5532_v48 = vmul.f32 1.442695, %v5525_v47  ;;  %v8153_v47 = vpack.c.bf16 %v6731_v46, %v6730_v45  ;;  %v6414_v46 = vld [vmem:[%s10895_s24 + $0x18] sm:$0xff] (!%p6753_p7) }
 0xf49   : > { %8280 = vpow2.f32 %v5532_v48  ;;  %v6735_v48 = vld [vmem:[%s10891_s20 + $0x80] sm:$0xff] }
 0xf4b   : > { %v8279_v49 = vpop.eup %8278 }
 0xf4c   : > { %v5537_v51 = vsel %vm3016_vm5, %v8279_v49, 0.0 }
 0xf4d   : > { %5538 = vadd.xlane.f32.xlu1 %v5537_v51 }
 0xf53   : > { %v8281_v52 = vpop.eup %8280 }
 0xf54   : > { %v5543_v53 = vsel %vm3016_vm5, %v8281_v52, 0.0 }
 0xf55   : > { %5544 = vadd.xlane.f32.xlu1 %v5543_v53 }
 0xfba   : > { %v5536_v54 = vpop.xlane.xlu0 %5535 }
 0xfbb   : > { %8282 = vrcp.f32 %v5536_v54 }
 0xfc5   : > { %v8283_v56 = vpop.eup %8282 }
 0xfc6   : > { %v5550_v57 = vmul.f32 %v8283_v56, %v8275_v39  ;;  %v6726_v56 = vld [vmem:[%s10887_s16 + $0x1] ss:$0 sm:$0xff] }
 0xfc7   : > { %v5542_v61 = vpop.xlane.xlu0 %5541 }
 0xfc8   : > { %8284 = vrcp.f32 %v5542_v61  ;;  %7404 = vmatmul.mubr.msk.f32.vlgmr.msra.gmra.mrb[48].mxu0 %vm3016_vm5, %v5550_v57 }
 0xfc9   : > { %7412 = vmatpush3.msra.mxu0 %v5129_v60  ;;  %7413 = vmatprep.mubr.msk.f32.mxu0 %vm8339_vm4, %v8340_v58  ;;  %v6727_v60 = vld [vmem:[%s10888_s17 + $0x1] ss:$0 sm:$0xff] }
 0xfca   : > { %7421 = vmatprep.subr.mxu0 %v8340_v58 }
 0xfd2   : > { %v8285_v62 = vpop.eup %8284 }
 0xfd3   : > { %v5552_v63 = vmul.f32 %v8285_v62, %v8277_v42 }
 0xfd5   : > { %7414 = vmatmul.mubr.msk.f32.vlgmr.msra.gmra.mrb[50].mxu0 %vm3016_vm5, %v5552_v63  ;;  %v6737_v63 = vld [vmem:[%s10891_s20 + $0x90] sm:$0xff] }
 0xfd6   : > { %7423 = vmatprep.mubr.msk.f32.mxu0 %vm8339_vm4, %v8340_v58  ;;  %7422 = vmatpush3.msra.mxu0 %v6662_v8  ;;  %v6743_v8 = vld [vmem:[%s10891_s20 + $0xc0] sm:$0xff] }
 0xfd7   : > { %7431 = vmatprep.subr.mxu0 %v8340_v58 }
 0xfda   : > { %v5539_v0 = vpop.xlane.xlu1 %5538 }
 0xfdb   : > { %8286 = vrcp.f32 %v5539_v0  ;;  %v6738_v0 = vld [vmem:[%s10891_s20 + $0x98] sm:$0xff] }
 0xfe2   : > { %v5545_v59 = vpop.xlane.xlu1 %5544 }
 0xfe3   : > { %8288 = vrcp.f32 %v5545_v59  ;;  %v8159_v59 = vpack.c.bf16 %v6738_v0, %v6737_v63 }
 0xfe5   : > { %v8287_v21 = vpop.eup %8286 }
 0xfe6   : > { %v5551_v2 = vmul.f32 %v8287_v21, %v8279_v49  ;;  %v6736_v49 = vld [vmem:[%s10891_s20 + $0x88] sm:$0xff] }
 0xfe7   : > { %v8156_v51 = vpack.c.bf16 %v6736_v49, %v6735_v48  ;;  %v6740_v21 = vld [vmem:[%s10891_s20 + $0xa8] sm:$0xff] }
 0xfe8   : > { %7409 = vmatmul.mubr.msk.f32.vlgmr.msra.gmra.mrb[36].mxu1 %vm3016_vm5, %v5551_v2  ;;  %v8162_v2 = vpack.c.bf16 %v6740_v21, %v6739_v1 }
 0xfe9   : > { %7417 = vmatpush3.msra.mxu1 %v5199_v3  ;;  %7418 = vmatprep.mubr.msk.f32.mxu1 %vm8339_vm4, %v8340_v58  ;;  %v6741_v3 = vld [vmem:[%s10891_s20 + $0xb0] sm:$0xff] }
 0xfea   : > { %7426 = vmatprep.subr.mxu1 %v8340_v58 }
 0xfed   : > { %v8289_v4 = vpop.eup %8288 }
 0xfee   : > { %v5553_v6 = vmul.f32 %v8289_v4, %v8281_v52  ;;  %v6742_v4 = vld [vmem:[%s10891_s20 + $0xb8] sm:$0xff] }
 0xff0   : > { %7419 = vmatmul.mubr.msk.f32.vlgmr.msra.gmra.mrb[38].mxu1 %vm3016_vm5, %v5553_v6  ;;  %v8165_v6 = vpack.c.bf16 %v6742_v4, %v6741_v3 }
 0xff1   : > { %7428 = vmatprep.mubr.msk.f32.mxu1 %vm8339_vm4, %v8340_v58  ;;  %7427 = vmatpush3.msra.mxu1 %v6663_v26  ;;  %v6744_v26 = vld [vmem:[%s10891_s20 + $0xc8] sm:$0xff] }
 0xff2   : > { %7436 = vmatprep.subr.mxu1 %v8340_v58 }
0x109b   : > { %v5623_v11 = vpop.f32.mrb[48].mxu0 }
0x109c   : > { %v7405_v12 = vpop.f32.mrb[49].mxu0  ;;  %7424 = vmatmul.mubr.msk.f32.vlgmr.msra.gmra.mrb[52].mxu0 %vm3016_vm5, %v5623_v11  ;;  %v6745_v11 = vld [vmem:[%s10891_s20 + $0xd0] sm:$0xff] }
0x109d   : > { %7432 = vmatpush3.msra.mxu0 %v6664_v10  ;;  %7433 = vmatprep.mubr.msk.f32.mxu0 %vm8339_vm4, %v8340_v58  ;;  %v8168_v10 = vpack.c.bf16 %v6744_v26, %v6743_v8  ;;  %v6746_v12 = vld [vmem:[%s10891_s20 + $0xd8] sm:$0xff] }
0x109e   : > { %8149 = vmatprep.subr.bf16.mxu0 %v8338_v50 }
0x10a8   : > { %v5769_v38 = vpop.f32.mrb[50].mxu0 }
0x10a9   : > { %v7415_v9 = vpop.f32.mrb[51].mxu0  ;;  %7434 = vmatmul.mubr.msk.f32.vlgmr.msra.gmra.mrb[54].mxu0 %vm3016_vm5, %v5769_v38  ;;  %v8171_v38 = vpack.c.bf16 %v6746_v12, %v6745_v11 }
0x10aa   : > { %7449 = vmatprep.mubr.msk.f32.mxu0 %vm8339_vm4, %v8340_v58  ;;  %v6747_v9 = vld [vmem:[%s10891_s20 + $0xe0] sm:$0xff] }
0x10bb   : > { %v5696_v13 = vpop.f32.mrb[36].mxu1 }
0x10bc   : > { %v7410_v14 = vpop.f32.mrb[37].mxu1  ;;  %7429 = vmatmul.mubr.msk.f32.vlgmr.msra.gmra.mrb[40].mxu1 %vm3016_vm5, %v5696_v13 }
0x10bd   : > { %7437 = vmatpush3.msra.mxu1 %v6665_v5  ;;  %7438 = vmatprep.mubr.msk.f32.mxu1 %vm8339_vm4, %v8340_v58  ;;  %v6748_v5 = vld [vmem:[%s10891_s20 + $0xe8] sm:$0xff]  ;;  %v6749_v14 = vld [vmem:[%s10891_s20 + $0xf0] sm:$0xff] }
0x10be   : > { %8155 = vmatprep.subr.bf16.mxu1 %v8338_v50  ;;  %v8174_v13 = vpack.c.bf16 %v6748_v5, %v6747_v9 }
0x10c3   : > { %v5842_v15 = vpop.f32.mrb[38].mxu1 }
0x10c4   : > { %v7420_v16 = vpop.f32.mrb[39].mxu1  ;;  %7439 = vmatmul.mubr.msk.f32.vlgmr.msra.gmra.mrb[42].mxu1 %vm3016_vm5, %v5842_v15  ;;  %v6750_v15 = vld [vmem:[%s10891_s20 + $0xf8] sm:$0xff] }
0x10c5   : > { %7484 = vmatprep.mubr.msk.f32.mxu1 %vm8339_vm4, %v8340_v58  ;;  %v6723_v58 = vld [vmem:[%s10886_s15 + $0x1] ss:$0 sm:$0xff]  ;;  %8157 = vmatpush3.bf16.msra.mxu1 %v8156_v51  ;;  %v8177_v16 = vpack.c.bf16 %v6750_v15, %v6749_v14 }
0x10c6   : > { %8158 = vmatprep.subr.bf16.mxu1 %v8338_v50 }
0x10c9   : > { %8160 = vmatpush3.bf16.msra.mxu1 %v8159_v59 }
0x10ca   : > { %8161 = vmatprep.subr.bf16.mxu1 %v8338_v50 }
0x10cd   : > { %8163 = vmatpush3.bf16.msra.mxu1 %v8162_v2 }
0x10ce   : > { %8164 = vmatprep.subr.bf16.mxu1 %v8338_v50 }
0x10d1   : > { %8166 = vmatpush3.bf16.msra.mxu1 %v8165_v6 }
0x10d2   : > { %8167 = vmatprep.subr.bf16.mxu1 %v8338_v50 }
0x10d5   : > { %8169 = vmatpush3.bf16.msra.mxu1 %v8168_v10 }
0x10d6   : > { %8170 = vmatprep.subr.bf16.mxu1 %v8338_v50 }
0x10d9   : > { %8172 = vmatpush3.bf16.msra.mxu1 %v8171_v38 }
0x10da   : > { %8173 = vmatprep.subr.bf16.mxu1 %v8338_v50 }
0x10dd   : > { %8175 = vmatpush3.bf16.msra.mxu1 %v8174_v13 }
0x10de   : > { %8176 = vmatprep.subr.bf16.mxu1 %v8338_v50 }
0x10e1   : > { %8178 = vmatpush3.bf16.msra.mxu1 %v8177_v16 }
0x116f   : > { %v5915_v17 = vpop.f32.mrb[52].mxu0 }
0x1170   : > { %v7425_v18 = vpop.f32.mrb[53].mxu0  ;;  %v6138_v23 = vsel %vm2072_vm3, %v5915_v17, 0.0  ;;  %v6733_v17 = vld [vmem:[%s10890_s19 + $0x1] ss:$0 sm:$0xff] }
0x117c   : > { %v6061_v19 = vpop.f32.mrb[54].mxu0 }
0x117d   : > { %v7435_v20 = vpop.f32.mrb[55].mxu0  ;;  %v6141_v28 = vsel %vm2072_vm3, %v6061_v19, 0.0 }
0x118f   : > { %v5988_v22 = vpop.f32.mrb[40].mxu1 }
0x1190   : > { %v6139_v24 = vsel %vm2072_vm3, %v5988_v22, 0.0  ;;  %v7430_v25 = vpop.f32.mrb[41].mxu1 }
0x1191   : > { %v6140_v27 = vadd.f32 %v6139_v24, %v6138_v23 }
0x1193   : > { %v6142_v29 = vadd.f32 %v6141_v28, %v6140_v27 }
0x1197   : > { %v6134_v30 = vpop.f32.mrb[42].mxu1 }
0x1198   : > { %v6143_v31 = vsel %vm2072_vm3, %v6134_v30, 0.0  ;;  %v7440_v32 = vpop.f32.mrb[43].mxu1 }
0x1199   : > { %v6144_v33 = vadd.f32 %v6143_v31, %v6142_v29 }
0x119b   : > { %v6145_v34 = vadd.f32 %v6144_v33, %v10392_v7  ;;  %v6729_v7 = vld [vmem:[%s10889_s18 + $0x28] sm:$0xff] }
0x119c   : > { %v8150_v44 = vpack.c.bf16 %v6729_v7, %v6728_v43  ;;  %v6411_v43 = vld [vmem:[%s10895_s24] sm:$0xff] (!%p6753_p7)  ;;  %v6413_v7 = vld [vmem:[%s10895_s24 + $0x10] sm:$0xff] (!%p6753_p7) }
0x119d   : > { %v10744_v36 = vadd.f32 %v6723_v58, %v6145_v34  ;;  %v8183_v48 = vpack.c.bf16 (!%p6753_p7), %v6414_v46, %v6413_v7 }
0x119e   : > { %8151 = vmatpush3.bf16.msra.mxu0 %v8150_v44  ;;  %v8341_v44 = vmov (!%p6753_p7), 0.0|0.0  }
0x119f   : > { %v6159_v37 = vsel %vm2072_vm3, %v10744_v36, 0.0  ;;  %8152 = vmatprep.subr.bf16.mxu0 %v8338_v50  ;;  %v6752_v50 = vld [vmem:[%s10892_s21 + $0x1] ss:$0 sm:$0xff] }
0x11a0   : > { %6160 = vadd.xlane.f32.xlu0 %v6159_v37 }
0x11a2   : > { %8154 = vmatpush3.bf16.msra.mxu0 %v8153_v47  ;;  %v8343_v47 = vmov (!%p6753_p7), 0.0  }
0x11a3   : > { %8179 = vmatprep.subr.bf16.mxu0 (!%p6753_p7), %v8341_v44 }
0x122d   : > { %v6161_v39 = vpop.xlane.xlu0 %6160 }
0x122e   : > { %v6162_v35 = vmul.f32 0.03125, %v6161_v39 }
0x1230   : > { %v6163_v40 = vsub.f32 %v10744_v36, %v6162_v35 }
0x1232   : > { %v6164_v42 = vmul.f32 %v6163_v40, %v6163_v40 }
0x1234   : > { %v6165_v41 = vsel %vm2072_vm3, %v6164_v42, 0.0 }
0x1235   : > { %6166 = vadd.xlane.f32.xlu1 %v6165_v41 }
0x12c2   : > { %v6167_v52 = vpop.xlane.xlu1 %6166 }
0x12c3   : > { %v6168_v53 = vmul.f32 0.03125, %v6167_v52 }
0x12c5   : > { %v6169_v54 = vadd.f32 1e-05, %v6168_v53 }
0x12c7   : > { %8290 = vrsqrt.f32 %v6169_v54  ;;  %v6754_v54 = vld [vmem:[%s10939_s6] ss:$0 sm:$0xff] (!%p6753_p7) }
0x12d1   : > { %v8291_v55 = vpop.eup %8290 }
0x12d2   : > { %v6171_v57 = vmul.f32 %v8291_v55, %v6163_v40 }
0x12d4   : > { %v6178_v61 = vmul.f32 %v6726_v56, %v6171_v57  ;;  %v6755_v56 = vld [vmem:[%s10940_s7] ss:$0 sm:$0xff] (!%p6753_p7) }
0x12d6   : > { %v6185_v62 = vadd.f32 %v6727_v60, %v6178_v61 }
0x12d8   : > { %7450 = vmatmul.mubr.msk.f32.vlgmr.msra.gmra.mrb[56].mxu0 %vm2072_vm3, %v6185_v62 }
0x12d9   : > { %7495 = vmatprep.mubr.msk.f32.mxu0 (!%p6753_p7), %vm8342_vm6, %v8343_v47 }
0x13ab   : > { %v6268_v18 = vpop.f32.mrb[56].mxu0 }
0x13ac   : > { %v6269_v19 = vadd.f32 %v6733_v17, %v6268_v18  ;;  %v7451_v20 = vpop.f32.mrb[57].mxu0 }
0x13ae   : > { %v6273_v22 = vmul.f32 0.044715, %v6269_v19  ;;  %v6272_v29 = vmul.f32 0.5, %v6269_v19 }
0x13b0   : > { %v6274_v23 = vmul.f32 %v6273_v22, %v6269_v19 }
0x13b2   : > { %v6275_v24 = vmul.f32 %v6274_v23, %v6269_v19 }
0x13b4   : > { %v6276_v25 = vadd.f32 %v6275_v24, %v6269_v19 }
0x13b6   : > { %v6277_v27 = vmul.f32 0.7978846, %v6276_v25 }
0x13b8   : > { %8292 = vtanh.f32 %v6277_v27 }
0x13c2   : > { %v8293_v28 = vpop.eup %8292 }
0x13c3   : > { %v6279_v30 = vadd.f32 1.0, %v8293_v28 }
0x13c5   : > { %v6280_v31 = vmul.f32 %v6279_v30, %v6272_v29 }
0x13c7   : > { %7485 = vmatmul.mubr.f32.vlgmr.msra.gmra.mrb[44].mxu1 %v6280_v31 }
0x1499   : > { %6381 = sbr.rel (%p6753_p7) target bundleno = 5805 (0x16ad), region = 128 }
0x149a   : > { %v6372_v32 = vpop.f32.mrb[44].mxu1 }
0x149b   : > { %v6373_v33 = vadd.f32 %v6752_v50, %v6372_v32  ;;  %v7486_v58 = vpop.f32.mrb[45].mxu1 }
0x149d   : > { %v6376_v34 = vadd.f32 %v6373_v33, %v10744_v36  ;;  %v6412_v36 = vld [vmem:[%s10895_s24 + $0x8] sm:$0xff] (!%p6753_p7) }
0x149e   : > { %v8180_v45 = vpack.c.bf16 (!%p6753_p7), %v6412_v36, %v6411_v43 }
0x149f   : > { %6377 = vst.msk [vmem:[#allocation2] sm:$0xff] %vm2072_vm3, %v6376_v34  ;;  %v6384_v37 = vsel (!%p6753_p7), %vm2072_vm3, %v6376_v34, 0.0 }
0x14a0   : > { %6385 = vadd.xlane.f32.xlu0 %v6384_v37  ;;  %8181 = vmatpush3.bf16.msra.mxu0 %v8180_v45 }
0x14a1   : > { %8182 = vmatprep.subr.bf16.mxu0 %v8341_v44 }
0x14a4   : > { %8184 = vmatpush3.bf16.msra.mxu0 %v8183_v48 }
0x152d   : > { %v6386_v39 = vpop.xlane.xlu0 %6385 }
0x152e   : > { %v6387_v35 = vmul.f32 0.03125, %v6386_v39 }
0x1530   : > { %v6388_v40 = vsub.f32 %v6376_v34, %v6387_v35 }
0x1532   : > { %v6389_v42 = vmul.f32 %v6388_v40, %v6388_v40 }
0x1534   : > { %v6390_v41 = vsel %vm2072_vm3, %v6389_v42, 0.0 }
0x1535   : > { %6391 = vadd.xlane.f32.xlu0 %v6390_v41 }
0x15c2   : > { %v6392_v49 = vpop.xlane.xlu0 %6391 }
0x15c3   : > { %v6393_v51 = vmul.f32 0.03125, %v6392_v49 }
0x15c5   : > { %v6394_v52 = vadd.f32 1e-05, %v6393_v51 }
0x15c7   : > { %8294 = vrsqrt.f32 %v6394_v52 }
0x15d1   : > { %v8295_v53 = vpop.eup %8294 }
0x15d2   : > { %v6396_v55 = vmul.f32 %v8295_v53, %v6388_v40 }
0x15d4   : > { %v6403_v57 = vmul.f32 %v6754_v54, %v6396_v55 }
0x15d6   : > { %v6410_v60 = vadd.f32 %v6755_v56, %v6403_v57 }
0x15d8   : > { %7496 = vmatmul.mubr.msk.f32.vlgmr.msra.gmra.mrb[0].mxu0 %vm2072_vm3, %v6410_v60 }
0x16ab   : > { %v6484_v61 = vpop.f32.mrb[0].mxu0 }
0x16ac   : > { %6488 = vst [vmem:[%s8509_s28] sm:$0xff] %v6484_v61  ;;  %v7497_v62 = vpop.f32.mrb[1].mxu0 }
0x16ad PF: > { %s10941_s0 = sld [smem:[#allocation5_spill]]  ;;  %s10942_s29 = sld [smem:[#allocation3_spill]] }
0x16ae   : > { %s10943_s2 = sld [smem:[#allocation4_spill]]  ;;  %s10944_s6 = sld [smem:[#allocation6_spill]] }
0x16af   : > { %s10945_s30 = sld [smem:[#allocation7_spill]] }
0x16b3   : > { %s35_s7 = sadd.s32 1, %s10941_s0  }
0x16b4   : > { %p32_p8 = scmp.ge.s32.totalorder %s35_s7, 6  }
0x16b6   :  { %34 = sbr.rel (!%p32_p8) target bundleno = 14 (0xe), region = 174 }

</bundles_post_ra>
